<compile_context>
chip_gen: v7x
topology: tpu7x:2x2x1
jax: 0.10.0
libtpu: 0.0.40
codegen_flags: <defaults>
</compile_context>

<pallas_src>
import jax
import jax.numpy as jnp
from jax.experimental import pallas as pl
from jax.experimental.pallas import tpu as pltpu

# Module defaults (in_dim = n_heads * dim, as in the real model), small seq/batch.
IN_DIM = 128
DIM = 32
N_HEADS = 4
SEQ = 16
BATCH = 2


# ----------------------------------------------------------------------------
# Shared in-kernel helpers (traced inline).
# ----------------------------------------------------------------------------
def _layer_norm(x, w, b, eps=1e-5):
    mean = jnp.mean(x, axis=-1, keepdims=True)
    var = jnp.mean(jnp.square(x - mean), axis=-1, keepdims=True)
    return (x - mean) * jax.lax.rsqrt(var + eps) * w + b


def _attend_heads(TR, L, H, D, HD, masked2d, bias_for_head, qkv_bf, gate, w_out_ref):
    """Row-wise attention, one head at a time.

    Returns the (TR*L, C) f32 result of (gate * attn_out) @ w_out (bias NOT
    added).  Per-head gating + output projection are accumulated directly so
    the 32-lane head outputs are never concatenated (no XLU relayout) and every
    store stays 128-lane dense.
    # TODO(synk): fold the head loop into one (r*h)-batched lax.dot_general once
    # the extra (TR, L, H, D) transpose/relayout is measured to be cheaper than
    # H separate K=32 matmuls on the target generation.
    """
    C = w_out_ref.shape[1]
    acc = jnp.zeros((TR * L, C), jnp.float32)
    for h in range(H):                                           # H small & static
        qh = qkv_bf[:, h * D:(h + 1) * D].reshape(TR, L, D)      # scale pre-folded
        kh = qkv_bf[:, HD + h * D:HD + (h + 1) * D].reshape(TR, L, D)
        vh = qkv_bf[:, 2 * HD + h * D:2 * HD + (h + 1) * D].reshape(TR, L, D)

        logits = jnp.einsum('rid,rjd->rij', qh, kh,
                            preferred_element_type=jnp.float32)  # (TR, L, L) f32
        logits = logits + bias_for_head(h)[None, :, :]
        logits = jnp.where(masked2d[None, :, :], jnp.float32(-1e-9), logits)

        mx = jnp.max(logits, axis=-1, keepdims=True)
        e = jnp.exp(logits - mx)
        inv_s = pl.reciprocal(jnp.sum(e, axis=-1, keepdims=True), approx=True)
        oh = jnp.einsum('rij,rjd->rid', e.astype(jnp.bfloat16), vh,
                        preferred_element_type=jnp.float32)      # (TR, L, D)
        oh = oh * inv_s                                          # deferred softmax norm

        gh = gate[:, h * D:(h + 1) * D].reshape(TR, L, D)
        go = (gh * oh).reshape(TR * L, D).astype(jnp.bfloat16)
        # per-head output projection: K=D, N=C (lane-dense), accumulate in f32
        acc = acc + jnp.dot(go, w_out_ref[h * D:(h + 1) * D, :],
                            preferred_element_type=jnp.float32)
    return acc


# ----------------------------------------------------------------------------
# Kernel A (single pass): whole (L, L, C) slab per batch element.
# ----------------------------------------------------------------------------
def attn_fused_kernel(m_row_ref, m_col_ref, z_ref, ln_w_ref, ln_b_ref,
                      w_pair_t_ref, w_fused_ref, b_gate_ref, w_out_ref,
                      b_out_ref, o_ref):
    L, C = z_ref.shape[1], z_ref.shape[3]
    H = w_pair_t_ref.shape[0]
    HD = w_out_ref.shape[0]
    D = HD // H

    # mask built once, kept 2-D; masked where m[i] * m[j] == -1
    masked2d = (m_col_ref[0] * m_row_ref[0]) == -1.0             # (L, L) bool

    zn = _layer_norm(z_ref[0], ln_w_ref[0], ln_b_ref[0])         # (L, L, C) f32
    zn2_bf = zn.reshape(L * L, C).astype(jnp.bfloat16)
    proj = jnp.dot(zn2_bf, w_fused_ref[...],                     # [q*sqrt(D)|k|v|gate]
                   preferred_element_type=jnp.float32)
    gate = jax.nn.sigmoid(proj[:, 3 * HD:3 * HD + C] + b_gate_ref[0])
    qkv_bf = proj[:, :3 * HD].astype(jnp.bfloat16)

    def bias_for_head(h):                                        # (L, L) f32
        # N = H (=4) is far too narrow for the MXU; VPU multiply + lane reduce.
        return jnp.sum(zn * w_pair_t_ref[h], axis=-1)

    acc = _attend_heads(L, L, H, D, HD, masked2d, bias_for_head,
                        qkv_bf, gate, w_out_ref)
    o_ref[0] = (acc + b_out_ref[0]).reshape(L, L, C)             # C=128: lane-dense store


# ----------------------------------------------------------------------------
# Kernel B1 (two-pass, pass 1): pair bias, stored in bf16.
#   pb[b, h, i, j] = sum_c LN(z)[b, i, j, c] * w_pair[c, h]
# ----------------------------------------------------------------------------
def pair_bias_kernel(z_ref, ln_w_ref, ln_b_ref, w_pair_t_ref, pb_ref):
    zn = _layer_norm(z_ref[0], ln_w_ref[0], ln_b_ref[0])         # (TR1, L, C)
    H = w_pair_t_ref.shape[0]
    for h in range(H):
        pb_ref[0, h] = jnp.sum(zn * w_pair_t_ref[h], axis=-1).astype(pb_ref.dtype)


# ----------------------------------------------------------------------------
# Kernel B2 (two-pass, pass 2): row-tiled attention consuming the bf16 pb.
# ----------------------------------------------------------------------------
def attn_rowtile_kernel(m_row_ref, m_col_ref, z_ref, pb_ref, ln_w_ref, ln_b_ref,
                        w_fused_ref, b_gate_ref, w_out_ref, b_out_ref, o_ref):
    TR, L, C = z_ref.shape[1], z_ref.shape[2], z_ref.shape[3]
    H = pb_ref.shape[1]
    HD = w_out_ref.shape[0]
    D = HD // H

    masked2d = (m_col_ref[0] * m_row_ref[0]) == -1.0             # (L, L) bool

    zn = _layer_norm(z_ref[0], ln_w_ref[0], ln_b_ref[0])         # (TR, L, C) f32
    zn2_bf = zn.reshape(TR * L, C).astype(jnp.bfloat16)
    proj = jnp.dot(zn2_bf, w_fused_ref[...],
                   preferred_element_type=jnp.float32)
    gate = jax.nn.sigmoid(proj[:, 3 * HD:3 * HD + C] + b_gate_ref[0])
    qkv_bf = proj[:, :3 * HD].astype(jnp.bfloat16)

    def bias_for_head(h):                                        # (L, L) f32
        return pb_ref[0, h].astype(jnp.float32)

    acc = _attend_heads(TR, L, H, D, HD, masked2d, bias_for_head,
                        qkv_bf, gate, w_out_ref)
    o_ref[0] = (acc + b_out_ref[0]).reshape(TR, L, C)


# ----------------------------------------------------------------------------
# Host-side, one-time parameter preparation (weight fusion + scale folding).
# ----------------------------------------------------------------------------
def prepare_params(params, n_heads=N_HEADS, dim=DIM):
    H, D = n_heads, dim
    HD = H * D
    w_qkv = params["w_qkv"]
    wq = w_qkv[:, :HD] * jnp.float32(D ** 0.5)   # fold the reference's `/ scale`
    wk = w_qkv[:, HD:2 * HD]
    wv = w_qkv[:, 2 * HD:3 * HD]
    return {
        "ln_w": params["ln_w"].astype(jnp.float32),
        "ln_b": params["ln_b"].astype(jnp.float32),
        # MXU operands in bf16 (f32 accumulation happens in-kernel)
        "w_fused": jnp.concatenate([wq, wk, wv, params["w_gate"]],
                                   axis=1).astype(jnp.bfloat16),
        "w_pair_t": params["w_pair"].T.astype(jnp.float32),      # (H, C): VPU reduce
        "b_gate": params["b_gate"].astype(jnp.float32),
        "w_out": params["w_out"].astype(jnp.bfloat16),
        "b_out": params["b_out"].astype(jnp.float32),
    }


# ----------------------------------------------------------------------------
# Planning: generation-aware VMEM budget + adaptive row tile.
# ----------------------------------------------------------------------------
def _vmem_budget_bytes():
    """~75% of this generation's physical VMEM (64 MiB v7x, 128 MiB v5e/v6e)."""
    try:
        cap = getattr(pltpu.get_tpu_info(), "vmem_capacity_bytes", None)
        if cap:
            return int(cap) * 3 // 4
    except Exception:
        pass
    return 48 * 1024 * 1024          # conservative fallback (fits every gen)


def _attn_step_bytes(TR, L, C, H, HD, two_pass):
    """Rough per-grid-step VMEM footprint of the attention kernel."""
    f32, bf16 = 4, 2
    rows = TR * L
    b = 4 * rows * C * f32                      # z in + out, double-buffered
    if two_pass:
        b += 2 * H * L * L * bf16               # resident bf16 pb block (x2 buffers)
    b += C * (3 * HD + C) * bf16 + HD * C * bf16 + 8 * C * f32   # weights / biases
    b += rows * C * f32 + rows * C * bf16       # zn (f32 + bf16)
    b += rows * (3 * HD + C) * f32              # fused projection
    b += rows * C * f32                         # gate
    b += rows * 3 * HD * bf16                   # qkv (bf16)
    b += 2 * TR * L * L * f32                   # logits + e of the live head
    b += rows * C * f32                         # output-projection accumulator
    return b


def _pick_row_tile(L, C, H, HD, budget):
    cands, t = [], L
    while t >= 8:
        if L % t == 0 and (t % 8 == 0 or t == L):
            cands.append(t)
        t //= 2
    if not cands:
        cands = [L]
    for t in cands:                             # largest tile that fits the budget
        if _attn_step_bytes(t, L, C, H, HD, True) <= 0.55 * budget:
            return t
    # TODO(synk): very large L needs key/j-dim tiling with online softmax here.
    return cands[-1]


# ----------------------------------------------------------------------------
# Wrapper.
# ----------------------------------------------------------------------------
def triangle_attention(z, src_mask, fp, *, n_heads=N_HEADS, dim=DIM,
                       row_tile=None, single_pass=None):
    """TriangleAttention forward (wise='row').  `fp` = prepare_params(params)."""
    B, L, L2, C = z.shape
    assert L == L2
    H, D = n_heads, dim
    HD = H * D
    assert HD == C, "gate * out requires n_heads * dim == in_dim"

    budget = _vmem_budget_bytes()
    if single_pass is None:
        # Fused single pass when a whole (L, L, C) slab fits the budget and the
        # (B,) grid still has >= 2 parallel steps (keeps both v7x TCs busy).
        single_pass = (B >= 2 and
                       _attn_step_bytes(L, L, C, H, HD, False) <= 0.55 * budget)

    # glue for the module's in-place `src_mask[src_mask == 0] = -1`
    m = jnp.where(src_mask == 0, -1.0, src_mask.astype(jnp.float32))   # (B, L)
    m_row = m[:, None, :]                        # (B, 1, L)
    m_col = m[:, :, None]                        # (B, L, 1)

    out_shape = jax.ShapeDtypeStruct((B, L, L, C), jnp.float32)

    if single_pass:
        rep = lambda shape: pl.BlockSpec(shape, lambda b: (0,) * len(shape))
        return pl.pallas_call(
            attn_fused_kernel,
            out_shape=out_shape,
            grid=(B,),
            in_specs=[
                pl.BlockSpec((1, 1, L), lambda b: (b, 0, 0)),          # m_row
                pl.BlockSpec((1, L, 1), lambda b: (b, 0, 0)),          # m_col
                pl.BlockSpec((1, L, L, C), lambda b: (b, 0, 0, 0)),    # z slab
                rep((1, C)), rep((1, C)),                              # ln_w, ln_b
                rep((H, C)),                                           # w_pair^T
                rep((C, 3 * HD + C)),                                  # fused weights
                rep((1, C)),                                           # b_gate
                rep((HD, C)),                                          # w_out
                rep((1, C)),                                           # b_out
            ],
            out_specs=pl.BlockSpec((1, L, L, C), lambda b: (b, 0, 0, 0)),
            compiler_params=pltpu.CompilerParams(
                dimension_semantics=("parallel",),
                vmem_limit_bytes=budget),
        )(m_row, m_col, z, fp["ln_w"], fp["ln_b"], fp["w_pair_t"],
          fp["w_fused"], fp["b_gate"], fp["w_out"], fp["b_out"])

    # ---------------------- two-pass, row-tiled path -------------------------
    if row_tile is None:
        row_tile = _pick_row_tile(L, C, H, HD, budget)
    TR = row_tile
    assert L % TR == 0 and (TR % 8 == 0 or TR == L)
    R = L // TR

    # pass-1 row tile: keep the bf16 pb store sublane-aligned (multiple of 16),
    # otherwise fall back to the full row extent.
    TR1 = L
    for cand in (128, 64, 32, 16):
        if L % cand == 0:
            TR1 = cand
            break
    R1 = L // TR1

    rep2 = lambda shape: pl.BlockSpec(shape, lambda b, r: (0,) * len(shape))

    # pass 1: pair bias (B, H, L, L) in bf16 (needs ALL rows i, so it cannot
    # live inside the row-tiled attention pass).
    pb = pl.pallas_call(
        pair_bias_kernel,
        out_shape=jax.ShapeDtypeStruct((B, H, L, L), jnp.bfloat16),
        grid=(B, R1),
        in_specs=[
            pl.BlockSpec((1, TR1, L, C), lambda b, r: (b, r, 0, 0)),   # z row tile
            rep2((1, C)), rep2((1, C)), rep2((H, C)),
        ],
        out_specs=pl.BlockSpec((1, H, TR1, L), lambda b, r: (b, 0, r, 0)),
        compiler_params=pltpu.CompilerParams(
            dimension_semantics=("parallel", "parallel"),
            vmem_limit_bytes=budget),
    )(z, fp["ln_w"], fp["ln_b"], fp["w_pair_t"])

    # pass 2: row-tiled attention (pb block stays resident across r for each b).
    return pl.pallas_call(
        attn_rowtile_kernel,
        out_shape=out_shape,
        grid=(B, R),
        in_specs=[
            pl.BlockSpec((1, 1, L), lambda b, r: (b, 0, 0)),           # m_row
            pl.BlockSpec((1, L, 1), lambda b, r: (b, 0, 0)),           # m_col
            pl.BlockSpec((1, TR, L, C), lambda b, r: (b, r, 0, 0)),    # z row tile
            pl.BlockSpec((1, H, L, L), lambda b, r: (b, 0, 0, 0)),     # pb (bf16)
            rep2((1, C)), rep2((1, C)),                                # ln_w, ln_b
            rep2((C, 3 * HD + C)),                                     # fused weights
            rep2((1, C)),                                              # b_gate
            rep2((HD, C)),                                             # w_out
            rep2((1, C)),                                              # b_out
        ],
        out_specs=pl.BlockSpec((1, TR, L, C), lambda b, r: (b, r, 0, 0)),
        compiler_params=pltpu.CompilerParams(
            dimension_semantics=("parallel", "parallel"),
            vmem_limit_bytes=budget),
    )(m_row, m_col, z, pb, fp["ln_w"], fp["ln_b"], fp["w_fused"],
      fp["b_gate"], fp["w_out"], fp["b_out"])


# ----------------------------------------------------------------------------
# Pure-JAX reference mirroring the PyTorch forward (wise='row'), original params.
# ----------------------------------------------------------------------------
def triangle_attention_reference(z, src_mask, params, n_heads=N_HEADS, dim=DIM):
    H, D = n_heads, dim
    B, L = z.shape[0], z.shape[1]
    m = jnp.where(src_mask == 0, -1.0, src_mask.astype(jnp.float32))
    attn_mask = m[:, :, None] * m[:, None, :]

    mean = jnp.mean(z, axis=-1, keepdims=True)
    var = jnp.mean(jnp.square(z - mean), axis=-1, keepdims=True)
    zn = (z - mean) / jnp.sqrt(var + 1e-5) * params["ln_w"][0] + params["ln_b"][0]

    gate = jax.nn.sigmoid(zn @ params["w_gate"] + params["b_gate"][0])
    bpair = zn @ params["w_pair"]                    # (B, I, J, H)
    qkv = zn @ params["w_qkv"]
    q, k, v = jnp.split(qkv, 3, axis=-1)
    rs = lambda x: x.reshape(B, L, L, H, D)
    q, k, v = rs(q), rs(k), rs(v)

    scale = D ** (-0.5)
    logits = jnp.einsum('brihd,brjhd->brijh', q, k) / scale + bpair[:, None]
    mask5 = attn_mask[:, None, :, :, None]
    logits = jnp.where(mask5 == -1, jnp.float32(-1e-9), logits)
    attn = jax.nn.softmax(logits, axis=3)
    out = jnp.einsum('brijh,brjhd->brihd', attn, v)
    out = out.reshape(B, L, L, H * D)
    out = gate * out
    return out @ params["w_out"] + params["b_out"][0]


if __name__ == "__main__":
    key = jax.random.PRNGKey(0)
    ks = jax.random.split(key, 10)

    params = {
        "ln_w":   1.0 + 0.1 * jax.random.normal(ks[8], (1, IN_DIM), jnp.float32),
        "ln_b":   0.1 * jax.random.normal(ks[9], (1, IN_DIM), jnp.float32),
        "w_qkv":  0.05 * jax.random.normal(ks[0], (IN_DIM, 3 * N_HEADS * DIM), jnp.float32),
        "w_pair": 0.1 * jax.random.normal(ks[1], (IN_DIM, N_HEADS), jnp.float32),
        "w_gate": 0.1 * jax.random.normal(ks[2], (IN_DIM, IN_DIM), jnp.float32),
        "b_gate": 0.1 * jax.random.normal(ks[3], (1, IN_DIM), jnp.float32),
        "w_out":  0.1 * jax.random.normal(ks[4], (N_HEADS * DIM, IN_DIM), jnp.float32),
        "b_out":  0.1 * jax.random.normal(ks[5], (1, IN_DIM), jnp.float32),
    }

    z = jax.random.normal(ks[6], (BATCH, SEQ, SEQ, IN_DIM), jnp.float32)
    src_mask = (jax.random.uniform(ks[7], (BATCH, SEQ)) > 0.3).astype(jnp.float32)

    fp = prepare_params(params)
    ref = triangle_attention_reference(z, src_mask, params)

    # adaptive path (small L -> fused single pass, grid (B,))
    out_fused = jax.block_until_ready(triangle_attention(z, src_mask, fp))
    # also exercise the two-pass row-tiled path (grid (B, L//8))
    out_tiled = jax.block_until_ready(
        triangle_attention(z, src_mask, fp, row_tile=8, single_pass=False))

    assert out_fused.shape == (BATCH, SEQ, SEQ, IN_DIM)
    assert out_tiled.shape == (BATCH, SEQ, SEQ, IN_DIM)

    err_fused = float(jnp.max(jnp.abs(out_fused - ref)))
    err_tiled = float(jnp.max(jnp.abs(out_tiled - ref)))
    # bf16 MXU operands (f32 accumulation) -> looser tolerance than pure f32
    assert jnp.allclose(out_fused, ref, atol=5e-2, rtol=5e-2), err_fused
    assert jnp.allclose(out_tiled, ref, atol=5e-2, rtol=5e-2), err_tiled

    print("KERNEL_OK")
</pallas_src>

<mosaic_0001>
module attributes {stable_mosaic.version = 11 : i64} {
  func.func @attn_fused_kernel(%arg0: i32, %arg1: memref<1x1x16xf32, #tpu.memory_space<vmem>>, %arg2: memref<1x16x1xf32, #tpu.memory_space<vmem>>, %arg3: memref<1x16x16x128xf32, #tpu.memory_space<vmem>>, %arg4: memref<1x128xf32, #tpu.memory_space<vmem>>, %arg5: memref<1x128xf32, #tpu.memory_space<vmem>>, %arg6: memref<4x128xf32, #tpu.memory_space<vmem>>, %arg7: memref<128x512xbf16, #tpu.memory_space<vmem>>, %arg8: memref<1x128xf32, #tpu.memory_space<vmem>>, %arg9: memref<128x128xbf16, #tpu.memory_space<vmem>>, %arg10: memref<1x128xf32, #tpu.memory_space<vmem>>, %arg11: memref<1x16x16x128xf32, #tpu.memory_space<vmem>>) attributes {dimension_semantics = [#tpu.dimension_semantics<parallel>], iteration_bounds = array<i64: 2>, scalar_prefetch = 0 : i64, scratch_operands = 0 : i64, tpu.core_type = #tpu.core_type<tc>, window_params = [{transform_indices = @transform_0, window_bounds = array<i64: 1, 1, 16>}, {transform_indices = @transform_1, window_bounds = array<i64: 1, 16, 1>}, {transform_indices = @transform_2, window_bounds = array<i64: 1, 16, 16, 128>}, {pipeline_mode = #tpu.pipeline_mode<synchronous>, transform_indices = @transform_3, window_bounds = array<i64: 1, 128>}, {pipeline_mode = #tpu.pipeline_mode<synchronous>, transform_indices = @transform_4, window_bounds = array<i64: 1, 128>}, {pipeline_mode = #tpu.pipeline_mode<synchronous>, transform_indices = @transform_5, window_bounds = array<i64: 4, 128>}, {pipeline_mode = #tpu.pipeline_mode<synchronous>, transform_indices = @transform_6, window_bounds = array<i64: 128, 512>}, {pipeline_mode = #tpu.pipeline_mode<synchronous>, transform_indices = @transform_7, window_bounds = array<i64: 1, 128>}, {pipeline_mode = #tpu.pipeline_mode<synchronous>, transform_indices = @transform_8, window_bounds = array<i64: 128, 128>}, {pipeline_mode = #tpu.pipeline_mode<synchronous>, transform_indices = @transform_9, window_bounds = array<i64: 1, 128>}, {transform_indices = @transform_10, window_bounds = array<i64: 1, 16, 16, 128>}]} {
    %c0 = arith.constant 0 : index
    %c0_0 = arith.constant 0 : index
    %c0_1 = arith.constant 0 : index
    %0 = vector.load %arg2[%c0, %c0_0, %c0_1] : memref<1x16x1xf32, #tpu.memory_space<vmem>>, vector<1x16x1xf32>
    %1 = vector.shape_cast %0 : vector<1x16x1xf32> to vector<16x1xf32>
    %c0_2 = arith.constant 0 : index
    %c0_3 = arith.constant 0 : index
    %c0_4 = arith.constant 0 : index
    %2 = vector.load %arg1[%c0_2, %c0_3, %c0_4] : memref<1x1x16xf32, #tpu.memory_space<vmem>>, vector<1x1x16xf32>
    %3 = vector.shape_cast %2 : vector<1x1x16xf32> to vector<1x16xf32>
    %4 = vector.broadcast %1 : vector<16x1xf32> to vector<16x16xf32>
    %5 = vector.broadcast %3 : vector<1x16xf32> to vector<16x16xf32>
    %6 = arith.mulf %4, %5 : vector<16x16xf32>
    %cst = arith.constant -1.000000e+00 : f32
    %7 = vector.broadcast %cst : f32 to vector<16x16xf32>
    %8 = arith.cmpf oeq, %6, %7 : vector<16x16xf32>
    %c0_5 = arith.constant 0 : index
    %c0_6 = arith.constant 0 : index
    %c0_7 = arith.constant 0 : index
    %c0_8 = arith.constant 0 : index
    %9 = vector.load %arg3[%c0_5, %c0_6, %c0_7, %c0_8] : memref<1x16x16x128xf32, #tpu.memory_space<vmem>>, vector<1x16x16x128xf32>
    %10 = vector.shape_cast %9 : vector<1x16x16x128xf32> to vector<16x16x128xf32>
    %c0_9 = arith.constant 0 : index
    %c0_10 = arith.constant 0 : index
    %11 = vector.load %arg4[%c0_9, %c0_10] : memref<1x128xf32, #tpu.memory_space<vmem>>, vector<1x128xf32>
    %12 = vector.shape_cast %11 : vector<1x128xf32> to vector<128xf32>
    %c0_11 = arith.constant 0 : index
    %c0_12 = arith.constant 0 : index
    %13 = vector.load %arg5[%c0_11, %c0_12] : memref<1x128xf32, #tpu.memory_space<vmem>>, vector<1x128xf32>
    %14 = vector.shape_cast %13 : vector<1x128xf32> to vector<128xf32>
    %cst_13 = arith.constant dense<0.000000e+00> : vector<16x16xf32>
    %15 = vector.multi_reduction <add>, %10, %cst_13 [2] : vector<16x16x128xf32> to vector<16x16xf32>
    %16 = vector.shape_cast %15 : vector<16x16xf32> to vector<16x16x1xf32>
    %cst_14 = arith.constant 1.280000e+02 : f32
    %17 = vector.broadcast %cst_14 : f32 to vector<16x16x1xf32>
    %18 = arith.divf %16, %17 : vector<16x16x1xf32>
    %19 = vector.broadcast %18 : vector<16x16x1xf32> to vector<16x16x128xf32>
    %20 = arith.subf %10, %19 : vector<16x16x128xf32>
    %21 = arith.mulf %20, %20 : vector<16x16x128xf32>
    %cst_15 = arith.constant dense<0.000000e+00> : vector<16x16xf32>
    %22 = vector.multi_reduction <add>, %21, %cst_15 [2] : vector<16x16x128xf32> to vector<16x16xf32>
    %23 = vector.shape_cast %22 : vector<16x16xf32> to vector<16x16x1xf32>
    %cst_16 = arith.constant 1.280000e+02 : f32
    %24 = vector.broadcast %cst_16 : f32 to vector<16x16x1xf32>
    %25 = arith.divf %23, %24 : vector<16x16x1xf32>
    %26 = vector.broadcast %18 : vector<16x16x1xf32> to vector<16x16x128xf32>
    %27 = arith.subf %10, %26 : vector<16x16x128xf32>
    %cst_17 = arith.constant 9.99999974E-6 : f32
    %28 = vector.broadcast %cst_17 : f32 to vector<16x16x1xf32>
    %29 = arith.addf %25, %28 : vector<16x16x1xf32>
    %30 = math.rsqrt %29 : vector<16x16x1xf32>
    %31 = vector.broadcast %30 : vector<16x16x1xf32> to vector<16x16x128xf32>
    %32 = arith.mulf %27, %31 : vector<16x16x128xf32>
    %33 = vector.shape_cast %12 : vector<128xf32> to vector<1x1x128xf32>
    %34 = vector.broadcast %33 : vector<1x1x128xf32> to vector<16x16x128xf32>
    %35 = arith.mulf %32, %34 : vector<16x16x128xf32>
    %36 = vector.shape_cast %14 : vector<128xf32> to vector<1x1x128xf32>
    %37 = vector.broadcast %36 : vector<1x1x128xf32> to vector<16x16x128xf32>
    %38 = arith.addf %35, %37 : vector<16x16x128xf32>
    %39 = vector.shape_cast %38 : vector<16x16x128xf32> to vector<256x128xf32>
    %40 = arith.truncf %39 : vector<256x128xf32> to vector<256x128xbf16>
    %c0_18 = arith.constant 0 : index
    %c0_19 = arith.constant 0 : index
    %41 = vector.load %arg7[%c0_18, %c0_19] : memref<128x512xbf16, #tpu.memory_space<vmem>>, vector<128x512xbf16>
    %cst_20 = arith.constant dense<0.000000e+00> : vector<256x512xf32>
    %42 = tpu.matmul %40, %41, %cst_20 {dimension_numbers = #tpu.dot_dimension_numbers<[1], [0], [0], [1], [0, 0, 1, 1], [], []>} : vector<256x128xbf16>, vector<128x512xbf16>, vector<256x512xf32> -> vector<256x512xf32>
    %43 = vector.extract_strided_slice %42 {offsets = [0, 384], sizes = [256, 128], strides = [1, 1]} : vector<256x512xf32> to vector<256x128xf32>
    %c0_21 = arith.constant 0 : index
    %c0_22 = arith.constant 0 : index
    %44 = vector.load %arg8[%c0_21, %c0_22] : memref<1x128xf32, #tpu.memory_space<vmem>>, vector<1x128xf32>
    %45 = vector.shape_cast %44 : vector<1x128xf32> to vector<128xf32>
    %46 = vector.shape_cast %45 : vector<128xf32> to vector<1x128xf32>
    %47 = vector.broadcast %46 : vector<1x128xf32> to vector<256x128xf32>
    %48 = arith.addf %43, %47 : vector<256x128xf32>
    %49 = arith.negf %48 : vector<256x128xf32>
    %50 = math.exp %49 : vector<256x128xf32>
    %cst_23 = arith.constant 1.000000e+00 : f32
    %51 = vector.broadcast %cst_23 : f32 to vector<256x128xf32>
    %52 = arith.addf %51, %50 : vector<256x128xf32>
    %53 = arith.divf %51, %52 : vector<256x128xf32>
    %54 = vector.extract_strided_slice %42 {offsets = [0, 0], sizes = [256, 384], strides = [1, 1]} : vector<256x512xf32> to vector<256x384xf32>
    %55 = arith.truncf %54 : vector<256x384xf32> to vector<256x384xbf16>
    %cst_24 = arith.constant 0.000000e+00 : f32
    %56 = vector.broadcast %cst_24 : f32 to vector<256x128xf32>
    %57 = vector.extract_strided_slice %55 {offsets = [0, 0], sizes = [256, 32], strides = [1, 1]} : vector<256x384xbf16> to vector<256x32xbf16>
    %58 = vector.shape_cast %57 : vector<256x32xbf16> to vector<16x16x32xbf16>
    %59 = vector.extract_strided_slice %55 {offsets = [0, 128], sizes = [256, 32], strides = [1, 1]} : vector<256x384xbf16> to vector<256x32xbf16>
    %60 = vector.shape_cast %59 : vector<256x32xbf16> to vector<16x16x32xbf16>
    %61 = vector.extract_strided_slice %55 {offsets = [0, 256], sizes = [256, 32], strides = [1, 1]} : vector<256x384xbf16> to vector<256x32xbf16>
    %62 = vector.shape_cast %61 : vector<256x32xbf16> to vector<16x16x32xbf16>
    "tpu.trace_start"() <{level = 10 : i32, message = "rid,rjd->rij"}> : () -> ()
    %cst_25 = arith.constant dense<0.000000e+00> : vector<16x16x16xf32>
    %63 = tpu.matmul %58, %60, %cst_25 {dimension_numbers = #tpu.dot_dimension_numbers<[2], [2], [1], [1], [0, 0, 0, 1, 1, 1], [0], [0]>} : vector<16x16x32xbf16>, vector<16x16x32xbf16>, vector<16x16x16xf32> -> vector<16x16x16xf32>
    "tpu.trace_stop"() : () -> ()
    %c0_26 = arith.constant 0 : index
    %c0_27 = arith.constant 0 : index
    %64 = vector.load %arg6[%c0_26, %c0_27] : memref<4x128xf32, #tpu.memory_space<vmem>>, vector<1x128xf32>
    %65 = vector.shape_cast %64 : vector<1x128xf32> to vector<128xf32>
    %66 = vector.shape_cast %65 : vector<128xf32> to vector<1x1x128xf32>
    %67 = vector.broadcast %66 : vector<1x1x128xf32> to vector<16x16x128xf32>
    %68 = arith.mulf %38, %67 : vector<16x16x128xf32>
    %cst_28 = arith.constant dense<0.000000e+00> : vector<16x16xf32>
    %69 = vector.multi_reduction <add>, %68, %cst_28 [2] : vector<16x16x128xf32> to vector<16x16xf32>
    %70 = vector.shape_cast %69 : vector<16x16xf32> to vector<1x16x16xf32>
    %71 = vector.broadcast %70 : vector<1x16x16xf32> to vector<16x16x16xf32>
    %72 = arith.addf %63, %71 : vector<16x16x16xf32>
    %73 = vector.shape_cast %8 : vector<16x16xi1> to vector<1x16x16xi1>
    %cst_29 = arith.constant -9.99999971E-10 : f32
    %74 = vector.shape_cast %73 : vector<1x16x16xi1> to vector<1x16x16xi1>
    %75 = vector.broadcast %74 : vector<1x16x16xi1> to vector<16x16x16xi1>
    %76 = vector.broadcast %cst_29 : f32 to vector<16x16x16xf32>
    %77 = arith.select %75, %76, %72 : vector<16x16x16xi1>, vector<16x16x16xf32>
    %cst_30 = arith.constant dense<0xFF800000> : vector<16x16xf32>
    %78 = vector.multi_reduction <maximumf>, %77, %cst_30 [2] : vector<16x16x16xf32> to vector<16x16xf32>
    %79 = vector.shape_cast %78 : vector<16x16xf32> to vector<16x16x1xf32>
    %80 = vector.broadcast %79 : vector<16x16x1xf32> to vector<16x16x16xf32>
    %81 = arith.subf %77, %80 : vector<16x16x16xf32>
    %82 = math.exp %81 : vector<16x16x16xf32>
    %cst_31 = arith.constant dense<0.000000e+00> : vector<16x16xf32>
    %83 = vector.multi_reduction <add>, %82, %cst_31 [2] : vector<16x16x16xf32> to vector<16x16xf32>
    %84 = vector.shape_cast %83 : vector<16x16xf32> to vector<16x16x1xf32>
    %85 = tpu.reciprocal %84 {approx = true} : vector<16x16x1xf32> -> vector<16x16x1xf32>
    %86 = arith.truncf %82 : vector<16x16x16xf32> to vector<16x16x16xbf16>
    "tpu.trace_start"() <{level = 10 : i32, message = "rij,rjd->rid"}> : () -> ()
    %cst_32 = arith.constant dense<0.000000e+00> : vector<16x16x32xf32>
    %87 = tpu.matmul %86, %62, %cst_32 {dimension_numbers = #tpu.dot_dimension_numbers<[2], [1], [1], [2], [0, 0, 0, 1, 1, 2], [0], [0]>} : vector<16x16x16xbf16>, vector<16x16x32xbf16>, vector<16x16x32xf32> -> vector<16x16x32xf32>
    "tpu.trace_stop"() : () -> ()
    %88 = vector.broadcast %85 : vector<16x16x1xf32> to vector<16x16x32xf32>
    %89 = arith.mulf %87, %88 : vector<16x16x32xf32>
    %90 = vector.extract_strided_slice %53 {offsets = [0, 0], sizes = [256, 32], strides = [1, 1]} : vector<256x128xf32> to vector<256x32xf32>
    %91 = vector.shape_cast %90 : vector<256x32xf32> to vector<16x16x32xf32>
    %92 = arith.mulf %91, %89 : vector<16x16x32xf32>
    %93 = vector.shape_cast %92 : vector<16x16x32xf32> to vector<256x32xf32>
    %94 = arith.truncf %93 : vector<256x32xf32> to vector<256x32xbf16>
    %c0_33 = arith.constant 0 : index
    %c0_34 = arith.constant 0 : index
    %95 = vector.load %arg9[%c0_33, %c0_34] : memref<128x128xbf16, #tpu.memory_space<vmem>>, vector<32x128xbf16>
    %cst_35 = arith.constant dense<0.000000e+00> : vector<256x128xf32>
    %96 = tpu.matmul %94, %95, %cst_35 {dimension_numbers = #tpu.dot_dimension_numbers<[1], [0], [0], [1], [0, 0, 1, 1], [], []>} : vector<256x32xbf16>, vector<32x128xbf16>, vector<256x128xf32> -> vector<256x128xf32>
    %97 = arith.addf %56, %96 : vector<256x128xf32>
    %98 = vector.extract_strided_slice %55 {offsets = [0, 32], sizes = [256, 32], strides = [1, 1]} : vector<256x384xbf16> to vector<256x32xbf16>
    %99 = vector.shape_cast %98 : vector<256x32xbf16> to vector<16x16x32xbf16>
    %100 = vector.extract_strided_slice %55 {offsets = [0, 160], sizes = [256, 32], strides = [1, 1]} : vector<256x384xbf16> to vector<256x32xbf16>
    %101 = vector.shape_cast %100 : vector<256x32xbf16> to vector<16x16x32xbf16>
    %102 = vector.extract_strided_slice %55 {offsets = [0, 288], sizes = [256, 32], strides = [1, 1]} : vector<256x384xbf16> to vector<256x32xbf16>
    %103 = vector.shape_cast %102 : vector<256x32xbf16> to vector<16x16x32xbf16>
    "tpu.trace_start"() <{level = 10 : i32, message = "rid,rjd->rij"}> : () -> ()
    %cst_36 = arith.constant dense<0.000000e+00> : vector<16x16x16xf32>
    %104 = tpu.matmul %99, %101, %cst_36 {dimension_numbers = #tpu.dot_dimension_numbers<[2], [2], [1], [1], [0, 0, 0, 1, 1, 1], [0], [0]>} : vector<16x16x32xbf16>, vector<16x16x32xbf16>, vector<16x16x16xf32> -> vector<16x16x16xf32>
    "tpu.trace_stop"() : () -> ()
    %c1 = arith.constant 1 : index
    %c0_37 = arith.constant 0 : index
    %105 = vector.load %arg6[%c1, %c0_37] : memref<4x128xf32, #tpu.memory_space<vmem>>, vector<1x128xf32>
    %106 = vector.shape_cast %105 : vector<1x128xf32> to vector<128xf32>
    %107 = vector.shape_cast %106 : vector<128xf32> to vector<1x1x128xf32>
    %108 = vector.broadcast %107 : vector<1x1x128xf32> to vector<16x16x128xf32>
    %109 = arith.mulf %38, %108 : vector<16x16x128xf32>
    %cst_38 = arith.constant dense<0.000000e+00> : vector<16x16xf32>
    %110 = vector.multi_reduction <add>, %109, %cst_38 [2] : vector<16x16x128xf32> to vector<16x16xf32>
    %111 = vector.shape_cast %110 : vector<16x16xf32> to vector<1x16x16xf32>
    %112 = vector.broadcast %111 : vector<1x16x16xf32> to vector<16x16x16xf32>
    %113 = arith.addf %104, %112 : vector<16x16x16xf32>
    %114 = vector.shape_cast %8 : vector<16x16xi1> to vector<1x16x16xi1>
    %cst_39 = arith.constant -9.99999971E-10 : f32
    %115 = vector.shape_cast %114 : vector<1x16x16xi1> to vector<1x16x16xi1>
    %116 = vector.broadcast %115 : vector<1x16x16xi1> to vector<16x16x16xi1>
    %117 = vector.broadcast %cst_39 : f32 to vector<16x16x16xf32>
    %118 = arith.select %116, %117, %113 : vector<16x16x16xi1>, vector<16x16x16xf32>
    %cst_40 = arith.constant dense<0xFF800000> : vector<16x16xf32>
    %119 = vector.multi_reduction <maximumf>, %118, %cst_40 [2] : vector<16x16x16xf32> to vector<16x16xf32>
    %120 = vector.shape_cast %119 : vector<16x16xf32> to vector<16x16x1xf32>
    %121 = vector.broadcast %120 : vector<16x16x1xf32> to vector<16x16x16xf32>
    %122 = arith.subf %118, %121 : vector<16x16x16xf32>
    %123 = math.exp %122 : vector<16x16x16xf32>
    %cst_41 = arith.constant dense<0.000000e+00> : vector<16x16xf32>
    %124 = vector.multi_reduction <add>, %123, %cst_41 [2] : vector<16x16x16xf32> to vector<16x16xf32>
    %125 = vector.shape_cast %124 : vector<16x16xf32> to vector<16x16x1xf32>
    %126 = tpu.reciprocal %125 {approx = true} : vector<16x16x1xf32> -> vector<16x16x1xf32>
    %127 = arith.truncf %123 : vector<16x16x16xf32> to vector<16x16x16xbf16>
    "tpu.trace_start"() <{level = 10 : i32, message = "rij,rjd->rid"}> : () -> ()
    %cst_42 = arith.constant dense<0.000000e+00> : vector<16x16x32xf32>
    %128 = tpu.matmul %127, %103, %cst_42 {dimension_numbers = #tpu.dot_dimension_numbers<[2], [1], [1], [2], [0, 0, 0, 1, 1, 2], [0], [0]>} : vector<16x16x16xbf16>, vector<16x16x32xbf16>, vector<16x16x32xf32> -> vector<16x16x32xf32>
    "tpu.trace_stop"() : () -> ()
    %129 = vector.broadcast %126 : vector<16x16x1xf32> to vector<16x16x32xf32>
    %130 = arith.mulf %128, %129 : vector<16x16x32xf32>
    %131 = vector.extract_strided_slice %53 {offsets = [0, 32], sizes = [256, 32], strides = [1, 1]} : vector<256x128xf32> to vector<256x32xf32>
    %132 = vector.shape_cast %131 : vector<256x32xf32> to vector<16x16x32xf32>
    %133 = arith.mulf %132, %130 : vector<16x16x32xf32>
    %134 = vector.shape_cast %133 : vector<16x16x32xf32> to vector<256x32xf32>
    %135 = arith.truncf %134 : vector<256x32xf32> to vector<256x32xbf16>
    %c32 = arith.constant 32 : index
    %c0_43 = arith.constant 0 : index
    %136 = vector.load %arg9[%c32, %c0_43] : memref<128x128xbf16, #tpu.memory_space<vmem>>, vector<32x128xbf16>
    %cst_44 = arith.constant dense<0.000000e+00> : vector<256x128xf32>
    %137 = tpu.matmul %135, %136, %cst_44 {dimension_numbers = #tpu.dot_dimension_numbers<[1], [0], [0], [1], [0, 0, 1, 1], [], []>} : vector<256x32xbf16>, vector<32x128xbf16>, vector<256x128xf32> -> vector<256x128xf32>
    %138 = arith.addf %97, %137 : vector<256x128xf32>
    %139 = vector.extract_strided_slice %55 {offsets = [0, 64], sizes = [256, 32], strides = [1, 1]} : vector<256x384xbf16> to vector<256x32xbf16>
    %140 = vector.shape_cast %139 : vector<256x32xbf16> to vector<16x16x32xbf16>
    %141 = vector.extract_strided_slice %55 {offsets = [0, 192], sizes = [256, 32], strides = [1, 1]} : vector<256x384xbf16> to vector<256x32xbf16>
    %142 = vector.shape_cast %141 : vector<256x32xbf16> to vector<16x16x32xbf16>
    %143 = vector.extract_strided_slice %55 {offsets = [0, 320], sizes = [256, 32], strides = [1, 1]} : vector<256x384xbf16> to vector<256x32xbf16>
    %144 = vector.shape_cast %143 : vector<256x32xbf16> to vector<16x16x32xbf16>
    "tpu.trace_start"() <{level = 10 : i32, message = "rid,rjd->rij"}> : () -> ()
    %cst_45 = arith.constant dense<0.000000e+00> : vector<16x16x16xf32>
    %145 = tpu.matmul %140, %142, %cst_45 {dimension_numbers = #tpu.dot_dimension_numbers<[2], [2], [1], [1], [0, 0, 0, 1, 1, 1], [0], [0]>} : vector<16x16x32xbf16>, vector<16x16x32xbf16>, vector<16x16x16xf32> -> vector<16x16x16xf32>
    "tpu.trace_stop"() : () -> ()
    %c2 = arith.constant 2 : index
    %c0_46 = arith.constant 0 : index
    %146 = vector.load %arg6[%c2, %c0_46] : memref<4x128xf32, #tpu.memory_space<vmem>>, vector<1x128xf32>
    %147 = vector.shape_cast %146 : vector<1x128xf32> to vector<128xf32>
    %148 = vector.shape_cast %147 : vector<128xf32> to vector<1x1x128xf32>
    %149 = vector.broadcast %148 : vector<1x1x128xf32> to vector<16x16x128xf32>
    %150 = arith.mulf %38, %149 : vector<16x16x128xf32>
    %cst_47 = arith.constant dense<0.000000e+00> : vector<16x16xf32>
    %151 = vector.multi_reduction <add>, %150, %cst_47 [2] : vector<16x16x128xf32> to vector<16x16xf32>
    %152 = vector.shape_cast %151 : vector<16x16xf32> to vector<1x16x16xf32>
    %153 = vector.broadcast %152 : vector<1x16x16xf32> to vector<16x16x16xf32>
    %154 = arith.addf %145, %153 : vector<16x16x16xf32>
    %155 = vector.shape_cast %8 : vector<16x16xi1> to vector<1x16x16xi1>
    %cst_48 = arith.constant -9.99999971E-10 : f32
    %156 = vector.shape_cast %155 : vector<1x16x16xi1> to vector<1x16x16xi1>
    %157 = vector.broadcast %156 : vector<1x16x16xi1> to vector<16x16x16xi1>
    %158 = vector.broadcast %cst_48 : f32 to vector<16x16x16xf32>
    %159 = arith.select %157, %158, %154 : vector<16x16x16xi1>, vector<16x16x16xf32>
    %cst_49 = arith.constant dense<0xFF800000> : vector<16x16xf32>
    %160 = vector.multi_reduction <maximumf>, %159, %cst_49 [2] : vector<16x16x16xf32> to vector<16x16xf32>
    %161 = vector.shape_cast %160 : vector<16x16xf32> to vector<16x16x1xf32>
    %162 = vector.broadcast %161 : vector<16x16x1xf32> to vector<16x16x16xf32>
    %163 = arith.subf %159, %162 : vector<16x16x16xf32>
    %164 = math.exp %163 : vector<16x16x16xf32>
    %cst_50 = arith.constant dense<0.000000e+00> : vector<16x16xf32>
    %165 = vector.multi_reduction <add>, %164, %cst_50 [2] : vector<16x16x16xf32> to vector<16x16xf32>
    %166 = vector.shape_cast %165 : vector<16x16xf32> to vector<16x16x1xf32>
    %167 = tpu.reciprocal %166 {approx = true} : vector<16x16x1xf32> -> vector<16x16x1xf32>
    %168 = arith.truncf %164 : vector<16x16x16xf32> to vector<16x16x16xbf16>
    "tpu.trace_start"() <{level = 10 : i32, message = "rij,rjd->rid"}> : () -> ()
    %cst_51 = arith.constant dense<0.000000e+00> : vector<16x16x32xf32>
    %169 = tpu.matmul %168, %144, %cst_51 {dimension_numbers = #tpu.dot_dimension_numbers<[2], [1], [1], [2], [0, 0, 0, 1, 1, 2], [0], [0]>} : vector<16x16x16xbf16>, vector<16x16x32xbf16>, vector<16x16x32xf32> -> vector<16x16x32xf32>
    "tpu.trace_stop"() : () -> ()
    %170 = vector.broadcast %167 : vector<16x16x1xf32> to vector<16x16x32xf32>
    %171 = arith.mulf %169, %170 : vector<16x16x32xf32>
    %172 = vector.extract_strided_slice %53 {offsets = [0, 64], sizes = [256, 32], strides = [1, 1]} : vector<256x128xf32> to vector<256x32xf32>
    %173 = vector.shape_cast %172 : vector<256x32xf32> to vector<16x16x32xf32>
    %174 = arith.mulf %173, %171 : vector<16x16x32xf32>
    %175 = vector.shape_cast %174 : vector<16x16x32xf32> to vector<256x32xf32>
    %176 = arith.truncf %175 : vector<256x32xf32> to vector<256x32xbf16>
    %c64 = arith.constant 64 : index
    %c0_52 = arith.constant 0 : index
    %177 = vector.load %arg9[%c64, %c0_52] : memref<128x128xbf16, #tpu.memory_space<vmem>>, vector<32x128xbf16>
    %cst_53 = arith.constant dense<0.000000e+00> : vector<256x128xf32>
    %178 = tpu.matmul %176, %177, %cst_53 {dimension_numbers = #tpu.dot_dimension_numbers<[1], [0], [0], [1], [0, 0, 1, 1], [], []>} : vector<256x32xbf16>, vector<32x128xbf16>, vector<256x128xf32> -> vector<256x128xf32>
    %179 = arith.addf %138, %178 : vector<256x128xf32>
    %180 = vector.extract_strided_slice %55 {offsets = [0, 96], sizes = [256, 32], strides = [1, 1]} : vector<256x384xbf16> to vector<256x32xbf16>
    %181 = vector.shape_cast %180 : vector<256x32xbf16> to vector<16x16x32xbf16>
    %182 = vector.extract_strided_slice %55 {offsets = [0, 224], sizes = [256, 32], strides = [1, 1]} : vector<256x384xbf16> to vector<256x32xbf16>
    %183 = vector.shape_cast %182 : vector<256x32xbf16> to vector<16x16x32xbf16>
    %184 = vector.extract_strided_slice %55 {offsets = [0, 352], sizes = [256, 32], strides = [1, 1]} : vector<256x384xbf16> to vector<256x32xbf16>
    %185 = vector.shape_cast %184 : vector<256x32xbf16> to vector<16x16x32xbf16>
    "tpu.trace_start"() <{level = 10 : i32, message = "rid,rjd->rij"}> : () -> ()
    %cst_54 = arith.constant dense<0.000000e+00> : vector<16x16x16xf32>
    %186 = tpu.matmul %181, %183, %cst_54 {dimension_numbers = #tpu.dot_dimension_numbers<[2], [2], [1], [1], [0, 0, 0, 1, 1, 1], [0], [0]>} : vector<16x16x32xbf16>, vector<16x16x32xbf16>, vector<16x16x16xf32> -> vector<16x16x16xf32>
    "tpu.trace_stop"() : () -> ()
    %c3 = arith.constant 3 : index
    %c0_55 = arith.constant 0 : index
    %187 = vector.load %arg6[%c3, %c0_55] : memref<4x128xf32, #tpu.memory_space<vmem>>, vector<1x128xf32>
    %188 = vector.shape_cast %187 : vector<1x128xf32> to vector<128xf32>
    %189 = vector.shape_cast %188 : vector<128xf32> to vector<1x1x128xf32>
    %190 = vector.broadcast %189 : vector<1x1x128xf32> to vector<16x16x128xf32>
    %191 = arith.mulf %38, %190 : vector<16x16x128xf32>
    %cst_56 = arith.constant dense<0.000000e+00> : vector<16x16xf32>
    %192 = vector.multi_reduction <add>, %191, %cst_56 [2] : vector<16x16x128xf32> to vector<16x16xf32>
    %193 = vector.shape_cast %192 : vector<16x16xf32> to vector<1x16x16xf32>
    %194 = vector.broadcast %193 : vector<1x16x16xf32> to vector<16x16x16xf32>
    %195 = arith.addf %186, %194 : vector<16x16x16xf32>
    %196 = vector.shape_cast %8 : vector<16x16xi1> to vector<1x16x16xi1>
    %cst_57 = arith.constant -9.99999971E-10 : f32
    %197 = vector.shape_cast %196 : vector<1x16x16xi1> to vector<1x16x16xi1>
    %198 = vector.broadcast %197 : vector<1x16x16xi1> to vector<16x16x16xi1>
    %199 = vector.broadcast %cst_57 : f32 to vector<16x16x16xf32>
    %200 = arith.select %198, %199, %195 : vector<16x16x16xi1>, vector<16x16x16xf32>
    %cst_58 = arith.constant dense<0xFF800000> : vector<16x16xf32>
    %201 = vector.multi_reduction <maximumf>, %200, %cst_58 [2] : vector<16x16x16xf32> to vector<16x16xf32>
    %202 = vector.shape_cast %201 : vector<16x16xf32> to vector<16x16x1xf32>
    %203 = vector.broadcast %202 : vector<16x16x1xf32> to vector<16x16x16xf32>
    %204 = arith.subf %200, %203 : vector<16x16x16xf32>
    %205 = math.exp %204 : vector<16x16x16xf32>
    %cst_59 = arith.constant dense<0.000000e+00> : vector<16x16xf32>
    %206 = vector.multi_reduction <add>, %205, %cst_59 [2] : vector<16x16x16xf32> to vector<16x16xf32>
    %207 = vector.shape_cast %206 : vector<16x16xf32> to vector<16x16x1xf32>
    %208 = tpu.reciprocal %207 {approx = true} : vector<16x16x1xf32> -> vector<16x16x1xf32>
    %209 = arith.truncf %205 : vector<16x16x16xf32> to vector<16x16x16xbf16>
    "tpu.trace_start"() <{level = 10 : i32, message = "rij,rjd->rid"}> : () -> ()
    %cst_60 = arith.constant dense<0.000000e+00> : vector<16x16x32xf32>
    %210 = tpu.matmul %209, %185, %cst_60 {dimension_numbers = #tpu.dot_dimension_numbers<[2], [1], [1], [2], [0, 0, 0, 1, 1, 2], [0], [0]>} : vector<16x16x16xbf16>, vector<16x16x32xbf16>, vector<16x16x32xf32> -> vector<16x16x32xf32>
    "tpu.trace_stop"() : () -> ()
    %211 = vector.broadcast %208 : vector<16x16x1xf32> to vector<16x16x32xf32>
    %212 = arith.mulf %210, %211 : vector<16x16x32xf32>
    %213 = vector.extract_strided_slice %53 {offsets = [0, 96], sizes = [256, 32], strides = [1, 1]} : vector<256x128xf32> to vector<256x32xf32>
    %214 = vector.shape_cast %213 : vector<256x32xf32> to vector<16x16x32xf32>
    %215 = arith.mulf %214, %212 : vector<16x16x32xf32>
    %216 = vector.shape_cast %215 : vector<16x16x32xf32> to vector<256x32xf32>
    %217 = arith.truncf %216 : vector<256x32xf32> to vector<256x32xbf16>
    %c96 = arith.constant 96 : index
    %c0_61 = arith.constant 0 : index
    %218 = vector.load %arg9[%c96, %c0_61] : memref<128x128xbf16, #tpu.memory_space<vmem>>, vector<32x128xbf16>
    %cst_62 = arith.constant dense<0.000000e+00> : vector<256x128xf32>
    %219 = tpu.matmul %217, %218, %cst_62 {dimension_numbers = #tpu.dot_dimension_numbers<[1], [0], [0], [1], [0, 0, 1, 1], [], []>} : vector<256x32xbf16>, vector<32x128xbf16>, vector<256x128xf32> -> vector<256x128xf32>
    %220 = arith.addf %179, %219 : vector<256x128xf32>
    %c0_63 = arith.constant 0 : index
    %c0_64 = arith.constant 0 : index
    %221 = vector.load %arg10[%c0_63, %c0_64] : memref<1x128xf32, #tpu.memory_space<vmem>>, vector<1x128xf32>
    %222 = vector.shape_cast %221 : vector<1x128xf32> to vector<128xf32>
    %223 = vector.shape_cast %222 : vector<128xf32> to vector<1x128xf32>
    %224 = vector.broadcast %223 : vector<1x128xf32> to vector<256x128xf32>
    %225 = arith.addf %220, %224 : vector<256x128xf32>
    %226 = vector.shape_cast %225 : vector<256x128xf32> to vector<16x16x128xf32>
    %c0_65 = arith.constant 0 : index
    %c0_66 = arith.constant 0 : index
    %c0_67 = arith.constant 0 : index
    %c0_68 = arith.constant 0 : index
    %227 = vector.load %arg11[%c0_65, %c0_66, %c0_67, %c0_68] : memref<1x16x16x128xf32, #tpu.memory_space<vmem>>, vector<1x16x16x128xf32>
    %228 = vector.shape_cast %227 : vector<1x16x16x128xf32> to vector<16x16x128xf32>
    %229 = vector.shape_cast %226 : vector<16x16x128xf32> to vector<1x16x16x128xf32>
    tpu.vector_store %arg11[%c0_65, %c0_66, %c0_67, %c0_68], %229 {strides = array<i32>} : memref<1x16x16x128xf32, #tpu.memory_space<vmem>>, vector<1x16x16x128xf32>,
    return
  }
  func.func @transform_0(%arg0: i32) -> (i32, i32, i32) {
    %c0_i32 = arith.constant 0 : i32
    %c0_i32_0 = arith.constant 0 : i32
    %c0_i32_1 = arith.constant 0 : i32
    return %arg0, %c0_i32, %c0_i32_0 : i32, i32, i32
  }
  func.func @transform_1(%arg0: i32) -> (i32, i32, i32) {
    %c0_i32 = arith.constant 0 : i32
    %c0_i32_0 = arith.constant 0 : i32
    %c0_i32_1 = arith.constant 0 : i32
    return %arg0, %c0_i32, %c0_i32_0 : i32, i32, i32
  }
  func.func @transform_2(%arg0: i32) -> (i32, i32, i32, i32) {
    %c0_i32 = arith.constant 0 : i32
    %c0_i32_0 = arith.constant 0 : i32
    %c0_i32_1 = arith.constant 0 : i32
    %c0_i32_2 = arith.constant 0 : i32
    return %arg0, %c0_i32, %c0_i32_0, %c0_i32_1 : i32, i32, i32, i32
  }
  func.func @transform_3(%arg0: i32) -> (i32, i32) {
    %c0_i32 = arith.constant 0 : i32
    %c0_i32_0 = arith.constant 0 : i32
    %c0_i32_1 = arith.constant 0 : i32
    return %c0_i32, %c0_i32_0 : i32, i32
  }
  func.func @transform_4(%arg0: i32) -> (i32, i32) {
    %c0_i32 = arith.constant 0 : i32
    %c0_i32_0 = arith.constant 0 : i32
    %c0_i32_1 = arith.constant 0 : i32
    return %c0_i32, %c0_i32_0 : i32, i32
  }
  func.func @transform_5(%arg0: i32) -> (i32, i32) {
    %c0_i32 = arith.constant 0 : i32
    %c0_i32_0 = arith.constant 0 : i32
    %c0_i32_1 = arith.constant 0 : i32
    return %c0_i32, %c0_i32_0 : i32, i32
  }
  func.func @transform_6(%arg0: i32) -> (i32, i32) {
    %c0_i32 = arith.constant 0 : i32
    %c0_i32_0 = arith.constant 0 : i32
    %c0_i32_1 = arith.constant 0 : i32
    return %c0_i32, %c0_i32_0 : i32, i32
  }
  func.func @transform_7(%arg0: i32) -> (i32, i32) {
    %c0_i32 = arith.constant 0 : i32
    %c0_i32_0 = arith.constant 0 : i32
    %c0_i32_1 = arith.constant 0 : i32
    return %c0_i32, %c0_i32_0 : i32, i32
  }
  func.func @transform_8(%arg0: i32) -> (i32, i32) {
    %c0_i32 = arith.constant 0 : i32
    %c0_i32_0 = arith.constant 0 : i32
    %c0_i32_1 = arith.constant 0 : i32
    return %c0_i32, %c0_i32_0 : i32, i32
  }
  func.func @transform_9(%arg0: i32) -> (i32, i32) {
    %c0_i32 = arith.constant 0 : i32
    %c0_i32_0 = arith.constant 0 : i32
    %c0_i32_1 = arith.constant 0 : i32
    return %c0_i32, %c0_i32_0 : i32, i32
  }
  func.func @transform_10(%arg0: i32) -> (i32, i32, i32, i32) {
    %c0_i32 = arith.constant 0 : i32
    %c0_i32_0 = arith.constant 0 : i32
    %c0_i32_1 = arith.constant 0 : i32
    %c0_i32_2 = arith.constant 0 : i32
    return %arg0, %c0_i32, %c0_i32_0, %c0_i32_1 : i32, i32, i32, i32
  }
}

</mosaic_0001>

<bundles_post_ra>
// kernel: tpu_custom_call.1
= control target key start
LH: loop header
LB: loop body
LE: loop exit
PB: predicated region body
PF: predicated region fallthrough
CT: control target
= control target key end

     0   :  { %s21749_s0 = inlined_call_operand.hbm [shape: f32[2,1,16], index: 0, kind: input, shape index: {}]   ;;  %s21750_s1 = inlined_call_operand.vmem [shape: f32[2,16,1], index: 1, kind: input, shape index: {}]   ;;  %s21751_s2 = inlined_call_operand.hbm [shape: f32[2,16,16,128], index: 2, kind: input, shape index: {}]   ;;  %s21752_s3 = inlined_call_operand.hbm [shape: f32[1,128], index: 3, kind: input, shape index: {}]   ;;  %s21753_s4 = inlined_call_operand.hbm [shape: f32[1,128], index: 4, kind: input, shape index: {}]   ;;  %s21754_s5 = inlined_call_operand.hbm [shape: f32[4,128], index: 5, kind: input, shape index: {}]   ;;  %s21755_s6 = inlined_call_operand.hbm [shape: bf16[128,512], index: 6, kind: input, shape index: {}]   ;;  %s21756_s7 = inlined_call_operand.hbm [shape: f32[1,128], index: 7, kind: input, shape index: {}]   ;;  %s21757_s8 = inlined_call_operand.vmem [shape: bf16[128,128], index: 8, kind: input, shape index: {}]   ;;  %s21758_s9 = inlined_call_operand.vmem [shape: f32[1,128], index: 9, kind: input, shape index: {}]   ;;  %s21759_s10 = inlined_call_operand.hbm [shape: f32[2,16,16,128], index: 10, kind: output, shape index: {}]  }
   0x1   :  { %22014 = sst [smem:[#allocation262_spill]] %s21749_s0 }
   0x2   :  { %22015 = sst [smem:[#allocation263_spill]] %s21752_s3 }
   0x3   :  { %22016 = sst [smem:[#allocation264_spill]] %s21753_s4 }
   0x4   :  { %22017 = sst [smem:[#allocation265_spill]] %s21754_s5 }
   0x5   :  { %22018 = sst [smem:[#allocation266_spill]] %s21758_s9 }
   0x6   :  { %22019 = sst [smem:[#allocation267_spill]] %s21759_s10 }
   0x7   :  { %15 = vsyncpa [#allocation3], 0 }
   0x8   :  { %17 = vsyncpa [#allocation3 + $0x1], 0 }
   0x9   :  { %18 = vsyncpa [#allocation6], 0 }
   0xa   :  { %20 = vsyncpa [#allocation6 + $0x1], 0 }
   0xb   :  { %21 = vsyncpa [#allocation9], 0 }
   0xc   :  { %22 = vsyncpa [#allocation12], 0 }
   0xd   :  { %23 = vsyncpa [#allocation4], 0 }
   0xe   :  { %25 = vsyncpa [#allocation4 + $0x1], 0  ;;  %s15664_s13 = smov 0   ;;  %s15666_s14 = smov 0  }
   0xf   :  { %s15668_s15 = smov 0   ;;  %s15670_s16 = smov 0  }
  0x10 LB: > { %s15589_s17 = smov [#allocation7]   ;;  %s15685_s19 = sadd.s32 4294967295, %s15587_s16   ;;  %s15587_s16 = sphi %s15670_s16, %s22922_s16   ;;  %s15583_s15 = sphi %s15668_s15, %s22921_s15   ;;  %s15579_s14 = sphi %s15666_s14, %s22920_s14   ;;  %s15575_s13 = sphi %s15664_s13, %s22919_s13  }
  0x11   : > { %s300_s18 = sshll.u32 %s15589_s17, 4  ;;  %p12775_p0 = scmp.ge.s32.totalorder %s15587_s16, 1  ;;  %s15690_s18 = int_to_ptr.vmem [resolvable:$true] %s300_s18 }
  0x12   : > { %p21761_p1 = scmp.eq.s32.totalorder %s15685_s19, 0  ;;  %p287_p2 = scmp.lt.s32.totalorder %s15587_s16, 3 }
  0x13   : > { %s15590_s21 = smov [#allocation8]   ;;  %s15591_s23 = smov [#allocation11]  }
  0x14   : > { %p15692_p3 = pnand %p12775_p0, %p287_p2  ;;  %s311_s22 = sshll.u32 %s15590_s21, 4  ;;  %s15699_s22 = int_to_ptr.vmem [resolvable:$true] %s311_s22 }
  0x15   : > { %s332_s24 = sshll.u32 %s15591_s23, 4  ;;  %s22022_s3 = sld [smem:[#allocation263_spill]]  ;;  %s15707_s24 = int_to_ptr.vmem [resolvable:$true] %s332_s24 }
  0x16   : > { %s22020_s20 = scalar_select %p15692_p3, 1, 0 }
  0x17   : > { %p14455_p5 = pneg %p15692_p3 }
  0x19   : > { %p15703_p6 = pnand %p14455_p5, %p21761_p1 }
  0x1b   : > { %s15305_s28 = scalar_lea.hbm %s22022_s3, 16  ;;  %p15717_p8 = pneg %p15703_p6 }
  0x1c   : > { %p15306_p7 = scmp.ne.s32.totalorder %s22022_s3, %s15305_s28  ;;  %p15312_p11 = scmp.lt.u32.totalorder %s15305_s28, %s22022_s3 }
  0x1e   : > { %p15308_p9 = pnand %p15717_p8, %p15306_p7 }
  0x20   : > { %p15309_p10 = pneg %p15308_p9 }
  0x22   : > { %p15314_p12 = pnand %p15312_p11, %p15309_p10 }
  0x24   : > { %15317 = shalt.err (!%p15314_p12)
}
  0x25   : > { %s15318_s21 = scalar_lea.vmem %s15690_s18, 16  ;;  %s15325_s23 = scalar_lea.vmem %s15690_s18, 32 }
  0x26   : > { %p15319_p13 = scmp.ne.s32.totalorder %s15690_s18, %s15318_s21  ;;  %p15326_p5 = scmp.lt.s32.totalorder %s15690_s18, %s15690_s18 }
  0x27   : > { %p15327_p7 = scmp.lt.s32.totalorder %s15325_s23, %s15318_s21 }
  0x28   : > { %p15321_p0 = pnand %p15319_p13, %p15717_p8 }
  0x29   : > { %p15328_p9 = por %p15327_p7, %p15326_p5 }
  0x2a   : > { %p15322_p2 = pneg %p15321_p0 }
  0x2c   : > { %p15329_p4 = pnand %p15328_p9, %p15322_p2 }
  0x2e   : > { %15332 = shalt.err (!%p15329_p4)
}
  0x2f   : > { %14458 = dma.hbm_to_vmem [thread:$0]  (!%p15703_p6), %s22022_s3, 16, %s15690_s18, [#allocation6]  }
  0x30   : > { %s22024_s4 = sld [smem:[#allocation264_spill]] }
  0x36   : > { %s15333_s30 = scalar_lea.hbm %s22024_s4, 16 }
  0x37   : > { %p15334_p10 = scmp.ne.s32.totalorder %s22024_s4, %s15333_s30  ;;  %p15340_p4 = scmp.lt.u32.totalorder %s15333_s30, %s22024_s4 }
  0x39   : > { %p15336_p11 = pnand %p15334_p10, %p15717_p8 }
  0x3b   : > { %p15337_p12 = pneg %p15336_p11 }
  0x3d   : > { %p15342_p13 = pnand %p15340_p4, %p15337_p12 }
  0x3f   : > { %15345 = shalt.err (!%p15342_p13)
}
  0x40   : > { %s15346_s18 = scalar_lea.vmem %s15699_s22, 16  ;;  %s15353_s26 = scalar_lea.vmem %s15699_s22, 32 }
  0x41   : > { %p15347_p0 = scmp.ne.s32.totalorder %s15699_s22, %s15346_s18  ;;  %p15354_p7 = scmp.lt.s32.totalorder %s15699_s22, %s15699_s22 }
  0x42   : > { %p15355_p9 = scmp.lt.s32.totalorder %s15353_s26, %s15346_s18 }
  0x43   : > { %p15349_p2 = pnand %p15347_p0, %p15717_p8 }
  0x44   : > { %p15356_p10 = por %p15355_p9, %p15354_p7 }
  0x45   : > { %p15350_p5 = pneg %p15349_p2 }
  0x47   : > { %p15357_p11 = pnand %p15356_p10, %p15350_p5 }
  0x49   : > { %15360 = shalt.err (!%p15357_p11)
}
  0x4a   : > { %14461 = dma.hbm_to_vmem [thread:$0]  (!%p15703_p6), %s22024_s4, 16, %s15699_s22, [#allocation9]  }
  0x4b   : > { %s15361_s12 = scalar_lea.hbm %s21755_s6, 4096 }
  0x4c   : > { %p15362_p12 = scmp.ne.s32.totalorder %s21755_s6, %s15361_s12  ;;  %p15368_p0 = scmp.lt.u32.totalorder %s15361_s12, %s21755_s6 }
  0x4e   : > { %p15364_p4 = pnand %p15362_p12, %p15717_p8 }
  0x50   : > { %p15365_p13 = pneg %p15364_p4 }
  0x52   : > { %p15370_p2 = pnand %p15368_p0, %p15365_p13 }
  0x54   : > { %15373 = shalt.err (!%p15370_p2)
}
  0x55   : > { %s15374_s22 = scalar_lea.vmem %s15707_s24, 4096  ;;  %p15382_p10 = scmp.lt.s32.totalorder %s15707_s24, %s15707_s24 }
  0x56   : > { %p15375_p5 = scmp.ne.s32.totalorder %s15707_s24, %s15374_s22  ;;  %p15383_p11 = scmp.lt.s32.totalorder %s15374_s22, %s15374_s22 }
  0x58   : > { %p15377_p7 = pnand %p15375_p5, %p15717_p8  ;;  %p15384_p12 = por %p15383_p11, %p15382_p10 }
  0x5a   : > { %p15378_p9 = pneg %p15377_p7 }
  0x5c   : > { %p15385_p4 = pnand %p15384_p12, %p15378_p9 }
  0x5e   : > { %15388 = shalt.err (!%p15385_p4)
}
  0x5f   : > { %s15592_s26 = smov 256   ;;  %s15593_s27 = smov 16  }
  0x60   : > { %14467 = dma.hbm_to_vmem [thread:$0]  (!%p15703_p6), %s21755_s6, 4096, %s15707_s24, [#allocation12], %s15592_s26, %s15592_s26, %s15593_s27  }
  0x61   : > { %s15594_s30 = smov [#allocation10]   ;;  %s15595_s17 = smov [#allocation13]  }
  0x62   : > { %s322_s12 = sshll.u32 %s15594_s30, 4  ;;  %s346_s21 = sshll.u32 %s15595_s17, 4  ;;  %s323_s12 = int_to_ptr.vmem [resolvable:$true] %s322_s12  ;;  %s347_s21 = int_to_ptr.vmem [resolvable:$true] %s346_s21 }
  0x63   : > { %s22025_s5 = sld [smem:[#allocation265_spill]] }
  0x69   : > { %s15389_s22 = scalar_lea.hbm %s22025_s5, 64 }
  0x6a   : > { %p15390_p13 = scmp.ne.s32.totalorder %s22025_s5, %s15389_s22  ;;  %p15396_p5 = scmp.lt.u32.totalorder %s15389_s22, %s22025_s5 }
  0x6c   : > { %p15392_p0 = pnand %p15390_p13, %p15717_p8 }
  0x6e   : > { %p15393_p2 = pneg %p15392_p0 }
  0x70   : > { %p15398_p7 = pnand %p15396_p5, %p15393_p2 }
  0x72   : > { %15401 = shalt.err (!%p15398_p7)
}
  0x73   : > { %s15402_s24 = scalar_lea.vmem %s323_s12, 64  ;;  %p15410_p12 = scmp.lt.s32.totalorder %s323_s12, %s323_s12 }
  0x74   : > { %p15403_p9 = scmp.ne.s32.totalorder %s323_s12, %s15402_s24  ;;  %p15411_p4 = scmp.lt.s32.totalorder %s15402_s24, %s15402_s24 }
  0x76   : > { %p15405_p10 = pnand %p15403_p9, %p15717_p8  ;;  %p15412_p1 = por %p15411_p4, %p15410_p12 }
  0x78   : > { %p15406_p11 = pneg %p15405_p10 }
  0x7a   : > { %p15413_p3 = pnand %p15412_p1, %p15406_p11 }
  0x7c   : > { %15416 = shalt.err (!%p15413_p3)
}
  0x7d   : > { %14464 = dma.hbm_to_vmem [thread:$0]  (!%p15703_p6), %s22025_s5, 64, %s323_s12, [#allocation9]  }
  0x7e   : > { %s15417_s26 = scalar_lea.hbm %s21756_s7, 16 }
  0x7f   : > { %p15418_p13 = scmp.ne.s32.totalorder %s21756_s7, %s15417_s26  ;;  %p15424_p3 = scmp.lt.u32.totalorder %s15417_s26, %s21756_s7 }
  0x81   : > { %p15420_p0 = pnand %p15418_p13, %p15717_p8 }
  0x83   : > { %p15421_p1 = pneg %p15420_p0 }
  0x85   : > { %p15426_p2 = pnand %p15424_p3, %p15421_p1 }
  0x87   : > { %15429 = shalt.err (!%p15426_p2)
}
  0x88   : > { %s15430_s17 = scalar_lea.vmem %s347_s21, 16  ;;  %s15437_s12 = scalar_lea.vmem %s347_s21, 32 }
  0x89   : > { %p15431_p5 = scmp.ne.s32.totalorder %s347_s21, %s15430_s17  ;;  %p15438_p10 = scmp.lt.s32.totalorder %s347_s21, %s347_s21 }
  0x8a   : > { %p15439_p11 = scmp.lt.s32.totalorder %s15437_s12, %s15430_s17 }
  0x8b   : > { %p15433_p7 = pnand %p15431_p5, %p15717_p8 }
  0x8c   : > { %p15440_p12 = por %p15439_p11, %p15438_p10 }
  0x8d   : > { %p15434_p9 = pneg %p15433_p7 }
  0x8f   : > { %p15441_p4 = pnand %p15440_p12, %p15434_p9 }
  0x91   : > { %15444 = shalt.err (!%p15441_p4)
}
  0x92   : > { %14470 = dma.hbm_to_vmem [thread:$0]  (!%p15703_p6), %s21756_s7, 16, %s347_s21, [#allocation12]  }
  0x93   : > { %s12774_s11 = sadd.s32 4294967294, %s15587_s16   ;;  %s15824_s25 = sadd.s32 1, %s15587_s16  }
  0x94   : > { %s38_s22 = sadd.s32 1, %s15583_s15  ;;  %s35_s24 = ssub.s32 %s15587_s16, %s15824_s25 }
  0x95   : > { %p45_p8 = scmp.ne.s32.totalorder %s15583_s15, %s15579_s14  ;;  %p36_p13 = scmp.eq.s32.totalorder %s35_s24, 0 }
  0x96   : > { %p46_p0 = scmp.eq.s32.totalorder %s15587_s16, 0  ;;  %p51_p1 = scmp.ne.s32.totalorder %s15579_s14, %s15575_s13 }
  0x97   : > { %p274_p3 = scmp.eq.s32.totalorder %s15685_s19, 1  ;;  %p22026_p5 = scmp.eq.s32.totalorder %s15685_s19, 0 }
  0x98   : > { %s15836_s3 = scalar_select %p36_p13, %s15583_s15, %s38_s22  }
  0x99   : > { %p47_p2 = por %p46_p0, %p45_p8  ;;  %p15840_p7 = por %p22026_p5, %p51_p1 }
  0x9a   : > { %p15844_p6 = por %p274_p3, %p45_p8  ;;  %p280_p9 = scmp.eq.s32.totalorder %s12774_s11, 1 }
  0x9b   : > { %p14487_p10 = scmp.lt.s32.totalorder %s15587_s16, 2  ;;  %s15850_s9 = sand.u32 1, %s15583_s15  }
  0x9c   : > { %s22028_s4 = scalar_select %p15844_p6, 1, 0 }
  0x9d   : > { %p15852_p11 = por %p280_p9, %p51_p1  ;;  %s12782_s26 = sshll.u32 %s15587_s16, 4 }
  0x9e   : > { %s22030_s0 = sld [smem:[#allocation262_spill]]  ;;  %s366_s30 = scalar_lea.vmem [#allocation2], %s15850_s9 }
  0x9f   : > { %s22029_s10 = scalar_select %p15852_p11, 1, 0 }
  0xa0   : > { %s373_s17 = sshll.u32 %s366_s30, 4  ;;  %p15865_p12 = pnand %p14487_p10, %p47_p2  ;;  %s15863_s17 = int_to_ptr.vmem [resolvable:$true] %s373_s17 }
  0xa1   : > { %s12783_s23 = sshll.u32 %s15850_s9, 8  ;;  %s364_s11 = scalar_lea.sflag [#allocation3], %s15850_s9 }
  0xa2   : > { %p15447_p8 = pneg %p15865_p12 }
  0xa4   : > { %s15860_s29 = scalar_lea.hbm %s22030_s0, %s12782_s26  ;;  %s15450_s27 = scalar_lea.hbm %s22030_s0, 32 }
  0xa5   : > { %s15445_s22 = scalar_lea.hbm %s15860_s29, 16  ;;  %p15451_p1 = scmp.lt.u32.totalorder %s15860_s29, %s22030_s0 }
  0xa6   : > { %p15446_p4 = scmp.ne.s32.totalorder %s15860_s29, %s15445_s22  ;;  %p15452_p3 = scmp.lt.u32.totalorder %s15450_s27, %s15445_s22 }
  0xa7   : > { %p15454_p5 = scmp.lt.u32.totalorder %s15445_s22, %s15860_s29 }
  0xa8   : > { %p15448_p13 = pnand %p15447_p8, %p15446_p4  ;;  %p15453_p2 = por %p15452_p3, %p15451_p1 }
  0xaa   : > { %p15449_p0 = pneg %p15448_p13  ;;  %p15455_p9 = por %p15454_p5, %p15453_p2 }
  0xac   : > { %p15456_p10 = pnand %p15455_p9, %p15449_p0 }
  0xae   : > { %15459 = shalt.err (!%p15456_p10)
}
  0xaf   : > { %s15460_s18 = scalar_lea.vmem %s15863_s17, 16  ;;  %s15596_s24 = smov [#allocation2]  }
  0xb0   : > { %p15461_p4 = scmp.ne.s32.totalorder %s15863_s17, %s15460_s18  ;;  %s15465_s26 = sshll.u32 %s15596_s24, 4  ;;  %s15466_s26 = int_to_ptr.vmem [resolvable:$false] %s15465_s26 }
  0xb1   : > { %s15467_s28 = scalar_lea.vmem %s15466_s26, 32  ;;  %p15468_p6 = scmp.lt.s32.totalorder %s15863_s17, %s15466_s26 }
  0xb2   : > { %p15463_p13 = pnand %p15461_p4, %p15447_p8  ;;  %p15469_p1 = scmp.lt.s32.totalorder %s15467_s28, %s15460_s18 }
  0xb4   : > { %p15464_p11 = pneg %p15463_p13  ;;  %p15470_p3 = por %p15469_p1, %p15468_p6 }
  0xb6   : > { %p15471_p2 = pnand %p15470_p3, %p15464_p11 }
  0xb8   : > { %15474 = shalt.err (!%p15471_p2)
}
  0xb9   : > { %14474 = dma.hbm_to_vmem [thread:$0]  (!%p15865_p12), %s15860_s29, 16, %s15863_s17, %s364_s11  }
  0xba   : > { %s392_s22 = scalar_lea.vmem [#allocation5], %s12783_s23  ;;  %s13074_s30 = sshll.u32 %s15587_s16, 12 }
  0xbb   : > { %s399_s27 = sshll.u32 %s392_s22, 4  ;;  %s15905_s26 = scalar_lea.hbm %s21751_s2, %s13074_s30  ;;  %s15899_s27 = int_to_ptr.vmem [resolvable:$true] %s399_s27 }
  0xbc   : > { %s22032_s28 = sand.u32 1, %s15587_s16   ;;  %s15475_s5 = scalar_lea.hbm %s15905_s26, 4096 }
  0xbd   : > { %s15909_s0 = scalar_lea.sflag [#allocation6], %s22032_s28  ;;  %p15476_p6 = scmp.ne.s32.totalorder %s15905_s26, %s15475_s5 }
  0xbe   : > { %s15480_s17 = scalar_lea.hbm %s21751_s2, 8192  ;;  %p15481_p5 = scmp.lt.u32.totalorder %s15905_s26, %s21751_s2 }
  0xbf   : > { %p15478_p11 = pnand %p15476_p6, %p15447_p8  ;;  %p15482_p9 = scmp.lt.u32.totalorder %s15480_s17, %s15475_s5 }
  0xc0   : > { %p15484_p4 = scmp.lt.u32.totalorder %s15475_s5, %s15905_s26 }
  0xc1   : > { %p15479_p0 = pneg %p15478_p11  ;;  %p15483_p10 = por %p15482_p9, %p15481_p5 }
  0xc3   : > { %p15485_p13 = por %p15484_p4, %p15483_p10 }
  0xc5   : > { %p15486_p1 = pnand %p15485_p13, %p15479_p0 }
  0xc7   : > { %15489 = shalt.err (!%p15486_p1)
}
  0xc8   : > { %s15490_s22 = scalar_lea.vmem %s15899_s27, 4096  ;;  %s15597_s30 = smov [#allocation5]  }
  0xc9   : > { %p15491_p3 = scmp.ne.s32.totalorder %s15899_s27, %s15490_s22  ;;  %s15495_s24 = sshll.u32 %s15597_s30, 4  ;;  %s15496_s24 = int_to_ptr.vmem [resolvable:$false] %s15495_s24 }
  0xca   : > { %s15497_s18 = scalar_lea.vmem %s15496_s24, 8192  ;;  %p15498_p11 = scmp.lt.s32.totalorder %s15899_s27, %s15496_s24 }
  0xcb   : > { %p15493_p2 = pnand %p15491_p3, %p15447_p8  ;;  %p15499_p5 = scmp.lt.s32.totalorder %s15497_s18, %s15490_s22 }
  0xcd   : > { %p15494_p6 = pneg %p15493_p2  ;;  %p15500_p9 = por %p15499_p5, %p15498_p11 }
  0xcf   : > { %p15501_p10 = pnand %p15500_p9, %p15494_p6 }
  0xd1   : > { %15504 = shalt.err (!%p15501_p10)
}
  0xd2   : > { %s15598_s5 = smov 128   ;;  %s15599_s28 = smov 8  }
  0xd3   : > { %14477 = dma.hbm_to_vmem [thread:$0]  (!%p15865_p12), %s15905_s26, 4096, %s15899_s27, %s15909_s0, %s15598_s5, %s15598_s5, %s15599_s28  }
  0xd4   : > { %p22033_p8 = scmp.ne.s32.totalorder %s22020_s20, 0 }
  0xd6   : > { %411 = sbr.rel (%p22033_p8) target bundleno = 4914 (0x1332), region = 60 }
  0xdd   : > { %s15938_s9 = sand.u32 1, %s15579_s14  }
  0xde   : > { %s414_s29 = scalar_lea.sflag [#allocation3], %s15938_s9  ;;  %s416_s17 = scalar_lea.vmem [#allocation2], %s15938_s9 }
  0xdf   : > { %15550 = dma.done.wait (%p15840_p7), %s414_s29, 16  }
  0xe0   : > { %15552 = vsyncadd (%p15840_p7), %s414_s29, 4294967280  ;;  %s421_s0 = sand.u32 1, %s15685_s19   ;;  %s12787_s20 = sshll.u32 %s15938_s9, 8 }
  0xe1   : > { %s422_s12 = scalar_lea.sflag [#allocation6], %s421_s0  ;;  %s15950_s27 = scalar_lea.vmem [#allocation5], %s12787_s20 }
  0xe2   : > { %15554 = dma.done.wait (%p15840_p7), %s422_s12, 4096  }
  0xe3   : > { %15556 = vsyncadd (%p15840_p7), %s422_s12, 4294963200  ;;  %p22034_p12 = scmp.eq.s32.totalorder %s15685_s19, 0 }
  0xe5   : > { %15558 = dma.done.wait (%p22034_p12), [#allocation6], 16   ;;  %p22035_p0 = pmov %p22034_p12 }
  0xe7   : > { %15560 = vsyncadd (%p22035_p0), [#allocation6], 4294967280  ;;  %p22036_p4 = pmov %p22035_p0 }
  0xe8   : > { %p22037_p13 = pmov %p22035_p0 }
  0xe9   : > { %15562 = dma.done.wait (%p22036_p4), [#allocation9], 80  }
  0xea   : > { %15564 = vsyncadd (%p22037_p13), [#allocation9], 4294967216  ;;  %p22038_p1 = pmov %p22035_p0 }
  0xeb   : > { %p22039_p3 = pmov %p22035_p0 }
  0xec   : > { %15566 = dma.done.wait (%p22038_p1), [#allocation12], 4112  }
  0xed   : > { %15568 = vsyncadd (%p22039_p3), [#allocation12], 4294963184  ;;  %v15969_v0 = vld [vmem:[%s15950_s27] sm:$0xff]  ;;  %v15972_v1 = vld [vmem:[%s15950_s27 + $0x10] sm:$0xff]  ;;  %v15600_v32 = vmov 0   ;;  %p491_p7 = scmp.lt.s32.totalorder %s15685_s19, 1 }
  0xee   : > { %554 = vadd.xlane.f32.xlu0 %v15969_v0  ;;  %558 = vadd.xlane.f32.xlu1 %v15972_v1  ;;  %v15977_v2 = vld [vmem:[%s15950_s27 + $0x8] sm:$0xff]  ;;  %v15980_v3 = vld [vmem:[%s15950_s27 + $0x18] sm:$0xff]  ;;  %v15985_v4 = vld [vmem:[%s15950_s27 + $0x20] sm:$0xff]  ;;  %vm15602_vm0 = vmmov 0   ;;  %vm2160_vm1 = vcmask 261120   ;;  %s15603_s30 = smov 96  }
  0xef   : > { %v15988_v5 = vld [vmem:[%s15950_s27 + $0x28] sm:$0xff]  ;;  %v15993_v6 = vld [vmem:[%s15950_s27 + $0x30] sm:$0xff]  ;;  %v15996_v7 = vld [vmem:[%s15950_s27 + $0x38] sm:$0xff]  ;;  %14544 = vset.pattern.permute.xlu1 %v15600_v32  ;;  %14543 = vset.pattern.permute.xlu0 %v15600_v32  ;;  %s492_s21 = scalar_select %p491_p7, %s15685_s19, 1  ;;  %vm2000_vm2 = vcmask 130112   ;;  %vm2137_vm3 = vcmask 1041409  }
  0xf0   : > { %v15999_v8 = vld [vmem:[%s15950_s27 + $0x40] sm:$0xff]  ;;  %v16002_v9 = vld [vmem:[%s15950_s27 + $0x48] sm:$0xff]  ;;  %v16007_v10 = vld [vmem:[%s15950_s27 + $0x50] sm:$0xff]  ;;  %1223 = vmatprep.mubr.bf16.mxu0 %v15600_v32  ;;  %1343 = vmatprep.mubr.bf16.mxu1 %v15600_v32  ;;  %s15604_s24 = smov 64   ;;  %vm2139_vm4 = vcmask 1042434   ;;  %vm2141_vm5 = vcmask 1043459  }
  0xf1   : > { %v16010_v11 = vld [vmem:[%s15950_s27 + $0x58] sm:$0xff]  ;;  %v16015_v12 = vld [vmem:[%s15950_s27 + $0x60] sm:$0xff]  ;;  %v16018_v13 = vld [vmem:[%s15950_s27 + $0x68] sm:$0xff]  ;;  %s13075_s26 = sshll.u32 %s492_s21, 4  ;;  %vm2143_vm6 = vcmask 1044484   ;;  %vm2145_vm7 = vcmask 1045509  }
  0xf2   : > { %556 = vadd.xlane.f32.xlu0 %v15977_v2  ;;  %560 = vadd.xlane.f32.xlu1 %v15980_v3  ;;  %v16023_v14 = vld [vmem:[%s15950_s27 + $0x70] sm:$0xff]  ;;  %v16028_v15 = vld [vmem:[%s15950_s27 + $0x78] sm:$0xff]  ;;  %v16033_v16 = vld [vmem:[%s15950_s27 + $0x80] sm:$0xff]  ;;  %s495_s22 = scalar_lea.vmem %s21750_s1, %s13075_s26  ;;  %vm2147_vm8 = vcmask 1046534   ;;  %vm2149_vm9 = vcmask 1047559   ;;  %vm2949_vm11 = vcmask 130048  }
  0xf3   : > { %v16036_v17 = vld [vmem:[%s15950_s27 + $0x88] sm:$0xff]  ;;  %v16041_v18 = vld [vmem:[%s15950_s27 + $0x90] sm:$0xff]  ;;  %v16044_v19 = vld [vmem:[%s15950_s27 + $0x98] sm:$0xff]  ;;  %s15605_s18 = smov 32   ;;  %s21634_s0 = scalar_lea.vmem [#allocation14], %s12787_s20 }
  0xf4   : > { %v16049_v20 = vld [vmem:[%s15950_s27 + $0xa0] sm:$0xff]  ;;  %v16052_v21 = vld [vmem:[%s15950_s27 + $0xa8] sm:$0xff]  ;;  %v16065_v24 = vld [vmem:[%s15950_s27 + $0xb0] sm:$0xff]  ;;  %s13076_s20 = sshll.u32 %s15685_s19, 12  ;;  %s12622_s12 = sshll.u32 %s21634_s0, 4  ;;  %s21701_s12 = int_to_ptr.vmem [resolvable:$true] %s12622_s12 }
  0xf5   : > { %v16057_v22 = vld [vmem:[%s15950_s27 + $0xc0] sm:$0xff]  ;;  %v16060_v23 = vld [vmem:[%s15950_s27 + $0xc8] sm:$0xff]  ;;  %v16068_v25 = vld [vmem:[%s15950_s27 + $0xb8] sm:$0xff]  ;;  %s22915_s26 = sld [smem:[#allocation267_spill]]  ;;  %s12609_s19 = scalar_lea.sflag [#allocation4], %s15938_s9 }
  0xf6   : > { %562 = vadd.xlane.f32.xlu0 %v15985_v4  ;;  %564 = vadd.xlane.f32.xlu1 %v15988_v5  ;;  %v16073_v26 = vld [vmem:[%s15950_s27 + $0xd0] sm:$0xff]  ;;  %v16076_v27 = vld [vmem:[%s15950_s27 + $0xd8] sm:$0xff]  ;;  %v16081_v28 = vld [vmem:[%s15950_s27 + $0xe0] sm:$0xff]  ;;  %s15505_s11 = scalar_lea.vmem %s21701_s12, 4096  ;;  %p22916_p6 = scmp.ne.s32.totalorder %s22028_s4, 0 }
  0xf7   : > { %v16084_v29 = vld [vmem:[%s15950_s27 + $0xe8] sm:$0xff]  ;;  %v16089_v30 = vld [vmem:[%s15950_s27 + $0xf0] sm:$0xff]  ;;  %v16092_v31 = vld [vmem:[%s15950_s27 + $0xf8] sm:$0xff]  ;;  %p15506_p2 = scmp.ne.s32.totalorder %s21701_s12, %s15505_s11 }
  0xf8   : > { %v14545_v33 = vld [vmem:[#allocation11 + $0x4] ss:$16 sps:$4 sm:$0xff]   ;;  %v14547_v34 = vld [vmem:[#allocation11] ss:$16 sps:$4 sm:$0xff]  }
  0xf9   : > { %v14548_v35 = vld [vmem:[#allocation11 + $0x24] ss:$16 sps:$4 sm:$0xff]   ;;  %1191 = vmatprep.subr.bf16.mxu0 %v14545_v33  ;;  %14317 = vmatprep.subr.bf16.mxu1 %v14545_v33  ;;  %p15507_p11 = pnand %p15506_p2, %p22916_p6 }
  0xfa   : > { %566 = vadd.xlane.f32.xlu0 %v15993_v6  ;;  %568 = vadd.xlane.f32.xlu1 %v15996_v7 }
  0xfb   : > { %1192 = vmatpush1.bf16.msra.mxu0 %v14547_v34  ;;  %14325 = vmatpush1.bf16.msra.mxu1 %v14547_v34  ;;  %s21699_s23 = scalar_lea.hbm %s22915_s26, %s13076_s20  ;;  %p15508_p5 = pneg %p15507_p11 }
  0xfc   : > { %1193 = vmatprep.subr.bf16.mxu0 %v14548_v35  ;;  %14318 = vmatprep.subr.bf16.mxu1 %v14548_v35 }
  0xfe   : > { %570 = vadd.xlane.f32.xlu0 %v15999_v8  ;;  %572 = vadd.xlane.f32.xlu1 %v16002_v9 }
 0x102   : > { %574 = vadd.xlane.f32.xlu0 %v16007_v10  ;;  %576 = vadd.xlane.f32.xlu1 %v16010_v11 }
 0x106   : > { %578 = vadd.xlane.f32.xlu0 %v16015_v12  ;;  %580 = vadd.xlane.f32.xlu1 %v16018_v13 }
 0x10a   : > { %582 = vadd.xlane.f32.xlu0 %v16023_v14  ;;  %584 = vadd.xlane.f32.xlu1 %v16028_v15 }
 0x10e   : > { %586 = vadd.xlane.f32.xlu0 %v16033_v16  ;;  %588 = vadd.xlane.f32.xlu1 %v16036_v17 }
 0x112   : > { %590 = vadd.xlane.f32.xlu0 %v16041_v18  ;;  %592 = vadd.xlane.f32.xlu1 %v16044_v19 }
 0x116   : > { %594 = vadd.xlane.f32.xlu0 %v16049_v20  ;;  %596 = vadd.xlane.f32.xlu1 %v16052_v21 }
 0x11a   : > { %602 = vadd.xlane.f32.xlu0 %v16057_v22  ;;  %604 = vadd.xlane.f32.xlu1 %v16060_v23 }
 0x11e   : > { %598 = vadd.xlane.f32.xlu0 %v16065_v24  ;;  %600 = vadd.xlane.f32.xlu1 %v16068_v25 }
 0x122   : > { %606 = vadd.xlane.f32.xlu0 %v16073_v26  ;;  %608 = vadd.xlane.f32.xlu1 %v16076_v27 }
 0x126   : > { %610 = vadd.xlane.f32.xlu0 %v16081_v28  ;;  %612 = vadd.xlane.f32.xlu1 %v16084_v29 }
 0x12a   : > { %614 = vadd.xlane.f32.xlu0 %v16089_v30  ;;  %616 = vadd.xlane.f32.xlu1 %v16092_v31 }
 0x17b   : > { %v555_v36 = vpop.xlane.xlu0 %554  ;;  %v559_v37 = vpop.xlane.xlu1 %558 }
 0x17c   : > { %v619_v38 = vmul.f32 0.0078125, %v555_v36  ;;  %v621_v39 = vmul.f32 0.0078125, %v559_v37 }
 0x17e   : > { %v16101_v40 = vsub.f32 %v15969_v0, %v619_v38  ;;  %v16104_v41 = vsub.f32 %v15972_v1, %v621_v39 }
 0x17f   : > { %v557_v42 = vpop.xlane.xlu0 %556  ;;  %v561_v43 = vpop.xlane.xlu1 %560 }
 0x180   : > { %v620_v44 = vmul.f32 0.0078125, %v557_v42  ;;  %v683_v45 = vmul.f32 %v16101_v40, %v16101_v40  ;;  %v622_v46 = vmul.f32 0.0078125, %v561_v43  ;;  %v685_v47 = vmul.f32 %v16104_v41, %v16104_v41  ;;  %v14551_v43 = vld [vmem:[#allocation11 + $0x44] ss:$16 sps:$4 sm:$0xff]  }
 0x182   : > { %715 = vadd.xlane.f32.xlu0 %v683_v45  ;;  %v16111_v48 = vsub.f32 %v15977_v2, %v620_v44  ;;  %v16114_v49 = vsub.f32 %v15980_v3, %v622_v46 }
 0x183   : > { %v563_v50 = vpop.xlane.xlu0 %562  ;;  %v565_v51 = vpop.xlane.xlu1 %564 }
 0x184   : > { %v623_v52 = vmul.f32 0.0078125, %v563_v50  ;;  %v684_v53 = vmul.f32 %v16111_v48, %v16111_v48  ;;  %v624_v54 = vmul.f32 0.0078125, %v565_v51  ;;  %v686_v55 = vmul.f32 %v16114_v49, %v16114_v49 }
 0x186   : > { %719 = vadd.xlane.f32.xlu0 %v685_v47  ;;  %717 = vadd.xlane.f32.xlu1 %v684_v53  ;;  %v16121_v56 = vsub.f32 %v15985_v4, %v623_v52  ;;  %v16124_v57 = vsub.f32 %v15988_v5, %v624_v54  ;;  %v14553_v47 = vld [vmem:[#allocation11 + $0x40] ss:$16 sps:$4 sm:$0xff]   ;;  %v14554_v54 = vld [vmem:[#allocation11 + $0x64] ss:$16 sps:$4 sm:$0xff]  }
 0x187   : > { %v567_v58 = vpop.xlane.xlu0 %566  ;;  %v569_v59 = vpop.xlane.xlu1 %568 }
 0x188   : > { %v625_v60 = vmul.f32 0.0078125, %v567_v58  ;;  %v687_v61 = vmul.f32 %v16121_v56, %v16121_v56  ;;  %v626_v62 = vmul.f32 0.0078125, %v569_v59  ;;  %v688_v63 = vmul.f32 %v16124_v57, %v16124_v57  ;;  %v14556_v59 = vld [vmem:[#allocation11 + $0x60] ss:$16 sps:$4 sm:$0xff]  }
 0x18a   : > { %721 = vadd.xlane.f32.xlu1 %v686_v55  ;;  %723 = vadd.xlane.f32.xlu0 %v687_v61  ;;  %v16131_v0 = vsub.f32 %v15993_v6, %v625_v60  ;;  %v16134_v1 = vsub.f32 %v15996_v7, %v626_v62  ;;  %v14550_v7 = vld [vmem:[#allocation11 + $0x20] ss:$16 sps:$4 sm:$0xff]  }
 0x18b   : > { %v571_v2 = vpop.xlane.xlu0 %570  ;;  %v573_v3 = vpop.xlane.xlu1 %572  ;;  %1194 = vmatpush1.bf16.msra.mxu0 %v14550_v7  ;;  %14326 = vmatpush1.bf16.msra.mxu1 %v14550_v7 }
 0x18c   : > { %v627_v4 = vmul.f32 0.0078125, %v571_v2  ;;  %v689_v5 = vmul.f32 %v16131_v0, %v16131_v0  ;;  %v628_v33 = vmul.f32 0.0078125, %v573_v3  ;;  %v690_v34 = vmul.f32 %v16134_v1, %v16134_v1  ;;  %1195 = vmatprep.subr.bf16.mxu0 %v14551_v43  ;;  %14319 = vmatprep.subr.bf16.mxu1 %v14551_v43  ;;  %v14557_v2 = vld [vmem:[#allocation11 + $0x84] ss:$16 sps:$4 sm:$0xff]  }
 0x18e   : > { %725 = vadd.xlane.f32.xlu1 %v688_v63  ;;  %727 = vadd.xlane.f32.xlu0 %v689_v5  ;;  %v16141_v35 = vsub.f32 %v15999_v8, %v627_v4  ;;  %v16144_v6 = vsub.f32 %v16002_v9, %v628_v33  ;;  %v14559_v5 = vld [vmem:[#allocation11 + $0x80] ss:$16 sps:$4 sm:$0xff]  }
 0x18f   : > { %v575_v36 = vpop.xlane.xlu0 %574  ;;  %v577_v37 = vpop.xlane.xlu1 %576  ;;  %1196 = vmatpush1.bf16.msra.mxu0 %v14553_v47  ;;  %14327 = vmatpush1.bf16.msra.mxu1 %v14553_v47  ;;  %v14563_v47 = vld [vmem:[#allocation11 + $0xc4] ss:$16 sps:$4 sm:$0xff]  }
 0x190   : > { %v629_v38 = vmul.f32 0.0078125, %v575_v36  ;;  %v691_v39 = vmul.f32 %v16141_v35, %v16141_v35  ;;  %v630_v42 = vmul.f32 0.0078125, %v577_v37  ;;  %v692_v8 = vmul.f32 %v16144_v6, %v16144_v6  ;;  %1197 = vmatprep.subr.bf16.mxu0 %v14554_v54  ;;  %14320 = vmatprep.subr.bf16.mxu1 %v14554_v54  ;;  %v14560_v37 = vld [vmem:[#allocation11 + $0xa4] ss:$16 sps:$4 sm:$0xff]  }
 0x192   : > { %729 = vadd.xlane.f32.xlu1 %v690_v34  ;;  %731 = vadd.xlane.f32.xlu0 %v691_v39  ;;  %v16151_v44 = vsub.f32 %v16007_v10, %v629_v38  ;;  %v16154_v9 = vsub.f32 %v16010_v11, %v630_v42  ;;  %v14562_v42 = vld [vmem:[#allocation11 + $0xa0] ss:$16 sps:$4 sm:$0xff]  }
 0x193   : > { %v579_v45 = vpop.xlane.xlu0 %578  ;;  %v581_v46 = vpop.xlane.xlu1 %580  ;;  %1198 = vmatpush1.bf16.msra.mxu0 %v14556_v59  ;;  %14328 = vmatpush1.bf16.msra.mxu1 %v14556_v59  ;;  %v14566_v59 = vld [vmem:[#allocation11 + $0xe4] ss:$16 sps:$4 sm:$0xff]  }
 0x194   : > { %v631_v50 = vmul.f32 0.0078125, %v579_v45  ;;  %v693_v51 = vmul.f32 %v16151_v44, %v16151_v44  ;;  %v632_v52 = vmul.f32 0.0078125, %v581_v46  ;;  %v694_v10 = vmul.f32 %v16154_v9, %v16154_v9  ;;  %1199 = vmatprep.subr.bf16.mxu0 %v14557_v2  ;;  %14321 = vmatprep.subr.bf16.mxu1 %v14557_v2 }
 0x196   : > { %733 = vadd.xlane.f32.xlu1 %v692_v8  ;;  %735 = vadd.xlane.f32.xlu0 %v693_v51  ;;  %v16161_v11 = vsub.f32 %v16015_v12, %v631_v50  ;;  %v16164_v53 = vsub.f32 %v16018_v13, %v632_v52  ;;  %v14565_v52 = vld [vmem:[#allocation11 + $0xc0] ss:$16 sps:$4 sm:$0xff]  }
 0x197   : > { %v583_v55 = vpop.xlane.xlu0 %582  ;;  %v585_v58 = vpop.xlane.xlu1 %584  ;;  %1200 = vmatpush1.bf16.msra.mxu0 %v14559_v5  ;;  %14329 = vmatpush1.bf16.msra.mxu1 %v14559_v5 }
 0x198   : > { %v633_v60 = vmul.f32 0.0078125, %v583_v55  ;;  %v695_v61 = vmul.f32 %v16161_v11, %v16161_v11  ;;  %v634_v62 = vmul.f32 0.0078125, %v585_v58  ;;  %v696_v12 = vmul.f32 %v16164_v53, %v16164_v53  ;;  %1201 = vmatprep.subr.bf16.mxu0 %v14560_v37  ;;  %14322 = vmatprep.subr.bf16.mxu1 %v14560_v37 }
 0x19a   : > { %737 = vadd.xlane.f32.xlu1 %v694_v10  ;;  %739 = vadd.xlane.f32.xlu0 %v695_v61  ;;  %v16171_v13 = vsub.f32 %v16023_v14, %v633_v60  ;;  %v16174_v63 = vsub.f32 %v16028_v15, %v634_v62  ;;  %v14568_v62 = vld [vmem:[#allocation11 + $0xe0] ss:$16 sps:$4 sm:$0xff]  }
 0x19b   : > { %v587_v3 = vpop.xlane.xlu0 %586  ;;  %v589_v4 = vpop.xlane.xlu1 %588  ;;  %1202 = vmatpush1.bf16.msra.mxu0 %v14562_v42  ;;  %14330 = vmatpush1.bf16.msra.mxu1 %v14562_v42 }
 0x19c   : > { %v635_v33 = vmul.f32 0.0078125, %v587_v3  ;;  %v697_v34 = vmul.f32 %v16171_v13, %v16171_v13  ;;  %v636_v7 = vmul.f32 0.0078125, %v589_v4  ;;  %v698_v14 = vmul.f32 %v16174_v63, %v16174_v63  ;;  %1203 = vmatprep.subr.bf16.mxu0 %v14563_v47  ;;  %14323 = vmatprep.subr.bf16.mxu1 %v14563_v47 }
 0x19e   : > { %741 = vadd.xlane.f32.xlu1 %v696_v12  ;;  %743 = vadd.xlane.f32.xlu0 %v697_v34  ;;  %v16181_v15 = vsub.f32 %v16033_v16, %v635_v33  ;;  %v16184_v36 = vsub.f32 %v16036_v17, %v636_v7 }
 0x19f   : > { %v591_v38 = vpop.xlane.xlu0 %590  ;;  %v593_v39 = vpop.xlane.xlu1 %592  ;;  %1204 = vmatpush1.bf16.msra.mxu0 %v14565_v52  ;;  %14331 = vmatpush1.bf16.msra.mxu1 %v14565_v52 }
 0x1a0   : > { %v637_v43 = vmul.f32 0.0078125, %v591_v38  ;;  %v699_v8 = vmul.f32 %v16181_v15, %v16181_v15  ;;  %v638_v45 = vmul.f32 0.0078125, %v593_v39  ;;  %v700_v16 = vmul.f32 %v16184_v36, %v16184_v36  ;;  %1205 = vmatprep.subr.bf16.mxu0 %v14566_v59  ;;  %14324 = vmatprep.subr.bf16.mxu1 %v14566_v59 }
 0x1a2   : > { %745 = vadd.xlane.f32.xlu1 %v698_v14  ;;  %747 = vadd.xlane.f32.xlu0 %v699_v8  ;;  %v16191_v17 = vsub.f32 %v16041_v18, %v637_v43  ;;  %v16194_v46 = vsub.f32 %v16044_v19, %v638_v45 }
 0x1a3   : > { %v595_v50 = vpop.xlane.xlu0 %594  ;;  %v597_v51 = vpop.xlane.xlu1 %596  ;;  %1206 = vmatpush1.bf16.msra.mxu0 %v14568_v62  ;;  %14332 = vmatpush1.bf16.msra.mxu1 %v14568_v62 }
 0x1a4   : > { %v639_v10 = vmul.f32 0.0078125, %v595_v50  ;;  %v701_v54 = vmul.f32 %v16191_v17, %v16191_v17  ;;  %v640_v55 = vmul.f32 0.0078125, %v597_v51  ;;  %v702_v18 = vmul.f32 %v16194_v46, %v16194_v46 }
 0x1a6   : > { %749 = vadd.xlane.f32.xlu1 %v700_v16  ;;  %751 = vadd.xlane.f32.xlu0 %v701_v54  ;;  %v16201_v19 = vsub.f32 %v16049_v20, %v639_v10  ;;  %v16204_v58 = vsub.f32 %v16052_v21, %v640_v55 }
 0x1a7   : > { %v603_v60 = vpop.xlane.xlu0 %602  ;;  %v605_v61 = vpop.xlane.xlu1 %604 }
 0x1a8   : > { %v643_v12 = vmul.f32 0.0078125, %v603_v60  ;;  %v703_v2 = vmul.f32 %v16201_v19, %v16201_v19  ;;  %v644_v3 = vmul.f32 0.0078125, %v605_v61  ;;  %v704_v20 = vmul.f32 %v16204_v58, %v16204_v58  ;;  %v497_v61 = vld [vmem:[%s495_s22] sm:$0xff] }
 0x1aa   : > { %753 = vadd.xlane.f32.xlu1 %v702_v18  ;;  %755 = vadd.xlane.f32.xlu0 %v703_v2  ;;  %v16211_v21 = vsub.f32 %v16057_v22, %v643_v12  ;;  %v16214_v4 = vsub.f32 %v16060_v23, %v644_v3  ;;  %v14571_v3 = vld [vmem:[#allocation11 + $0xc] ss:$16 sps:$4 sm:$0xff]  }
 0x1ab   : > { %v599_v5 = vpop.xlane.xlu0 %598  ;;  %v601_v33 = vpop.xlane.xlu1 %600  ;;  %1384 = vmatprep.subr.bf16.mxu1 %v14571_v3 }
 0x1ac   : > { %v641_v34 = vmul.f32 0.0078125, %v599_v5  ;;  %v707_v7 = vmul.f32 %v16211_v21, %v16211_v21  ;;  %v642_v14 = vmul.f32 0.0078125, %v601_v33  ;;  %v708_v37 = vmul.f32 %v16214_v4, %v16214_v4 }
 0x1ae   : > { %757 = vadd.xlane.f32.xlu1 %v704_v20  ;;  %763 = vadd.xlane.f32.xlu0 %v707_v7  ;;  %v16221_v38 = vsub.f32 %v16065_v24, %v641_v34  ;;  %v16224_v22 = vsub.f32 %v16068_v25, %v642_v14 }
 0x1af   : > { %v607_v23 = vpop.xlane.xlu0 %606  ;;  %v609_v39 = vpop.xlane.xlu1 %608 }
 0x1b0   : > { %v645_v42 = vmul.f32 0.0078125, %v607_v23  ;;  %v705_v43 = vmul.f32 %v16221_v38, %v16221_v38  ;;  %v646_v8 = vmul.f32 0.0078125, %v609_v39  ;;  %v706_v45 = vmul.f32 %v16224_v22, %v16224_v22 }
 0x1b2   : > { %765 = vadd.xlane.f32.xlu1 %v708_v37  ;;  %759 = vadd.xlane.f32.xlu0 %v705_v43  ;;  %v16231_v16 = vsub.f32 %v16073_v26, %v645_v42  ;;  %v16234_v24 = vsub.f32 %v16076_v27, %v646_v8 }
 0x1b3   : > { %v611_v25 = vpop.xlane.xlu0 %610  ;;  %v613_v47 = vpop.xlane.xlu1 %612 }
 0x1b4   : > { %v647_v50 = vmul.f32 0.0078125, %v611_v25  ;;  %v709_v51 = vmul.f32 %v16231_v16, %v16231_v16  ;;  %v648_v52 = vmul.f32 0.0078125, %v613_v47  ;;  %v710_v10 = vmul.f32 %v16234_v24, %v16234_v24 }
 0x1b6   : > { %761 = vadd.xlane.f32.xlu1 %v706_v45  ;;  %767 = vadd.xlane.f32.xlu0 %v709_v51  ;;  %v16241_v26 = vsub.f32 %v16081_v28, %v647_v50  ;;  %v16244_v27 = vsub.f32 %v16084_v29, %v648_v52  ;;  %v498_v29 = vld [vmem:[%s495_s22 + $0x8] sm:$0xff]  ;;  %v16265_v52 = vld [vmem:[#allocation7] ss:$0 sm:$0xff]  ;;  %s15606_s22 = smov [#allocation14]  }
 0x1b7   : > { %v615_v54 = vpop.xlane.xlu0 %614  ;;  %v617_v62 = vpop.xlane.xlu1 %616 }
 0x1b8   : > { %v649_v55 = vmul.f32 0.0078125, %v615_v54  ;;  %v711_v18 = vmul.f32 %v16241_v26, %v16241_v26  ;;  %v712_v59 = vmul.f32 %v16244_v27, %v16244_v27  ;;  %v650_v12 = vmul.f32 0.0078125, %v617_v62 }
 0x1ba   : > { %769 = vadd.xlane.f32.xlu1 %v710_v10  ;;  %771 = vadd.xlane.f32.xlu0 %v711_v18  ;;  %v16251_v60 = vsub.f32 %v16089_v30, %v649_v55  ;;  %v16261_v30 = vsub.f32 %v16092_v31, %v650_v12 }
 0x1bc   : > { %v713_v28 = vmul.f32 %v16251_v60, %v16251_v60  ;;  %v714_v2 = vmul.f32 %v16261_v30, %v16261_v30 }
 0x1be   : > { %773 = vadd.xlane.f32.xlu1 %v712_v59  ;;  %775 = vadd.xlane.f32.xlu0 %v713_v28 }
 0x1cf   : > { %507 = vperm.xlu1 %14544, %v498_v29   ;;  %v16268_v29 = vld [vmem:[#allocation8] ss:$0 sm:$0xff] }
 0x1d4   : > { %502 = vperm.xlu0 %14543, %v497_v61  }
 0x1f3   : > { %777 = vadd.xlane.f32.xlu1 %v714_v2  ;;  %v16271_v2 = vld [vmem:[#allocation10] ss:$0 sm:$0xff] }
 0x20f   : > { %v716_v20 = vpop.xlane.xlu0 %715 }
 0x210   : > { %v779_v5 = vmul.f32 0.0078125, %v716_v20 }
 0x212   : > { %v811_v33 = vadd.f32 1e-05, %v779_v5 }
 0x213   : > { %v718_v34 = vpop.xlane.xlu1 %717  ;;  %v720_v7 = vpop.xlane.xlu0 %719 }
 0x214   : > { %14601 = vrsqrt.f32 %v811_v33  ;;  %v780_v14 = vmul.f32 0.0078125, %v718_v34  ;;  %v781_v37 = vmul.f32 0.0078125, %v720_v7 }
 0x216   : > { %v812_v23 = vadd.f32 1e-05, %v780_v14  ;;  %v813_v39 = vadd.f32 1e-05, %v781_v37 }
 0x217   : > { %v722_v42 = vpop.xlane.xlu1 %721  ;;  %v724_v43 = vpop.xlane.xlu0 %723 }
 0x218   : > { %14603 = vrsqrt.f32 %v812_v23  ;;  %v782_v31 = vmul.f32 0.0078125, %v722_v42  ;;  %v783_v45 = vmul.f32 0.0078125, %v724_v43 }
 0x219   : > { %14605 = vrsqrt.f32 %v813_v39 }
 0x21a   : > { %v814_v8 = vadd.f32 1e-05, %v782_v31  ;;  %v815_v10 = vadd.f32 1e-05, %v783_v45 }
 0x21b   : > { %v726_v25 = vpop.xlane.xlu1 %725  ;;  %v728_v47 = vpop.xlane.xlu0 %727 }
 0x21c   : > { %14607 = vrsqrt.f32 %v814_v8  ;;  %v784_v50 = vmul.f32 0.0078125, %v726_v25  ;;  %v785_v12 = vmul.f32 0.0078125, %v728_v47 }
 0x21e   : > { %v14602_v51 = vpop.eup %14601  ;;  %v816_v54 = vadd.f32 1e-05, %v784_v50  ;;  %v817_v42 = vadd.f32 1e-05, %v785_v12 }
 0x21f   : > { %v875_v55 = vmul.f32 %v14602_v51, %v16101_v40  ;;  %v730_v18 = vpop.xlane.xlu1 %729  ;;  %v732_v59 = vpop.xlane.xlu0 %731 }
 0x220   : > { %14609 = vrsqrt.f32 %v816_v54  ;;  %v786_v28 = vmul.f32 0.0078125, %v730_v18 }
 0x221   : > { %v913_v61 = vmul.f32 %v16265_v52, %v875_v55  ;;  %14611 = vrsqrt.f32 %v815_v10 }
 0x222   : > { %v14604_v62 = vpop.eup %14603  ;;  %v818_v7 = vadd.f32 1e-05, %v786_v28 }
 0x223   : > { %v14606_v3 = vpop.eup %14605  ;;  %v876_v20 = vmul.f32 %v14604_v62, %v16111_v48  ;;  %v734_v5 = vpop.xlane.xlu1 %733  ;;  %v16275_v40 = vadd.f32 %v16268_v29, %v913_v61 }
 0x224   : > { %v736_v33 = vpop.xlane.xlu0 %735  ;;  %v877_v34 = vmul.f32 %v14606_v3, %v16104_v41  ;;  %v788_v43 = vmul.f32 0.0078125, %v734_v5  ;;  %14613 = vrsqrt.f32 %v818_v7  ;;  %v787_v41 = vmul.f32 0.0078125, %v732_v59 }
 0x225   : > { %22040 = vst [vmem:[#allocation21_spill] sm:$0xff] %v16275_v40  ;;  %v914_v14 = vmul.f32 %v16265_v52, %v876_v20  ;;  %v1861_v37 = vmul.f32 %v16271_v2, %v16275_v40  ;;  %14615 = vrsqrt.f32 %v817_v42  ;;  %v789_v20 = vmul.f32 0.0078125, %v736_v33 }
 0x226   : > { %v14608_v23 = vpop.eup %14607  ;;  %v915_v39 = vmul.f32 %v16265_v52, %v877_v34  ;;  %v819_v28 = vadd.f32 1e-05, %v787_v41 }
 0x227   : > { %v878_v48 = vmul.f32 %v14608_v23, %v16114_v49  ;;  %v738_v31 = vpop.xlane.xlu1 %737  ;;  %1893 = vadd.xlane.f32.xlu0 %v1861_v37  ;;  %v16284_v45 = vadd.f32 %v16268_v29, %v914_v14  ;;  %v820_v49 = vadd.f32 1e-05, %v788_v43  ;;  %v821_v43 = vadd.f32 1e-05, %v789_v20 }
 0x228   : > { %v740_v8 = vpop.xlane.xlu0 %739  ;;  %v16294_v10 = vadd.f32 %v16268_v29, %v915_v39  ;;  %v790_v61 = vmul.f32 0.0078125, %v738_v31 }
 0x229   : > { %22041 = vst [vmem:[#allocation22_spill] sm:$0xff] %v16284_v45  ;;  %v916_v25 = vmul.f32 %v16265_v52, %v878_v48  ;;  %v16289_v47 = vpack.c.bf16 %v16284_v45, %v16275_v40  ;;  %v1862_v50 = vmul.f32 %v16271_v2, %v16284_v45  ;;  %14617 = vrsqrt.f32 %v820_v49 }
 0x22a   : > { %v14610_v51 = vpop.eup %14609  ;;  %22042 = vst [vmem:[#allocation23_spill] sm:$0xff] %v16294_v10  ;;  %v1863_v12 = vmul.f32 %v16271_v2, %v16294_v10  ;;  %14619 = vrsqrt.f32 %v819_v28  ;;  %v822_v14 = vadd.f32 1e-05, %v790_v61 }
 0x22b   : > { %v742_v54 = vpop.xlane.xlu1 %741  ;;  %1224 = vmatmul.mubr.bf16.vlgmr.msra.gmra.mrb[0].mxu0 %v16289_v47  ;;  %1895 = vadd.xlane.f32.xlu1 %v1862_v50  ;;  %v16298_v18 = vadd.f32 %v16268_v29, %v916_v25  ;;  %v14612_v59 = vpop.eup %14611  ;;  %v880_v62 = vmul.f32 %v14610_v51, %v16124_v57  ;;  %v791_v57 = vmul.f32 0.0078125, %v740_v8 }
 0x22c   : > { %v744_v55 = vpop.xlane.xlu0 %743  ;;  %1233 = vmatprep.mubr.bf16.mxu0 %v15600_v32  ;;  %v879_v5 = vmul.f32 %v14612_v59, %v16121_v56  ;;  %1897 = vadd.xlane.f32.xlu0 %v1863_v12  ;;  %14621 = vrsqrt.f32 %v822_v14  ;;  %v792_v59 = vmul.f32 0.0078125, %v742_v54 }
 0x22d   : > { %22043 = vst [vmem:[#allocation24_spill] sm:$0xff] %v16298_v18  ;;  %v1864_v3 = vmul.f32 %v16271_v2, %v16298_v18  ;;  %v918_v23 = vmul.f32 %v16265_v52, %v880_v62  ;;  %v16310_v39 = vpack.c.bf16 %v16298_v18, %v16294_v10  ;;  %v823_v51 = vadd.f32 1e-05, %v791_v57 }
 0x22e   : > { %v14614_v42 = vpop.eup %14613  ;;  %v917_v33 = vmul.f32 %v16265_v52, %v879_v5  ;;  %v793_v12 = vmul.f32 0.0078125, %v744_v55 }
 0x22f   : > { %v746_v34 = vpop.xlane.xlu1 %745  ;;  %1899 = vadd.xlane.f32.xlu1 %v1864_v3  ;;  %v14616_v41 = vpop.eup %14615  ;;  %v882_v8 = vmul.f32 %v14614_v42, %v16134_v1  ;;  %v16317_v49 = vadd.f32 %v16268_v29, %v918_v23 }
 0x230   : > { %v748_v7 = vpop.xlane.xlu0 %747  ;;  %v881_v62 = vmul.f32 %v14616_v41, %v16131_v0  ;;  %v16321_v5 = vadd.f32 %v16268_v29, %v917_v33  ;;  %v824_v0 = vadd.f32 1e-05, %v792_v59  ;;  %v794_v33 = vmul.f32 0.0078125, %v746_v34 }
 0x231   : > { %v795_v37 = vmul.f32 0.0078125, %v748_v7  ;;  %22044 = vst [vmem:[#allocation25_spill] sm:$0xff] %v16317_v49 }
 0x232   : > { %22045 = vst [vmem:[#allocation26_spill] sm:$0xff] %v16321_v5  ;;  %v16326_v54 = vpack.c.bf16 %v16317_v49, %v16321_v5  ;;  %v919_v42 = vmul.f32 %v16265_v52, %v881_v62 }
 0x233   : > { %v827_v48 = vadd.f32 1e-05, %v795_v37  ;;  %v750_v56 = vpop.xlane.xlu1 %749  ;;  %1234 = vmatmul.mubr.bf16.gmra.mrb[4].mxu0 %v16310_v39  ;;  %v14618_v7 = vpop.eup %14617  ;;  %v920_v37 = vmul.f32 %v16265_v52, %v882_v8 }
 0x234   : > { %v752_v31 = vpop.xlane.xlu0 %751  ;;  %v796_v25 = vmul.f32 0.0078125, %v750_v56  ;;  %1243 = vmatprep.mubr.bf16.mxu0 %v15600_v32  ;;  %v14620_v23 = vpop.eup %14619 }
 0x235   : > { %v797_v50 = vmul.f32 0.0078125, %v752_v31  ;;  %14623 = vrsqrt.f32 %v827_v48  ;;  %v825_v48 = vadd.f32 1e-05, %v793_v12  ;;  %v16334_v8 = vadd.f32 %v16268_v29, %v920_v37 }
 0x236   : > { %14625 = vrsqrt.f32 %v821_v43  ;;  %v828_v28 = vadd.f32 1e-05, %v796_v25  ;;  %v884_v43 = vmul.f32 %v14618_v7, %v16144_v6 }
 0x237   : > { %v829_v61 = vadd.f32 1e-05, %v797_v50  ;;  %v754_v3 = vpop.xlane.xlu1 %753  ;;  %v883_v50 = vmul.f32 %v14620_v23, %v16141_v35  ;;  %22046 = vst [vmem:[#allocation27_spill] sm:$0xff] %v16334_v8 }
 0x238   : > { %v756_v20 = vpop.xlane.xlu0 %755  ;;  %14627 = vrsqrt.f32 %v828_v28  ;;  %v798_v1 = vmul.f32 0.0078125, %v754_v3  ;;  %v922_v28 = vmul.f32 %v16265_v52, %v884_v43  ;;  %v16338_v3 = vadd.f32 %v16268_v29, %v919_v42 }
 0x239   : > { %v799_v14 = vmul.f32 0.0078125, %v756_v20  ;;  %14629 = vrsqrt.f32 %v829_v61  ;;  %v826_v61 = vadd.f32 1e-05, %v794_v33 }
 0x23a   : > { %14631 = vrsqrt.f32 %v823_v51  ;;  %v830_v55 = vadd.f32 1e-05, %v798_v1  ;;  %v14622_v51 = vpop.eup %14621  ;;  %22047 = vst [vmem:[#allocation28_spill] sm:$0xff] %v16338_v3  ;;  %v16344_v37 = vpack.c.bf16 %v16334_v8, %v16338_v3 }
 0x23b   : > { %v831_v57 = vadd.f32 1e-05, %v799_v14  ;;  %v758_v56 = vpop.xlane.xlu1 %757  ;;  %1244 = vmatmul.mubr.bf16.gmra.mrb[8].mxu0 %v16326_v54  ;;  %v921_v14 = vmul.f32 %v16265_v52, %v883_v50 }
 0x23c   : > { %v764_v31 = vpop.xlane.xlu0 %763  ;;  %14633 = vrsqrt.f32 %v830_v55  ;;  %v800_v41 = vmul.f32 0.0078125, %v758_v56  ;;  %1253 = vmatprep.mubr.bf16.mxu0 %v15600_v32 }
 0x23d   : > { %v803_v25 = vmul.f32 0.0078125, %v764_v31  ;;  %14635 = vrsqrt.f32 %v831_v57  ;;  %v16352_v31 = vadd.f32 %v16268_v29, %v922_v28 }
 0x23e   : > { %14637 = vrsqrt.f32 %v824_v0  ;;  %v832_v6 = vadd.f32 1e-05, %v800_v41  ;;  %v886_v0 = vmul.f32 %v14622_v51, %v16154_v9  ;;  %v16361_v51 = vadd.f32 %v16268_v29, %v921_v14 }
 0x23f   : > { %v835_v59 = vadd.f32 1e-05, %v803_v25  ;;  %v14624_v34 = vpop.eup %14623  ;;  %14639 = vrsqrt.f32 %v825_v48  ;;  %v766_v62 = vpop.xlane.xlu1 %765  ;;  %22048 = vst [vmem:[#allocation29_spill] sm:$0xff] %v16352_v31 }
 0x240   : > { %v760_v12 = vpop.xlane.xlu0 %759  ;;  %v14626_v20 = vpop.eup %14625  ;;  %v891_v35 = vmul.f32 %v14624_v34, %v16181_v15  ;;  %14641 = vrsqrt.f32 %v832_v6  ;;  %v804_v7 = vmul.f32 0.0078125, %v766_v62  ;;  %22050 = vst [vmem:[#allocation31_spill] sm:$0xff] %v16361_v51 }
 0x241   : > { %v801_v1 = vmul.f32 0.0078125, %v760_v12  ;;  %14643 = vrsqrt.f32 %v835_v59  ;;  %v885_v15 = vmul.f32 %v14626_v20, %v16151_v44  ;;  %v924_v59 = vmul.f32 %v16265_v52, %v886_v0 }
 0x242   : > { %v14628_v23 = vpop.eup %14627  ;;  %v929_v55 = vmul.f32 %v16265_v52, %v891_v35  ;;  %v836_v57 = vadd.f32 1e-05, %v804_v7  ;;  %14645 = vrsqrt.f32 %v826_v61  ;;  %v16370_v7 = vpack.c.bf16 %v16352_v31, %v16361_v51 }
 0x243   : > { %v833_v42 = vadd.f32 1e-05, %v801_v1  ;;  %v14630_v43 = vpop.eup %14629  ;;  %v892_v48 = vmul.f32 %v14628_v23, %v16184_v36  ;;  %v762_v33 = vpop.xlane.xlu1 %761  ;;  %1254 = vmatmul.mubr.bf16.gmra.mrb[12].mxu0 %v16344_v37 }
 0x244   : > { %v768_v56 = vpop.xlane.xlu0 %767  ;;  %v14632_v41 = vpop.eup %14631  ;;  %v893_v9 = vmul.f32 %v14630_v43, %v16191_v17  ;;  %14647 = vrsqrt.f32 %v836_v57  ;;  %v802_v25 = vmul.f32 0.0078125, %v762_v33  ;;  %1263 = vmatprep.mubr.bf16.mxu0 %v15600_v32  ;;  %v16358_v36 = vadd.f32 %v16268_v29, %v929_v55 }
 0x245   : > { %v805_v50 = vmul.f32 0.0078125, %v768_v56  ;;  %v930_v44 = vmul.f32 %v16265_v52, %v892_v48  ;;  %14649 = vrsqrt.f32 %v833_v42  ;;  %v923_v33 = vmul.f32 %v16265_v52, %v885_v15 }
 0x246   : > { %22049 = vst [vmem:[#allocation30_spill] sm:$0xff] %v16358_v36  ;;  %v14634_v6 = vpop.eup %14633  ;;  %v931_v34 = vmul.f32 %v16265_v52, %v893_v9  ;;  %v834_v17 = vadd.f32 1e-05, %v802_v25  ;;  %v1877_v35 = vmul.f32 %v16271_v2, %v16358_v36 }
 0x247   : > { %v837_v28 = vadd.f32 1e-05, %v805_v50  ;;  %v14636_v61 = vpop.eup %14635  ;;  %v894_v62 = vmul.f32 %v14634_v6, %v16194_v46  ;;  %v770_v12 = vpop.xlane.xlu1 %769  ;;  %v16373_v1 = vadd.f32 %v16268_v29, %v930_v44 }
 0x248   : > { %v772_v20 = vpop.xlane.xlu0 %771  ;;  %v14638_v14 = vpop.eup %14637  ;;  %v895_v23 = vmul.f32 %v14636_v61, %v16201_v19  ;;  %14651 = vrsqrt.f32 %v834_v17  ;;  %v806_v0 = vmul.f32 0.0078125, %v770_v12  ;;  %1925 = vadd.xlane.f32.xlu0 %v1877_v35  ;;  %v16382_v43 = vadd.f32 %v16268_v29, %v931_v34 }
 0x249   : > { %22051 = vst [vmem:[#allocation32_spill] sm:$0xff] %v16373_v1  ;;  %v807_v55 = vmul.f32 0.0078125, %v772_v20  ;;  %v16376_v57 = vpop.eup %14639  ;;  %v932_v46 = vmul.f32 %v16265_v52, %v894_v62  ;;  %14653 = vrsqrt.f32 %v837_v28  ;;  %v1878_v42 = vmul.f32 %v16271_v2, %v16373_v1 }
 0x24a   : > { %22052 = vst [vmem:[#allocation33_spill] sm:$0xff] %v16382_v43  ;;  %v14642_v48 = vpop.eup %14641  ;;  %v933_v19 = vmul.f32 %v16265_v52, %v895_v23  ;;  %v838_v56 = vadd.f32 1e-05, %v806_v0  ;;  %v1879_v6 = vmul.f32 %v16271_v2, %v16382_v43  ;;  %v888_v17 = vmul.f32 %v14638_v14, %v16164_v53 }
 0x24b   : > { %v839_v9 = vadd.f32 1e-05, %v807_v55  ;;  %v14644_v25 = vpop.eup %14643  ;;  %v896_v50 = vmul.f32 %v14642_v48, %v16204_v58  ;;  %v774_v44 = vpop.xlane.xlu1 %773  ;;  %1264 = vmatmul.mubr.bf16.gmra.mrb[16].mxu0 %v16370_v7  ;;  %1927 = vadd.xlane.f32.xlu1 %v1878_v42  ;;  %v16391_v34 = vadd.f32 %v16268_v29, %v932_v46  ;;  %v16400_v12 = vadd.f32 %v16268_v29, %v924_v59 }
 0x24c   : > { %v899_v15 = vmul.f32 %v14644_v25, %v16211_v21  ;;  %14655 = vrsqrt.f32 %v838_v56  ;;  %v808_v28 = vmul.f32 0.0078125, %v774_v44  ;;  %1273 = vmatprep.mubr.bf16.mxu0 %v15600_v32  ;;  %v14646_v61 = vpop.eup %14645  ;;  %1929 = vadd.xlane.f32.xlu0 %v1879_v6  ;;  %v887_v53 = vmul.f32 %v14632_v41, %v16161_v11 }
 0x24d   : > { %22053 = vst [vmem:[#allocation34_spill] sm:$0xff] %v16391_v34  ;;  %v934_v58 = vmul.f32 %v16265_v52, %v896_v50  ;;  %14657 = vrsqrt.f32 %v839_v9  ;;  %v1880_v62 = vmul.f32 %v16271_v2, %v16391_v34  ;;  %22054 = vst [vmem:[#allocation35_spill] sm:$0xff] %v16400_v12  ;;  %v16404_v21 = vadd.f32 %v16268_v29, %v933_v19 }
 0x24e   : > { %v14648_v20 = vpop.eup %14647  ;;  %v840_v35 = vadd.f32 1e-05, %v808_v28  ;;  %v937_v23 = vmul.f32 %v16265_v52, %v899_v15  ;;  %v1865_v55 = vmul.f32 %v16271_v2, %v16321_v5  ;;  %v16411_v46 = vadd.f32 %v16268_v29, %v923_v33  ;;  %v14569_v15 = vld [vmem:[#allocation11 + $0x8] ss:$16 sps:$4 sm:$0xff]  }
 0x24f   : > { %22055 = vst [vmem:[#allocation36_spill] sm:$0xff] %v16404_v21  ;;  %v14650_v14 = vpop.eup %14649  ;;  %v900_v0 = vmul.f32 %v14648_v20, %v16214_v4  ;;  %1931 = vadd.xlane.f32.xlu1 %v1880_v62  ;;  %v1866_v11 = vmul.f32 %v16271_v2, %v16317_v49  ;;  %v926_v41 = vmul.f32 %v16265_v52, %v888_v17  ;;  %v14574_v20 = vld [vmem:[#allocation11 + $0x2c] ss:$16 sps:$4 sm:$0xff]  }
 0x250   : > { %22056 = vst [vmem:[#allocation37_spill] sm:$0xff] %v16411_v46  ;;  %v897_v59 = vmul.f32 %v14650_v14, %v16221_v38  ;;  %14659 = vrsqrt.f32 %v840_v35  ;;  %1901 = vadd.xlane.f32.xlu0 %v1865_v55  ;;  %v16420_v4 = vpack.c.bf16 %v16400_v12, %v16411_v46  ;;  %v16423_v48 = vadd.f32 %v16268_v29, %v934_v58 }
 0x251   : > { %v938_v42 = vmul.f32 %v16265_v52, %v900_v0  ;;  %v925_v19 = vmul.f32 %v16265_v52, %v887_v53  ;;  %v1881_v56 = vmul.f32 %v16271_v2, %v16404_v21  ;;  %v16432_v50 = vadd.f32 %v16268_v29, %v937_v23  ;;  %v776_v0 = vpop.xlane.xlu0 %775 }
 0x252   : > { %22057 = vst [vmem:[#allocation38_spill] sm:$0xff] %v16423_v48  ;;  %v14652_v33 = vpop.eup %14651  ;;  %v935_v38 = vmul.f32 %v16265_v52, %v897_v59  ;;  %v890_v6 = vmul.f32 %v14646_v61, %v16174_v63  ;;  %v1882_v58 = vmul.f32 %v16271_v2, %v16423_v48  ;;  %v16448_v62 = vadd.f32 %v16268_v29, %v926_v41  ;;  %v14572_v59 = vld [vmem:[#allocation11 + $0x28] ss:$16 sps:$4 sm:$0xff]  }
 0x253   : > { %v14654_v9 = vpop.eup %14653  ;;  %v898_v25 = vmul.f32 %v14652_v33, %v16224_v22  ;;  %1274 = vmatmul.mubr.bf16.gmra.mrb[20].mxu0 %v16420_v4  ;;  %1903 = vadd.xlane.f32.xlu1 %v1866_v11  ;;  %22058 = vst [vmem:[#allocation39_spill] sm:$0xff] %v16432_v50  ;;  %v16435_v44 = vadd.f32 %v16268_v29, %v938_v42  ;;  %v14577_v42 = vld [vmem:[#allocation11 + $0x4c] ss:$16 sps:$4 sm:$0xff]  }
 0x254   : > { %v901_v17 = vmul.f32 %v14654_v9, %v16231_v16  ;;  %1283 = vmatprep.mubr.bf16.mxu0 %v15600_v32  ;;  %1933 = vadd.xlane.f32.xlu0 %v1881_v56  ;;  %22060 = vst [vmem:[#allocation41_spill] sm:$0xff] %v16448_v62  ;;  %v889_v16 = vmul.f32 %v16376_v57, %v16171_v13  ;;  %v809_v56 = vmul.f32 0.0078125, %v776_v0 }
 0x255   : > { %22059 = vst [vmem:[#allocation40_spill] sm:$0xff] %v16435_v44  ;;  %v936_v28 = vmul.f32 %v16265_v52, %v898_v25  ;;  %v16443_v22 = vpack.c.bf16 %v16435_v44, %v16432_v50  ;;  %v1867_v61 = vmul.f32 %v16271_v2, %v16338_v3  ;;  %v16455_v53 = vadd.f32 %v16268_v29, %v935_v38 }
 0x256   : > { %v14656_v63 = vpop.eup %14655  ;;  %v939_v14 = vmul.f32 %v16265_v52, %v901_v17  ;;  %v16461_v55 = vadd.f32 %v16268_v29, %v925_v19  ;;  %v928_v13 = vmul.f32 %v16265_v52, %v890_v6  ;;  %v1868_v57 = vmul.f32 %v16271_v2, %v16334_v8 }
 0x257   : > { %22061 = vst [vmem:[#allocation42_spill] sm:$0xff] %v16455_v53  ;;  %v14658_v35 = vpop.eup %14657  ;;  %v902_v23 = vmul.f32 %v14656_v63, %v16234_v24  ;;  %1344 = vmatmul.mubr.bf16.vlgmr.msra.gmra.mrb[0].mxu1 %v16443_v22  ;;  %1935 = vadd.xlane.f32.xlu1 %v1882_v58  ;;  %v16473_v41 = vadd.f32 %v16268_v29, %v936_v28  ;;  %v841_v63 = vadd.f32 1e-05, %v809_v56 }
 0x258   : > { %22062 = vst [vmem:[#allocation43_spill] sm:$0xff] %v16461_v55  ;;  %1353 = vmatprep.mubr.bf16.mxu1 %v15600_v32  ;;  %1385 = vmatpush1.bf16.msra.mxu1 %v14569_v15  ;;  %v16470_v24 = vpack.c.bf16 %v16448_v62, %v16461_v55  ;;  %v927_v19 = vmul.f32 %v16265_v52, %v889_v16 }
 0x259   : > { %v940_v11 = vmul.f32 %v16265_v52, %v902_v23  ;;  %1905 = vadd.xlane.f32.xlu0 %v1867_v61  ;;  %22063 = vst [vmem:[#allocation44_spill] sm:$0xff] %v16473_v41  ;;  %1386 = vmatprep.subr.bf16.mxu1 %v14574_v20  ;;  %v903_v38 = vmul.f32 %v14658_v35, %v16241_v26  ;;  %v14575_v26 = vld [vmem:[#allocation11 + $0x48] ss:$16 sps:$4 sm:$0xff]   ;;  %v14580_v20 = vld [vmem:[#allocation11 + $0x6c] ss:$16 sps:$4 sm:$0xff]   ;;  %14661 = vrsqrt.f32 %v841_v63 }
 0x25a   : > { %v14660_v33 = vpop.eup %14659  ;;  %v1883_v9 = vmul.f32 %v16271_v2, %v16455_v53  ;;  %v16482_v6 = vadd.f32 %v16268_v29, %v939_v14  ;;  %v16489_v15 = vadd.f32 %v16268_v29, %v928_v13  ;;  %v1884_v58 = vmul.f32 %v16271_v2, %v16473_v41  ;;  %v14578_v14 = vld [vmem:[#allocation11 + $0x68] ss:$16 sps:$4 sm:$0xff]  }
 0x25b   : > { %v904_v25 = vmul.f32 %v14660_v33, %v16244_v27  ;;  %1284 = vmatmul.mubr.bf16.gmra.mrb[24].mxu0 %v16470_v24  ;;  %1907 = vadd.xlane.f32.xlu1 %v1868_v57  ;;  %v16485_v17 = vadd.f32 %v16268_v29, %v940_v11  ;;  %v941_v16 = vmul.f32 %v16265_v52, %v903_v38  ;;  %v14583_v57 = vld [vmem:[#allocation11 + $0x8c] ss:$16 sps:$4 sm:$0xff]   ;;  %v14587_v63 = vld [vmem:[#allocation11 + $0xc8] ss:$16 sps:$4 sm:$0xff]  }
 0x25c   : > { %22064 = vst [vmem:[#allocation45_spill] sm:$0xff] %v16482_v6  ;;  %1293 = vmatprep.mubr.bf16.mxu0 %v15600_v32  ;;  %22066 = vst [vmem:[#allocation47_spill] sm:$0xff] %v16489_v15  ;;  %1387 = vmatpush1.bf16.msra.mxu1 %v14572_v59  ;;  %v1869_v61 = vmul.f32 %v16271_v2, %v16361_v51  ;;  %v16503_v35 = vadd.f32 %v16268_v29, %v927_v19  ;;  %v14586_v38 = vld [vmem:[#allocation11 + $0xac] ss:$16 sps:$4 sm:$0xff]  }
 0x25d   : > { %22065 = vst [vmem:[#allocation46_spill] sm:$0xff] %v16485_v17  ;;  %v942_v28 = vmul.f32 %v16265_v52, %v904_v25  ;;  %1937 = vadd.xlane.f32.xlu0 %v1883_v9  ;;  %v16494_v27 = vpack.c.bf16 %v16485_v17, %v16482_v6  ;;  %1388 = vmatprep.subr.bf16.mxu1 %v14577_v42  ;;  %v14581_v42 = vld [vmem:[#allocation11 + $0x88] ss:$16 sps:$4 sm:$0xff]  }
 0x25e   : > { %22067 = vst [vmem:[#allocation48_spill] sm:$0xff] %v16503_v35  ;;  %v16508_v23 = vpack.c.bf16 %v16489_v15, %v16503_v35  ;;  %v1870_v0 = vmul.f32 %v16271_v2, %v16352_v31  ;;  %v1885_v59 = vmul.f32 %v16271_v2, %v16432_v50  ;;  %v16519_v11 = vadd.f32 %v16268_v29, %v941_v16  ;;  %v14584_v9 = vld [vmem:[#allocation11 + $0xa8] ss:$16 sps:$4 sm:$0xff]  }
 0x25f   : > { %1354 = vmatmul.mubr.bf16.gmra.mrb[4].mxu1 %v16494_v27  ;;  %1939 = vadd.xlane.f32.xlu1 %v1884_v58  ;;  %v16513_v13 = vadd.f32 %v16268_v29, %v942_v28  ;;  %v1886_v19 = vmul.f32 %v16271_v2, %v16435_v44  ;;  %v1871_v56 = vmul.f32 %v16271_v2, %v16411_v46  ;;  %v14589_v28 = vld [vmem:[#allocation11 + $0xcc] ss:$16 sps:$4 sm:$0xff]  }
 0x260   : > { %1363 = vmatprep.mubr.bf16.mxu1 %v15600_v32  ;;  %1389 = vmatpush1.bf16.msra.mxu1 %v14575_v26  ;;  %22069 = vst [vmem:[#allocation50_spill] sm:$0xff] %v16519_v11  ;;  %v16534_v25 = vpack.c.bf16 %v16373_v1, %v16358_v36  ;;  %v1872_v26 = vmul.f32 %v16271_v2, %v16400_v12 }
 0x261   : > { %1909 = vadd.xlane.f32.xlu0 %v1869_v61  ;;  %22068 = vst [vmem:[#allocation49_spill] sm:$0xff] %v16513_v13  ;;  %1390 = vmatprep.subr.bf16.mxu1 %v14580_v20  ;;  %v16524_v33 = vpack.c.bf16 %v16513_v13, %v16519_v11  ;;  %v1887_v58 = vmul.f32 %v16271_v2, %v16482_v6  ;;  %v14592_v61 = vld [vmem:[#allocation11 + $0xec] ss:$16 sps:$4 sm:$0xff]  }
 0x262   : > { %v1888_v16 = vmul.f32 %v16271_v2, %v16485_v17 }
 0x263   : > { %1294 = vmatmul.mubr.bf16.gmra.mrb[28].mxu0 %v16508_v23  ;;  %1911 = vadd.xlane.f32.xlu1 %v1870_v0  ;;  %v14662_v20 = vpop.eup %14661  ;;  %v1873_v0 = vmul.f32 %v16271_v2, %v16461_v55 }
 0x264   : > { %1303 = vmatprep.mubr.bf16.mxu0 %v15600_v32  ;;  %1391 = vmatpush1.bf16.msra.mxu1 %v14578_v14  ;;  %v905_v14 = vmul.f32 %v14662_v20, %v16251_v60  ;;  %v1889_v60 = vmul.f32 %v16271_v2, %v16519_v11  ;;  %v16574_v20 = vpop.permute.xlu1 %507 }
 0x265   : > { %1941 = vadd.xlane.f32.xlu0 %v1885_v59  ;;  %1392 = vmatprep.subr.bf16.mxu1 %v14583_v57  ;;  %v14590_v57 = vld [vmem:[#allocation11 + $0xe8] ss:$16 sps:$4 sm:$0xff]   ;;  %v16549_v59 = vpack.c.bf16 %v16391_v34, %v16382_v43  ;;  %22071 = vst [vmem:[#allocation52_spill] sm:$0xff] %v16574_v20 }
 0x267   : > { %1364 = vmatmul.mubr.bf16.gmra.mrb[8].mxu1 %v16524_v33  ;;  %1943 = vadd.xlane.f32.xlu1 %v1886_v19  ;;  %v943_v19 = vmul.f32 %v16265_v52, %v905_v14 }
 0x268   : > { %1393 = vmatpush1.bf16.msra.mxu1 %v14581_v42  ;;  %1373 = vmatprep.mubr.bf16.mxu1 %v15600_v32  ;;  %v1874_v42 = vmul.f32 %v16271_v2, %v16448_v62 }
 0x269   : > { %1913 = vadd.xlane.f32.xlu0 %v1871_v56  ;;  %1394 = vmatprep.subr.bf16.mxu1 %v14586_v38  ;;  %v1890_v38 = vmul.f32 %v16271_v2, %v16513_v13  ;;  %v1875_v56 = vmul.f32 %v16271_v2, %v16503_v35 }
 0x26b   : > { %1304 = vmatmul.mubr.bf16.gmra.mrb[32].mxu0 %v16534_v25  ;;  %1915 = vadd.xlane.f32.xlu1 %v1872_v26  ;;  %v16567_v26 = vpack.c.bf16 %v16423_v48, %v16404_v21 }
 0x26c   : > { %1313 = vmatprep.mubr.bf16.mxu0 %v15600_v32  ;;  %1395 = vmatpush1.bf16.msra.mxu1 %v14584_v9  ;;  %v16563_v9 = vadd.f32 %v16268_v29, %v943_v19  ;;  %v21764_v19 = vmov 0.0  }
 0x26d   : > { %1945 = vadd.xlane.f32.xlu0 %v1887_v58  ;;  %1396 = vmatprep.subr.bf16.mxu1 %v14589_v28  ;;  %v1876_v28 = vmul.f32 %v16271_v2, %v16489_v15 }
 0x26e   : > { %22070 = vst [vmem:[#allocation51_spill] sm:$0xff] %v16563_v9  ;;  %v1891_v58 = vmul.f32 %v16271_v2, %v16563_v9  ;;  %13405 = vmatprep.subr.bf16.mxu0 %v21764_v19 }
 0x26f   : > { %1947 = vadd.xlane.f32.xlu1 %v1888_v16 }
 0x270   : > { %1397 = vmatpush1.bf16.msra.mxu1 %v14587_v63  ;;  %v16577_v63 = vld [vmem:[#allocation10 + $0x1] ss:$0 sm:$0xff] }
 0x271   : > { %1917 = vadd.xlane.f32.xlu0 %v1873_v0  ;;  %1398 = vmatprep.subr.bf16.mxu1 %v14592_v61  ;;  %v4080_v16 = vmul.f32 %v16577_v63, %v16284_v45  ;;  %v16583_v0 = vpack.c.bf16 %v16473_v41, %v16455_v53 }
 0x273   : > { %1314 = vmatmul.mubr.bf16.gmra.mrb[36].mxu0 %v16549_v59  ;;  %1919 = vadd.xlane.f32.xlu1 %v1874_v42  ;;  %v4081_v42 = vmul.f32 %v16577_v63, %v16294_v10 }
 0x274   : > { %1323 = vmatprep.mubr.bf16.mxu0 %v15600_v32  ;;  %1399 = vmatpush1.bf16.msra.mxu1 %v14590_v57 }
 0x275   : > { %1949 = vadd.xlane.f32.xlu0 %v1889_v60  ;;  %13411 = vmatprep.subr.bf16.mxu1 %v21764_v19  ;;  %v4095_v60 = vmul.f32 %v16577_v63, %v16358_v36 }
 0x277   : > { %1951 = vadd.xlane.f32.xlu1 %v1890_v38  ;;  %v4097_v38 = vmul.f32 %v16577_v63, %v16382_v43 }
 0x279   : > { %1921 = vadd.xlane.f32.xlu0 %v1875_v56 }
 0x27b   : > { %1324 = vmatmul.mubr.bf16.gmra.mrb[40].mxu0 %v16567_v26  ;;  %1923 = vadd.xlane.f32.xlu1 %v1876_v28  ;;  %v4083_v28 = vmul.f32 %v16577_v63, %v16321_v5 }
 0x27c   : > { %1333 = vmatprep.mubr.bf16.mxu0 %v15600_v32 }
 0x27d   : > { %1953 = vadd.xlane.f32.xlu0 %v1891_v58 }
 0x280   : > { %v778_v61 = vpop.xlane.xlu1 %777 }
 0x281   : > { %4113 = vadd.xlane.f32.xlu0 %v4080_v16  ;;  %v810_v14 = vmul.f32 0.0078125, %v778_v61  ;;  %v4099_v61 = vmul.f32 %v16577_v63, %v16404_v21 }
 0x283   : > { %v842_v57 = vadd.f32 1e-05, %v810_v14  ;;  %1334 = vmatmul.mubr.bf16.gmra.mrb[44].mxu0 %v16583_v0 }
 0x284   : > { %13407 = vmatprep.mubr.msk.bf16.mxu0 %vm15602_vm0, %v21764_v19 }
 0x285   : > { %14663 = vrsqrt.f32 %v842_v57  ;;  %4115 = vadd.xlane.f32.xlu0 %v4081_v42 }
 0x289   : > { %4143 = vadd.xlane.f32.xlu0 %v4095_v60  ;;  %v4087_v60 = vmul.f32 %v16577_v63, %v16361_v51 }
 0x28d   : > { %4147 = vadd.xlane.f32.xlu0 %v4097_v38  ;;  %v4096_v38 = vmul.f32 %v16577_v63, %v16373_v1 }
 0x28f   : > { %v14664_v56 = vpop.eup %14663 }
 0x290   : > { %v906_v58 = vmul.f32 %v14664_v56, %v16261_v30  ;;  %v4085_v30 = vmul.f32 %v16577_v63, %v16338_v3  ;;  %v4103_v56 = vmul.f32 %v16577_v63, %v16432_v50 }
 0x291   : > { %4119 = vadd.xlane.f32.xlu0 %v4083_v28  ;;  %v4098_v28 = vmul.f32 %v16577_v63, %v16391_v34 }
 0x292   : > { %v944_v16 = vmul.f32 %v16265_v52, %v906_v58  ;;  %v4079_v52 = vmul.f32 %v16577_v63, %v16275_v40  ;;  %v4089_v58 = vmul.f32 %v16577_v63, %v16411_v46 }
 0x294   : > { %v16603_v14 = vadd.f32 %v16268_v29, %v944_v16  ;;  %v4101_v29 = vmul.f32 %v16577_v63, %v16455_v53  ;;  %v4105_v16 = vmul.f32 %v16577_v63, %v16482_v6 }
 0x295   : > { %4151 = vadd.xlane.f32.xlu0 %v4099_v61  ;;  %v4100_v61 = vmul.f32 %v16577_v63, %v16423_v48 }
 0x296   : > { %22072 = vst [vmem:[#allocation53_spill] sm:$0xff] %v16603_v14  ;;  %v1892_v57 = vmul.f32 %v16271_v2, %v16603_v14  ;;  %v16609_v42 = vpack.c.bf16 %v16603_v14, %v16563_v9  ;;  %v4082_v2 = vmul.f32 %v16577_v63, %v16298_v18 }
 0x298   : > { %1955 = vadd.xlane.f32.xlu1 %v1892_v57  ;;  %1374 = vmatmul.mubr.bf16.gmra.mrb[12].mxu1 %v16609_v42  ;;  %v4091_v57 = vmul.f32 %v16577_v63, %v16461_v55 }
 0x299   : > { %4123 = vadd.xlane.f32.xlu0 %v4085_v30  ;;  %1416 = vmatprep.mubr.bf16.mxu1 %v15600_v32  ;;  %v4107_v30 = vmul.f32 %v16577_v63, %v16519_v11 }
 0x29c   : > { %4111 = vadd.xlane.f32.xlu1 %v4079_v52  ;;  %v4102_v52 = vmul.f32 %v16577_v63, %v16473_v41 }
 0x29d   : > { %4155 = vadd.xlane.f32.xlu0 %v4101_v29  ;;  %v4093_v29 = vmul.f32 %v16577_v63, %v16503_v35 }
 0x2a0   : > { %4117 = vadd.xlane.f32.xlu1 %v4082_v2  ;;  %1417 = vmatmul.mubr.bf16.vlgmr.msra.gmra.mrb[16].mxu1 %v16289_v47  ;;  %v4084_v47 = vmul.f32 %v16577_v63, %v16317_v49  ;;  %v4109_v2 = vmul.f32 %v16577_v63, %v16563_v9 }
 0x2a1   : > { %4127 = vadd.xlane.f32.xlu0 %v4087_v60  ;;  %1426 = vmatprep.mubr.bf16.mxu1 %v15600_v32  ;;  %v4104_v60 = vmul.f32 %v16577_v63, %v16435_v44 }
 0x2a4   : > { %4145 = vadd.xlane.f32.xlu1 %v4096_v38  ;;  %v4106_v38 = vmul.f32 %v16577_v63, %v16485_v17 }
 0x2a5   : > { %4159 = vadd.xlane.f32.xlu0 %v4103_v56  ;;  %v4092_v56 = vmul.f32 %v16577_v63, %v16448_v62 }
 0x2a8   : > { %4149 = vadd.xlane.f32.xlu1 %v4098_v28  ;;  %1427 = vmatmul.mubr.bf16.gmra.mrb[20].mxu1 %v16310_v39  ;;  %v4086_v39 = vmul.f32 %v16577_v63, %v16334_v8  ;;  %v4094_v28 = vmul.f32 %v16577_v63, %v16489_v15 }
 0x2a9   : > { %4131 = vadd.xlane.f32.xlu0 %v4089_v58  ;;  %1436 = vmatprep.mubr.bf16.mxu1 %v15600_v32 }
 0x2ac   : > { %4121 = vadd.xlane.f32.xlu1 %v4084_v47 }
 0x2ad   : > { %4163 = vadd.xlane.f32.xlu0 %v4105_v16 }
 0x2b0   : > { %4153 = vadd.xlane.f32.xlu1 %v4100_v61  ;;  %1437 = vmatmul.mubr.bf16.gmra.mrb[24].mxu1 %v16326_v54  ;;  %v4088_v54 = vmul.f32 %v16577_v63, %v16352_v31 }
 0x2b1   : > { %4135 = vadd.xlane.f32.xlu0 %v4091_v57  ;;  %1446 = vmatprep.mubr.bf16.mxu1 %v15600_v32 }
 0x2b4   : > { %4125 = vadd.xlane.f32.xlu1 %v4086_v39 }
 0x2b5   : > { %4167 = vadd.xlane.f32.xlu0 %v4107_v30 }
 0x2b8   : > { %4157 = vadd.xlane.f32.xlu1 %v4102_v52  ;;  %1447 = vmatmul.mubr.bf16.gmra.mrb[28].mxu1 %v16344_v37  ;;  %v4090_v37 = vmul.f32 %v16577_v63, %v16400_v12 }
 0x2b9   : > { %4139 = vadd.xlane.f32.xlu0 %v4093_v29  ;;  %1456 = vmatprep.mubr.bf16.mxu1 %v15600_v32 }
 0x2bc   : > { %4129 = vadd.xlane.f32.xlu1 %v4088_v54 }
 0x2bd   : > { %4171 = vadd.xlane.f32.xlu0 %v4109_v2 }
 0x2c0   : > { %4161 = vadd.xlane.f32.xlu1 %v4104_v60  ;;  %1457 = vmatmul.mubr.bf16.gmra.mrb[32].mxu1 %v16370_v7  ;;  %v4108_v7 = vmul.f32 %v16577_v63, %v16513_v13 }
 0x2c1   : > { %1466 = vmatprep.mubr.bf16.mxu1 %v15600_v32 }
 0x2c4   : > { %4133 = vadd.xlane.f32.xlu1 %v4090_v37 }
 0x2c8   : > { %4165 = vadd.xlane.f32.xlu1 %v4106_v38  ;;  %1467 = vmatmul.mubr.bf16.gmra.mrb[36].mxu1 %v16420_v4  ;;  %v4110_v4 = vmul.f32 %v16577_v63, %v16603_v14 }
 0x2c9   : > { %1476 = vmatprep.mubr.bf16.mxu1 %v15600_v32 }
 0x2cc   : > { %4137 = vadd.xlane.f32.xlu1 %v4092_v56 }
 0x2d0   : > { %4169 = vadd.xlane.f32.xlu1 %v4108_v7  ;;  %1477 = vmatmul.mubr.bf16.gmra.mrb[40].mxu1 %v16470_v24 }
 0x2d1   : > { %1486 = vmatprep.mubr.bf16.mxu1 %v15600_v32 }
 0x2d4   : > { %4141 = vadd.xlane.f32.xlu1 %v4094_v28 }
 0x2d8   : > { %4173 = vadd.xlane.f32.xlu1 %v4110_v4  ;;  %1487 = vmatmul.mubr.bf16.gmra.mrb[44].mxu1 %v16508_v23 }
 0x2d9   : > { %1496 = vmatprep.mubr.bf16.mxu1 %v15600_v32 }
 0x2e0   : > { %1497 = vmatmul.mubr.bf16.gmra.mrb[48].mxu1 %v16534_v25 }
 0x2e1   : > { %1506 = vmatprep.mubr.bf16.mxu1 %v15600_v32 }
 0x2e8   : > { %1507 = vmatmul.mubr.bf16.gmra.mrb[52].mxu1 %v16549_v59 }
 0x2e9   : > { %1516 = vmatprep.mubr.bf16.mxu1 %v15600_v32 }
 0x2f0   : > { %1517 = vmatmul.mubr.bf16.gmra.mrb[56].mxu1 %v16567_v26 }
 0x2f1   : > { %1526 = vmatprep.mubr.bf16.mxu1 %v15600_v32 }
 0x2f8   : > { %1527 = vmatmul.mubr.bf16.gmra.mrb[60].mxu1 %v16583_v0 }
 0x2f9   : > { %1536 = vmatprep.mubr.bf16.mxu1 %v15600_v32 }
 0x2fe   : > { %v1225_v24 = vpop.f32.mrb[0].mxu0 }
 0x2ff   : > { %v1227_v23 = vpop.f32.mrb[1].mxu0 }
 0x300   : > { %v1229_v63 = vpop.f32.mrb[2].mxu0  ;;  %1537 = vmatmul.mubr.bf16.gmra.mrb[64].mxu1 %v16443_v22 }
 0x301   : > { %v16690_v25 = vpack.c.bf16 %v1229_v63, %v1225_v24  ;;  %v1231_v58 = vpop.f32.mrb[3].mxu0  ;;  %1546 = vmatprep.mubr.bf16.mxu1 %v15600_v32 }
 0x302   : > { %v16693_v59 = vpack.c.bf16 %v1231_v58, %v1227_v23 }
 0x303   : > { %22073 = vst [vmem:[#allocation54_spill] sm:$0xff] %v16690_v25  ;;  %4176 = vrot.lane.b32.xlu1 %v16690_v25, %s15603_s30  ;;  %7154 = vrot.lane.b32.xlu0 %v16690_v25, %s15604_s24 }
 0x304   : > { %22074 = vst [vmem:[#allocation55_spill] sm:$0xff] %v16693_v59  ;;  %v2165_v26 = vsel %vm2160_vm1, %v16693_v59, 0 }
 0x305   : > { %13406 = vmatpush3.bf16.xpose.msra.mxu0 %v2165_v26 }
 0x306   : > { %v1235_v22 = vpop.f32.mrb[4].mxu0  ;;  %13417 = vmatprep.subr.bf16.mxu0 %v21764_v19 }
 0x307   : > { %v1237_v0 = vpop.f32.mrb[5].mxu0  ;;  %4179 = vrot.lane.b32.xlu0 %v16693_v59, %s15603_s30 }
 0x308   : > { %v1239_v47 = vpop.f32.mrb[6].mxu0  ;;  %1547 = vmatmul.mubr.bf16.gmra.mrb[68].mxu1 %v16494_v27 }
 0x309   : > { %v16705_v16 = vpack.c.bf16 %v1239_v47, %v1235_v22  ;;  %v1241_v61 = vpop.f32.mrb[7].mxu0  ;;  %1556 = vmatprep.mubr.bf16.mxu1 %v15600_v32 }
 0x30a   : > { %v16708_v57 = vpack.c.bf16 %v1241_v61, %v1237_v0 }
 0x30b   : > { %22075 = vst [vmem:[#allocation56_spill] sm:$0xff] %v16705_v16 }
 0x30c   : > { %22076 = vst [vmem:[#allocation57_spill] sm:$0xff] %v16708_v57  ;;  %13408 = vmatmul.mubr.msk.bf16.vlgmr.msra.gmra.mrb[48].mxu0 %vm2160_vm1, %v16690_v25  ;;  %v2212_v39 = vsel %vm2160_vm1, %v16708_v57, 0 }
 0x30d   : > { %13412 = vmatpush3.bf16.xpose.msra.mxu1 %v2212_v39  ;;  %13419 = vmatprep.mubr.msk.bf16.mxu0 %vm15602_vm0, %v21764_v19 }
 0x30e   : > { %v1245_v30 = vpop.f32.mrb[8].mxu0  ;;  %13423 = vmatprep.subr.bf16.mxu1 %v21764_v19 }
 0x30f   : > { %v1247_v27 = vpop.f32.mrb[9].mxu0 }
 0x310   : > { %v1249_v52 = vpop.f32.mrb[10].mxu0  ;;  %1557 = vmatmul.mubr.bf16.gmra.mrb[72].mxu1 %v16524_v33 }
 0x311   : > { %v16718_v29 = vpack.c.bf16 %v1249_v52, %v1245_v30  ;;  %v1251_v54 = vpop.f32.mrb[11].mxu0  ;;  %1566 = vmatprep.mubr.bf16.mxu1 %v15600_v32 }
 0x312   : > { %v16721_v2 = vpack.c.bf16 %v1251_v54, %v1247_v27 }
 0x313   : > { %22077 = vst [vmem:[#allocation58_spill] sm:$0xff] %v16718_v29 }
 0x314   : > { %22078 = vst [vmem:[#allocation59_spill] sm:$0xff] %v16721_v2  ;;  %v2259_v60 = vsel %vm2160_vm1, %v16721_v2, 0 }
 0x315   : > { %13418 = vmatpush3.bf16.xpose.msra.mxu0 %v2259_v60 }
 0x316   : > { %v1255_v37 = vpop.f32.mrb[12].mxu0  ;;  %13429 = vmatprep.subr.bf16.mxu0 %v21764_v19 }
 0x317   : > { %v1257_v38 = vpop.f32.mrb[13].mxu0 }
 0x318   : > { %v1259_v56 = vpop.f32.mrb[14].mxu0  ;;  %1567 = vmatmul.mubr.bf16.gmra.mrb[76].mxu1 %v16609_v42 }
 0x319   : > { %v16727_v7 = vpack.c.bf16 %v1259_v56, %v1255_v37  ;;  %v1261_v33 = vpop.f32.mrb[15].mxu0  ;;  %13413 = vmatprep.mubr.msk.bf16.mxu1 %vm15602_vm0, %v21764_v19 }
 0x31a   : > { %v16731_v32 = vpack.c.bf16 %v1261_v33, %v1257_v38 }
 0x31b   : > { %22079 = vst [vmem:[#allocation60_spill] sm:$0xff] %v16727_v7 }
 0x31c   : > { %22080 = vst [vmem:[#allocation61_spill] sm:$0xff] %v16731_v32  ;;  %13420 = vmatmul.mubr.msk.bf16.vlgmr.msra.gmra.mrb[52].mxu0 %vm2160_vm1, %v16718_v29  ;;  %v2306_v42 = vsel %vm2160_vm1, %v16731_v32, 0 }
 0x31d   : > { %13431 = vmatprep.mubr.msk.bf16.mxu0 %vm15602_vm0, %v21764_v19 }
 0x31e   : > { %v1265_v28 = vpop.f32.mrb[16].mxu0 }
 0x31f   : > { %v1267_v4 = vpop.f32.mrb[17].mxu0 }
 0x320   : > { %v1269_v24 = vpop.f32.mrb[18].mxu0  ;;  %13414 = vmatmul.mubr.msk.bf16.vlgmr.msra.gmra.mrb[80].mxu1 %vm2160_vm1, %v16705_v16 }
 0x321   : > { %v16741_v23 = vpack.c.bf16 %v1269_v24, %v1265_v28  ;;  %13424 = vmatpush3.bf16.xpose.msra.mxu1 %v2306_v42  ;;  %v1271_v63 = vpop.f32.mrb[19].mxu0  ;;  %13425 = vmatprep.mubr.msk.bf16.mxu1 %vm15602_vm0, %v21764_v19  ;;  %v16770_v28 = vpop.xlane.xlu1 %1895 }
 0x322   : > { %v16745_v58 = vpack.c.bf16 %v1271_v63, %v1267_v4  ;;  %13435 = vmatprep.subr.bf16.mxu1 %v21764_v19 }
 0x323   : > { %22081 = vst [vmem:[#allocation62_spill] sm:$0xff] %v16741_v23 }
 0x324   : > { %22082 = vst [vmem:[#allocation63_spill] sm:$0xff] %v16745_v58  ;;  %v2353_v26 = vsel %vm2160_vm1, %v16745_v58, 0 }
 0x325   : > { %13430 = vmatpush3.bf16.xpose.msra.mxu0 %v2353_v26 }
 0x326   : > { %v1275_v22 = vpop.f32.mrb[20].mxu0  ;;  %13441 = vmatprep.subr.bf16.mxu0 %v21764_v19 }
 0x327   : > { %v1277_v0 = vpop.f32.mrb[21].mxu0 }
 0x328   : > { %v1279_v47 = vpop.f32.mrb[22].mxu0  ;;  %13426 = vmatmul.mubr.msk.bf16.vlgmr.msra.gmra.mrb[84].mxu1 %vm2160_vm1, %v16727_v7 }
 0x329   : > { %v16753_v61 = vpack.c.bf16 %v1279_v47, %v1275_v22  ;;  %v1281_v39 = vpop.f32.mrb[23].mxu0  ;;  %13437 = vmatprep.mubr.msk.bf16.mxu1 %vm15602_vm0, %v21764_v19 }
 0x32a   : > { %v16757_v30 = vpack.c.bf16 %v1281_v39, %v1277_v0  ;;  %v1345_v27 = vpop.f32.mrb[0].mxu1 }
 0x32b   : > { %22083 = vst [vmem:[#allocation64_spill] sm:$0xff] %v16753_v61  ;;  %v1347_v52 = vpop.f32.mrb[1].mxu1 }
 0x32c   : > { %22084 = vst [vmem:[#allocation65_spill] sm:$0xff] %v16757_v30  ;;  %v1349_v54 = vpop.f32.mrb[2].mxu1  ;;  %13432 = vmatmul.mubr.msk.bf16.vlgmr.msra.gmra.mrb[56].mxu0 %vm2160_vm1, %v16741_v23  ;;  %v2400_v60 = vsel %vm2160_vm1, %v16757_v30, 0 }
 0x32d   : > { %v16763_v37 = vpack.c.bf16 %v1349_v54, %v1345_v27  ;;  %v1351_v38 = vpop.f32.mrb[3].mxu1  ;;  %13436 = vmatpush3.bf16.xpose.msra.mxu1 %v2400_v60  ;;  %13443 = vmatprep.mubr.msk.bf16.mxu0 %vm15602_vm0, %v21764_v19  ;;  %v16788_v27 = vpop.xlane.xlu1 %1899 }
 0x32e   : > { %v16767_v56 = vpack.c.bf16 %v1351_v38, %v1347_v52  ;;  %v1285_v33 = vpop.f32.mrb[24].mxu0  ;;  %13447 = vmatprep.subr.bf16.mxu1 %v21764_v19  ;;  %v16794_v60 = vpop.permute.xlu0 %502 }
 0x32f   : > { %22085 = vst [vmem:[#allocation66_spill] sm:$0xff] %v16763_v37  ;;  %v1287_v4 = vpop.f32.mrb[25].mxu0  ;;  %5004 = vrot.lane.b32.xlu1 %v16763_v37, %s15603_s30  ;;  %22090 = vst [vmem:[#allocation71_spill] sm:$0xff] %v16794_v60 }
 0x330   : > { %22086 = vst [vmem:[#allocation67_spill] sm:$0xff] %v16767_v56  ;;  %v1289_v24 = vpop.f32.mrb[26].mxu0  ;;  %5007 = vrot.lane.b32.xlu0 %v16767_v56, %s15603_s30  ;;  %v2729_v55 = vsel %vm2160_vm1, %v16767_v56, 0 }
 0x331   : > { %v16776_v42 = vpack.c.bf16 %v1289_v24, %v1285_v33  ;;  %v1291_v63 = vpop.f32.mrb[27].mxu0 }
 0x332   : > { %v16778_v26 = vpack.c.bf16 %v1291_v63, %v1287_v4  ;;  %v1355_v22 = vpop.f32.mrb[4].mxu1  ;;  %v16803_v63 = vpop.xlane.xlu1 %1927 }
 0x333   : > { %22087 = vst [vmem:[#allocation68_spill] sm:$0xff] %v16776_v42  ;;  %v1357_v0 = vpop.f32.mrb[5].mxu1  ;;  %7958 = vrot.lane.b32.xlu1 %v16763_v37, %s15604_s24 }
 0x334   : > { %22088 = vst [vmem:[#allocation69_spill] sm:$0xff] %v16778_v26  ;;  %v1359_v47 = vpop.f32.mrb[6].mxu1  ;;  %13438 = vmatmul.mubr.msk.bf16.vlgmr.msra.gmra.mrb[88].mxu1 %vm2160_vm1, %v16753_v61  ;;  %7397 = vrot.lane.b32.xlu0 %v16705_v16, %s15604_s24  ;;  %v2447_v39 = vsel %vm2160_vm1, %v16778_v26, 0 }
 0x335   : > { %v16790_v52 = vpack.c.bf16 %v1359_v47, %v1355_v22  ;;  %v1361_v54 = vpop.f32.mrb[7].mxu1  ;;  %13442 = vmatpush3.bf16.xpose.msra.mxu0 %v2447_v39  ;;  %13449 = vmatprep.mubr.msk.bf16.mxu1 %vm15602_vm0, %v21764_v19 }
 0x336   : > { %v16796_v38 = vpack.c.bf16 %v1361_v54, %v1357_v0  ;;  %v1295_v33 = vpop.f32.mrb[28].mxu0  ;;  %13453 = vmatprep.subr.bf16.mxu0 %v21764_v19  ;;  %v16811_v19 = vpop.xlane.xlu0 %1893 }
 0x337   : > { %22089 = vst [vmem:[#allocation70_spill] sm:$0xff] %v16790_v52  ;;  %v1297_v4 = vpop.f32.mrb[29].mxu0  ;;  %7156 = vrot.lane.b32.xlu1 %v16693_v59, %s15604_s24  ;;  %v16826_v62 = vpop.xlane.xlu1 %1931 }
 0x338   : > { %22091 = vst [vmem:[#allocation72_spill] sm:$0xff] %v16796_v38  ;;  %v1299_v24 = vpop.f32.mrb[30].mxu0  ;;  %5060 = vrot.lane.b32.xlu0 %v16796_v38, %s15603_s30 }
 0x339   : > { %v16805_v22 = vpack.c.bf16 %v1299_v24, %v1295_v33  ;;  %v1301_v47 = vpop.f32.mrb[31].mxu0 }
 0x33a   : > { %v16807_v39 = vpack.c.bf16 %v1301_v47, %v1297_v4  ;;  %v1365_v0 = vpop.f32.mrb[8].mxu1  ;;  %v22095_v47 = vmov 0.0  }
 0x33b   : > { %22092 = vst [vmem:[#allocation73_spill] sm:$0xff] %v16805_v22  ;;  %v1367_v54 = vpop.f32.mrb[9].mxu1  ;;  %7960 = vrot.lane.b32.xlu1 %v16767_v56, %s15604_s24 }
 0x33c   : > { %22093 = vst [vmem:[#allocation74_spill] sm:$0xff] %v16807_v39  ;;  %v1369_v25 = vpop.f32.mrb[10].mxu1  ;;  %13444 = vmatmul.mubr.msk.bf16.vlgmr.msra.gmra.mrb[60].mxu0 %vm2160_vm1, %v16776_v42  ;;  %8011 = vrot.lane.b32.xlu0 %v16796_v38, %s15604_s24  ;;  %v2494_v33 = vsel %vm2160_vm1, %v16807_v39, 0 }
 0x33d   : > { %v16819_v24 = vpack.c.bf16 %v1369_v25, %v1365_v0  ;;  %v1371_v4 = vpop.f32.mrb[11].mxu1  ;;  %13448 = vmatpush3.bf16.xpose.msra.mxu1 %v2494_v33  ;;  %13455 = vmatprep.mubr.msk.bf16.mxu0 %vm15602_vm0, %v22095_v47  ;;  %v16834_v33 = vpop.xlane.xlu0 %1897 }
 0x33e   : > { %v16823_v59 = vpack.c.bf16 %v1371_v4, %v1367_v54  ;;  %v1305_v14 = vpop.f32.mrb[32].mxu0  ;;  %13459 = vmatprep.subr.bf16.mxu1 %v22095_v47 }
 0x33f   : > { %22094 = vst [vmem:[#allocation75_spill] sm:$0xff] %v16819_v24  ;;  %v1307_v17 = vpop.f32.mrb[33].mxu0  ;;  %4421 = vrot.lane.b32.xlu1 %v16705_v16, %s15603_s30  ;;  %v16846_v16 = vpop.xlane.xlu1 %1903 }
 0x340   : > { %22096 = vst [vmem:[#allocation76_spill] sm:$0xff] %v16823_v59  ;;  %v1309_v20 = vpop.f32.mrb[34].mxu0  ;;  %7448 = vrot.lane.b32.xlu0 %v16718_v29, %s15604_s24 }
 0x341   : > { %v16832_v25 = vpack.c.bf16 %v1309_v20, %v1305_v14  ;;  %v1311_v0 = vpop.f32.mrb[35].mxu0 }
 0x342   : > { %v16836_v54 = vpack.c.bf16 %v1311_v0, %v1307_v17  ;;  %v16850_v17 = vpop.xlane.xlu0 %1925 }
 0x343   : > { %22097 = vst [vmem:[#allocation77_spill] sm:$0xff] %v16832_v25  ;;  %5057 = vrot.lane.b32.xlu1 %v16790_v52, %s15603_s30  ;;  %v16861_v15 = vpop.xlane.xlu1 %1935 }
 0x344   : > { %22098 = vst [vmem:[#allocation78_spill] sm:$0xff] %v16836_v54  ;;  %13450 = vmatmul.mubr.msk.bf16.vlgmr.msra.gmra.mrb[92].mxu1 %vm2160_vm1, %v16805_v22  ;;  %4477 = vrot.lane.b32.xlu0 %v16721_v2, %s15603_s30  ;;  %v2541_v4 = vsel %vm2160_vm1, %v16836_v54, 0 }
 0x345   : > { %13454 = vmatpush3.bf16.xpose.msra.mxu0 %v2541_v4  ;;  %13461 = vmatprep.mubr.msk.bf16.mxu1 %vm15602_vm0, %v22095_v47 }
 0x346   : > { %v1315_v20 = vpop.f32.mrb[36].mxu0  ;;  %13465 = vmatprep.subr.bf16.mxu0 %v22095_v47  ;;  %v16865_v12 = vpop.xlane.xlu0 %1929 }
 0x347   : > { %v1317_v14 = vpop.f32.mrb[37].mxu0  ;;  %8009 = vrot.lane.b32.xlu1 %v16790_v52, %s15604_s24  ;;  %v16878_v35 = vpop.xlane.xlu1 %1907 }
 0x348   : > { %v1319_v0 = vpop.f32.mrb[38].mxu0  ;;  %5113 = vrot.lane.b32.xlu0 %v16823_v59, %s15603_s30 }
 0x349   : > { %v16857_v9 = vpack.c.bf16 %v1319_v0, %v1315_v20  ;;  %v1321_v6 = vpop.f32.mrb[39].mxu0 }
 0x34a   : > { %v16859_v4 = vpack.c.bf16 %v1321_v6, %v1317_v14  ;;  %v16882_v44 = vpop.xlane.xlu0 %1901 }
 0x34b   : > { %22099 = vst [vmem:[#allocation79_spill] sm:$0xff] %v16857_v9  ;;  %4424 = vrot.lane.b32.xlu1 %v16708_v57, %s15603_s30 }
 0x34c   : > { %22100 = vst [vmem:[#allocation80_spill] sm:$0xff] %v16859_v4  ;;  %13456 = vmatmul.mubr.msk.bf16.vlgmr.msra.gmra.mrb[64].mxu0 %vm2160_vm1, %v16832_v25  ;;  %8062 = vrot.lane.b32.xlu0 %v16823_v59, %s15604_s24  ;;  %v2588_v20 = vsel %vm2160_vm1, %v16859_v4, 0 }
 0x34d   : > { %13460 = vmatpush3.bf16.xpose.msra.mxu1 %v2588_v20  ;;  %13467 = vmatprep.mubr.msk.bf16.mxu0 %vm15602_vm0, %v22095_v47 }
 0x34e   : > { %v1325_v6 = vpop.f32.mrb[40].mxu0  ;;  %13471 = vmatprep.subr.bf16.mxu1 %v22095_v47 }
 0x34f   : > { %v1327_v14 = vpop.f32.mrb[41].mxu0  ;;  %7399 = vrot.lane.b32.xlu1 %v16708_v57, %s15604_s24 }
 0x350   : > { %v1329_v0 = vpop.f32.mrb[42].mxu0 }
 0x351   : > { %v16880_v46 = vpack.c.bf16 %v1329_v0, %v1325_v6  ;;  %v1331_v13 = vpop.f32.mrb[43].mxu0  ;;  %v16895_v0 = vpop.xlane.xlu1 %1939 }
 0x352   : > { %v16884_v11 = vpack.c.bf16 %v1331_v13, %v1327_v14  ;;  %v16899_v14 = vpop.xlane.xlu0 %1933 }
 0x353   : > { %22101 = vst [vmem:[#allocation81_spill] sm:$0xff] %v16880_v46  ;;  %4474 = vrot.lane.b32.xlu1 %v16718_v29, %s15603_s30 }
 0x354   : > { %22102 = vst [vmem:[#allocation82_spill] sm:$0xff] %v16884_v11  ;;  %13462 = vmatmul.mubr.msk.bf16.vlgmr.msra.gmra.mrb[96].mxu1 %vm2160_vm1, %v16857_v9  ;;  %v2635_v20 = vsel %vm2160_vm1, %v16884_v11, 0 }
 0x355   : > { %13466 = vmatpush3.bf16.xpose.msra.mxu0 %v2635_v20  ;;  %13473 = vmatprep.mubr.msk.bf16.mxu1 %vm15602_vm0, %v22095_v47  ;;  %v16913_v8 = vpop.xlane.xlu1 %1911 }
 0x356   : > { %v1335_v6 = vpop.f32.mrb[44].mxu0  ;;  %13477 = vmatprep.subr.bf16.mxu0 %v22095_v47 }
 0x357   : > { %v1337_v13 = vpop.f32.mrb[45].mxu0  ;;  %5110 = vrot.lane.b32.xlu1 %v16819_v24, %s15603_s30 }
 0x358   : > { %v1339_v29 = vpop.f32.mrb[46].mxu0 }
 0x359   : > { %v16901_v57 = vpack.c.bf16 %v1339_v29, %v1335_v6  ;;  %v1341_v31 = vpop.f32.mrb[47].mxu0  ;;  %v16915_v29 = vpop.xlane.xlu0 %1905 }
 0x35a   : > { %v16903_v41 = vpack.c.bf16 %v1341_v31, %v1337_v13  ;;  %v16923_v31 = vpop.xlane.xlu1 %1943  ;;  %v2823_v13 = vsel %vm2160_vm1, %v16823_v59, 0 }
 0x35b   : > { %22103 = vst [vmem:[#allocation83_spill] sm:$0xff] %v16901_v57  ;;  %8060 = vrot.lane.b32.xlu1 %v16819_v24, %s15604_s24 }
 0x35c   : > { %22104 = vst [vmem:[#allocation84_spill] sm:$0xff] %v16903_v41  ;;  %13468 = vmatmul.mubr.msk.bf16.vlgmr.msra.gmra.mrb[68].mxu0 %vm2160_vm1, %v16880_v46  ;;  %v2682_v20 = vsel %vm2160_vm1, %v16903_v41, 0 }
 0x35d   : > { %13472 = vmatpush3.bf16.xpose.msra.mxu1 %v2682_v20  ;;  %13478 = vmatpush3.bf16.xpose.msra.mxu0 %v2729_v55  ;;  %v16927_v6 = vpop.xlane.xlu0 %1937  ;;  %v2776_v55 = vsel %vm2160_vm1, %v16796_v38, 0 }
 0x35e   : > { %13479 = vmatprep.mubr.msk.bf16.mxu0 %vm15602_vm0, %v22095_v47  ;;  %13483 = vmatprep.subr.bf16.mxu1 %v22095_v47  ;;  %v16943_v20 = vpop.xlane.xlu1 %1915 }
 0x35f   : > { %7450 = vrot.lane.b32.xlu1 %v16721_v2, %s15604_s24  ;;  %13489 = vmatprep.subr.bf16.mxu0 %v22095_v47 }
 0x362   : > { %v16957_v2 = vpop.xlane.xlu1 %1947 }
 0x363   : > { %4527 = vrot.lane.b32.xlu1 %v16727_v7, %s15603_s30 }
 0x364   : > { %13474 = vmatmul.mubr.msk.bf16.vlgmr.msra.gmra.mrb[100].mxu1 %vm2160_vm1, %v16901_v57  ;;  %13480 = vmatmul.mubr.msk.bf16.vlgmr.msra.gmra.mrb[72].mxu0 %vm2160_vm1, %v16763_v37  ;;  %v16945_v37 = vpop.xlane.xlu0 %1909 }
 0x365   : > { %13484 = vmatpush3.bf16.xpose.msra.mxu1 %v2776_v55  ;;  %13490 = vmatpush3.bf16.xpose.msra.mxu0 %v2823_v13 }
 0x366   : > { %13485 = vmatprep.mubr.msk.bf16.mxu1 %vm15602_vm0, %v22095_v47  ;;  %13491 = vmatprep.mubr.msk.bf16.mxu0 %vm15602_vm0, %v22095_v47 }
 0x367   : > { %13495 = vmatprep.subr.bf16.mxu1 %v22095_v47  ;;  %13501 = vmatprep.subr.bf16.mxu0 %v22095_v47 }
 0x368   : > { %v16961_v50 = vpop.xlane.xlu0 %1941 }
 0x36b   : > { %v1375_v38 = vpop.f32.mrb[12].mxu1 }
 0x36c   : > { %v1377_v56 = vpop.f32.mrb[13].mxu1  ;;  %13486 = vmatmul.mubr.msk.bf16.vlgmr.msra.gmra.mrb[104].mxu1 %vm2160_vm1, %v16790_v52  ;;  %13492 = vmatmul.mubr.msk.bf16.vlgmr.msra.gmra.mrb[76].mxu0 %vm2160_vm1, %v16819_v24 }
 0x36d   : > { %v1379_v55 = vpop.f32.mrb[14].mxu1  ;;  %13497 = vmatprep.mubr.msk.bf16.mxu1 %vm15602_vm0, %v22095_v47  ;;  %13503 = vmatprep.mubr.msk.bf16.mxu0 %vm15602_vm0, %v22095_v47 }
 0x36e   : > { %v16955_v13 = vpack.c.bf16 %v1379_v55, %v1375_v38  ;;  %v1381_v59 = vpop.f32.mrb[15].mxu1  ;;  %v16978_v55 = vpop.xlane.xlu0 %1913 }
 0x36f   : > { %v16959_v60 = vpack.c.bf16 %v1381_v59, %v1377_v56  ;;  %v16976_v56 = vpop.xlane.xlu1 %1919  ;;  %22108 = vst [vmem:[#allocation88_spill] sm:$0xff] %v16978_v55 }
 0x370   : > { %22105 = vst [vmem:[#allocation85_spill] sm:$0xff] %v16955_v13  ;;  %8111 = vrot.lane.b32.xlu1 %v16955_v13, %s15604_s24  ;;  %5163 = vrot.lane.b32.xlu0 %v16955_v13, %s15603_s30 }
 0x371   : > { %22106 = vst [vmem:[#allocation86_spill] sm:$0xff] %v16959_v60  ;;  %v2870_v24 = vsel %vm2160_vm1, %v16959_v60, 0 }
 0x372   : > { %13496 = vmatpush3.bf16.xpose.msra.mxu1 %v2870_v24 }
 0x373   : > { %v1418_v52 = vpop.f32.mrb[16].mxu1  ;;  %13507 = vmatprep.subr.bf16.mxu1 %v22095_v47 }
 0x374   : > { %7501 = vrot.lane.b32.xlu1 %v16731_v32, %s15604_s24  ;;  %v16972_v59 = vpop.f32.mrb[17].mxu1  ;;  %7499 = vrot.lane.b32.xlu0 %v16727_v7, %s15604_s24 }
 0x375   : > { %22107 = vst [vmem:[#allocation87_spill] sm:$0xff] %v16972_v59  ;;  %v1422_v38 = vpop.f32.mrb[18].mxu1 }
 0x376   : > { %v16980_v48 = vpack.c.bf16 %v1422_v38, %v1418_v52  ;;  %v16982_v51 = vpop.f32.mrb[19].mxu1  ;;  %v16994_v52 = vpop.xlane.xlu1 %1951 }
 0x377   : > { %22110 = vst [vmem:[#allocation90_spill] sm:$0xff] %v16982_v51  ;;  %v16996_v38 = vpop.xlane.xlu0 %1945 }
 0x378   : > { %22109 = vst [vmem:[#allocation89_spill] sm:$0xff] %v16980_v48  ;;  %13502 = vmatpush3.bf16.msra.mxu0 %v16980_v48  ;;  %4580 = vrot.lane.b32.xlu1 %v16741_v23, %s15603_s30 }
 0x379   : > { %4530 = vrot.lane.b32.xlu0 %v16731_v32, %s15603_s30  ;;  %13498 = vmatmul.mubr.msk.bf16.vlgmr.msra.gmra.mrb[108].mxu1 %vm2160_vm1, %v16955_v13 }
 0x37a   : > { %13513 = vmatprep.subr.bf16.mxu0 %v22095_v47  ;;  %13509 = vmatprep.mubr.msk.bf16.mxu1 %vm15602_vm0, %v22095_v47  ;;  %v17011_v59 = vpop.xlane.xlu1 %1923 }
 0x37b   : > { %v1428_v24 = vpop.f32.mrb[20].mxu1  ;;  %22114 = vst [vmem:[#allocation94_spill] sm:$0xff] %v17011_v59 }
 0x37c   : > { %v16998_v7 = vpop.f32.mrb[21].mxu1  ;;  %7552 = vrot.lane.b32.xlu1 %v16745_v58, %s15604_s24 }
 0x37d   : > { %22111 = vst [vmem:[#allocation91_spill] sm:$0xff] %v16998_v7  ;;  %5166 = vrot.lane.b32.xlu0 %v16959_v60, %s15603_s30  ;;  %v1432_v32 = vpop.f32.mrb[22].mxu1  ;;  %v17016_v7 = vpop.xlane.xlu0 %1917 }
 0x37e   : > { %v17004_v13 = vpack.c.bf16 %v1432_v32, %v1428_v24  ;;  %v17006_v51 = vpop.f32.mrb[23].mxu1  ;;  %22115 = vst [vmem:[#allocation95_spill] sm:$0xff] %v17016_v7  ;;  %v17022_v32 = vpop.xlane.xlu1 %1955 }
 0x37f   : > { %22113 = vst [vmem:[#allocation93_spill] sm:$0xff] %v17006_v51 }
 0x380   : > { %22112 = vst [vmem:[#allocation92_spill] sm:$0xff] %v17004_v13  ;;  %13508 = vmatpush3.bf16.msra.mxu1 %v17004_v13  ;;  %4633 = vrot.lane.b32.xlu1 %v16753_v61, %s15603_s30 }
 0x381   : > { %8113 = vrot.lane.b32.xlu0 %v16959_v60, %s15604_s24  ;;  %13519 = vmatprep.subr.bf16.mxu1 %v22095_v47  ;;  %v17030_v60 = vpop.xlane.xlu0 %1949 }
 0x383   : > { %v1438_v49 = vpop.f32.mrb[24].mxu1 }
 0x384   : > { %v17018_v55 = vpop.f32.mrb[25].mxu1  ;;  %5632 = vrot.lane.b32.xlu1 %v17004_v13, %s15603_s30 }
 0x385   : > { %22116 = vst [vmem:[#allocation96_spill] sm:$0xff] %v17018_v55  ;;  %5584 = vrot.lane.b32.xlu0 %v16980_v48, %s15603_s30  ;;  %v1442_v24 = vpop.f32.mrb[26].mxu1  ;;  %v17036_v55 = vpop.xlane.xlu1 %4111 }
 0x386   : > { %v17026_v51 = vpack.c.bf16 %v1442_v24, %v1438_v49  ;;  %v17028_v59 = vpop.f32.mrb[27].mxu1  ;;  %22119 = vst [vmem:[#allocation99_spill] sm:$0xff] %v17036_v55  ;;  %v17044_v24 = vpop.xlane.xlu0 %1921 }
 0x387   : > { %22118 = vst [vmem:[#allocation98_spill] sm:$0xff] %v17028_v59 }
 0x388   : > { %22117 = vst [vmem:[#allocation97_spill] sm:$0xff] %v17026_v51  ;;  %7603 = vrot.lane.b32.xlu1 %v16757_v30, %s15604_s24 }
 0x389   : > { %7550 = vrot.lane.b32.xlu0 %v16741_v23, %s15604_s24  ;;  %v17052_v23 = vpop.xlane.xlu1 %4117 }
 0x38a   : > { %22123 = vst [vmem:[#allocation103_spill] sm:$0xff] %v17052_v23 }
 0x38b   : > { %v1448_v13 = vpop.f32.mrb[28].mxu1 }
 0x38c   : > { %v17038_v47 = vpop.f32.mrb[29].mxu1  ;;  %4686 = vrot.lane.b32.xlu1 %v16776_v42, %s15603_s30 }
 0x38d   : > { %22120 = vst [vmem:[#allocation100_spill] sm:$0xff] %v17038_v47  ;;  %4583 = vrot.lane.b32.xlu0 %v16745_v58, %s15603_s30  ;;  %v1452_v49 = vpop.f32.mrb[30].mxu1  ;;  %v17056_v47 = vpop.xlane.xlu0 %1953 }
 0x38e   : > { %v17046_v59 = vpack.c.bf16 %v1452_v49, %v1448_v13  ;;  %v17048_v48 = vpop.f32.mrb[31].mxu1  ;;  %v17068_v23 = vpop.xlane.xlu1 %4145 }
 0x38f   : > { %22122 = vst [vmem:[#allocation102_spill] sm:$0xff] %v17048_v48  ;;  %22127 = vst [vmem:[#allocation107_spill] sm:$0xff] %v17068_v23 }
 0x390   : > { %22121 = vst [vmem:[#allocation101_spill] sm:$0xff] %v17046_v59  ;;  %7654 = vrot.lane.b32.xlu1 %v16778_v26, %s15604_s24 }
 0x391   : > { %7601 = vrot.lane.b32.xlu0 %v16753_v61, %s15604_s24  ;;  %v17074_v61 = vpop.xlane.xlu0 %4113 }
 0x392   : > { %22128 = vst [vmem:[#allocation108_spill] sm:$0xff] %v17074_v61 }
 0x393   : > { %v1458_v55 = vpop.f32.mrb[32].mxu1 }
 0x394   : > { %v17058_v7 = vpop.f32.mrb[33].mxu1  ;;  %4739 = vrot.lane.b32.xlu1 %v16805_v22, %s15603_s30 }
 0x395   : > { %22124 = vst [vmem:[#allocation104_spill] sm:$0xff] %v17058_v7  ;;  %4636 = vrot.lane.b32.xlu0 %v16757_v30, %s15603_s30  ;;  %v1462_v13 = vpop.f32.mrb[34].mxu1 }
 0x396   : > { %v17064_v49 = vpack.c.bf16 %v1462_v13, %v1458_v55  ;;  %v17066_v58 = vpop.f32.mrb[35].mxu1  ;;  %v17080_v55 = vpop.xlane.xlu1 %4149 }
 0x397   : > { %22126 = vst [vmem:[#allocation106_spill] sm:$0xff] %v17066_v58  ;;  %22130 = vst [vmem:[#allocation110_spill] sm:$0xff] %v17080_v55  ;;  %v17088_v58 = vpop.xlane.xlu0 %4115 }
 0x398   : > { %22125 = vst [vmem:[#allocation105_spill] sm:$0xff] %v17064_v49  ;;  %5728 = vrot.lane.b32.xlu1 %v17046_v59, %s15603_s30  ;;  %22133 = vst [vmem:[#allocation113_spill] sm:$0xff] %v17088_v58 }
 0x399   : > { %5680 = vrot.lane.b32.xlu0 %v17026_v51, %s15603_s30 }
 0x39a   : > { %v17094_v61 = vpop.xlane.xlu1 %4121 }
 0x39b   : > { %v1468_v7 = vpop.f32.mrb[36].mxu1  ;;  %22134 = vst [vmem:[#allocation114_spill] sm:$0xff] %v17094_v61 }
 0x39c   : > { %v17076_v48 = vpop.f32.mrb[37].mxu1  ;;  %7705 = vrot.lane.b32.xlu1 %v16807_v39, %s15604_s24 }
 0x39d   : > { %22129 = vst [vmem:[#allocation109_spill] sm:$0xff] %v17076_v48  ;;  %7652 = vrot.lane.b32.xlu0 %v16776_v42, %s15604_s24  ;;  %v1472_v13 = vpop.f32.mrb[38].mxu1 }
 0x39e   : > { %v17084_v30 = vpack.c.bf16 %v1472_v13, %v1468_v7  ;;  %v17086_v23 = vpop.f32.mrb[39].mxu1  ;;  %v17102_v13 = vpop.xlane.xlu0 %4143 }
 0x39f   : > { %22132 = vst [vmem:[#allocation112_spill] sm:$0xff] %v17086_v23  ;;  %22136 = vst [vmem:[#allocation116_spill] sm:$0xff] %v17102_v13 }
 0x3a0   : > { %22131 = vst [vmem:[#allocation111_spill] sm:$0xff] %v17084_v30  ;;  %4792 = vrot.lane.b32.xlu1 %v16832_v25, %s15603_s30 }
 0x3a1   : > { %4689 = vrot.lane.b32.xlu0 %v16778_v26, %s15603_s30  ;;  %v17110_v26 = vpop.xlane.xlu1 %4153 }
 0x3a2   : > { %22139 = vst [vmem:[#allocation119_spill] sm:$0xff] %v17110_v26 }
 0x3a3   : > { %v1478_v48 = vpop.f32.mrb[40].mxu1 }
 0x3a4   : > { %v17096_v55 = vpop.f32.mrb[41].mxu1  ;;  %7756 = vrot.lane.b32.xlu1 %v16836_v54, %s15604_s24 }
 0x3a5   : > { %22135 = vst [vmem:[#allocation115_spill] sm:$0xff] %v17096_v55  ;;  %7703 = vrot.lane.b32.xlu0 %v16805_v22, %s15604_s24  ;;  %v1482_v7 = vpop.f32.mrb[42].mxu1  ;;  %v17114_v55 = vpop.xlane.xlu0 %4147 }
 0x3a6   : > { %v17104_v42 = vpack.c.bf16 %v1482_v7, %v1478_v48  ;;  %v17106_v58 = vpop.f32.mrb[43].mxu1  ;;  %22140 = vst [vmem:[#allocation120_spill] sm:$0xff] %v17114_v55  ;;  %v17126_v26 = vpop.xlane.xlu1 %4125 }
 0x3a7   : > { %22138 = vst [vmem:[#allocation118_spill] sm:$0xff] %v17106_v58  ;;  %22144 = vst [vmem:[#allocation124_spill] sm:$0xff] %v17126_v26 }
 0x3a8   : > { %22137 = vst [vmem:[#allocation117_spill] sm:$0xff] %v17104_v42  ;;  %4845 = vrot.lane.b32.xlu1 %v16857_v9, %s15603_s30 }
 0x3a9   : > { %4742 = vrot.lane.b32.xlu0 %v16807_v39, %s15603_s30  ;;  %v17132_v39 = vpop.xlane.xlu0 %4119 }
 0x3aa   : > { %22145 = vst [vmem:[#allocation125_spill] sm:$0xff] %v17132_v39 }
 0x3ab   : > { %v1488_v61 = vpop.f32.mrb[44].mxu1 }
 0x3ac   : > { %v17116_v23 = vpop.f32.mrb[45].mxu1  ;;  %5824 = vrot.lane.b32.xlu1 %v17084_v30, %s15603_s30 }
 0x3ad   : > { %22141 = vst [vmem:[#allocation121_spill] sm:$0xff] %v17116_v23  ;;  %5776 = vrot.lane.b32.xlu0 %v17064_v49, %s15603_s30  ;;  %v1492_v48 = vpop.f32.mrb[46].mxu1  ;;  %v17146_v23 = vpop.xlane.xlu0 %4151 }
 0x3ae   : > { %v17122_v7 = vpack.c.bf16 %v1492_v48, %v1488_v61  ;;  %v17124_v22 = vpop.f32.mrb[47].mxu1  ;;  %v17138_v61 = vpop.xlane.xlu1 %4157  ;;  %22150 = vst [vmem:[#allocation130_spill] sm:$0xff] %v17146_v23 }
 0x3af   : > { %22143 = vst [vmem:[#allocation123_spill] sm:$0xff] %v17124_v22  ;;  %22147 = vst [vmem:[#allocation127_spill] sm:$0xff] %v17138_v61 }
 0x3b0   : > { %22142 = vst [vmem:[#allocation122_spill] sm:$0xff] %v17122_v7  ;;  %7807 = vrot.lane.b32.xlu1 %v16859_v4, %s15604_s24 }
 0x3b1   : > { %7754 = vrot.lane.b32.xlu0 %v16832_v25, %s15604_s24 }
 0x3b2   : > { %v17152_v25 = vpop.xlane.xlu1 %4129 }
 0x3b3   : > { %v1498_v55 = vpop.f32.mrb[48].mxu1  ;;  %22151 = vst [vmem:[#allocation131_spill] sm:$0xff] %v17152_v25 }
 0x3b4   : > { %v17134_v13 = vpop.f32.mrb[49].mxu1  ;;  %4898 = vrot.lane.b32.xlu1 %v16880_v46, %s15603_s30 }
 0x3b5   : > { %22146 = vst [vmem:[#allocation126_spill] sm:$0xff] %v17134_v13  ;;  %4795 = vrot.lane.b32.xlu0 %v16836_v54, %s15603_s30  ;;  %v1502_v48 = vpop.f32.mrb[50].mxu1 }
 0x3b6   : > { %v17142_v26 = vpack.c.bf16 %v1502_v48, %v1498_v55  ;;  %v17144_v22 = vpop.f32.mrb[51].mxu1  ;;  %v17160_v48 = vpop.xlane.xlu0 %4123 }
 0x3b7   : > { %22149 = vst [vmem:[#allocation129_spill] sm:$0xff] %v17144_v22  ;;  %22153 = vst [vmem:[#allocation133_spill] sm:$0xff] %v17160_v48 }
 0x3b8   : > { %22148 = vst [vmem:[#allocation128_spill] sm:$0xff] %v17142_v26  ;;  %7858 = vrot.lane.b32.xlu1 %v16884_v11, %s15604_s24 }
 0x3b9   : > { %7805 = vrot.lane.b32.xlu0 %v16857_v9, %s15604_s24  ;;  %v17168_v9 = vpop.xlane.xlu1 %4161 }
 0x3ba   : > { %22156 = vst [vmem:[#allocation136_spill] sm:$0xff] %v17168_v9 }
 0x3bb   : > { %v1508_v39 = vpop.f32.mrb[52].mxu1 }
 0x3bc   : > { %v17154_v61 = vpop.f32.mrb[53].mxu1  ;;  %4951 = vrot.lane.b32.xlu1 %v16901_v57, %s15603_s30 }
 0x3bd   : > { %22152 = vst [vmem:[#allocation132_spill] sm:$0xff] %v17154_v61  ;;  %4848 = vrot.lane.b32.xlu0 %v16859_v4, %s15603_s30  ;;  %v1512_v55 = vpop.f32.mrb[54].mxu1  ;;  %v17172_v61 = vpop.xlane.xlu0 %4155 }
 0x3be   : > { %v17162_v54 = vpack.c.bf16 %v1512_v55, %v1508_v39  ;;  %v17164_v23 = vpop.f32.mrb[55].mxu1  ;;  %22157 = vst [vmem:[#allocation137_spill] sm:$0xff] %v17172_v61  ;;  %v17184_v9 = vpop.xlane.xlu1 %4133 }
 0x3bf   : > { %22155 = vst [vmem:[#allocation135_spill] sm:$0xff] %v17164_v23  ;;  %22161 = vst [vmem:[#allocation141_spill] sm:$0xff] %v17184_v9 }
 0x3c0   : > { %22154 = vst [vmem:[#allocation134_spill] sm:$0xff] %v17162_v54  ;;  %5920 = vrot.lane.b32.xlu1 %v17122_v7, %s15603_s30 }
 0x3c1   : > { %5872 = vrot.lane.b32.xlu0 %v17104_v42, %s15603_s30  ;;  %v17190_v61 = vpop.xlane.xlu0 %4127 }
 0x3c2   : > { %22162 = vst [vmem:[#allocation142_spill] sm:$0xff] %v17190_v61 }
 0x3c3   : > { %v1518_v25 = vpop.f32.mrb[56].mxu1 }
 0x3c4   : > { %v17174_v22 = vpop.f32.mrb[57].mxu1  ;;  %7909 = vrot.lane.b32.xlu1 %v16903_v41, %s15604_s24 }
 0x3c5   : > { %22158 = vst [vmem:[#allocation138_spill] sm:$0xff] %v17174_v22  ;;  %7856 = vrot.lane.b32.xlu0 %v16880_v46, %s15604_s24  ;;  %v1522_v39 = vpop.f32.mrb[58].mxu1 }
 0x3c6   : > { %v17180_v55 = vpack.c.bf16 %v1522_v39, %v1518_v25  ;;  %v17182_v4 = vpop.f32.mrb[59].mxu1  ;;  %v17196_v25 = vpop.xlane.xlu1 %4165 }
 0x3c7   : > { %22160 = vst [vmem:[#allocation140_spill] sm:$0xff] %v17182_v4  ;;  %22164 = vst [vmem:[#allocation144_spill] sm:$0xff] %v17196_v25  ;;  %v17204_v4 = vpop.xlane.xlu0 %4159 }
 0x3c8   : > { %22159 = vst [vmem:[#allocation139_spill] sm:$0xff] %v17180_v55  ;;  %6016 = vrot.lane.b32.xlu1 %v17162_v54, %s15603_s30  ;;  %22167 = vst [vmem:[#allocation147_spill] sm:$0xff] %v17204_v4 }
 0x3c9   : > { %4901 = vrot.lane.b32.xlu0 %v16884_v11, %s15603_s30 }
 0x3ca   : > { %v17208_v11 = vpop.xlane.xlu1 %4137 }
 0x3cb   : > { %v1528_v48 = vpop.f32.mrb[60].mxu1  ;;  %22168 = vst [vmem:[#allocation148_spill] sm:$0xff] %v17208_v11 }
 0x3cc   : > { %v17192_v22 = vpop.f32.mrb[61].mxu1  ;;  %6064 = vrot.lane.b32.xlu1 %v17180_v55, %s15603_s30 }
 0x3cd   : > { %22163 = vst [vmem:[#allocation143_spill] sm:$0xff] %v17192_v22  ;;  %7907 = vrot.lane.b32.xlu0 %v16901_v57, %s15604_s24  ;;  %v1532_v39 = vpop.f32.mrb[62].mxu1  ;;  %v17214_v57 = vpop.xlane.xlu0 %4131 }
 0x3ce   : > { %v17200_v46 = vpack.c.bf16 %v1532_v39, %v1528_v48  ;;  %v17202_v9 = vpop.f32.mrb[63].mxu1  ;;  %22170 = vst [vmem:[#allocation150_spill] sm:$0xff] %v17214_v57 }
 0x3cf   : > { %22166 = vst [vmem:[#allocation146_spill] sm:$0xff] %v17202_v9  ;;  %v17220_v9 = vpop.xlane.xlu1 %4169 }
 0x3d0   : > { %22165 = vst [vmem:[#allocation145_spill] sm:$0xff] %v17200_v46  ;;  %22173 = vst [vmem:[#allocation153_spill] sm:$0xff] %v17220_v9 }
 0x3d1   : > { %4954 = vrot.lane.b32.xlu0 %v16903_v41, %s15603_s30  ;;  %v17224_v11 = vpop.xlane.xlu0 %4163 }
 0x3d2   : > { %22174 = vst [vmem:[#allocation154_spill] sm:$0xff] %v17224_v11 }
 0x3d3   : > { %v1538_v61 = vpop.f32.mrb[64].mxu1  ;;  %v17232_v57 = vpop.xlane.xlu1 %4141 }
 0x3d4   : > { %v17210_v22 = vpop.f32.mrb[65].mxu1  ;;  %22178 = vst [vmem:[#allocation158_spill] sm:$0xff] %v17232_v57 }
 0x3d5   : > { %22169 = vst [vmem:[#allocation149_spill] sm:$0xff] %v17210_v22  ;;  %5968 = vrot.lane.b32.xlu0 %v17142_v26, %s15603_s30  ;;  %v1542_v25 = vpop.f32.mrb[66].mxu1  ;;  %v17238_v9 = vpop.xlane.xlu0 %4135 }
 0x3d6   : > { %v17216_v48 = vpack.c.bf16 %v1542_v25, %v1538_v61  ;;  %v17218_v39 = vpop.f32.mrb[67].mxu1  ;;  %22179 = vst [vmem:[#allocation159_spill] sm:$0xff] %v17238_v9  ;;  %v17256_v9 = vld [vmem:[#allocation10 + $0x2] ss:$0 sm:$0xff] }
 0x3d7   : > { %22172 = vst [vmem:[#allocation152_spill] sm:$0xff] %v17218_v39  ;;  %v17242_v11 = vpop.xlane.xlu1 %4173 }
 0x3d8   : > { %22171 = vst [vmem:[#allocation151_spill] sm:$0xff] %v17216_v48  ;;  %22181 = vst [vmem:[#allocation161_spill] sm:$0xff] %v17242_v11 }
 0x3d9   : > { %6112 = vrot.lane.b32.xlu0 %v17200_v46, %s15603_s30 }
 0x3db   : > { %v1548_v41 = vpop.f32.mrb[68].mxu1  ;;  %v17250_v57 = vpop.permute.xlu1 %4176 }
 0x3dc   : > { %v17226_v4 = vpop.f32.mrb[69].mxu1  ;;  %22185 = vst [vmem:[#allocation165_spill] sm:$0xff] %v17250_v57 }
 0x3dd   : > { %22175 = vst [vmem:[#allocation155_spill] sm:$0xff] %v17226_v4  ;;  %v1552_v22 = vpop.f32.mrb[70].mxu1 }
 0x3de   : > { %v17228_v23 = vpack.c.bf16 %v1552_v22, %v1548_v41  ;;  %v17230_v13 = vpop.f32.mrb[71].mxu1 }
 0x3df   : > { %22177 = vst [vmem:[#allocation157_spill] sm:$0xff] %v17230_v13  ;;  %v17234_v61 = vpop.f32.mrb[48].mxu0  ;;  %v17248_v13 = vpop.xlane.xlu0 %4167 }
 0x3e0   : > { %22176 = vst [vmem:[#allocation156_spill] sm:$0xff] %v17228_v23  ;;  %v13409_v25 = vpop.f32.mrb[49].mxu0  ;;  %22184 = vst [vmem:[#allocation164_spill] sm:$0xff] %v17248_v13  ;;  %v17254_v26 = vpop.permute.xlu1 %5004 }
 0x3e1   : > { %v17236_v39 = vpop.f32.mrb[50].mxu0  ;;  %22187 = vst [vmem:[#allocation167_spill] sm:$0xff] %v17254_v26 }
 0x3e2   : > { %v13410_v58 = vpop.f32.mrb[51].mxu0 }
 0x3e3   : > { %v1558_v46 = vpop.f32.mrb[72].mxu1 }
 0x3e4   : > { %v17240_v55 = vpop.f32.mrb[73].mxu1  ;;  %v17270_v26 = vpop.permute.xlu1 %7958 }
 0x3e5   : > { %22180 = vst [vmem:[#allocation160_spill] sm:$0xff] %v17240_v55  ;;  %v1562_v4 = vpop.f32.mrb[74].mxu1  ;;  %v17258_v55 = vpop.xlane.xlu0 %4139  ;;  %22191 = vst [vmem:[#allocation171_spill] sm:$0xff] %v17270_v26 }
 0x3e6   : > { %v17244_v41 = vpack.c.bf16 %v1562_v4, %v1558_v46  ;;  %v17246_v22 = vpop.f32.mrb[75].mxu1  ;;  %22188 = vst [vmem:[#allocation168_spill] sm:$0xff] %v17258_v55  ;;  %v7059_v4 = vmul.f32 %v17256_v9, %v16284_v45  ;;  %v7058_v45 = vmul.f32 %v17256_v9, %v16275_v40 }
 0x3e7   : > { %22183 = vst [vmem:[#allocation163_spill] sm:$0xff] %v17246_v22 }
 0x3e8   : > { %22182 = vst [vmem:[#allocation162_spill] sm:$0xff] %v17244_v41 }
 0x3e9   : > { %v17274_v42 = vpop.xlane.xlu0 %4171 }
 0x3ea   : > { %22192 = vst [vmem:[#allocation172_spill] sm:$0xff] %v17274_v42 }
 0x3eb   : > { %v1568_v25 = vpop.f32.mrb[76].mxu1 }
 0x3ec   : > { %v17252_v54 = vpop.f32.mrb[77].mxu1 }
 0x3ed   : > { %22186 = vst [vmem:[#allocation166_spill] sm:$0xff] %v17252_v54  ;;  %v1572_v58 = vpop.f32.mrb[78].mxu1 }
 0x3ee   : > { %v17260_v11 = vpack.c.bf16 %v1572_v58, %v1568_v25  ;;  %v17262_v46 = vpop.f32.mrb[79].mxu1 }
 0x3ef   : > { %22190 = vst [vmem:[#allocation170_spill] sm:$0xff] %v17262_v46  ;;  %v17266_v13 = vpop.f32.mrb[52].mxu0  ;;  %v17280_v46 = vpop.permute.xlu0 %7154 }
 0x3f0   : > { %22189 = vst [vmem:[#allocation169_spill] sm:$0xff] %v17260_v11  ;;  %v13421_v22 = vpop.f32.mrb[53].mxu0  ;;  %7092 = vadd.xlane.f32.xlu1 %v7059_v4  ;;  %22193 = vst [vmem:[#allocation173_spill] sm:$0xff] %v17280_v46 }
 0x3f1   : > { %v17268_v57 = vpop.f32.mrb[54].mxu0  ;;  %v17282_v22 = vpop.permute.xlu1 %7156 }
 0x3f2   : > { %v13422_v54 = vpop.f32.mrb[55].mxu0  ;;  %22194 = vst [vmem:[#allocation174_spill] sm:$0xff] %v17282_v22 }
 0x3f3   : > { %v17272_v7 = vpop.f32.mrb[80].mxu1  ;;  %v7060_v54 = vmul.f32 %v17256_v9, %v16294_v10 }
 0x3f4   : > { %v13415_v25 = vpop.f32.mrb[81].mxu1 }
 0x3f5   : > { %v17276_v58 = vpop.f32.mrb[82].mxu1  ;;  %v17290_v25 = vpop.permute.xlu0 %4179 }
 0x3f6   : > { %v13416_v55 = vpop.f32.mrb[83].mxu1  ;;  %22195 = vst [vmem:[#allocation175_spill] sm:$0xff] %v17290_v25  ;;  %v17292_v30 = vpop.permute.xlu1 %7960 }
 0x3f7   : > { %22196 = vst [vmem:[#allocation176_spill] sm:$0xff] %v17292_v30 }
 0x3f8   : > { %7090 = vadd.xlane.f32.xlu0 %v7058_v45 }
 0x3f9   : > { %v17300_v22 = vpop.permute.xlu0 %5007 }
 0x3fa   : > { %22198 = vst [vmem:[#allocation178_spill] sm:$0xff] %v17300_v22 }
 0x3fb   : > { %v17286_v4 = vpop.f32.mrb[84].mxu1 }
 0x3fc   : > { %7094 = vadd.xlane.f32.xlu0 %v7060_v54  ;;  %v13427_v26 = vpop.f32.mrb[85].mxu1  ;;  %v17302_v54 = vpop.permute.xlu1 %4421 }
 0x3fd   : > { %v17288_v42 = vpop.f32.mrb[86].mxu1  ;;  %22199 = vst [vmem:[#allocation179_spill] sm:$0xff] %v17302_v54  ;;  %v17306_v25 = vpop.permute.xlu0 %7397 }
 0x3fe   : > { %v13428_v55 = vpop.f32.mrb[87].mxu1  ;;  %22200 = vst [vmem:[#allocation180_spill] sm:$0xff] %v17306_v25 }
 0x3ff   : > { %v17294_v40 = vpop.f32.mrb[56].mxu0 }
 0x400   : > { %v13433_v46 = vpop.f32.mrb[57].mxu0  ;;  %v17310_v59 = vpop.permute.xlu1 %5057 }
 0x401   : > { %v17296_v45 = vpop.f32.mrb[58].mxu0  ;;  %6160 = vrot.lane.b32.xlu1 %v17216_v48, %s15603_s30  ;;  %22202 = vst [vmem:[#allocation182_spill] sm:$0xff] %v17310_v59  ;;  %v17312_v46 = vpop.permute.xlu0 %5060 }
 0x402   : > { %22197 = vst [vmem:[#allocation177_spill] sm:$0xff] %v17296_v45  ;;  %v13434_v10 = vpop.f32.mrb[59].mxu0  ;;  %22203 = vst [vmem:[#allocation183_spill] sm:$0xff] %v17312_v46 }
 0x404   : > { %v17316_v10 = vpop.permute.xlu1 %8009 }
 0x405   : > { %22205 = vst [vmem:[#allocation185_spill] sm:$0xff] %v17316_v10  ;;  %v17322_v54 = vpop.permute.xlu0 %8011 }
 0x406   : > { %22207 = vst [vmem:[#allocation187_spill] sm:$0xff] %v17322_v54 }
 0x407   : > { %v17304_v26 = vpop.f32.mrb[88].mxu1 }
 0x408   : > { %v13439_v49 = vpop.f32.mrb[89].mxu1  ;;  %v17324_v25 = vpop.permute.xlu1 %4424 }
 0x409   : > { %v17308_v55 = vpop.f32.mrb[90].mxu1  ;;  %22208 = vst [vmem:[#allocation188_spill] sm:$0xff] %v17324_v25 }
 0x40a   : > { %22201 = vst [vmem:[#allocation181_spill] sm:$0xff] %v17308_v55  ;;  %v13440_v30 = vpop.f32.mrb[91].mxu1 }
 0x40f   : > { %v17314_v51 = vpop.f32.mrb[60].mxu0 }
 0x410   : > { %22204 = vst [vmem:[#allocation184_spill] sm:$0xff] %v17314_v51  ;;  %v13445_v48 = vpop.f32.mrb[61].mxu0  ;;  %v17330_v51 = vpop.permute.xlu0 %7448 }
 0x411   : > { %v17318_v22 = vpop.f32.mrb[62].mxu0  ;;  %22209 = vst [vmem:[#allocation189_spill] sm:$0xff] %v17330_v51  ;;  %v17332_v48 = vpop.permute.xlu1 %7399  ;;  %v7076_v51 = vmul.f32 %v17256_v9, %v16382_v43  ;;  %v7061_v43 = vmul.f32 %v17256_v9, %v16298_v18 }
 0x412   : > { %22206 = vst [vmem:[#allocation186_spill] sm:$0xff] %v17318_v22  ;;  %6208 = vrot.lane.b32.xlu0 %v17228_v23, %s15603_s30  ;;  %v13446_v49 = vpop.f32.mrb[63].mxu0  ;;  %22210 = vst [vmem:[#allocation190_spill] sm:$0xff] %v17332_v48 }
 0x414   : > { %v17336_v45 = vpop.permute.xlu0 %4477 }
 0x415   : > { %22211 = vst [vmem:[#allocation191_spill] sm:$0xff] %v17336_v45  ;;  %v17340_v23 = vpop.permute.xlu1 %4474 }
 0x416   : > { %22213 = vst [vmem:[#allocation193_spill] sm:$0xff] %v17340_v23  ;;  %v7062_v23 = vmul.f32 %v17256_v9, %v16321_v5  ;;  %v1989_v5 = vlaneseq }
 0x417   : > { %v17326_v30 = vpop.f32.mrb[92].mxu1 }
 0x418   : > { %v13451_v59 = vpop.f32.mrb[93].mxu1  ;;  %v17344_v25 = vpop.permute.xlu0 %5113 }
 0x419   : > { %v17328_v55 = vpop.f32.mrb[94].mxu1  ;;  %v7074_v59 = vmul.f32 %v17256_v9, %v16358_v36  ;;  %22214 = vst [vmem:[#allocation194_spill] sm:$0xff] %v17344_v25 }
 0x41a   : > { %v13452_v46 = vpop.f32.mrb[95].mxu1 }
 0x41f   : > { %v17334_v10 = vpop.f32.mrb[64].mxu0 }
 0x420   : > { %v13457_v22 = vpop.f32.mrb[65].mxu0 }
 0x421   : > { %v17338_v49 = vpop.f32.mrb[66].mxu0  ;;  %v17350_v22 = vpop.permute.xlu1 %5110 }
 0x422   : > { %22212 = vst [vmem:[#allocation192_spill] sm:$0xff] %v17338_v49  ;;  %v13458_v54 = vpop.f32.mrb[67].mxu0  ;;  %22215 = vst [vmem:[#allocation195_spill] sm:$0xff] %v17350_v22  ;;  %v17356_v49 = vpop.permute.xlu0 %8062 }
 0x423   : > { %22217 = vst [vmem:[#allocation197_spill] sm:$0xff] %v17356_v49 }
 0x425   : > { %7122 = vadd.xlane.f32.xlu1 %v7074_v59  ;;  %v17358_v59 = vpop.permute.xlu1 %8060 }
 0x426   : > { %22218 = vst [vmem:[#allocation198_spill] sm:$0xff] %v17358_v59  ;;  %v17364_v25 = vpop.permute.xlu0 %5163 }
 0x427   : > { %v17346_v46 = vpop.f32.mrb[96].mxu1  ;;  %22220 = vst [vmem:[#allocation200_spill] sm:$0xff] %v17364_v25  ;;  %v1990_v25 = vand.u32 127, %v1989_v5 }
 0x428   : > { %v13463_v48 = vpop.f32.mrb[97].mxu1 }
 0x429   : > { %v17352_v45 = vpop.f32.mrb[98].mxu1  ;;  %7126 = vadd.xlane.f32.xlu1 %v7076_v51  ;;  %v17370_v49 = vpop.permute.xlu1 %7450 }
 0x42a   : > { %22216 = vst [vmem:[#allocation196_spill] sm:$0xff] %v17352_v45  ;;  %v13464_v54 = vpop.f32.mrb[99].mxu1  ;;  %22222 = vst [vmem:[#allocation202_spill] sm:$0xff] %v17370_v49  ;;  %v1995_v49 = vadd.s32 4294967288, %v1990_v25 }
 0x42b   : > { %v7075_v54 = vmul.f32 %v17256_v9, %v16373_v1 }
 0x42d   : > { %7098 = vadd.xlane.f32.xlu1 %v7062_v23  ;;  %v17372_v23 = vpop.permute.xlu0 %7499 }
 0x42e   : > { %22223 = vst [vmem:[#allocation203_spill] sm:$0xff] %v17372_v23 }
 0x42f   : > { %v17360_v36 = vpop.f32.mrb[68].mxu0 }
 0x430   : > { %22219 = vst [vmem:[#allocation199_spill] sm:$0xff] %v17360_v36  ;;  %v13469_v48 = vpop.f32.mrb[69].mxu0  ;;  %v1992_v36 = vshrl.u32 %v1989_v5, 7 }
 0x431   : > { %7096 = vadd.xlane.f32.xlu0 %v7061_v43  ;;  %v17366_v22 = vpop.f32.mrb[70].mxu0  ;;  %v7077_v48 = vmul.f32 %v17256_v9, %v16391_v34 }
 0x432   : > { %22221 = vst [vmem:[#allocation201_spill] sm:$0xff] %v17366_v22  ;;  %v13470_v51 = vpop.f32.mrb[71].mxu0  ;;  %v17388_v34 = vsub.s32 %v1995_v49, %v1992_v36 }
 0x434   : > { %22227 = vst [vmem:[#allocation207_spill] sm:$0xff] %v17388_v34 }
 0x435   : > { %7124 = vadd.xlane.f32.xlu0 %v7075_v54  ;;  %v17384_v54 = vpop.permute.xlu1 %4527 }
 0x436   : > { %22226 = vst [vmem:[#allocation206_spill] sm:$0xff] %v17384_v54  ;;  %v2090_v54 = vrot.slane %v16861_v15, %v17388_v34  ;;  %v2108_v15 = vrot.slane %v16923_v31, %v17388_v34  ;;  %v2126_v31 = vrot.slane %v16994_v52, %v17388_v34 }
 0x437   : > { %v17374_v59 = vpop.f32.mrb[100].mxu1  ;;  %v17378_v18 = vpop.f32.mrb[72].mxu0 }
 0x438   : > { %22224 = vst [vmem:[#allocation204_spill] sm:$0xff] %v17378_v18  ;;  %v13475_v43 = vpop.f32.mrb[101].mxu1  ;;  %v13481_v22 = vpop.f32.mrb[73].mxu0 }
 0x439   : > { %7128 = vadd.xlane.f32.xlu0 %v7077_v48  ;;  %v17380_v51 = vpop.f32.mrb[102].mxu1  ;;  %v17382_v1 = vpop.f32.mrb[74].mxu0 }
 0x43a   : > { %22225 = vst [vmem:[#allocation205_spill] sm:$0xff] %v17382_v1  ;;  %v13476_v45 = vpop.f32.mrb[103].mxu1  ;;  %v13482_v23 = vpop.f32.mrb[75].mxu0  ;;  %v17398_v1 = vsub.s32 %v1990_v25, %v1992_v36  ;;  %v2099_v36 = vrot.slane %v16895_v0, %v17388_v34  ;;  %v2117_v0 = vrot.slane %v16957_v2, %v17388_v34  ;;  %v2135_v2 = vrot.slane %v17022_v32, %v17388_v34 }
 0x43b   : > { %v17390_v18 = vpop.permute.xlu1 %8111  ;;  %v17394_v22 = vpop.permute.xlu0 %4530  ;;  %v2081_v45 = vrot.slane %v16826_v62, %v17388_v34 }
 0x43c   : > { %22228 = vst [vmem:[#allocation208_spill] sm:$0xff] %v17390_v18  ;;  %22229 = vst [vmem:[#allocation209_spill] sm:$0xff] %v17394_v22  ;;  %v2072_v18 = vrot.slane %v16803_v63, %v17388_v34  ;;  %v2077_v22 = vrot.slane %v16865_v12, %v17398_v1  ;;  %v2095_v12 = vrot.slane %v16927_v6, %v17398_v1 }
 0x43d   : > { %22230 = vst [vmem:[#allocation210_spill] sm:$0xff] %v17398_v1  ;;  %v2113_v6 = vrot.slane %v16996_v38, %v17398_v1  ;;  %v2122_v52 = vrot.slane %v17030_v60, %v17398_v1  ;;  %v2131_v38 = vrot.slane %v17056_v47, %v17398_v1 }
 0x43e   : > { %6256 = vrot.lane.b32.xlu1 %v17244_v41, %s15603_s30  ;;  %v2082_v63 = vsel %vm2000_vm2, %v2081_v45, %v2077_v22  ;;  %v2100_v22 = vsel %vm2000_vm2, %v2099_v36, %v2095_v12 }
 0x43f   : > { %v17392_v43 = vpop.f32.mrb[104].mxu1  ;;  %v17396_v48 = vpop.f32.mrb[76].mxu0  ;;  %v2118_v36 = vsel %vm2000_vm2, %v2117_v0, %v2113_v6 }
 0x440   : > { %v13487_v23 = vpop.f32.mrb[105].mxu1  ;;  %v13493_v5 = vpop.f32.mrb[77].mxu0 }
 0x441   : > { %v17404_v49 = vpop.f32.mrb[106].mxu1  ;;  %v17406_v41 = vpop.f32.mrb[78].mxu0  ;;  %v2086_v23 = vrot.slane %v16899_v14, %v17398_v1  ;;  %v2068_v5 = vrot.slane %v16850_v17, %v17398_v1  ;;  %v2104_v14 = vrot.slane %v16961_v50, %v17398_v1 }
 0x442   : > { %v13488_v25 = vpop.f32.mrb[107].mxu1  ;;  %v13494_v62 = vpop.f32.mrb[79].mxu0 }
 0x443   : > { %v2091_v25 = vsel %vm2000_vm2, %v2090_v54, %v2086_v23  ;;  %v17430_v62 = vpop.permute.xlu1 %7501  ;;  %v2073_v17 = vsel %vm2000_vm2, %v2072_v18, %v2068_v5  ;;  %v17438_v45 = vpop.permute.xlu0 %5166  ;;  %v2109_v50 = vsel %vm2000_vm2, %v2108_v15, %v2104_v14  ;;  %v2127_v23 = vsel %vm2000_vm2, %v2126_v31, %v2122_v52 }
 0x444   : > { %22231 = vst [vmem:[#allocation211_spill] sm:$0xff] %v17430_v62  ;;  %v2151_v54 = vsel %vm2137_vm3, %v2082_v63, %v2073_v17  ;;  %v2136_v15 = vsel %vm2000_vm2, %v2135_v2, %v2131_v38  ;;  %v2009_v38 = vrot.slane %v16788_v27, %v17388_v34  ;;  %v2014_v27 = vrot.slane %v16882_v44, %v17398_v1 }
 0x445   : > { %v2152_v18 = vsel %vm2139_vm4, %v2091_v25, %v2151_v54  ;;  %v2032_v44 = vrot.slane %v16945_v37, %v17398_v1  ;;  %v22241_v37 = vld [vmem:[#allocation95_spill] sm:$0xff] }
 0x446   : > { %v2153_v32 = vsel %vm2141_vm5, %v2100_v22, %v2152_v18 }
 0x447   : > { %v2154_v5 = vsel %vm2143_vm6, %v2109_v50, %v2153_v32  ;;  %v17453_v63 = vpop.permute.xlu1 %4580  ;;  %v17458_v47 = vpop.permute.xlu0 %8113  ;;  %v7064_v32 = vmul.f32 %v17256_v9, %v16338_v3 }
 0x448   : > { %v2155_v60 = vsel %vm2145_vm7, %v2118_v36, %v2154_v5  ;;  %22232 = vst [vmem:[#allocation212_spill] sm:$0xff] %v17458_v47  ;;  %v7078_v36 = vmul.f32 %v17256_v9, %v16404_v21  ;;  %v22267_v21 = vld [vmem:[#allocation52_spill] sm:$0xff] }
 0x449   : > { %v2156_v0 = vsel %vm2147_vm8, %v2127_v23, %v2155_v60  ;;  %v2018_v23 = vrot.slane %v16846_v16, %v17388_v34  ;;  %v1999_v60 = vrot.slane %v16770_v28, %v17388_v34  ;;  %v2036_v16 = vrot.slane %v16913_v8, %v17388_v34 }
 0x44a   : > { %v17461_v14 = vsel %vm2149_vm9, %v2136_v15, %v2156_v0  ;;  %v2005_v0 = vrot.slane %v16834_v33, %v17398_v1  ;;  %v2023_v33 = vrot.slane %v16915_v29, %v17398_v1  ;;  %v2054_v8 = vrot.slane %v16976_v56, %v17388_v34  ;;  %v22240_v29 = vld [vmem:[#allocation94_spill] sm:$0xff] }
 0x44b   : > { %v17468_v6 = vpop.permute.xlu1 %7552  ;;  %v17470_v2 = vpop.permute.xlu0 %5584  ;;  %v2252_v47 = vadd.f32 %v17276_v58, %v17461_v14 }
 0x44c   : > { %v17455_v12 = vpop.f32.mrb[108].mxu1  ;;  %22233 = vst [vmem:[#allocation213_spill] sm:$0xff] %v17468_v6  ;;  %22234 = vst [vmem:[#allocation214_spill] sm:$0xff] %v17470_v2  ;;  %v2010_v28 = vsel %vm2000_vm2, %v2009_v38, %v2005_v0  ;;  %v22239_v38 = vld [vmem:[#allocation88_spill] sm:$0xff] }
 0x44d   : > { %v13499_v25 = vpop.f32.mrb[109].mxu1  ;;  %v2041_v0 = vrot.slane %v22239_v38, %v17398_v1 }
 0x44e   : > { %v2909_v31 = vpop.f32.mrb[110].mxu1  ;;  %v2027_v25 = vrot.slane %v16878_v35, %v17388_v34  ;;  %v2045_v35 = vrot.slane %v16943_v20, %v17388_v34 }
 0x44f   : > { %v17464_v17 = vadd.f32 %v2909_v31, %v17461_v14  ;;  %6304 = vrot.lane.b32.xlu0 %v17260_v11, %s15603_s30  ;;  %v13500_v22 = vpop.f32.mrb[111].mxu1  ;;  %v17472_v54 = vpop.permute.xlu1 %4633  ;;  %v7080_v31 = vmul.f32 %v17256_v9, %v16455_v53  ;;  %v2063_v53 = vrot.slane %v22240_v29, %v17388_v34 }
 0x450   : > { %v17474_v50 = vpop.permute.xlu0 %7550  ;;  %v1994_v22 = vrot.slane %v16811_v19, %v17398_v1  ;;  %v2028_v19 = vsel %vm2000_vm2, %v2027_v25, %v2023_v33  ;;  %v22242_v25 = vld [vmem:[#allocation25_spill] sm:$0xff]  ;;  %v2046_v38 = vsel %vm2000_vm2, %v2045_v35, %v2041_v0  ;;  %v12796_v35 = vld [vmem:[%s416_s17] ss:$0 sm:$0xff]  ;;  %s22914_s17 = sld [smem:[#allocation266_spill]] }
 0x451   : > { %22235 = vst [vmem:[#allocation215_spill] sm:$0xff] %v17474_v50 }
 0x453   : > { %v17476_v52 = vpop.permute.xlu1 %5632 }
 0x454   : > { %22236 = vst [vmem:[#allocation216_spill] sm:$0xff] %v17476_v52  ;;  %v17478_v18 = vpop.permute.xlu0 %4583 }
 0x457   : > { %v17488_v5 = vpop.permute.xlu1 %7603 }
 0x458   : > { %22237 = vst [vmem:[#allocation217_spill] sm:$0xff] %v17488_v5  ;;  %v17490_v15 = vpop.permute.xlu0 %7601 }
 0x459   : > { %22238 = vst [vmem:[#allocation218_spill] sm:$0xff] %v17490_v15 }
 0x45b   : > { %v17526_v56 = vpop.permute.xlu1 %4686 }
 0x462   : > { %7130 = vadd.xlane.f32.xlu1 %v7078_v36  ;;  %v2019_v36 = vsel %vm2000_vm2, %v2018_v23, %v2014_v27  ;;  %v2037_v23 = vsel %vm2000_vm2, %v2036_v16, %v2032_v44  ;;  %v2050_v27 = vrot.slane %v22241_v37, %v17398_v1 }
 0x466   : > { %7102 = vadd.xlane.f32.xlu1 %v7064_v32  ;;  %v2001_v32 = vsel %vm2000_vm2, %v1999_v60, %v1994_v22  ;;  %v17528_v60 = vpop.permute.xlu0 %4636  ;;  %v7063_v22 = vmul.f32 %v17256_v9, %v22242_v25 }
 0x467   : > { %v2138_v20 = vsel %vm2137_vm3, %v2010_v28, %v2001_v32  ;;  %v22243_v28 = vld [vmem:[#allocation31_spill] sm:$0xff]  ;;  %v2055_v32 = vsel %vm2000_vm2, %v2054_v8, %v2050_v27 }
 0x468   : > { %v2140_v33 = vsel %vm2139_vm4, %v2019_v36, %v2138_v20  ;;  %v7066_v16 = vmul.f32 %v17256_v9, %v22243_v28  ;;  %v22245_v28 = vld [vmem:[#allocation39_spill] sm:$0xff] }
 0x469   : > { %v2142_v44 = vsel %vm2141_vm5, %v2028_v19, %v2140_v33  ;;  %v7082_v19 = vmul.f32 %v17256_v9, %v22245_v28  ;;  %v22246_v33 = vld [vmem:[#allocation71_spill] sm:$0xff] }
 0x46a   : > { %7134 = vadd.xlane.f32.xlu1 %v7080_v31  ;;  %v2059_v31 = vrot.slane %v17044_v24, %v17398_v1  ;;  %v2144_v29 = vsel %vm2143_vm6, %v2037_v23, %v2142_v44  ;;  %v22244_v24 = vld [vmem:[#allocation38_spill] sm:$0xff]  ;;  %v17551_v8 = vmul.f32 %v12796_v35, %v22246_v33  ;;  %v17558_v27 = vpop.permute.xlu0 %5680 }
 0x46b   : > { %v2146_v36 = vsel %vm2145_vm7, %v2046_v38, %v2144_v29  ;;  %v7079_v20 = vmul.f32 %v17256_v9, %v22244_v24  ;;  %22249 = vst [vmem:[#allocation95_spill] sm:$0xff] %v17558_v27  ;;  %v22250_v38 = vld [vmem:[#allocation27_spill] sm:$0xff]  ;;  %v22255_v33 = vld [vmem:[#allocation50_spill] sm:$0xff] }
 0x46c   : > { %v2064_v37 = vsel %vm2000_vm2, %v2063_v53, %v2059_v31  ;;  %v2148_v0 = vsel %vm2147_vm8, %v2055_v32, %v2146_v36  ;;  %22247 = vst [vmem:[#allocation88_spill] sm:$0xff] %v17551_v8  ;;  %v17556_v53 = vpop.permute.xlu1 %7654  ;;  %v7065_v31 = vmul.f32 %v17256_v9, %v22250_v38  ;;  %vm518_vm10 = vcmp.eq.f32.partialorder %v17551_v8, -1.0  ;;  %v22262_v38 = vld [vmem:[#allocation48_spill] sm:$0xff] }
 0x46d   : > { %v17554_v23 = vsel %vm2149_vm9, %v2064_v37, %v2148_v0  ;;  %22248 = vst [vmem:[#allocation94_spill] sm:$0xff] %v17556_v53  ;;  %v22253_v37 = vld [vmem:[#allocation44_spill] sm:$0xff]  ;;  %v7072_v24 = vmul.f32 %v17256_v9, %v22262_v38 }
 0x46e   : > { %7100 = vadd.xlane.f32.xlu0 %v7063_v22  ;;  %7106 = vadd.xlane.f32.xlu1 %v7066_v16  ;;  %v2202_v22 = vadd.f32 %v17234_v61, %v17554_v23  ;;  %v22251_v16 = vld [vmem:[#allocation43_spill] sm:$0xff]  ;;  %v17573_v61 = vpop.permute.xlu0 %7652  ;;  %v7081_v36 = vmul.f32 %v17256_v9, %v22253_v37  ;;  %v22258_v37 = vld [vmem:[#allocation49_spill] sm:$0xff]  ;;  %v2249_v25 = vadd.f32 %v17272_v7, %v17554_v23 }
 0x46f   : > { %v7070_v44 = vmul.f32 %v17256_v9, %v22251_v16  ;;  %22252 = vst [vmem:[#allocation71_spill] sm:$0xff] %v17573_v61  ;;  %v22257_v16 = vld [vmem:[#allocation40_spill] sm:$0xff]  ;;  %v7087_v3 = vmul.f32 %v17256_v9, %v22258_v37 }
 0x470   : > { %v17569_v32 = vsel %vm518_vm10, -1e-09, %v2202_v22  ;;  %v17571_v29 = vpop.permute.xlu1 %4739  ;;  %v7086_v22 = vmul.f32 %v17256_v9, %v22255_v33  ;;  %v7083_v28 = vmul.f32 %v17256_v9, %v22257_v16  ;;  %v22264_v16 = vld [vmem:[#allocation47_spill] sm:$0xff]  ;;  %v17622_v7 = vsel %vm518_vm10, -1e-09, %v2249_v25 }
 0x471   : > { %v2950_v0 = vsel %vm2949_vm11, %v17569_v32, -inf  ;;  %v7073_v37 = vmul.f32 %v17256_v9, %v22264_v16  ;;  %v2205_v16 = vadd.f32 %v17236_v39, %v17461_v14  ;;  %v2956_v39 = vsel %vm2949_vm11, %v17622_v7, -inf }
 0x472   : > { %7132 = vadd.xlane.f32.xlu0 %v7079_v20  ;;  %7138 = vadd.xlane.f32.xlu1 %v7082_v19  ;;  %v22254_v20 = vld [vmem:[#allocation29_spill] sm:$0xff]  ;;  %v2296_v25 = vadd.f32 %v17266_v13, %v17554_v23  ;;  %v2299_v13 = vadd.f32 %v17268_v57, %v17461_v14 }
 0x473   : > { %v7067_v19 = vmul.f32 %v17256_v9, %v22254_v20  ;;  %v22261_v20 = vld [vmem:[#allocation37_spill] sm:$0xff] }
 0x474   : > { %v7068_v33 = vmul.f32 %v17256_v9, %v22261_v20  ;;  %v22265_v20 = vld [vmem:[#allocation45_spill] sm:$0xff] }
 0x475   : > { %v7084_v38 = vmul.f32 %v17256_v9, %v22265_v20  ;;  %v17653_v20 = vsel %vm518_vm10, -1e-09, %v2296_v25  ;;  %v2343_v25 = vadd.f32 %v17286_v4, %v17554_v23  ;;  %v2437_v4 = vadd.f32 %v17304_v26, %v17554_v23  ;;  %v22279_v26 = vld [vmem:[#allocation184_spill] sm:$0xff] }
 0x476   : > { %7104 = vadd.xlane.f32.xlu0 %v7065_v31  ;;  %7114 = vadd.xlane.f32.xlu1 %v7070_v44  ;;  %v17583_v31 = vpop.permute.xlu1 %5728  ;;  %v17585_v44 = vpop.permute.xlu0 %4689 }
 0x477   : > { %22256 = vst [vmem:[#allocation219_spill] sm:$0xff] %v17583_v31 }
 0x47a   : > { %7136 = vadd.xlane.f32.xlu0 %v7081_v36  ;;  %2951 = vmax.xlane.f32.xlu1 %v2950_v0  ;;  %v17591_v36 = vpop.permute.xlu1 %7705  ;;  %v17593_v0 = vpop.permute.xlu0 %7703 }
 0x47b   : > { %22259 = vst [vmem:[#allocation220_spill] sm:$0xff] %v17591_v36  ;;  %22260 = vst [vmem:[#allocation221_spill] sm:$0xff] %v17593_v0 }
 0x47e   : > { %7108 = vadd.xlane.f32.xlu0 %v7067_v19  ;;  %7146 = vadd.xlane.f32.xlu1 %v7086_v22  ;;  %v22263_v19 = vld [vmem:[#allocation35_spill] sm:$0xff] }
 0x47f   : > { %v7069_v22 = vmul.f32 %v17256_v9, %v22263_v19  ;;  %v17614_v19 = vmul.f32 %v12796_v35, %v22267_v21 }
 0x481   : > { %22268 = vst [vmem:[#allocation52_spill] sm:$0xff] %v17614_v19  ;;  %vm519_vm12 = vcmp.eq.f32.partialorder %v17614_v19, -1.0 }
 0x482   : > { %7140 = vadd.xlane.f32.xlu0 %v7083_v28  ;;  %7148 = vadd.xlane.f32.xlu1 %v7087_v3  ;;  %v17603_v28 = vpop.permute.xlu1 %4792  ;;  %v17605_v3 = vpop.permute.xlu0 %4742  ;;  %v17635_v58 = vsel %vm519_vm12, -1e-09, %v2205_v16  ;;  %v17641_v35 = vsel %vm519_vm12, -1e-09, %v2252_v47  ;;  %v2390_v47 = vadd.f32 %v17294_v40, %v17554_v23  ;;  %v17665_v0 = vsel %vm519_vm12, -1e-09, %v2299_v13 }
 0x483   : > { %v2959_v16 = vsel %vm2949_vm11, %v17641_v35, -inf  ;;  %v2965_v13 = vsel %vm2949_vm11, %v17665_v0, -inf }
 0x484   : > { %v17671_v57 = vsel %vm518_vm10, -1e-09, %v2390_v47  ;;  %v22275_v47 = vld [vmem:[#allocation53_spill] sm:$0xff] }
 0x486   : > { %7110 = vadd.xlane.f32.xlu0 %v7068_v33  ;;  %7118 = vadd.xlane.f32.xlu1 %v7072_v24  ;;  %v22266_v33 = vld [vmem:[#allocation51_spill] sm:$0xff] }
 0x487   : > { %v7088_v24 = vmul.f32 %v17256_v9, %v22266_v33  ;;  %v22271_v33 = vld [vmem:[#allocation46_spill] sm:$0xff] }
 0x488   : > { %v7085_v21 = vmul.f32 %v17256_v9, %v22271_v33  ;;  %v2953_v33 = vsel %vm2949_vm11, %v17635_v58, -inf }
 0x48a   : > { %7112 = vadd.xlane.f32.xlu0 %v7069_v22  ;;  %7120 = vadd.xlane.f32.xlu1 %v7073_v37  ;;  %v17624_v37 = vpop.permute.xlu1 %7756  ;;  %v17626_v22 = vpop.permute.xlu0 %5776 }
 0x48b   : > { %22269 = vst [vmem:[#allocation222_spill] sm:$0xff] %v17624_v37  ;;  %22270 = vst [vmem:[#allocation223_spill] sm:$0xff] %v17626_v22 }
 0x48e   : > { %7142 = vadd.xlane.f32.xlu0 %v7084_v38  ;;  %7150 = vadd.xlane.f32.xlu1 %v7088_v24  ;;  %v17643_v38 = vpop.permute.xlu1 %4845  ;;  %v17645_v24 = vpop.permute.xlu0 %7754 }
 0x48f   : > { %22272 = vst [vmem:[#allocation224_spill] sm:$0xff] %v17645_v24  ;;  %v2962_v24 = vsel %vm2949_vm11, %v17653_v20, -inf }
 0x492   : > { %7144 = vadd.xlane.f32.xlu0 %v7085_v21  ;;  %2957 = vmax.xlane.f32.xlu1 %v2956_v39  ;;  %v22273_v21 = vld [vmem:[#allocation41_spill] sm:$0xff]  ;;  %v17673_v40 = vpop.permute.xlu1 %5824 }
 0x493   : > { %v7071_v39 = vmul.f32 %v17256_v9, %v22273_v21  ;;  %22274 = vst [vmem:[#allocation225_spill] sm:$0xff] %v17673_v40  ;;  %v2346_v21 = vadd.f32 %v17288_v42, %v17461_v14  ;;  %v22278_v42 = vld [vmem:[#allocation177_spill] sm:$0xff] }
 0x494   : > { %v2393_v15 = vadd.f32 %v22278_v42, %v17461_v14 }
 0x496   : > { %2954 = vmax.xlane.f32.xlu0 %v2953_v33  ;;  %2960 = vmax.xlane.f32.xlu1 %v2959_v16  ;;  %v17675_v33 = vpop.permute.xlu0 %4795  ;;  %v2974_v16 = vsel %vm2949_vm11, %v17671_v57, -inf  ;;  %v17691_v37 = vpop.permute.xlu1 %7807  ;;  %v17715_v42 = vsel %vm519_vm12, -1e-09, %v2393_v15 }
 0x497   : > { %22276 = vst [vmem:[#allocation226_spill] sm:$0xff] %v17691_v37  ;;  %v2977_v37 = vsel %vm2949_vm11, %v17715_v42, -inf }
 0x49a   : > { %7116 = vadd.xlane.f32.xlu0 %v7071_v39  ;;  %2963 = vmax.xlane.f32.xlu1 %v2962_v24  ;;  %v17687_v24 = vsel %vm518_vm10, -1e-09, %v2343_v25  ;;  %v7089_v39 = vmul.f32 %v17256_v9, %v22275_v47  ;;  %v17693_v61 = vpop.permute.xlu0 %7805  ;;  %v17703_v25 = vsel %vm518_vm10, -1e-09, %v2437_v4  ;;  %v17707_v9 = vsel %vm519_vm12, -1e-09, %v2346_v21 }
 0x49b   : > { %22277 = vst [vmem:[#allocation227_spill] sm:$0xff] %v17693_v61  ;;  %v2968_v36 = vsel %vm2949_vm11, %v17687_v24, -inf  ;;  %v2971_v47 = vsel %vm2949_vm11, %v17707_v9, -inf  ;;  %v2531_v21 = vadd.f32 %v17326_v30, %v17554_v23 }
 0x49d   : > { %v17739_v30 = vsel %vm518_vm10, -1e-09, %v2531_v21  ;;  %v2534_v21 = vadd.f32 %v17328_v55, %v17461_v14  ;;  %v22285_v55 = vld [vmem:[#allocation199_spill] sm:$0xff] }
 0x49e   : > { %2975 = vmax.xlane.f32.xlu0 %v2974_v16  ;;  %2966 = vmax.xlane.f32.xlu1 %v2965_v13  ;;  %v2484_v16 = vadd.f32 %v22279_v26, %v17554_v23  ;;  %v2980_v13 = vsel %vm2949_vm11, %v17703_v25, -inf  ;;  %v17725_v26 = vpop.permute.xlu1 %4898  ;;  %v17727_v61 = vpop.permute.xlu0 %4848  ;;  %v2672_v62 = vadd.f32 %v22285_v55, %v17554_v23 }
 0x4a0   : > { %v17721_v4 = vsel %vm518_vm10, -1e-09, %v2484_v16  ;;  %v2578_v16 = vadd.f32 %v17334_v10, %v17554_v23 }
 0x4a1   : > { %v2986_v15 = vsel %vm2949_vm11, %v17721_v4, -inf }
 0x4a2   : > { %7152 = vadd.xlane.f32.xlu0 %v7089_v39  ;;  %2969 = vmax.xlane.f32.xlu1 %v2968_v36  ;;  %v22280_v36 = vld [vmem:[#allocation181_spill] sm:$0xff]  ;;  %v17747_v50 = vpop.permute.xlu0 %5872 }
 0x4a3   : > { %v2440_v39 = vadd.f32 %v22280_v36, %v17461_v14  ;;  %v22281_v36 = vld [vmem:[#allocation186_spill] sm:$0xff]  ;;  %22283 = vst [vmem:[#allocation184_spill] sm:$0xff] %v17747_v50 }
 0x4a4   : > { %v2487_v53 = vadd.f32 %v22281_v36, %v17461_v14  ;;  %v2992_v36 = vsel %vm2949_vm11, %v17739_v30, -inf }
 0x4a6   : > { %2981 = vmax.xlane.f32.xlu0 %v2980_v13  ;;  %2972 = vmax.xlane.f32.xlu1 %v2971_v47  ;;  %v17743_v47 = vsel %vm519_vm12, -1e-09, %v2440_v39  ;;  %v17745_v13 = vpop.permute.xlu1 %7858  ;;  %v17761_v39 = vsel %vm518_vm10, -1e-09, %v2578_v16 }
 0x4a7   : > { %22282 = vst [vmem:[#allocation177_spill] sm:$0xff] %v17745_v13  ;;  %v2983_v10 = vsel %vm2949_vm11, %v17743_v47, -inf  ;;  %v2998_v13 = vsel %vm2949_vm11, %v17761_v39, -inf }
 0x4aa   : > { %2987 = vmax.xlane.f32.xlu0 %v2986_v15  ;;  %2978 = vmax.xlane.f32.xlu1 %v2977_v37  ;;  %v17755_v37 = vsel %vm519_vm12, -1e-09, %v2487_v53  ;;  %v2625_v15 = vadd.f32 %v17346_v46, %v17554_v23  ;;  %v22284_v53 = vld [vmem:[#allocation192_spill] sm:$0xff]  ;;  %v17779_v46 = vsel %vm519_vm12, -1e-09, %v2534_v21 }
 0x4ab   : > { %v2989_v5 = vsel %vm2949_vm11, %v17755_v37, -inf  ;;  %v2581_v6 = vadd.f32 %v22284_v53, %v17461_v14  ;;  %v2995_v55 = vsel %vm2949_vm11, %v17779_v46, -inf  ;;  %v17797_v21 = vsel %vm518_vm10, -1e-09, %v2672_v62  ;;  %v22290_v62 = vld [vmem:[#allocation204_spill] sm:$0xff] }
 0x4ac   : > { %v17775_v16 = vsel %vm518_vm10, -1e-09, %v2625_v15  ;;  %v2766_v27 = vadd.f32 %v22290_v62, %v17554_v23 }
 0x4ad   : > { %v3004_v53 = vsel %vm2949_vm11, %v17775_v16, -inf }
 0x4ae   : > { %2993 = vmax.xlane.f32.xlu0 %v2992_v36  ;;  %2984 = vmax.xlane.f32.xlu1 %v2983_v10  ;;  %v17781_v36 = vpop.permute.xlu1 %4951  ;;  %v17783_v10 = vpop.permute.xlu0 %7856 }
 0x4af   : > { %22286 = vst [vmem:[#allocation181_spill] sm:$0xff] %v17783_v10  ;;  %v2719_v10 = vadd.f32 %v17374_v59, %v17554_v23 }
 0x4b1   : > { %v17815_v59 = vsel %vm518_vm10, -1e-09, %v2719_v10  ;;  %v2722_v10 = vadd.f32 %v17380_v51, %v17461_v14  ;;  %v2860_v51 = vadd.f32 %v17396_v48, %v17554_v23 }
 0x4b2   : > { %2999 = vmax.xlane.f32.xlu0 %v2998_v13  ;;  %2990 = vmax.xlane.f32.xlu1 %v2989_v5  ;;  %v17791_v5 = vsel %vm519_vm12, -1e-09, %v2581_v6  ;;  %v22287_v13 = vld [vmem:[#allocation196_spill] sm:$0xff]  ;;  %v17801_v50 = vpop.permute.xlu1 %5920  ;;  %v17803_v40 = vpop.permute.xlu0 %4901  ;;  %v3010_v6 = vsel %vm2949_vm11, %v17797_v21, -inf }
 0x4b3   : > { %v2628_v15 = vadd.f32 %v22287_v13, %v17461_v14  ;;  %22288 = vst [vmem:[#allocation186_spill] sm:$0xff] %v17801_v50  ;;  %v3001_v22 = vsel %vm2949_vm11, %v17791_v5, -inf  ;;  %v22289_v13 = vld [vmem:[#allocation201_spill] sm:$0xff] }
 0x4b4   : > { %v2675_v31 = vadd.f32 %v22289_v13, %v17461_v14 }
 0x4b6   : > { %3005 = vmax.xlane.f32.xlu0 %v3004_v53  ;;  %2996 = vmax.xlane.f32.xlu1 %v2995_v55  ;;  %v17819_v53 = vsel %vm519_vm12, -1e-09, %v2628_v15  ;;  %v3016_v55 = vsel %vm2949_vm11, %v17815_v59, -inf  ;;  %v17827_v13 = vsel %vm519_vm12, -1e-09, %v2675_v31  ;;  %v2813_v15 = vadd.f32 %v17392_v43, %v17554_v23  ;;  %v17839_v62 = vpop.permute.xlu0 %7907 }
 0x4b7   : > { %v3007_v50 = vsel %vm2949_vm11, %v17819_v53, -inf  ;;  %22292 = vst [vmem:[#allocation199_spill] sm:$0xff] %v17839_v62  ;;  %v3013_v1 = vsel %vm2949_vm11, %v17827_v13, -inf }
 0x4b8   : > { %v17851_v43 = vsel %vm518_vm10, -1e-09, %v2813_v15  ;;  %v17871_v15 = vsel %vm518_vm10, -1e-09, %v2860_v51 }
 0x4ba   : > { %3011 = vmax.xlane.f32.xlu0 %v3010_v6  ;;  %3002 = vmax.xlane.f32.xlu1 %v3001_v22  ;;  %v17831_v22 = vsel %vm518_vm10, -1e-09, %v2766_v27  ;;  %v17837_v6 = vpop.permute.xlu1 %7909  ;;  %v22293_v27 = vld [vmem:[#allocation205_spill] sm:$0xff]  ;;  %v17859_v62 = vpop.permute.xlu0 %4954 }
 0x4bb   : > { %22291 = vst [vmem:[#allocation192_spill] sm:$0xff] %v17837_v6  ;;  %v3022_v31 = vsel %vm2949_vm11, %v17831_v22, -inf  ;;  %v2769_v34 = vadd.f32 %v22293_v27, %v17461_v14  ;;  %v3028_v27 = vsel %vm2949_vm11, %v17851_v43, -inf  ;;  %v3034_v6 = vsel %vm2949_vm11, %v17871_v15, -inf }
 0x4be   : > { %3017 = vmax.xlane.f32.xlu0 %v3016_v55  ;;  %3008 = vmax.xlane.f32.xlu1 %v3007_v50  ;;  %v17855_v50 = vsel %vm519_vm12, -1e-09, %v2722_v10  ;;  %v17857_v55 = vpop.permute.xlu1 %6016  ;;  %v2816_v10 = vadd.f32 %v17404_v49, %v17461_v14 }
 0x4bf   : > { %22294 = vst [vmem:[#allocation196_spill] sm:$0xff] %v17857_v55  ;;  %v3019_v48 = vsel %vm2949_vm11, %v17855_v50, -inf }
 0x4c0   : > { %v17889_v49 = vsel %vm519_vm12, -1e-09, %v2816_v10  ;;  %v17912_v10 = vsel %vm519_vm12, -1e-09, %v17464_v17 }
 0x4c2   : > { %3023 = vmax.xlane.f32.xlu0 %v3022_v31  ;;  %3014 = vmax.xlane.f32.xlu1 %v3013_v1  ;;  %v17867_v1 = vsel %vm519_vm12, -1e-09, %v2769_v34  ;;  %v2907_v31 = vadd.f32 %v17455_v12, %v17554_v23  ;;  %v2863_v34 = vadd.f32 %v17406_v41, %v17461_v14  ;;  %v17891_v12 = vpop.permute.xlu1 %6064  ;;  %v17893_v23 = vpop.permute.xlu0 %5968  ;;  %v3031_v41 = vsel %vm2949_vm11, %v17889_v49, -inf }
 0x4c3   : > { %v3025_v55 = vsel %vm2949_vm11, %v17867_v1, -inf  ;;  %22295 = vst [vmem:[#allocation201_spill] sm:$0xff] %v17891_v12  ;;  %22296 = vst [vmem:[#allocation204_spill] sm:$0xff] %v17893_v23 }
 0x4c4   : > { %v17885_v51 = vsel %vm518_vm10, -1e-09, %v2907_v31  ;;  %v17901_v14 = vsel %vm519_vm12, -1e-09, %v2863_v34  ;;  %v3043_v34 = vsel %vm2949_vm11, %v17912_v10, -inf }
 0x4c6   : > { %3029 = vmax.xlane.f32.xlu0 %v3028_v27  ;;  %3020 = vmax.xlane.f32.xlu1 %v3019_v48  ;;  %v3040_v27 = vsel %vm2949_vm11, %v17885_v51, -inf  ;;  %v3037_v48 = vsel %vm2949_vm11, %v17901_v14, -inf }
 0x4ca   : > { %3035 = vmax.xlane.f32.xlu0 %v3034_v6  ;;  %3026 = vmax.xlane.f32.xlu1 %v3025_v55  ;;  %v17903_v6 = vpop.xlane.xlu1 %7092  ;;  %v17905_v55 = vpop.permute.xlu0 %6112 }
 0x4cb   : > { %22297 = vst [vmem:[#allocation205_spill] sm:$0xff] %v17903_v6  ;;  %22298 = vst [vmem:[#allocation228_spill] sm:$0xff] %v17905_v55 }
 0x4ce   : > { %3041 = vmax.xlane.f32.xlu0 %v3040_v27  ;;  %3032 = vmax.xlane.f32.xlu1 %v3031_v41  ;;  %v17914_v31 = vpop.permute.xlu1 %6160  ;;  %v17916_v12 = vpop.xlane.xlu0 %7090 }
 0x4cf   : > { %22299 = vst [vmem:[#allocation229_spill] sm:$0xff] %v17914_v31  ;;  %22300 = vst [vmem:[#allocation230_spill] sm:$0xff] %v17916_v12 }
 0x4d2   : > { %3038 = vmax.xlane.f32.xlu1 %v3037_v48  ;;  %v17920_v27 = vpop.xlane.xlu1 %7122  ;;  %v17922_v41 = vpop.xlane.xlu0 %7094 }
 0x4d3   : > { %22301 = vst [vmem:[#allocation231_spill] sm:$0xff] %v17920_v27  ;;  %22302 = vst [vmem:[#allocation232_spill] sm:$0xff] %v17922_v41 }
 0x4d6   : > { %3044 = vmax.xlane.f32.xlu1 %v3043_v34  ;;  %v17924_v6 = vpop.xlane.xlu1 %7126  ;;  %v17926_v48 = vpop.permute.xlu0 %6208 }
 0x4d7   : > { %22303 = vst [vmem:[#allocation233_spill] sm:$0xff] %v17924_v6  ;;  %22304 = vst [vmem:[#allocation234_spill] sm:$0xff] %v17926_v48 }
 0x4da   : > { %v17928_v55 = vpop.xlane.xlu1 %7098  ;;  %v17930_v17 = vpop.xlane.xlu0 %7096 }
 0x4db   : > { %22305 = vst [vmem:[#allocation235_spill] sm:$0xff] %v17928_v55  ;;  %22306 = vst [vmem:[#allocation236_spill] sm:$0xff] %v17930_v17 }
 0x4de   : > { %v17932_v23 = vpop.permute.xlu1 %6256  ;;  %v17934_v31 = vpop.xlane.xlu0 %7124 }
 0x4df   : > { %22307 = vst [vmem:[#allocation237_spill] sm:$0xff] %v17932_v23  ;;  %22308 = vst [vmem:[#allocation238_spill] sm:$0xff] %v17934_v31 }
 0x4e2   : > { %v17938_v19 = vpop.xlane.xlu0 %7128 }
 0x4e3   : > { %22310 = vst [vmem:[#allocation240_spill] sm:$0xff] %v17938_v19 }
 0x4e6   : > { %v17942_v27 = vpop.permute.xlu0 %6304 }
 0x4e7   : > { %22312 = vst [vmem:[#allocation242_spill] sm:$0xff] %v17942_v27 }
 0x4ef   : > { %v17936_v12 = vpop.xlane.xlu1 %7130 }
 0x4f0   : > { %22309 = vst [vmem:[#allocation239_spill] sm:$0xff] %v17936_v12 }
 0x4f3   : > { %v17940_v34 = vpop.xlane.xlu1 %7102 }
 0x4f4   : > { %22311 = vst [vmem:[#allocation241_spill] sm:$0xff] %v17940_v34 }
 0x4f7   : > { %v17944_v41 = vpop.xlane.xlu1 %7134 }
 0x4f8   : > { %22313 = vst [vmem:[#allocation243_spill] sm:$0xff] %v17944_v41 }
 0x4fb   : > { %v17946_v6 = vpop.xlane.xlu0 %7100  ;;  %v17948_v48 = vpop.xlane.xlu1 %7106 }
 0x4fc   : > { %22314 = vst [vmem:[#allocation244_spill] sm:$0xff] %v17946_v6  ;;  %22315 = vst [vmem:[#allocation245_spill] sm:$0xff] %v17948_v48 }
 0x4ff   : > { %v17950_v55 = vpop.xlane.xlu0 %7132  ;;  %v17952_v17 = vpop.xlane.xlu1 %7138 }
 0x500   : > { %22316 = vst [vmem:[#allocation246_spill] sm:$0xff] %v17950_v55  ;;  %22317 = vst [vmem:[#allocation247_spill] sm:$0xff] %v17952_v17 }
 0x503   : > { %v17954_v23 = vpop.xlane.xlu0 %7104  ;;  %v17956_v31 = vpop.xlane.xlu1 %7114 }
 0x504   : > { %22318 = vst [vmem:[#allocation248_spill] sm:$0xff] %v17954_v23  ;;  %22319 = vst [vmem:[#allocation249_spill] sm:$0xff] %v17956_v31 }
 0x507   : > { %v17958_v12 = vpop.xlane.xlu0 %7136  ;;  %v2952_v19 = vpop.xlane.xlu1 %2951 }
 0x508   : > { %22320 = vst [vmem:[#allocation250_spill] sm:$0xff] %v17958_v12  ;;  %v3046_v34 = vsub.f32 %v17569_v32, %v2952_v19 }
 0x50a   : > { %v3078_v27 = vmul.f32 1.442695, %v3046_v34 }
 0x50b   : > { %v17961_v8 = vpop.xlane.xlu0 %7108  ;;  %v17963_v41 = vpop.xlane.xlu1 %7146 }
 0x50c   : > { %22321 = vst [vmem:[#allocation251_spill] sm:$0xff] %v17961_v8  ;;  %22322 = vst [vmem:[#allocation252_spill] sm:$0xff] %v17963_v41  ;;  %14665 = vpow2.f32 %v3078_v27 }
 0x50f   : > { %v17965_v48 = vpop.xlane.xlu0 %7140  ;;  %v17967_v55 = vpop.xlane.xlu1 %7148 }
 0x510   : > { %22323 = vst [vmem:[#allocation253_spill] sm:$0xff] %v17965_v48  ;;  %22324 = vst [vmem:[#allocation254_spill] sm:$0xff] %v17967_v55 }
 0x513   : > { %v17969_v17 = vpop.xlane.xlu0 %7110  ;;  %v17971_v23 = vpop.xlane.xlu1 %7118 }
 0x514   : > { %22325 = vst [vmem:[#allocation255_spill] sm:$0xff] %v17969_v17  ;;  %22326 = vst [vmem:[#allocation256_spill] sm:$0xff] %v17971_v23 }
 0x516   : > { %v14666_v31 = vpop.eup %14665 }
 0x517   : > { %v17973_v6 = vpop.xlane.xlu0 %7112  ;;  %v17975_v12 = vpop.xlane.xlu1 %7120  ;;  %v3142_v32 = vsel %vm2949_vm11, %v14666_v31, 0.0 }
 0x518   : > { %22327 = vst [vmem:[#allocation257_spill] sm:$0xff] %v17973_v6  ;;  %22328 = vst [vmem:[#allocation258_spill] sm:$0xff] %v17975_v12  ;;  %3143 = vadd.xlane.f32.xlu1 %v3142_v32 }
 0x51b   : > { %v17978_v19 = vpop.xlane.xlu0 %7142  ;;  %v17980_v34 = vpop.xlane.xlu1 %7150 }
 0x51c   : > { %22329 = vst [vmem:[#allocation259_spill] sm:$0xff] %v17978_v19  ;;  %22330 = vst [vmem:[#allocation260_spill] sm:$0xff] %v17980_v34 }
 0x51f   : > { %v17982_v27 = vpop.xlane.xlu0 %7144  ;;  %v2958_v41 = vpop.xlane.xlu1 %2957 }
 0x520   : > { %22331 = vst [vmem:[#allocation261_spill] sm:$0xff] %v17982_v27  ;;  %v3048_v55 = vsub.f32 %v17622_v7, %v2958_v41 }
 0x522   : > { %v3082_v48 = vmul.f32 1.442695, %v3048_v55 }
 0x523   : > { %v2955_v17 = vpop.xlane.xlu0 %2954  ;;  %v2961_v23 = vpop.xlane.xlu1 %2960 }
 0x524   : > { %14667 = vpow2.f32 %v3082_v48  ;;  %v3047_v6 = vsub.f32 %v17635_v58, %v2955_v17  ;;  %v3049_v12 = vsub.f32 %v17641_v35, %v2961_v23 }
 0x526   : > { %v3080_v8 = vmul.f32 1.442695, %v3047_v6  ;;  %v3084_v52 = vmul.f32 1.442695, %v3049_v12 }
 0x527   : > { %v17987_v32 = vpop.xlane.xlu0 %7116  ;;  %v2964_v19 = vpop.xlane.xlu1 %2963 }
 0x528   : > { %14669 = vpow2.f32 %v3080_v8  ;;  %v3050_v34 = vsub.f32 %v17653_v20, %v2964_v19 }
 0x529   : > { %14671 = vpow2.f32 %v3084_v52 }
 0x52a   : > { %v3086_v27 = vmul.f32 1.442695, %v3050_v34 }
 0x52b   : > { %v2976_v2 = vpop.xlane.xlu0 %2975  ;;  %v2967_v7 = vpop.xlane.xlu1 %2966 }
 0x52c   : > { %14673 = vpow2.f32 %v3086_v27  ;;  %v3054_v55 = vsub.f32 %v17671_v57, %v2976_v2  ;;  %v3051_v41 = vsub.f32 %v17665_v0, %v2967_v7 }
 0x52e   : > { %v14668_v58 = vpop.eup %14667  ;;  %v3094_v48 = vmul.f32 1.442695, %v3054_v55  ;;  %v3088_v35 = vmul.f32 1.442695, %v3051_v41  ;;  %v22332_v41 = vld [vmem:[#allocation97_spill] sm:$0xff] }
 0x52f   : > { %v17992_v23 = vpop.xlane.xlu0 %7152  ;;  %v2970_v12 = vpop.xlane.xlu1 %2969  ;;  %v3148_v6 = vsel %vm2949_vm11, %v14668_v58, 0.0 }
 0x530   : > { %14675 = vpow2.f32 %v3094_v48  ;;  %v3052_v8 = vsub.f32 %v17687_v24, %v2970_v12  ;;  %3149 = vadd.xlane.f32.xlu1 %v3148_v6  ;;  %v22333_v48 = vmov 0.0   ;;  %v22334_v6 = vld [vmem:[#allocation101_spill] sm:$0xff] }
 0x531   : > { %14677 = vpow2.f32 %v3088_v35 }
 0x532   : > { %v14670_v52 = vpop.eup %14669  ;;  %v3090_v20 = vmul.f32 1.442695, %v3052_v8 }
 0x533   : > { %v14672_v17 = vpop.eup %14671  ;;  %v2982_v19 = vpop.xlane.xlu0 %2981  ;;  %v3145_v0 = vsel %vm2949_vm11, %v14670_v52, 0.0  ;;  %v3270_v57 = vpack.c.bf16 %v14670_v52, %v14666_v31 }
 0x534   : > { %v2973_v2 = vpop.xlane.xlu1 %2972  ;;  %14679 = vpow2.f32 %v3090_v20  ;;  %3146 = vadd.xlane.f32.xlu0 %v3145_v0  ;;  %v3151_v27 = vsel %vm2949_vm11, %v14672_v17, 0.0  ;;  %v3271_v24 = vpack.c.bf16 %v14672_v17, %v14668_v58  ;;  %v3056_v35 = vsub.f32 %v17703_v25, %v2982_v19 }
 0x535   : > { %v3053_v34 = vsub.f32 %v17707_v9, %v2973_v2  ;;  %3152 = vadd.xlane.f32.xlu1 %v3151_v27  ;;  %13504 = vmatmul.mubr.msk.bf16.vlgmr.msra.gmra.mrb[80].mxu0 %vm2949_vm11, %v3270_v57 }
 0x536   : > { %v14674_v7 = vpop.eup %14673  ;;  %13514 = vmatpush3.bf16.msra.mxu0 %v22332_v41  ;;  %13515 = vmatprep.mubr.msk.bf16.mxu0 %vm15602_vm0, %v22333_v48  ;;  %v3098_v17 = vmul.f32 1.442695, %v3056_v35 }
 0x537   : > { %v3092_v55 = vmul.f32 1.442695, %v3053_v34  ;;  %13510 = vmatmul.mubr.msk.bf16.vlgmr.msra.gmra.mrb[112].mxu1 %vm2949_vm11, %v3271_v24  ;;  %v2988_v31 = vpop.xlane.xlu0 %2987  ;;  %v3154_v12 = vsel %vm2949_vm11, %v14674_v7, 0.0  ;;  %13525 = vmatprep.subr.bf16.mxu0 %v22333_v48 }
 0x538   : > { %v2979_v9 = vpop.xlane.xlu1 %2978  ;;  %13520 = vmatpush3.bf16.msra.mxu1 %v22334_v6  ;;  %3155 = vadd.xlane.f32.xlu0 %v3154_v12  ;;  %v3058_v8 = vsub.f32 %v17721_v4, %v2988_v31  ;;  %v22335_v12 = vld [vmem:[#allocation105_spill] sm:$0xff] }
 0x539   : > { %v3055_v58 = vsub.f32 %v17715_v42, %v2979_v9  ;;  %14681 = vpow2.f32 %v3092_v55  ;;  %13521 = vmatprep.mubr.msk.bf16.mxu1 %vm15602_vm0, %v22333_v48  ;;  %13531 = vmatprep.subr.bf16.mxu1 %v22333_v48 }
 0x53a   : > { %v18012_v25 = vpop.eup %14675  ;;  %v3102_v24 = vmul.f32 1.442695, %v3058_v8 }
 0x53b   : > { %v3096_v52 = vmul.f32 1.442695, %v3055_v58  ;;  %v14678_v20 = vpop.eup %14677  ;;  %v2994_v19 = vpop.xlane.xlu0 %2993  ;;  %v3166_v0 = vsel %vm2949_vm11, %v18012_v25, 0.0 }
 0x53c   : > { %v2985_v2 = vpop.xlane.xlu1 %2984  ;;  %v3157_v57 = vsel %vm2949_vm11, %v14678_v20, 0.0  ;;  %3167 = vadd.xlane.f32.xlu0 %v3166_v0  ;;  %v3272_v34 = vpack.c.bf16 %v14678_v20, %v14674_v7  ;;  %v3060_v4 = vsub.f32 %v17739_v30, %v2994_v19 }
 0x53d   : > { %v3057_v42 = vsub.f32 %v17743_v47, %v2985_v2  ;;  %14683 = vpow2.f32 %v3096_v52  ;;  %3158 = vadd.xlane.f32.xlu1 %v3157_v57 }
 0x53e   : > { %v14680_v27 = vpop.eup %14679  ;;  %14685 = vpow2.f32 %v3098_v17  ;;  %13516 = vmatmul.mubr.msk.bf16.vlgmr.msra.gmra.mrb[84].mxu0 %vm2949_vm11, %v3272_v34  ;;  %v3106_v30 = vmul.f32 1.442695, %v3060_v4 }
 0x53f   : > { %v3100_v55 = vmul.f32 1.442695, %v3057_v42  ;;  %v3000_v35 = vpop.xlane.xlu0 %2999  ;;  %v3160_v9 = vsel %vm2949_vm11, %v14680_v27, 0.0  ;;  %13526 = vmatpush3.bf16.msra.mxu0 %v22335_v12  ;;  %13527 = vmatprep.mubr.msk.bf16.mxu0 %vm15602_vm0, %v22333_v48 }
 0x540   : > { %v2991_v31 = vpop.xlane.xlu1 %2990  ;;  %13537 = vmatprep.subr.bf16.mxu0 %v22333_v48  ;;  %v3062_v7 = vsub.f32 %v17761_v39, %v3000_v35 }
 0x541   : > { %v3059_v47 = vsub.f32 %v17755_v37, %v2991_v31  ;;  %14687 = vpow2.f32 %v3100_v55  ;;  %3161 = vadd.xlane.f32.xlu1 %v3160_v9 }
 0x542   : > { %14689 = vpow2.f32 %v3102_v24  ;;  %v3110_v2 = vmul.f32 1.442695, %v3062_v7  ;;  %v22336_v24 = vld [vmem:[#allocation111_spill] sm:$0xff]  ;;  %v22337_v7 = vld [vmem:[#allocation117_spill] sm:$0xff] }
 0x543   : > { %v3104_v58 = vmul.f32 1.442695, %v3059_v47  ;;  %v14682_v8 = vpop.eup %14681  ;;  %v3006_v52 = vpop.xlane.xlu0 %3005 }
 0x544   : > { %v2997_v20 = vpop.xlane.xlu1 %2996  ;;  %v3163_v19 = vsel %vm2949_vm11, %v14682_v8, 0.0  ;;  %v3273_v37 = vpack.c.bf16 %v14682_v8, %v14680_v27  ;;  %v3064_v39 = vsub.f32 %v17775_v16, %v3006_v52 }
 0x545   : > { %v3061_v17 = vsub.f32 %v17779_v46, %v2997_v20  ;;  %14691 = vpow2.f32 %v3104_v58  ;;  %3164 = vadd.xlane.f32.xlu1 %v3163_v19 }
 0x546   : > { %14693 = vpow2.f32 %v3106_v30  ;;  %13522 = vmatmul.mubr.msk.bf16.vlgmr.msra.gmra.mrb[116].mxu1 %vm2949_vm11, %v3273_v37  ;;  %v3114_v30 = vmul.f32 1.442695, %v3064_v39 }
 0x547   : > { %v3108_v0 = vmul.f32 1.442695, %v3061_v17  ;;  %v14684_v42 = vpop.eup %14683  ;;  %v3012_v57 = vpop.xlane.xlu0 %3011  ;;  %13532 = vmatpush3.bf16.msra.mxu1 %v22336_v24  ;;  %13533 = vmatprep.mubr.msk.bf16.mxu1 %vm15602_vm0, %v22333_v48 }
 0x548   : > { %v3003_v34 = vpop.xlane.xlu1 %3002  ;;  %v3169_v46 = vsel %vm2949_vm11, %v14684_v42, 0.0  ;;  %v14686_v27 = vpop.eup %14685  ;;  %v3274_v55 = vpack.c.bf16 %v14684_v42, %v18012_v25  ;;  %13543 = vmatprep.subr.bf16.mxu1 %v22333_v48  ;;  %v3066_v16 = vsub.f32 %v17797_v21, %v3012_v57  ;;  %v22338_v42 = vld [vmem:[#allocation122_spill] sm:$0xff] }
 0x549   : > { %v3063_v4 = vsub.f32 %v17791_v5, %v3003_v34  ;;  %14695 = vpow2.f32 %v3108_v0  ;;  %3170 = vadd.xlane.f32.xlu1 %v3169_v46  ;;  %v3172_v25 = vsel %vm2949_vm11, %v14686_v27, 0.0 }
 0x54a   : > { %14697 = vpow2.f32 %v3110_v2  ;;  %13528 = vmatmul.mubr.msk.bf16.vlgmr.msra.gmra.mrb[88].mxu0 %vm2949_vm11, %v3274_v55  ;;  %v3118_v17 = vmul.f32 1.442695, %v3066_v16  ;;  %v22339_v16 = vld [vmem:[#allocation128_spill] sm:$0xff] }
 0x54b   : > { %v3112_v35 = vmul.f32 1.442695, %v3063_v4  ;;  %v14688_v31 = vpop.eup %14687  ;;  %v3018_v5 = vpop.xlane.xlu0 %3017  ;;  %13538 = vmatpush3.bf16.msra.mxu0 %v22337_v7  ;;  %13539 = vmatprep.mubr.msk.bf16.mxu0 %vm15602_vm0, %v22333_v48 }
 0x54c   : > { %v3009_v9 = vpop.xlane.xlu1 %3008  ;;  %v14690_v47 = vpop.eup %14689  ;;  %v3175_v8 = vsel %vm2949_vm11, %v14688_v31, 0.0  ;;  %v3275_v21 = vpack.c.bf16 %v14688_v31, %v14686_v27  ;;  %13549 = vmatprep.subr.bf16.mxu0 %v22333_v48  ;;  %v3068_v19 = vsub.f32 %v17815_v59, %v3018_v5 }
 0x54d   : > { %v3065_v58 = vsub.f32 %v17819_v53, %v3009_v9  ;;  %14699 = vpow2.f32 %v3112_v35  ;;  %3176 = vadd.xlane.f32.xlu0 %v3175_v8  ;;  %3173 = vadd.xlane.f32.xlu1 %v3172_v25  ;;  %v3178_v2 = vsel %vm2949_vm11, %v14690_v47, 0.0 }
 0x54e   : > { %13534 = vmatmul.mubr.msk.bf16.vlgmr.msra.gmra.mrb[120].mxu1 %vm2949_vm11, %v3275_v21  ;;  %14701 = vpow2.f32 %v3114_v30  ;;  %v3122_v55 = vmul.f32 1.442695, %v3068_v19 }
 0x54f   : > { %v3116_v52 = vmul.f32 1.442695, %v3065_v58  ;;  %v14692_v20 = vpop.eup %14691  ;;  %v3024_v53 = vpop.xlane.xlu0 %3023  ;;  %13544 = vmatpush3.bf16.msra.mxu1 %v22338_v42  ;;  %13545 = vmatprep.mubr.msk.bf16.mxu1 %vm15602_vm0, %v22333_v48  ;;  %v22448_v42 = vld [vmem:[#allocation99_spill] sm:$0xff] }
 0x550   : > { %v3015_v37 = vpop.xlane.xlu1 %3014  ;;  %v14694_v0 = vpop.eup %14693  ;;  %v3070_v57 = vsub.f32 %v17831_v22, %v3024_v53  ;;  %v3181_v39 = vsel %vm2949_vm11, %v14692_v20, 0.0  ;;  %v3276_v59 = vpack.c.bf16 %v14692_v20, %v14690_v47  ;;  %13555 = vmatprep.subr.bf16.mxu1 %v22333_v48 }
 0x551   : > { %v3067_v34 = vsub.f32 %v17827_v13, %v3015_v37  ;;  %14703 = vpow2.f32 %v3116_v52  ;;  %3182 = vadd.xlane.f32.xlu0 %v3181_v39  ;;  %3179 = vadd.xlane.f32.xlu1 %v3178_v2  ;;  %v3184_v35 = vsel %vm2949_vm11, %v14694_v0, 0.0  ;;  %v22340_v52 = vld [vmem:[#allocation134_spill] sm:$0xff] }
 0x552   : > { %v3126_v4 = vmul.f32 1.442695, %v3070_v57  ;;  %14705 = vpow2.f32 %v3118_v17  ;;  %13540 = vmatmul.mubr.msk.bf16.vlgmr.msra.gmra.mrb[92].mxu0 %vm2949_vm11, %v3276_v59 }
 0x553   : > { %v3120_v46 = vmul.f32 1.442695, %v3067_v34  ;;  %v14696_v27 = vpop.eup %14695  ;;  %v3030_v22 = vpop.xlane.xlu0 %3029  ;;  %13550 = vmatpush3.bf16.msra.mxu0 %v22339_v16  ;;  %13551 = vmatprep.mubr.msk.bf16.mxu0 %vm15602_vm0, %v22333_v48  ;;  %v22447_v16 = vld [vmem:[#allocation130_spill] sm:$0xff] }
 0x554   : > { %v3021_v13 = vpop.xlane.xlu1 %3020  ;;  %v14698_v31 = vpop.eup %14697  ;;  %14707 = vpow2.f32 %v3126_v4  ;;  %v3072_v5 = vsub.f32 %v17851_v43, %v3030_v22  ;;  %v3187_v47 = vsel %vm2949_vm11, %v14696_v27, 0.0  ;;  %v3277_v30 = vpack.c.bf16 %v14696_v27, %v14694_v0  ;;  %13561 = vmatprep.subr.bf16.mxu0 %v22333_v48 }
 0x555   : > { %v3069_v9 = vsub.f32 %v17855_v50, %v3021_v13  ;;  %14709 = vpow2.f32 %v3120_v46  ;;  %3188 = vadd.xlane.f32.xlu0 %v3187_v47  ;;  %3185 = vadd.xlane.f32.xlu1 %v3184_v35  ;;  %v3190_v50 = vsel %vm2949_vm11, %v14698_v31, 0.0 }
 0x556   : > { %v3130_v58 = vmul.f32 1.442695, %v3072_v5  ;;  %14711 = vpow2.f32 %v3122_v55  ;;  %13546 = vmatmul.mubr.msk.bf16.vlgmr.msra.gmra.mrb[124].mxu1 %vm2949_vm11, %v3277_v30 }
 0x557   : > { %v3124_v8 = vmul.f32 1.442695, %v3069_v9  ;;  %v14700_v25 = vpop.eup %14699  ;;  %v3036_v43 = vpop.xlane.xlu0 %3035  ;;  %13556 = vmatpush3.bf16.msra.mxu1 %v22340_v52  ;;  %13557 = vmatprep.mubr.msk.bf16.mxu1 %vm15602_vm0, %v22333_v48 }
 0x558   : > { %v3027_v21 = vpop.xlane.xlu1 %3026  ;;  %14713 = vpow2.f32 %v3130_v58  ;;  %v3074_v20 = vsub.f32 %v17871_v15, %v3036_v43  ;;  %v3278_v19 = vpack.c.bf16 %v14700_v25, %v14698_v31  ;;  %13567 = vmatprep.subr.bf16.mxu1 %v22333_v48  ;;  %v14702_v53 = vpop.eup %14701  ;;  %v3193_v15 = vsel %vm2949_vm11, %v14700_v25, 0.0  ;;  %v22343_v43 = vld [vmem:[#allocation151_spill] sm:$0xff] }
 0x559   : > { %v3071_v17 = vsub.f32 %v17867_v1, %v3027_v21  ;;  %14715 = vpow2.f32 %v3124_v8  ;;  %3191 = vadd.xlane.f32.xlu1 %v3190_v50  ;;  %v22341_v1 = vld [vmem:[#allocation139_spill] sm:$0xff]  ;;  %v3196_v5 = vsel %vm2949_vm11, %v14702_v53, 0.0 }
 0x55a   : > { %v3134_v37 = vmul.f32 1.442695, %v3074_v20  ;;  %13552 = vmatmul.mubr.msk.bf16.vlgmr.msra.gmra.mrb[96].mxu0 %vm2949_vm11, %v3278_v19 }
 0x55b   : > { %v3128_v2 = vmul.f32 1.442695, %v3071_v17  ;;  %v14704_v0 = vpop.eup %14703  ;;  %v3042_v57 = vpop.xlane.xlu0 %3041  ;;  %13562 = vmatpush3.bf16.msra.mxu0 %v22341_v1  ;;  %13563 = vmatprep.mubr.msk.bf16.mxu0 %vm15602_vm0, %v22333_v48 }
 0x55c   : > { %v3033_v34 = vpop.xlane.xlu1 %3032  ;;  %14717 = vpow2.f32 %v3134_v37  ;;  %v3076_v39 = vsub.f32 %v17885_v51, %v3042_v57  ;;  %v3279_v4 = vpack.c.bf16 %v14704_v0, %v14702_v53  ;;  %v14706_v46 = vpop.eup %14705  ;;  %13573 = vmatprep.subr.bf16.mxu0 %v22333_v48  ;;  %v3199_v50 = vsel %vm2949_vm11, %v14704_v0, 0.0 }
 0x55d   : > { %v3073_v59 = vsub.f32 %v17889_v49, %v3033_v34  ;;  %14719 = vpow2.f32 %v3128_v2  ;;  %3194 = vadd.xlane.f32.xlu1 %v3193_v15  ;;  %v22342_v49 = vld [vmem:[#allocation145_spill] sm:$0xff]  ;;  %v22344_v2 = vld [vmem:[#allocation156_spill] sm:$0xff] }
 0x55e   : > { %v14708_v27 = vpop.eup %14707  ;;  %v3138_v55 = vmul.f32 1.442695, %v3076_v39  ;;  %13558 = vmatmul.mubr.msk.bf16.vlgmr.msra.gmra.mrb[128].mxu1 %vm2949_vm11, %v3279_v4  ;;  %v22345_v39 = vld [vmem:[#allocation162_spill] sm:$0xff] }
 0x55f   : > { %v3132_v22 = vmul.f32 1.442695, %v3073_v59  ;;  %v14710_v13 = vpop.eup %14709  ;;  %v3214_v51 = vsel %vm2949_vm11, %v14708_v27, 0.0  ;;  %13568 = vmatpush3.bf16.msra.mxu1 %v22342_v49  ;;  %13569 = vmatprep.mubr.msk.bf16.mxu1 %vm15602_vm0, %v22333_v48  ;;  %v22446_v49 = vld [vmem:[#allocation125_spill] sm:$0xff] }
 0x560   : > { %v3039_v35 = vpop.xlane.xlu1 %3038  ;;  %14721 = vpow2.f32 %v3138_v55  ;;  %3215 = vadd.xlane.f32.xlu0 %v3214_v51  ;;  %v3280_v9 = vpack.c.bf16 %v14710_v13, %v14706_v46  ;;  %v14712_v47 = vpop.eup %14711  ;;  %13579 = vmatprep.subr.bf16.mxu1 %v22333_v48  ;;  %v3205_v59 = vsel %vm2949_vm11, %v14710_v13, 0.0 }
 0x561   : > { %v3075_v31 = vsub.f32 %v17901_v14, %v3039_v35  ;;  %14723 = vpow2.f32 %v3132_v22  ;;  %3197 = vadd.xlane.f32.xlu1 %v3196_v5  ;;  %v3208_v55 = vsel %vm2949_vm11, %v14712_v47, 0.0  ;;  %v22346_v35 = vld [vmem:[#allocation175_spill] sm:$0xff]  ;;  %v22347_v5 = vld [vmem:[#allocation188_spill] sm:$0xff] }
 0x562   : > { %v14714_v30 = vpop.eup %14713  ;;  %13564 = vmatmul.mubr.msk.bf16.vlgmr.msra.gmra.mrb[100].mxu0 %vm2949_vm11, %v3280_v9  ;;  %v4377_v51 = vsel %vm2160_vm1, %v22346_v35, 0  ;;  %v4430_v9 = vsel %vm2160_vm1, %v22347_v5, 0  ;;  %v22366_v35 = vld [vmem:[#allocation91_spill] sm:$0xff]  ;;  %v22367_v5 = vld [vmem:[#allocation93_spill] sm:$0xff] }
 0x563   : > { %v3136_v58 = vmul.f32 1.442695, %v3075_v31  ;;  %v14716_v8 = vpop.eup %14715  ;;  %v3220_v14 = vsel %vm2949_vm11, %v14714_v30, 0.0  ;;  %13574 = vmatpush3.bf16.msra.mxu0 %v22343_v43  ;;  %13575 = vmatprep.mubr.msk.bf16.mxu0 %vm15602_vm0, %v22333_v48 }
 0x564   : > { %v3045_v25 = vpop.xlane.xlu1 %3044  ;;  %3221 = vadd.xlane.f32.xlu0 %v3220_v14  ;;  %v3281_v20 = vpack.c.bf16 %v14716_v8, %v14712_v47  ;;  %13585 = vmatprep.subr.bf16.mxu0 %v22333_v48  ;;  %v3211_v31 = vsel %vm2949_vm11, %v14716_v8, 0.0  ;;  %v22349_v8 = vld [vmem:[#allocation165_spill] sm:$0xff] }
 0x565   : > { %14725 = vpow2.f32 %v3136_v58  ;;  %v3077_v21 = vsub.f32 %v17912_v10, %v3045_v25  ;;  %3200 = vadd.xlane.f32.xlu1 %v3199_v50  ;;  %v3202_v10 = vsel %vm2949_vm11, %v14706_v46, 0.0  ;;  %v22350_v14 = vld [vmem:[#allocation209_spill] sm:$0xff]  ;;  %v22351_v50 = vld [vmem:[#allocation179_spill] sm:$0xff] }
 0x566   : > { %v14718_v17 = vpop.eup %14717  ;;  %13570 = vmatmul.mubr.msk.bf16.vlgmr.msra.gmra.mrb[132].mxu1 %vm2949_vm11, %v3281_v20 }
 0x567   : > { %v3140_v19 = vmul.f32 1.442695, %v3077_v21  ;;  %v14720_v53 = vpop.eup %14719  ;;  %v3226_v37 = vsel %vm2949_vm11, %v14718_v17, 0.0  ;;  %13580 = vmatpush3.bf16.msra.mxu1 %v22344_v2  ;;  %13581 = vmatprep.mubr.msk.bf16.mxu1 %vm15602_vm0, %v22333_v48  ;;  %v4536_v21 = vsel %vm2160_vm1, %v22350_v14, 0 }
 0x568   : > { %3227 = vadd.xlane.f32.xlu0 %v3226_v37  ;;  %v3282_v0 = vpack.c.bf16 %v14720_v53, %v14708_v27  ;;  %13591 = vmatprep.subr.bf16.mxu1 %v22333_v48  ;;  %v3217_v47 = vsel %vm2949_vm11, %v14720_v53, 0.0  ;;  %v22353_v53 = vld [vmem:[#allocation193_spill] sm:$0xff] }
 0x569   : > { %14727 = vpow2.f32 %v3140_v19  ;;  %3203 = vadd.xlane.f32.xlu1 %v3202_v10  ;;  %v4589_v19 = vsel %vm2160_vm1, %v17478_v18, 0  ;;  %v4642_v10 = vsel %vm2160_vm1, %v17528_v60, 0  ;;  %v4695_v18 = vsel %vm2160_vm1, %v17585_v44, 0 }
 0x56a   : > { %v14722_v57 = vpop.eup %14721  ;;  %13576 = vmatmul.mubr.msk.bf16.vlgmr.msra.gmra.mrb[104].mxu0 %vm2949_vm11, %v3282_v0  ;;  %v22354_v0 = vld [vmem:[#allocation206_spill] sm:$0xff]  ;;  %v4748_v60 = vsel %vm2160_vm1, %v17605_v3, 0 }
 0x56b   : > { %v14724_v34 = vpop.eup %14723  ;;  %v3232_v15 = vsel %vm2949_vm11, %v14722_v57, 0.0  ;;  %13586 = vmatpush3.bf16.msra.mxu0 %v22345_v39  ;;  %13587 = vmatprep.mubr.msk.bf16.mxu0 %vm15602_vm0, %v22333_v48 }
 0x56c   : > { %3233 = vadd.xlane.f32.xlu0 %v3232_v15  ;;  %v3283_v4 = vpack.c.bf16 %v14724_v34, %v14714_v30  ;;  %13597 = vmatprep.subr.bf16.mxu0 %v22333_v48  ;;  %v22348_v30 = vld [vmem:[#allocation191_spill] sm:$0xff]  ;;  %v3223_v25 = vsel %vm2949_vm11, %v14724_v34, 0.0  ;;  %v22363_v34 = vld [vmem:[#allocation216_spill] sm:$0xff] }
 0x56d   : > { %3206 = vadd.xlane.f32.xlu1 %v3205_v59  ;;  %v4483_v58 = vsel %vm2160_vm1, %v22348_v30, 0 }
 0x56e   : > { %13582 = vmatmul.mubr.msk.bf16.vlgmr.msra.gmra.mrb[136].mxu1 %vm2949_vm11, %v3283_v4  ;;  %v18252_v4 = vld [vmem:[#allocation13] ss:$0 sm:$0xff] }
 0x56f   : > { %v14726_v46 = vpop.eup %14725  ;;  %13592 = vmatpush3.bf16.msra.mxu1 %v17260_v11  ;;  %13593 = vmatprep.mubr.msk.bf16.mxu1 %vm15602_vm0, %v22333_v48 }
 0x570   : > { %v3284_v27 = vpack.c.bf16 %v14726_v46, %v14718_v17  ;;  %13603 = vmatprep.subr.bf16.mxu1 %v22333_v48  ;;  %v3229_v20 = vsel %vm2949_vm11, %v14726_v46, 0.0  ;;  %v22352_v17 = vld [vmem:[#allocation89_spill] sm:$0xff]  ;;  %v22364_v46 = vld [vmem:[#allocation87_spill] sm:$0xff] }
 0x571   : > { %3209 = vadd.xlane.f32.xlu1 %v3208_v55 }
 0x572   : > { %13588 = vmatmul.mubr.msk.bf16.vlgmr.msra.gmra.mrb[108].mxu0 %vm2949_vm11, %v3284_v27  ;;  %v1584_v27 = vadd.f32 %v18252_v4, %v22364_v46 }
 0x573   : > { %v14728_v22 = vpop.eup %14727  ;;  %13599 = vmatprep.mubr.msk.bf16.mxu0 %vm15602_vm0, %v22333_v48 }
 0x574   : > { %v3285_v13 = vpack.c.bf16 %v14728_v22, %v14722_v57  ;;  %13598 = vmatpush3.bf16.xpose.msra.mxu0 %v4377_v51  ;;  %v3235_v37 = vsel %vm2949_vm11, %v14728_v22, 0.0  ;;  %v22361_v57 = vld [vmem:[#allocation214_spill] sm:$0xff]  ;;  %v1586_v51 = vadd.f32 %v18252_v4, %v22366_v35 }
 0x575   : > { %3212 = vadd.xlane.f32.xlu1 %v3211_v31  ;;  %13609 = vmatprep.subr.bf16.mxu0 %v22333_v48  ;;  %v22365_v22 = vld [vmem:[#allocation90_spill] sm:$0xff]  ;;  %v12832_v31 = vmul.f32 -1.442695, %v1584_v27 }
 0x576   : > { %13594 = vmatmul.mubr.msk.bf16.vlgmr.msra.gmra.mrb[140].mxu1 %vm2949_vm11, %v3285_v13  ;;  %v1585_v13 = vadd.f32 %v18252_v4, %v22365_v22 }
 0x577   : > { %13605 = vmatprep.mubr.msk.bf16.mxu1 %vm15602_vm0, %v22333_v48  ;;  %14729 = vpow2.f32 %v12832_v31 }
 0x578   : > { %13604 = vmatpush3.bf16.xpose.msra.mxu1 %v4430_v9  ;;  %v1587_v9 = vadd.f32 %v18252_v4, %v22367_v5 }
 0x579   : > { %3218 = vadd.xlane.f32.xlu1 %v3217_v47  ;;  %13615 = vmatprep.subr.bf16.mxu1 %v22333_v48  ;;  %v22368_v47 = vld [vmem:[#allocation96_spill] sm:$0xff] }
 0x57a   : > { %v1588_v30 = vadd.f32 %v18252_v4, %v22368_v47 }
 0x57b   : > { %13600 = vmatmul.mubr.msk.bf16.vlgmr.msra.gmra.mrb[112].mxu0 %vm2160_vm1, %v22349_v8  ;;  %v12833_v8 = vmul.f32 -1.442695, %v1585_v13 }
 0x57c   : > { %13610 = vmatpush3.bf16.xpose.msra.mxu0 %v4483_v58  ;;  %13611 = vmatprep.mubr.msk.bf16.mxu0 %vm15602_vm0, %v22333_v48 }
 0x57d   : > { %3224 = vadd.xlane.f32.xlu1 %v3223_v25  ;;  %13621 = vmatprep.subr.bf16.mxu0 %v22333_v48  ;;  %v22369_v25 = vld [vmem:[#allocation98_spill] sm:$0xff]  ;;  %14731 = vpow2.f32 %v12833_v8 }
 0x57e   : > { %v1589_v14 = vadd.f32 %v18252_v4, %v22369_v25 }
 0x57f   : > { %13606 = vmatmul.mubr.msk.bf16.vlgmr.msra.gmra.mrb[144].mxu1 %vm2160_vm1, %v22351_v50  ;;  %v22370_v50 = vld [vmem:[#allocation100_spill] sm:$0xff] }
 0x580   : > { %13616 = vmatpush3.bf16.xpose.msra.mxu1 %v4536_v21  ;;  %13617 = vmatprep.mubr.msk.bf16.mxu1 %vm15602_vm0, %v22333_v48  ;;  %v12834_v21 = vmul.f32 -1.442695, %v1586_v51 }
 0x581   : > { %3230 = vadd.xlane.f32.xlu1 %v3229_v20  ;;  %13627 = vmatprep.subr.bf16.mxu1 %v22333_v48  ;;  %v1590_v20 = vadd.f32 %v18252_v4, %v22370_v50 }
 0x582   : > { %8530 = vrot.lane.b32.xlu0 %v22352_v17, %s15604_s24  ;;  %14733 = vpow2.f32 %v12834_v21  ;;  %v22377_v21 = vld [vmem:[#allocation118_spill] sm:$0xff] }
 0x583   : > { %13612 = vmatmul.mubr.msk.bf16.vlgmr.msra.gmra.mrb[116].mxu0 %vm2160_vm1, %v22353_v53  ;;  %v22371_v53 = vld [vmem:[#allocation102_spill] sm:$0xff]  ;;  %v1597_v50 = vadd.f32 %v18252_v4, %v22377_v21 }
 0x584   : > { %13622 = vmatpush3.bf16.xpose.msra.mxu0 %v4589_v19  ;;  %13623 = vmatprep.mubr.msk.bf16.mxu0 %vm15602_vm0, %v22333_v48  ;;  %v12835_v19 = vmul.f32 -1.442695, %v1587_v9 }
 0x585   : > { %3236 = vadd.xlane.f32.xlu1 %v3235_v37  ;;  %13633 = vmatprep.subr.bf16.mxu0 %v22333_v48  ;;  %v1591_v37 = vadd.f32 %v18252_v4, %v22371_v53 }
 0x586   : > { %14735 = vpow2.f32 %v12835_v19 }
 0x587   : > { %13618 = vmatmul.mubr.msk.bf16.vlgmr.msra.gmra.mrb[148].mxu1 %vm2160_vm1, %v22354_v0  ;;  %v12837_v0 = vmul.f32 -1.442695, %v1589_v14 }
 0x588   : > { %13628 = vmatpush3.bf16.xpose.msra.mxu1 %v4642_v10  ;;  %13629 = vmatprep.mubr.msk.bf16.mxu1 %vm15602_vm0, %v22333_v48  ;;  %v12836_v10 = vmul.f32 -1.442695, %v1588_v30 }
 0x589   : > { %13639 = vmatprep.subr.bf16.mxu1 %v22333_v48 }
 0x58a   : > { %14737 = vpow2.f32 %v12836_v10 }
 0x58b   : > { %13624 = vmatmul.mubr.msk.bf16.vlgmr.msra.gmra.mrb[120].mxu0 %vm2160_vm1, %v17453_v63  ;;  %v4801_v63 = vsel %vm2160_vm1, %v17675_v33, 0  ;;  %v22358_v33 = vld [vmem:[#allocation167_spill] sm:$0xff]  ;;  %14739 = vpow2.f32 %v12837_v0 }
 0x58c   : > { %13634 = vmatpush3.bf16.xpose.msra.mxu0 %v4695_v18  ;;  %13635 = vmatprep.mubr.msk.bf16.mxu0 %vm15602_vm0, %v22333_v48  ;;  %v22372_v18 = vld [vmem:[#allocation104_spill] sm:$0xff] }
 0x58d   : > { %13645 = vmatprep.subr.bf16.mxu0 %v22333_v48 }
 0x58f   : > { %13630 = vmatmul.mubr.msk.bf16.vlgmr.msra.gmra.mrb[152].mxu1 %vm2160_vm1, %v17472_v54  ;;  %v4854_v54 = vsel %vm2160_vm1, %v17727_v61, 0  ;;  %v22355_v61 = vld [vmem:[#allocation178_spill] sm:$0xff] }
 0x590   : > { %13640 = vmatpush3.bf16.xpose.msra.mxu1 %v4748_v60  ;;  %13641 = vmatprep.mubr.msk.bf16.mxu1 %vm15602_vm0, %v22333_v48  ;;  %v5013_v44 = vsel %vm2160_vm1, %v22355_v61, 0  ;;  %v1592_v60 = vadd.f32 %v18252_v4, %v22372_v18  ;;  %v22373_v61 = vld [vmem:[#allocation106_spill] sm:$0xff]  ;;  %v22379_v18 = vld [vmem:[#allocation123_spill] sm:$0xff] }
 0x591   : > { %13651 = vmatprep.subr.bf16.mxu1 %v22333_v48 }
 0x593   : > { %13636 = vmatmul.mubr.msk.bf16.vlgmr.msra.gmra.mrb[124].mxu0 %vm2160_vm1, %v17526_v56  ;;  %v4907_v56 = vsel %vm2160_vm1, %v17803_v40, 0 }
 0x594   : > { %13646 = vmatpush3.bf16.xpose.msra.mxu0 %v4801_v63  ;;  %13647 = vmatprep.mubr.msk.bf16.mxu0 %vm15602_vm0, %v22333_v48  ;;  %v12838_v63 = vmul.f32 -1.442695, %v1590_v20 }
 0x595   : > { %13657 = vmatprep.subr.bf16.mxu0 %v22333_v48 }
 0x596   : > { %14741 = vpow2.f32 %v12838_v63 }
 0x597   : > { %13642 = vmatmul.mubr.msk.bf16.vlgmr.msra.gmra.mrb[156].mxu1 %vm2160_vm1, %v17571_v29  ;;  %v4960_v29 = vsel %vm2160_vm1, %v17859_v62, 0  ;;  %v22360_v62 = vld [vmem:[#allocation195_spill] sm:$0xff] }
 0x598   : > { %13652 = vmatpush3.bf16.xpose.msra.mxu1 %v4854_v54  ;;  %13653 = vmatprep.mubr.msk.bf16.mxu1 %vm15602_vm0, %v22333_v48 }
 0x599   : > { %13663 = vmatprep.subr.bf16.mxu1 %v22333_v48 }
 0x59b   : > { %13648 = vmatmul.mubr.msk.bf16.vlgmr.msra.gmra.mrb[128].mxu0 %vm2160_vm1, %v17603_v28  ;;  %v22356_v28 = vld [vmem:[#allocation183_spill] sm:$0xff] }
 0x59c   : > { %13658 = vmatpush3.bf16.xpose.msra.mxu0 %v4907_v56  ;;  %13659 = vmatprep.mubr.msk.bf16.mxu0 %vm15602_vm0, %v22333_v48  ;;  %v5066_v3 = vsel %vm2160_vm1, %v22356_v28, 0  ;;  %v12839_v56 = vmul.f32 -1.442695, %v1591_v37  ;;  %v22374_v28 = vld [vmem:[#allocation109_spill] sm:$0xff] }
 0x59d   : > { %13669 = vmatprep.subr.bf16.mxu0 %v22333_v48  ;;  %v22378_v37 = vld [vmem:[#allocation121_spill] sm:$0xff] }
 0x59e   : > { %14743 = vpow2.f32 %v12839_v56  ;;  %v1598_v10 = vadd.f32 %v18252_v4, %v22378_v37  ;;  %v12845_v56 = vmul.f32 -1.442695, %v1597_v50 }
 0x59f   : > { %13654 = vmatmul.mubr.msk.bf16.vlgmr.msra.gmra.mrb[160].mxu1 %vm2160_vm1, %v17643_v38  ;;  %v22357_v38 = vld [vmem:[#allocation194_spill] sm:$0xff] }
 0x5a0   : > { %13664 = vmatpush3.bf16.xpose.msra.mxu1 %v4960_v29  ;;  %13665 = vmatprep.mubr.msk.bf16.mxu1 %vm15602_vm0, %v22333_v48  ;;  %v5119_v40 = vsel %vm2160_vm1, %v22357_v38, 0  ;;  %v12840_v29 = vmul.f32 -1.442695, %v1592_v60  ;;  %v22375_v38 = vld [vmem:[#allocation112_spill] sm:$0xff]  ;;  %v1599_v60 = vadd.f32 %v18252_v4, %v22379_v18 }
 0x5a1   : > { %13675 = vmatprep.subr.bf16.mxu1 %v22333_v48 }
 0x5a2   : > { %14745 = vpow2.f32 %v12840_v29  ;;  %v22380_v29 = vld [vmem:[#allocation126_spill] sm:$0xff] }
 0x5a3   : > { %13660 = vmatmul.mubr.msk.bf16.vlgmr.msra.gmra.mrb[132].mxu0 %vm2160_vm1, %v17725_v26  ;;  %v5172_v26 = vsel %vm2160_vm1, %v17438_v45, 0  ;;  %v22362_v45 = vld [vmem:[#allocation200_spill] sm:$0xff] }
 0x5a4   : > { %13670 = vmatpush3.bf16.xpose.msra.mxu0 %v5013_v44  ;;  %13671 = vmatprep.mubr.msk.bf16.mxu0 %vm15602_vm0, %v22333_v48  ;;  %v1593_v44 = vadd.f32 %v18252_v4, %v22373_v61  ;;  %v1600_v61 = vadd.f32 %v18252_v4, %v22380_v29 }
 0x5a5   : > { %13681 = vmatprep.subr.bf16.mxu0 %v22333_v48  ;;  %v18248_v15 = vpop.xlane.xlu1 %3143 }
 0x5a7   : > { %13666 = vmatmul.mubr.msk.bf16.vlgmr.msra.gmra.mrb[164].mxu1 %vm2160_vm1, %v17781_v36  ;;  %v22359_v36 = vld [vmem:[#allocation182_spill] sm:$0xff] }
 0x5a8   : > { %13676 = vmatpush3.bf16.xpose.msra.mxu1 %v5066_v3  ;;  %13677 = vmatprep.mubr.msk.bf16.mxu1 %vm15602_vm0, %v22333_v48  ;;  %v1594_v3 = vadd.f32 %v18252_v4, %v22374_v28 }
 0x5a9   : > { %13687 = vmatprep.subr.bf16.mxu1 %v22333_v48 }
 0x5ab   : > { %13672 = vmatmul.mubr.msk.bf16.vlgmr.msra.gmra.mrb[136].mxu0 %vm2160_vm1, %v22358_v33 }
 0x5ac   : > { %13682 = vmatpush3.bf16.xpose.msra.mxu0 %v5119_v40  ;;  %13683 = vmatprep.mubr.msk.bf16.mxu0 %vm15602_vm0, %v22333_v48  ;;  %v1595_v40 = vadd.f32 %v18252_v4, %v22375_v38 }
 0x5ad   : > { %13693 = vmatprep.subr.bf16.mxu0 %v22333_v48 }
 0x5ae   : > { %v12843_v46 = vmul.f32 -1.442695, %v1595_v40  ;;  %v12847_v40 = vmul.f32 -1.442695, %v1599_v60 }
 0x5af   : > { %13678 = vmatmul.mubr.msk.bf16.vlgmr.msra.gmra.mrb[168].mxu1 %vm2160_vm1, %v22359_v36  ;;  %v12841_v36 = vmul.f32 -1.442695, %v1593_v44 }
 0x5b0   : > { %13688 = vmatpush3.bf16.xpose.msra.mxu1 %v5172_v26  ;;  %13689 = vmatprep.mubr.msk.bf16.mxu1 %vm15602_vm0, %v22333_v48  ;;  %v14730_v26 = vpop.eup %14729 }
 0x5b1   : > { %13699 = vmatprep.subr.bf16.mxu1 %v22333_v48  ;;  %v1712_v22 = vadd.f32 1.0, %v14730_v26  ;;  %14747 = vpow2.f32 %v12841_v36  ;;  %v12848_v36 = vmul.f32 -1.442695, %v1600_v61 }
 0x5b3   : > { %13684 = vmatmul.mubr.msk.bf16.vlgmr.msra.gmra.mrb[140].mxu0 %vm2160_vm1, %v22360_v62  ;;  %v22376_v62 = vld [vmem:[#allocation115_spill] sm:$0xff] }
 0x5b4   : > { %13694 = vmatpush3.bf16.msra.mxu0 %v22361_v57  ;;  %13695 = vmatprep.mubr.msk.bf16.mxu0 %vm15602_vm0, %v22333_v48  ;;  %v1596_v57 = vadd.f32 %v18252_v4, %v22376_v62  ;;  %v22381_v62 = vld [vmem:[#allocation129_spill] sm:$0xff] }
 0x5b5   : > { %13705 = vmatprep.subr.bf16.mxu0 %v22333_v48 }
 0x5b6   : > { %v12844_v35 = vmul.f32 -1.442695, %v1596_v57  ;;  %v1601_v57 = vadd.f32 %v18252_v4, %v22381_v62 }
 0x5b7   : > { %13690 = vmatmul.mubr.msk.bf16.vlgmr.msra.gmra.mrb[172].mxu1 %vm2160_vm1, %v22362_v45  ;;  %v12842_v45 = vmul.f32 -1.442695, %v1594_v3  ;;  %v12846_v3 = vmul.f32 -1.442695, %v1598_v10 }
 0x5b8   : > { %13700 = vmatpush3.bf16.msra.mxu1 %v22363_v34  ;;  %13701 = vmatprep.mubr.msk.bf16.mxu1 %vm15602_vm0, %v22333_v48  ;;  %v14732_v34 = vpop.eup %14731 }
 0x5b9   : > { %13711 = vmatprep.subr.bf16.mxu1 %v22333_v48  ;;  %v14734_v27 = vpop.eup %14733  ;;  %v1713_v31 = vadd.f32 1.0, %v14732_v34  ;;  %14749 = vpow2.f32 %v12842_v45 }
 0x5ba   : > { %v14736_v13 = vpop.eup %14735  ;;  %v1714_v47 = vadd.f32 1.0, %v14734_v27  ;;  %14751 = vpow2.f32 %v12843_v46 }
 0x5bb   : > { %v14738_v51 = vpop.eup %14737  ;;  %14753 = vrcp.f32 %v1712_v22  ;;  %v1715_v8 = vadd.f32 1.0, %v14736_v13  ;;  %v22383_v13 = vld [vmem:[#allocation132_spill] sm:$0xff] }
 0x5bc   : > { %v14740_v9 = vpop.eup %14739  ;;  %v1716_v14 = vadd.f32 1.0, %v14738_v51  ;;  %14755 = vpow2.f32 %v12844_v35  ;;  %v1602_v35 = vadd.f32 %v18252_v4, %v22383_v13  ;;  %v22397_v13 = vld [vmem:[#allocation146_spill] sm:$0xff] }
 0x5bd   : > { %v18250_v59 = vpop.xlane.xlu1 %3149  ;;  %v14742_v30 = vpop.eup %14741  ;;  %14757 = vrcp.f32 %v1713_v31  ;;  %v1717_v20 = vadd.f32 1.0, %v14740_v9  ;;  %v22385_v9 = vld [vmem:[#allocation135_spill] sm:$0xff] }
 0x5be   : > { %v14744_v25 = vpop.eup %14743  ;;  %14759 = vrcp.f32 %v1714_v47  ;;  %v1718_v53 = vadd.f32 1.0, %v14742_v30  ;;  %v1603_v47 = vadd.f32 %v18252_v4, %v22385_v9  ;;  %v12850_v37 = vmul.f32 -1.442695, %v1602_v35 }
 0x5bf   : > { %v14746_v19 = vpop.eup %14745  ;;  %14761 = vrcp.f32 %v1715_v8  ;;  %v1719_v0 = vadd.f32 1.0, %v14744_v25  ;;  %v12849_v8 = vmul.f32 -1.442695, %v1601_v57  ;;  %v22387_v25 = vld [vmem:[#allocation138_spill] sm:$0xff]  ;;  %v22395_v57 = vld [vmem:[#allocation143_spill] sm:$0xff]  ;;  %v1607_v35 = vadd.f32 %v18252_v4, %v22397_v13 }
 0x5c0   : > { %14763 = vrcp.f32 %v1716_v14  ;;  %v1720_v44 = vadd.f32 1.0, %v14746_v19  ;;  %v14748_v28 = vpop.eup %14747  ;;  %v1604_v14 = vadd.f32 %v18252_v4, %v22387_v25 }
 0x5c1   : > { %14765 = vrcp.f32 %v1717_v20  ;;  %v1721_v34 = vadd.f32 1.0, %v14748_v28  ;;  %v22389_v20 = vld [vmem:[#allocation140_spill] sm:$0xff] }
 0x5c2   : > { %v18256_v55 = vpop.xlane.xlu1 %3152  ;;  %14767 = vrcp.f32 %v1718_v53  ;;  %v1605_v19 = vadd.f32 %v18252_v4, %v22389_v20 }
 0x5c3   : > { %v14750_v38 = vpop.eup %14749  ;;  %14769 = vrcp.f32 %v1719_v0  ;;  %v12851_v0 = vmul.f32 -1.442695, %v1603_v47 }
 0x5c4   : > { %v14752_v26 = vpop.eup %14751  ;;  %14771 = vpow2.f32 %v12845_v56  ;;  %v1722_v22 = vadd.f32 1.0, %v14750_v38  ;;  %v12852_v56 = vmul.f32 -1.442695, %v1604_v14  ;;  %v12853_v61 = vmul.f32 -1.442695, %v1605_v19 }
 0x5c5   : > { %v18302_v45 = vpop.eup %14753  ;;  %14773 = vrcp.f32 %v1720_v44  ;;  %v1723_v31 = vadd.f32 1.0, %v14752_v26  ;;  %v3147_v26 = vpop.xlane.xlu0 %3146 }
 0x5c6   : > { %22382 = vst [vmem:[#allocation175_spill] sm:$0xff] %v18302_v45  ;;  %v14756_v27 = vpop.eup %14755  ;;  %14775 = vpow2.f32 %v12846_v3 }
 0x5c7   : > { %v18308_v51 = vpop.eup %14757  ;;  %14777 = vpow2.f32 %v12847_v40  ;;  %v1724_v50 = vadd.f32 1.0, %v14756_v27 }
 0x5c8   : > { %22384 = vst [vmem:[#allocation188_spill] sm:$0xff] %v18308_v51  ;;  %v18312_v30 = vpop.eup %14759  ;;  %14779 = vpow2.f32 %v12848_v36 }
 0x5c9   : > { %22386 = vst [vmem:[#allocation191_spill] sm:$0xff] %v18312_v30  ;;  %v18316_v21 = vpop.eup %14761  ;;  %14781 = vrcp.f32 %v1721_v34  ;;  %v1606_v34 = vadd.f32 %v18252_v4, %v22395_v57 }
 0x5ca   : > { %v18266_v58 = vpop.xlane.xlu1 %3158  ;;  %22388 = vst [vmem:[#allocation165_spill] sm:$0xff] %v18316_v21  ;;  %v18320_v53 = vpop.eup %14763  ;;  %14783 = vrcp.f32 %v1722_v22 }
 0x5cb   : > { %22390 = vst [vmem:[#allocation209_spill] sm:$0xff] %v18320_v53  ;;  %v18322_v10 = vpop.eup %14765  ;;  %14785 = vrcp.f32 %v1723_v31  ;;  %v12854_v14 = vmul.f32 -1.442695, %v1606_v34 }
 0x5cc   : > { %22391 = vst [vmem:[#allocation179_spill] sm:$0xff] %v18322_v10  ;;  %v18326_v60 = vpop.eup %14767  ;;  %14787 = vpow2.f32 %v12849_v8 }
 0x5cd   : > { %22392 = vst [vmem:[#allocation193_spill] sm:$0xff] %v18326_v60  ;;  %v18328_v29 = vpop.eup %14769  ;;  %14789 = vrcp.f32 %v1724_v50  ;;  %v12855_v50 = vmul.f32 -1.442695, %v1607_v35 }
 0x5ce   : > { %v18276_v54 = vpop.xlane.xlu1 %3161  ;;  %22393 = vst [vmem:[#allocation206_spill] sm:$0xff] %v18328_v29  ;;  %v14772_v44 = vpop.eup %14771  ;;  %14791 = vpow2.f32 %v12850_v37 }
 0x5cf   : > { %v18330_v28 = vpop.eup %14773  ;;  %14793 = vpow2.f32 %v12851_v0  ;;  %v1725_v40 = vadd.f32 1.0, %v14772_v44  ;;  %v3156_v0 = vpop.xlane.xlu0 %3155 }
 0x5d0   : > { %22394 = vst [vmem:[#allocation178_spill] sm:$0xff] %v18330_v28  ;;  %v14776_v3 = vpop.eup %14775  ;;  %14795 = vpow2.f32 %v12852_v56 }
 0x5d1   : > { %v14778_v38 = vpop.eup %14777  ;;  %14797 = vpow2.f32 %v12853_v61  ;;  %v1726_v22 = vadd.f32 1.0, %v14776_v3 }
 0x5d2   : > { %v18284_v33 = vpop.xlane.xlu1 %3164  ;;  %v14780_v62 = vpop.eup %14779  ;;  %14799 = vrcp.f32 %v18248_v15  ;;  %v1727_v9 = vadd.f32 1.0, %v14778_v38 }
 0x5d3   : > { %v18337_v27 = vpop.eup %14781  ;;  %14801 = vrcp.f32 %v18250_v59  ;;  %v1728_v8 = vadd.f32 1.0, %v14780_v62 }
 0x5d4   : > { %22396 = vst [vmem:[#allocation183_spill] sm:$0xff] %v18337_v27  ;;  %v18342_v31 = vpop.eup %14783  ;;  %14803 = vrcp.f32 %v3147_v26 }
 0x5d5   : > { %22398 = vst [vmem:[#allocation194_spill] sm:$0xff] %v18342_v31  ;;  %v18344_v47 = vpop.eup %14785  ;;  %14805 = vrcp.f32 %v1725_v40 }
 0x5d6   : > { %v18288_v5 = vpop.xlane.xlu1 %3170  ;;  %22399 = vst [vmem:[#allocation167_spill] sm:$0xff] %v18344_v47  ;;  %v14788_v25 = vpop.eup %14787  ;;  %14807 = vrcp.f32 %v18256_v55 }
 0x5d7   : > { %v18347_v15 = vpop.eup %14789  ;;  %14809 = vrcp.f32 %v1726_v22  ;;  %v1729_v37 = vadd.f32 1.0, %v14788_v25 }
 0x5d8   : > { %22400 = vst [vmem:[#allocation182_spill] sm:$0xff] %v18347_v15  ;;  %v14792_v19 = vpop.eup %14791  ;;  %14811 = vrcp.f32 %v1727_v9 }
 0x5d9   : > { %v14794_v59 = vpop.eup %14793  ;;  %14813 = vrcp.f32 %v1728_v8  ;;  %v1730_v44 = vadd.f32 1.0, %v14792_v19  ;;  %v22402_v8 = vld [vmem:[#allocation149_spill] sm:$0xff] }
 0x5da   : > { %v18296_v63 = vpop.xlane.xlu1 %3173  ;;  %v14796_v56 = vpop.eup %14795  ;;  %14815 = vpow2.f32 %v12854_v14  ;;  %v1731_v38 = vadd.f32 1.0, %v14794_v59  ;;  %v1608_v25 = vadd.f32 %v18252_v4, %v22402_v8 }
 0x5db   : > { %v14798_v61 = vpop.eup %14797  ;;  %14817 = vpow2.f32 %v12855_v50  ;;  %v1732_v22 = vadd.f32 1.0, %v14796_v56  ;;  %v22404_v56 = vld [vmem:[#allocation152_spill] sm:$0xff] }
 0x5dc   : > { %v14800_v3 = vpop.eup %14799  ;;  %14819 = vrcp.f32 %v3156_v0 }
 0x5dd   : > { %v14802_v40 = vpop.eup %14801  ;;  %14821 = vrcp.f32 %v1729_v37  ;;  %v1733_v37 = vadd.f32 1.0, %v14798_v61  ;;  %v12856_v61 = vmul.f32 -1.442695, %v1608_v25 }
 0x5de   : > { %v18304_v46 = vpop.xlane.xlu1 %3179  ;;  %v14804_v34 = vpop.eup %14803  ;;  %14823 = vrcp.f32 %v18266_v58  ;;  %v1609_v58 = vadd.f32 %v18252_v4, %v22404_v56 }
 0x5df   : > { %v18354_v9 = vpop.eup %14805  ;;  %14825 = vrcp.f32 %v1730_v44 }
 0x5e0   : > { %22401 = vst [vmem:[#allocation195_spill] sm:$0xff] %v18354_v9  ;;  %v14808_v59 = vpop.eup %14807  ;;  %14827 = vrcp.f32 %v1731_v38 }
 0x5e1   : > { %14829 = vrcp.f32 %v1732_v22  ;;  %v12857_v22 = vmul.f32 -1.442695, %v1609_v58 }
 0x5e2   : > { %v18324_v18 = vpop.xlane.xlu1 %3185  ;;  %14831 = vrcp.f32 %v18276_v54 }
 0x5e3   : > { %14833 = vrcp.f32 %v1733_v37 }
 0x5e4   : > { %14835 = vrcp.f32 %v18284_v33 }
 0x5e5   : > { %14837 = vpow2.f32 %v12856_v61 }
 0x5e6   : > { %v18332_v36 = vpop.xlane.xlu1 %3191 }
 0x5ea   : > { %v18349_v20 = vpop.xlane.xlu1 %3194 }
 0x5ee   : > { %v18351_v26 = vpop.xlane.xlu1 %3197 }
 0x608   : > { %v3323_v55 = vpop.f32.mrb[80].mxu0 }
 0x609   : > { %v3990_v62 = vmul.f32 %v14800_v3, %v3323_v55  ;;  %v13505_v57 = vpop.f32.mrb[81].mxu0  ;;  %v18358_v55 = vpop.eup %14809 }
 0x60a   : > { %v3367_v13 = vpop.f32.mrb[112].mxu1  ;;  %v3326_v35 = vpop.f32.mrb[82].mxu0  ;;  %22403 = vst [vmem:[#allocation214_spill] sm:$0xff] %v18358_v55 }
 0x60b   : > { %v3992_v14 = vmul.f32 %v14802_v40, %v3367_v13  ;;  %v3991_v50 = vmul.f32 %v14804_v34, %v3326_v35  ;;  %v13511_v19 = vpop.f32.mrb[113].mxu1  ;;  %v13506_v0 = vpop.f32.mrb[83].mxu0  ;;  %v18363_v57 = vmul.f32 %v18302_v45, %v3990_v62  ;;  %v22412_v62 = vld [vmem:[#allocation155_spill] sm:$0xff] }
 0x60c   : > { %v3370_v3 = vpop.f32.mrb[114].mxu1  ;;  %v18368_v34 = vpop.eup %14811 }
 0x60d   : > { %22405 = vst [vmem:[#allocation200_spill] sm:$0xff] %v18363_v57  ;;  %v18366_v44 = vmul.f32 %v18308_v51, %v3991_v50  ;;  %v3993_v8 = vmul.f32 %v14808_v59, %v3370_v3  ;;  %v13512_v40 = vpop.f32.mrb[115].mxu1  ;;  %22407 = vst [vmem:[#allocation87_spill] sm:$0xff] %v18368_v34  ;;  %v18370_v38 = vpop.eup %14813  ;;  %v18375_v19 = vmul.f32 %v18312_v30, %v3992_v14 }
 0x60e   : > { %22408 = vst [vmem:[#allocation90_spill] sm:$0xff] %v18370_v38  ;;  %v3168_v13 = vpop.xlane.xlu0 %3167  ;;  %v18372_v35 = vpop.xlane.xlu1 %3200 }
 0x60f   : > { %22406 = vst [vmem:[#allocation216_spill] sm:$0xff] %v18366_v44  ;;  %22409 = vst [vmem:[#allocation91_spill] sm:$0xff] %v18375_v19  ;;  %v18380_v50 = vmul.f32 %v18316_v21, %v3993_v8  ;;  %v14816_v59 = vpop.eup %14815  ;;  %v1610_v8 = vadd.f32 %v18252_v4, %v22412_v62  ;;  %14839 = vrcp.f32 %v3168_v13  ;;  %v22414_v19 = vld [vmem:[#allocation157_spill] sm:$0xff] }
 0x610   : > { %v14818_v0 = vpop.eup %14817  ;;  %v1734_v40 = vadd.f32 1.0, %v14816_v59  ;;  %14841 = vpow2.f32 %v12857_v22  ;;  %v1611_v33 = vadd.f32 %v18252_v4, %v22414_v19 }
 0x611   : > { %22410 = vst [vmem:[#allocation93_spill] sm:$0xff] %v18380_v50  ;;  %v14820_v3 = vpop.eup %14819  ;;  %v3411_v14 = vpop.f32.mrb[84].mxu0  ;;  %v1735_v25 = vadd.f32 1.0, %v14818_v0  ;;  %14843 = vrcp.f32 %v18288_v5  ;;  %v12858_v62 = vmul.f32 -1.442695, %v1610_v8 }
 0x612   : > { %v18386_v56 = vpop.eup %14821  ;;  %v3177_v17 = vpop.xlane.xlu0 %3176  ;;  %v3994_v57 = vmul.f32 %v14820_v3, %v3411_v14  ;;  %14845 = vrcp.f32 %v1734_v40  ;;  %v12859_v19 = vmul.f32 -1.442695, %v1611_v33 }
 0x613   : > { %22411 = vst [vmem:[#allocation96_spill] sm:$0xff] %v18386_v56  ;;  %v13517_v54 = vpop.f32.mrb[85].mxu0  ;;  %v14824_v44 = vpop.eup %14823  ;;  %14847 = vrcp.f32 %v18296_v63 }
 0x614   : > { %v3414_v37 = vpop.f32.mrb[86].mxu0  ;;  %v18390_v58 = vpop.eup %14825  ;;  %v18400_v13 = vmul.f32 %v18320_v53, %v3994_v57  ;;  %14849 = vrcp.f32 %v1735_v25 }
 0x615   : > { %22413 = vst [vmem:[#allocation98_spill] sm:$0xff] %v18390_v58  ;;  %v18394_v50 = vpop.xlane.xlu1 %3203  ;;  %v3995_v59 = vmul.f32 %v14824_v44, %v3414_v37  ;;  %v13518_v61 = vpop.f32.mrb[87].mxu0  ;;  %14851 = vrcp.f32 %v3177_v17 }
 0x616   : > { %v18396_v39 = vpop.eup %14827  ;;  %22416 = vst [vmem:[#allocation102_spill] sm:$0xff] %v18400_v13  ;;  %v3183_v44 = vpop.xlane.xlu0 %3182  ;;  %14853 = vpow2.f32 %v12858_v62  ;;  %v22420_v13 = vld [vmem:[#allocation160_spill] sm:$0xff] }
 0x617   : > { %22415 = vst [vmem:[#allocation100_spill] sm:$0xff] %v18396_v39  ;;  %v18403_v3 = vmul.f32 %v18322_v10, %v3995_v59  ;;  %v18405_v0 = vpop.eup %14829  ;;  %14855 = vrcp.f32 %v18304_v46 }
 0x618   : > { %22418 = vst [vmem:[#allocation106_spill] sm:$0xff] %v18405_v0  ;;  %v14832_v14 = vpop.eup %14831  ;;  %14857 = vpow2.f32 %v12859_v19 }
 0x619   : > { %22417 = vst [vmem:[#allocation104_spill] sm:$0xff] %v18403_v3  ;;  %v3455_v5 = vpop.f32.mrb[116].mxu1  ;;  %v18410_v40 = vpop.eup %14833  ;;  %14859 = vrcp.f32 %v3183_v44  ;;  %v1612_v3 = vadd.f32 %v18252_v4, %v22420_v13 }
 0x61a   : > { %22419 = vst [vmem:[#allocation109_spill] sm:$0xff] %v18410_v40  ;;  %v18412_v57 = vpop.xlane.xlu1 %3206  ;;  %v3996_v8 = vmul.f32 %v14832_v14, %v3455_v5  ;;  %v13523_v54 = vpop.f32.mrb[117].mxu1  ;;  %14861 = vrcp.f32 %v18324_v18 }
 0x61b   : > { %v14836_v37 = vpop.eup %14835  ;;  %v3458_v63 = vpop.f32.mrb[118].mxu1  ;;  %v12860_v18 = vmul.f32 -1.442695, %v1612_v3 }
 0x61c   : > { %v14838_v25 = vpop.eup %14837  ;;  %v3997_v33 = vmul.f32 %v14836_v37, %v3458_v63  ;;  %v13524_v59 = vpop.f32.mrb[119].mxu1  ;;  %v18418_v43 = vmul.f32 %v18326_v60, %v3996_v8  ;;  %v22424_v63 = vld [vmem:[#allocation163_spill] sm:$0xff] }
 0x61d   : > { %v14840_v61 = vpop.eup %14839  ;;  %v3499_v22 = vpop.f32.mrb[88].mxu0  ;;  %v1736_v44 = vadd.f32 1.0, %v14838_v25  ;;  %v1613_v59 = vadd.f32 %v18252_v4, %v22424_v63 }
 0x61e   : > { %v14842_v17 = vpop.eup %14841  ;;  %v3189_v62 = vpop.xlane.xlu0 %3188  ;;  %22421 = vst [vmem:[#allocation112_spill] sm:$0xff] %v18418_v43  ;;  %v18421_v14 = vmul.f32 %v18328_v29, %v3997_v33  ;;  %v3998_v46 = vmul.f32 %v14840_v61, %v3499_v22 }
 0x61f   : > { %v13529_v5 = vpop.f32.mrb[89].mxu0  ;;  %v14844_v54 = vpop.eup %14843  ;;  %14863 = vrcp.f32 %v3189_v62  ;;  %v1737_v62 = vadd.f32 1.0, %v14842_v17 }
 0x620   : > { %22422 = vst [vmem:[#allocation115_spill] sm:$0xff] %v18421_v14  ;;  %v3502_v19 = vpop.f32.mrb[90].mxu0  ;;  %v18424_v37 = vpop.eup %14845  ;;  %v18435_v5 = vmul.f32 %v18330_v28, %v3998_v46  ;;  %14865 = vrcp.f32 %v18332_v36 }
 0x621   : > { %22423 = vst [vmem:[#allocation118_spill] sm:$0xff] %v18424_v37  ;;  %v18428_v13 = vpop.xlane.xlu1 %3209  ;;  %v3999_v11 = vmul.f32 %v14844_v54, %v3502_v19  ;;  %v13530_v8 = vpop.f32.mrb[91].mxu0  ;;  %14867 = vrcp.f32 %v1736_v44 }
 0x622   : > { %v14848_v1 = vpop.eup %14847  ;;  %v3543_v22 = vpop.f32.mrb[120].mxu1  ;;  %22426 = vst [vmem:[#allocation123_spill] sm:$0xff] %v18435_v5  ;;  %v12861_v8 = vmul.f32 -1.442695, %v1613_v59  ;;  %14869 = vrcp.f32 %v18349_v20  ;;  %v22430_v20 = vld [vmem:[#allocation166_spill] sm:$0xff] }
 0x623   : > { %v18432_v61 = vpop.eup %14849  ;;  %v18438_v25 = vmul.f32 %v18337_v27, %v3999_v11  ;;  %v4000_v63 = vmul.f32 %v14848_v1, %v3543_v22  ;;  %v13535_v2 = vpop.f32.mrb[121].mxu1  ;;  %14871 = vpow2.f32 %v12860_v18 }
 0x624   : > { %22425 = vst [vmem:[#allocation121_spill] sm:$0xff] %v18432_v61  ;;  %v14852_v52 = vpop.eup %14851  ;;  %v3546_v54 = vpop.f32.mrb[122].mxu1  ;;  %14873 = vrcp.f32 %v18351_v26 }
 0x625   : > { %22427 = vst [vmem:[#allocation126_spill] sm:$0xff] %v18438_v25  ;;  %v14854_v19 = vpop.eup %14853  ;;  %v4001_v33 = vmul.f32 %v14852_v52, %v3546_v54  ;;  %v13536_v3 = vpop.f32.mrb[123].mxu1  ;;  %v18447_v2 = vmul.f32 %v18342_v31, %v4000_v63  ;;  %14875 = vpow2.f32 %v12861_v8  ;;  %v1614_v54 = vadd.f32 %v18252_v4, %v22430_v20  ;;  %v22439_v25 = vld [vmem:[#allocation210_spill] sm:$0xff] }
 0x626   : > { %v14856_v43 = vpop.eup %14855  ;;  %v3587_v46 = vpop.f32.mrb[92].mxu0  ;;  %14877 = vrcp.f32 %v18372_v35 }
 0x627   : > { %v18444_v11 = vpop.eup %14857  ;;  %v3213_v1 = vpop.xlane.xlu1 %3212  ;;  %22428 = vst [vmem:[#allocation129_spill] sm:$0xff] %v18447_v2  ;;  %v18450_v36 = vmul.f32 %v18344_v47, %v4001_v33  ;;  %v4002_v44 = vmul.f32 %v14856_v43, %v3587_v46  ;;  %v22431_v43 = vld [vmem:[#allocation170_spill] sm:$0xff]  ;;  %14879 = vrcp.f32 %v18394_v50 }
 0x628   : > { %v13541_v59 = vpop.f32.mrb[93].mxu0  ;;  %v14860_v22 = vpop.eup %14859  ;;  %v1615_v46 = vadd.f32 %v18252_v4, %v22431_v43  ;;  %14881 = vrcp.f32 %v1737_v62 }
 0x629   : > { %22429 = vst [vmem:[#allocation132_spill] sm:$0xff] %v18450_v36  ;;  %v3590_v52 = vpop.f32.mrb[94].mxu0  ;;  %v14862_v5 = vpop.eup %14861  ;;  %v18461_v26 = vmul.f32 %v18347_v15, %v4002_v44  ;;  %14883 = vrcp.f32 %v18412_v57  ;;  %v22438_v36 = vld [vmem:[#allocation108_spill] sm:$0xff] }
 0x62a   : > { %v4003_v3 = vmul.f32 %v14860_v22, %v3590_v52  ;;  %v13542_v18 = vpop.f32.mrb[95].mxu0  ;;  %v3631_v33 = vpop.f32.mrb[124].mxu1  ;;  %14885 = vrcp.f32 %v18428_v13 }
 0x62b   : > { %v3216_v17 = vpop.xlane.xlu0 %3215  ;;  %22432 = vst [vmem:[#allocation135_spill] sm:$0xff] %v18461_v26  ;;  %v4004_v59 = vmul.f32 %v14862_v5, %v3631_v33  ;;  %v13547_v22 = vpop.f32.mrb[125].mxu1  ;;  %v12862_v18 = vmul.f32 -1.442695, %v1614_v54  ;;  %v12863_v5 = vmul.f32 -1.442695, %v1615_v46 }
 0x62c   : > { %v18464_v8 = vmul.f32 %v18354_v9, %v4003_v3  ;;  %v14864_v52 = vpop.eup %14863  ;;  %v3634_v20 = vpop.f32.mrb[126].mxu1  ;;  %v22443_v46 = vld [vmem:[#allocation116_spill] sm:$0xff] }
 0x62d   : > { %v3219_v35 = vpop.xlane.xlu1 %3218  ;;  %v4005_v4 = vmul.f32 %v14864_v52, %v3634_v20  ;;  %v13548_v43 = vpop.f32.mrb[127].mxu1  ;;  %v18473_v33 = vmul.f32 %v18358_v55, %v4004_v59  ;;  %14887 = vpow2.f32 %v12862_v18 }
 0x62e   : > { %22433 = vst [vmem:[#allocation138_spill] sm:$0xff] %v18464_v8  ;;  %v14866_v2 = vpop.eup %14865  ;;  %v3675_v44 = vpop.f32.mrb[96].mxu0  ;;  %v1738_v43 = vadd.f32 1.0, %v14854_v19  ;;  %v22437_v8 = vld [vmem:[#allocation207_spill] sm:$0xff]  ;;  %14889 = vrcp.f32 %v3213_v1 }
 0x62f   : > { %v18470_v3 = vpop.eup %14867  ;;  %22435 = vst [vmem:[#allocation143_spill] sm:$0xff] %v18473_v33  ;;  %v18476_v50 = vmul.f32 %v18368_v34, %v4005_v4  ;;  %v4006_v62 = vmul.f32 %v14866_v2, %v3675_v44  ;;  %v13553_v54 = vpop.f32.mrb[97].mxu0  ;;  %v4220_v4 = vrot.slane %v22438_v36, %v22437_v8  ;;  %v22440_v2 = vld [vmem:[#allocation113_spill] sm:$0xff]  ;;  %14891 = vpow2.f32 %v12863_v5  ;;  %v22444_v33 = vld [vmem:[#allocation120_spill] sm:$0xff]  ;;  %v22445_v1 = vld [vmem:[#allocation103_spill] sm:$0xff] }
 0x630   : > { %22434 = vst [vmem:[#allocation140_spill] sm:$0xff] %v18470_v3  ;;  %v14870_v22 = vpop.eup %14869  ;;  %v3678_v52 = vpop.f32.mrb[98].mxu0  ;;  %v4225_v44 = vrot.slane %v22440_v2, %v22439_v25  ;;  %14893 = vrcp.f32 %v3216_v17  ;;  %v22452_v2 = vld [vmem:[#allocation133_spill] sm:$0xff] }
 0x631   : > { %22436 = vst [vmem:[#allocation146_spill] sm:$0xff] %v18476_v50  ;;  %v14872_v20 = vpop.eup %14871  ;;  %v3222_v57 = vpop.xlane.xlu0 %3221  ;;  %v4007_v63 = vmul.f32 %v14870_v22, %v3678_v52  ;;  %v18486_v19 = vmul.f32 %v18370_v38, %v4006_v62  ;;  %v4229_v50 = vrot.slane %v22445_v1, %v22437_v8  ;;  %14895 = vrcp.f32 %v1738_v43 }
 0x632   : > { %v13554_v26 = vpop.f32.mrb[99].mxu0  ;;  %v14874_v59 = vpop.eup %14873  ;;  %v1739_v62 = vadd.f32 1.0, %v18444_v11  ;;  %v4216_v1 = vrot.slane %v22448_v42, %v22439_v25  ;;  %14897 = vrcp.f32 %v3219_v35  ;;  %v1740_v11 = vadd.f32 1.0, %v14872_v20  ;;  %v22453_v42 = vld [vmem:[#allocation137_spill] sm:$0xff]  ;;  %v22455_v35 = vld [vmem:[#allocation110_spill] sm:$0xff] }
 0x633   : > { %v3719_v54 = vpop.f32.mrb[128].mxu1  ;;  %v14876_v13 = vpop.eup %14875  ;;  %22441 = vst [vmem:[#allocation149_spill] sm:$0xff] %v18486_v19  ;;  %v18489_v26 = vmul.f32 %v18386_v56, %v4007_v63  ;;  %14899 = vrcp.f32 %v3222_v57  ;;  %v22454_v19 = vld [vmem:[#allocation107_spill] sm:$0xff]  ;;  %v4301_v56 = vrot.slane %v22455_v35, %v22437_v8  ;;  %v22459_v35 = vld [vmem:[#allocation114_spill] sm:$0xff] }
 0x634   : > { %v3225_v14 = vpop.xlane.xlu1 %3224  ;;  %v4008_v18 = vmul.f32 %v14874_v59, %v3719_v54  ;;  %v13559_v22 = vpop.f32.mrb[129].mxu1  ;;  %14901 = vrcp.f32 %v1739_v62  ;;  %v1741_v38 = vadd.f32 1.0, %v14876_v13 }
 0x635   : > { %22442 = vst [vmem:[#allocation152_spill] sm:$0xff] %v18489_v26  ;;  %v14878_v52 = vpop.eup %14877  ;;  %v3722_v5 = vpop.f32.mrb[130].mxu1  ;;  %v4230_v26 = vsel %vm2000_vm2, %v4229_v50, %v4225_v44  ;;  %14903 = vrcp.f32 %v3225_v14  ;;  %v4238_v14 = vrot.slane %v22459_v35, %v22437_v8  ;;  %v22463_v35 = vrot.slane %v22444_v33, %v22439_v25 }
 0x636   : > { %v4009_v59 = vmul.f32 %v14878_v52, %v3722_v5  ;;  %v13560_v54 = vpop.f32.mrb[131].mxu1  ;;  %v14880_v22 = vpop.eup %14879  ;;  %v18509_v63 = vmul.f32 %v18390_v58, %v4008_v18  ;;  %14905 = vrcp.f32 %v1740_v11 }
 0x637   : > { %v3763_v17 = vpop.f32.mrb[100].mxu0  ;;  %v18506_v43 = vpop.eup %14881 }
 0x638   : > { %22449 = vst [vmem:[#allocation155_spill] sm:$0xff] %v18506_v43  ;;  %v3228_v7 = vpop.xlane.xlu0 %3227  ;;  %22450 = vst [vmem:[#allocation157_spill] sm:$0xff] %v18509_v63  ;;  %v18512_v52 = vmul.f32 %v18396_v39, %v4009_v59  ;;  %v4010_v5 = vmul.f32 %v14880_v22, %v3763_v17  ;;  %v13565_v54 = vpop.f32.mrb[101].mxu0  ;;  %v4292_v39 = vrot.slane %v22454_v19, %v22437_v8 }
 0x639   : > { %v14884_v36 = vpop.eup %14883  ;;  %v3766_v20 = vpop.f32.mrb[102].mxu0  ;;  %v4221_v54 = vsel %vm2000_vm2, %v4220_v4, %v4216_v1  ;;  %v22458_v4 = vld [vmem:[#allocation142_spill] sm:$0xff]  ;;  %14907 = vrcp.f32 %v3228_v7  ;;  %v22461_v1 = vld [vmem:[#allocation147_spill] sm:$0xff] }
 0x63a   : > { %22451 = vst [vmem:[#allocation160_spill] sm:$0xff] %v18512_v52  ;;  %v3231_v18 = vpop.xlane.xlu1 %3230  ;;  %v4011_v58 = vmul.f32 %v14884_v36, %v3766_v20  ;;  %v13566_v22 = vpop.f32.mrb[103].mxu0  ;;  %v18527_v44 = vmul.f32 %v18405_v0, %v4010_v5  ;;  %v4357_v19 = vsel %vm2137_vm3, %v4230_v26, %v4221_v54  ;;  %v22460_v5 = vld [vmem:[#allocation119_spill] sm:$0xff]  ;;  %14909 = vrcp.f32 %v1741_v38 }
 0x63b   : > { %v14886_v17 = vpop.eup %14885  ;;  %v3807_v50 = vpop.f32.mrb[132].mxu1  ;;  %v4310_v59 = vrot.slane %v22460_v5, %v22437_v8  ;;  %v22462_v54 = vrot.slane %v22443_v46, %v22439_v25  ;;  %v4302_v38 = vsel %vm2000_vm2, %v4301_v56, %v22463_v35  ;;  %14911 = vrcp.f32 %v3231_v18 }
 0x63c   : > { %v14888_v57 = vpop.eup %14887  ;;  %22456 = vst [vmem:[#allocation163_spill] sm:$0xff] %v18527_v44  ;;  %v18530_v13 = vmul.f32 %v18410_v40, %v4011_v58  ;;  %v4012_v36 = vmul.f32 %v14886_v17, %v3807_v50  ;;  %v13571_v62 = vpop.f32.mrb[133].mxu1  ;;  %v22468_v56 = vrot.slane %v22446_v49, %v22439_v25 }
 0x63d   : > { %v14890_v20 = vpop.eup %14889  ;;  %v3810_v22 = vpop.f32.mrb[134].mxu1  ;;  %v4293_v7 = vsel %vm2000_vm2, %v4292_v39, %v22462_v54  ;;  %v22467_v54 = vld [vmem:[#allocation150_spill] sm:$0xff] }
 0x63e   : > { %22457 = vst [vmem:[#allocation166_spill] sm:$0xff] %v18530_v13  ;;  %v14892_v11 = vpop.eup %14891  ;;  %v3234_v58 = vpop.xlane.xlu0 %3233  ;;  %v4013_v50 = vmul.f32 %v14890_v20, %v3810_v22  ;;  %v1742_v20 = vadd.f32 1.0, %v14888_v57  ;;  %v4261_v33 = vrot.slane %v22467_v54, %v22439_v25  ;;  %v4239_v18 = vsel %vm2000_vm2, %v4238_v14, %v22468_v56  ;;  %v22471_v14 = vld [vmem:[#allocation154_spill] sm:$0xff] }
 0x63f   : > { %v13572_v62 = vpop.f32.mrb[135].mxu1  ;;  %v14894_v63 = vpop.eup %14893  ;;  %v1743_v35 = vadd.f32 1.0, %v14892_v11  ;;  %14913 = vrcp.f32 %v3234_v58  ;;  %v4364_v49 = vsel %vm2137_vm3, %v4302_v38, %v4293_v7  ;;  %v4333_v11 = vrot.slane %v22471_v14, %v22439_v25  ;;  %v22472_v58 = vld [vmem:[#allocation127_spill] sm:$0xff] }
 0x640   : > { %v3851_v5 = vpop.f32.mrb[104].mxu0  ;;  %v18551_v52 = vpop.eup %14895  ;;  %v18554_v62 = vmul.f32 %v18424_v37, %v4012_v36  ;;  %v18557_v17 = vmul.f32 %v18432_v61, %v4013_v50  ;;  %v22469_v36 = vrot.slane %v22447_v16, %v22439_v25  ;;  %v4319_v56 = vrot.slane %v22472_v58, %v22437_v8 }
 0x641   : > { %22464 = vst [vmem:[#allocation170_spill] sm:$0xff] %v18551_v52  ;;  %v3237_v22 = vpop.xlane.xlu1 %3236  ;;  %v4014_v46 = vmul.f32 %v14894_v63, %v3851_v5  ;;  %v13577_v26 = vpop.f32.mrb[105].mxu0  ;;  %v22470_v63 = vld [vmem:[#allocation124_spill] sm:$0xff]  ;;  %v4358_v38 = vsel %vm2139_vm4, %v4239_v18, %v4357_v19 }
 0x642   : > { %22465 = vst [vmem:[#allocation108_spill] sm:$0xff] %v18554_v62  ;;  %22466 = vst [vmem:[#allocation113_spill] sm:$0xff] %v18557_v17  ;;  %v14898_v39 = vpop.eup %14897  ;;  %v3854_v57 = vpop.f32.mrb[106].mxu0  ;;  %v4311_v50 = vsel %vm2000_vm2, %v4310_v59, %v22469_v36  ;;  %v4247_v26 = vrot.slane %v22470_v63, %v22437_v8  ;;  %14915 = vrcp.f32 %v3237_v22  ;;  %v22476_v63 = vld [vmem:[#allocation159_spill] sm:$0xff]  ;;  %v22488_v19 = vld [vmem:[#allocation168_spill] sm:$0xff] }
 0x643   : > { %v4015_v54 = vmul.f32 %v14898_v39, %v3854_v57  ;;  %v13578_v44 = vpop.f32.mrb[107].mxu0  ;;  %v14900_v13 = vpop.eup %14899  ;;  %14917 = vrcp.f32 %v1742_v20  ;;  %v18581_v36 = vmul.f32 %v18470_v3, %v4014_v46  ;;  %v4270_v14 = vrot.slane %v22476_v63, %v22439_v25  ;;  %v22490_v3 = vld [vmem:[#allocation158_spill] sm:$0xff] }
 0x644   : > { %v3895_v16 = vpop.f32.mrb[136].mxu1  ;;  %v18578_v59 = vpop.eup %14901  ;;  %v4365_v22 = vsel %vm2139_vm4, %v4311_v50, %v4364_v49  ;;  %14919 = vrcp.f32 %v1743_v35  ;;  %v22478_v20 = vrot.slane %v22452_v2, %v22439_v25  ;;  %v22480_v50 = vld [vmem:[#allocation164_spill] sm:$0xff]  ;;  %v22481_v49 = vrot.slane %v22453_v42, %v22439_v25 }
 0x645   : > { %22473 = vst [vmem:[#allocation116_spill] sm:$0xff] %v18578_v59  ;;  %22474 = vst [vmem:[#allocation120_spill] sm:$0xff] %v18581_v36  ;;  %v18584_v39 = vmul.f32 %v18506_v43, %v4015_v54  ;;  %v4016_v44 = vmul.f32 %v14900_v13, %v3895_v16  ;;  %v13583_v57 = vpop.f32.mrb[137].mxu1  ;;  %v14904_v7 = vpop.eup %14903  ;;  %v22479_v13 = vld [vmem:[#allocation131_spill] sm:$0xff]  ;;  %v4342_v35 = vrot.slane %v22480_v50, %v22439_v25  ;;  %v22482_v2 = vld [vmem:[#allocation136_spill] sm:$0xff] }
 0x646   : > { %v3898_v58 = vpop.f32.mrb[138].mxu1  ;;  %v18590_v5 = vpop.eup %14905  ;;  %v4248_v46 = vsel %vm2000_vm2, %v4247_v26, %v22478_v20  ;;  %v4256_v54 = vrot.slane %v22479_v13, %v22437_v8  ;;  %v4320_v63 = vsel %vm2000_vm2, %v4319_v56, %v22481_v49  ;;  %v4328_v26 = vrot.slane %v22482_v2, %v22437_v8  ;;  %v22483_v20 = vld [vmem:[#allocation141_spill] sm:$0xff]  ;;  %v22489_v36 = vld [vmem:[#allocation144_spill] sm:$0xff] }
 0x647   : > { %22475 = vst [vmem:[#allocation103_spill] sm:$0xff] %v18584_v39  ;;  %22477 = vst [vmem:[#allocation125_spill] sm:$0xff] %v18590_v5  ;;  %v4017_v18 = vmul.f32 %v14904_v7, %v3898_v58  ;;  %v13584_v16 = vpop.f32.mrb[139].mxu1  ;;  %v14908_v57 = vpop.eup %14907  ;;  %v4265_v13 = vrot.slane %v22483_v20, %v22437_v8  ;;  %v22485_v7 = vld [vmem:[#allocation148_spill] sm:$0xff]  ;;  %v4359_v2 = vsel %vm2141_vm5, %v4248_v46, %v4358_v38 }
 0x648   : > { %v3939_v62 = vpop.f32.mrb[108].mxu0  ;;  %v18610_v17 = vpop.eup %14909  ;;  %v4274_v58 = vrot.slane %v22485_v7, %v22437_v8  ;;  %v18615_v16 = vmul.f32 %v18551_v52, %v4016_v44  ;;  %v4279_v20 = vrot.slane %v22488_v19, %v22439_v25  ;;  %v4337_v39 = vrot.slane %v22489_v36, %v22437_v8 }
 0x649   : > { %22484 = vst [vmem:[#allocation130_spill] sm:$0xff] %v18610_v17  ;;  %v18618_v50 = vmul.f32 %v18578_v59, %v4017_v18  ;;  %v4018_v42 = vmul.f32 %v14908_v57, %v3939_v62  ;;  %v13589_v56 = vpop.f32.mrb[109].mxu0  ;;  %v14912_v49 = vpop.eup %14911  ;;  %v4283_v7 = vrot.slane %v22490_v3, %v22437_v8  ;;  %v22491_v44 = vrot.slane %v22458_v4, %v22439_v25  ;;  %v22492_v62 = vld [vmem:[#allocation153_spill] sm:$0xff] }
 0x64a   : > { %22486 = vst [vmem:[#allocation99_spill] sm:$0xff] %v18615_v16  ;;  %v3942_v43 = vpop.f32.mrb[110].mxu0  ;;  %v4346_v57 = vrot.slane %v22492_v62, %v22437_v8  ;;  %v14914_v56 = vpop.eup %14913  ;;  %v4366_v36 = vsel %vm2141_vm5, %v4320_v63, %v4365_v22  ;;  %v22493_v3 = vrot.slane %v22461_v1, %v22439_v25  ;;  %v4266_v4 = vsel %vm2000_vm2, %v4265_v13, %v4261_v33  ;;  %v22497_v1 = vld [vmem:[#allocation172_spill] sm:$0xff] }
 0x64b   : > { %22487 = vst [vmem:[#allocation133_spill] sm:$0xff] %v18618_v50  ;;  %v4257_v18 = vsel %vm2000_vm2, %v4256_v54, %v22491_v44  ;;  %v4019_v46 = vmul.f32 %v14912_v49, %v3942_v43  ;;  %v13590_v19 = vpop.f32.mrb[111].mxu0  ;;  %v22494_v54 = vld [vmem:[#allocation161_spill] sm:$0xff]  ;;  %v3983_v59 = vpop.f32.mrb[140].mxu1  ;;  %v4275_v62 = vsel %vm2000_vm2, %v4274_v58, %v4270_v14  ;;  %v18645_v38 = vmul.f32 %v18590_v5, %v4018_v42 }
 0x64c   : > { %v4329_v52 = vsel %vm2000_vm2, %v4328_v26, %v22493_v3  ;;  %v4355_v44 = vrot.slane %v22494_v54, %v22437_v8  ;;  %v4020_v22 = vmul.f32 %v14914_v56, %v3983_v59  ;;  %v13595_v63 = vpop.f32.mrb[141].mxu1  ;;  %v14916_v49 = vpop.eup %14915  ;;  %v4351_v26 = vrot.slane %v22497_v1, %v22439_v25 }
 0x64d   : > { %22495 = vst [vmem:[#allocation137_spill] sm:$0xff] %v18645_v38  ;;  %v18648_v43 = vmul.f32 %v18610_v17, %v4019_v46  ;;  %v4360_v33 = vsel %vm2143_vm6, %v4257_v18, %v4359_v2  ;;  %v4338_v13 = vsel %vm2000_vm2, %v4337_v39, %v4333_v11  ;;  %v4284_v19 = vsel %vm2000_vm2, %v4283_v7, %v4279_v20  ;;  %v3986_v3 = vpop.f32.mrb[142].mxu1  ;;  %v18655_v14 = vpop.eup %14917 }
 0x64e   : > { %22498 = vst [vmem:[#allocation110_spill] sm:$0xff] %v18655_v14  ;;  %v4361_v58 = vsel %vm2145_vm7, %v4266_v4, %v4360_v33  ;;  %v4347_v42 = vsel %vm2000_vm2, %v4346_v57, %v4342_v35  ;;  %v4021_v46 = vmul.f32 %v14916_v49, %v3986_v3  ;;  %v13596_v56 = vpop.f32.mrb[143].mxu1  ;;  %v18661_v54 = vpop.eup %14919  ;;  %v4367_v2 = vsel %vm2143_vm6, %v4329_v52, %v4366_v36 }
 0x64f   : > { %22496 = vst [vmem:[#allocation107_spill] sm:$0xff] %v18648_v43  ;;  %22499 = vst [vmem:[#allocation142_spill] sm:$0xff] %v18661_v54  ;;  %v4362_v11 = vsel %vm2147_vm8, %v4275_v62, %v4361_v58  ;;  %v4356_v39 = vsel %vm2000_vm2, %v4355_v44, %v4351_v26  ;;  %v4368_v20 = vsel %vm2145_vm7, %v4338_v13, %v4367_v2  ;;  %v4413_v57 = vpop.f32.mrb[112].mxu0 }
 0x650   : > { %v18668_v7 = vsel %vm2149_vm9, %v4284_v19, %v4362_v11  ;;  %v18671_v35 = vmul.f32 %v18655_v14, %v4020_v22  ;;  %v18674_v18 = vmul.f32 %v18661_v54, %v4021_v46  ;;  %v4369_v4 = vsel %vm2147_vm8, %v4347_v42, %v4368_v20  ;;  %v13601_v36 = vpop.f32.mrb[113].mxu0 }
 0x651   : > { %v4414_v52 = vadd.f32 %v4413_v57, %v18668_v7  ;;  %v18679_v62 = vsel %vm2149_vm9, %v4356_v39, %v4369_v4  ;;  %v4416_v63 = vpop.f32.mrb[114].mxu0 }
 0x652   : > { %22500 = vst [vmem:[#allocation114_spill] sm:$0xff] %v18671_v35  ;;  %22501 = vst [vmem:[#allocation119_spill] sm:$0xff] %v18674_v18  ;;  %v4417_v1 = vadd.f32 %v4416_v63, %v18679_v62  ;;  %v13602_v26 = vpop.f32.mrb[115].mxu0  ;;  %v4466_v33 = vpop.f32.mrb[144].mxu1 }
 0x653   : > { %v18685_v22 = vsel %vm518_vm10, -1e-09, %v4414_v52  ;;  %v4467_v58 = vadd.f32 %v4466_v33, %v18668_v7  ;;  %v13607_v42 = vpop.f32.mrb[145].mxu1 }
 0x654   : > { %v5247_v13 = vsel %vm2949_vm11, %v18685_v22, -inf  ;;  %v18692_v3 = vsel %vm519_vm12, -1e-09, %v4417_v1  ;;  %v4469_v46 = vpop.f32.mrb[146].mxu1 }
 0x655   : > { %5248 = vmax.xlane.f32.xlu0 %v5247_v13  ;;  %v5250_v56 = vsel %vm2949_vm11, %v18692_v3, -inf  ;;  %v18699_v2 = vsel %vm518_vm10, -1e-09, %v4467_v58  ;;  %v4470_v11 = vadd.f32 %v4469_v46, %v18679_v62  ;;  %v13608_v39 = vpop.f32.mrb[147].mxu1 }
 0x656   : > { %5251 = vmax.xlane.f32.xlu1 %v5250_v56  ;;  %v4519_v20 = vpop.f32.mrb[116].mxu0  ;;  %v5253_v57 = vsel %vm2949_vm11, %v18699_v2, -inf }
 0x657   : > { %v18706_v4 = vsel %vm519_vm12, -1e-09, %v4470_v11  ;;  %v4520_v52 = vadd.f32 %v4519_v20, %v18668_v7  ;;  %v13613_v36 = vpop.f32.mrb[117].mxu0 }
 0x658   : > { %v4522_v63 = vpop.f32.mrb[118].mxu0  ;;  %v5256_v1 = vsel %vm2949_vm11, %v18706_v4, -inf }
 0x659   : > { %5254 = vmax.xlane.f32.xlu0 %v5253_v57  ;;  %v18713_v26 = vsel %vm518_vm10, -1e-09, %v4520_v52  ;;  %v4523_v33 = vadd.f32 %v4522_v63, %v18679_v62  ;;  %v13614_v13 = vpop.f32.mrb[119].mxu0 }
 0x65a   : > { %5257 = vmax.xlane.f32.xlu1 %v5256_v1  ;;  %v4572_v58 = vpop.f32.mrb[148].mxu1  ;;  %v5259_v42 = vsel %vm2949_vm11, %v18713_v26, -inf }
 0x65b   : > { %v18720_v46 = vsel %vm519_vm12, -1e-09, %v4523_v33  ;;  %v4573_v56 = vadd.f32 %v4572_v58, %v18668_v7  ;;  %v13619_v11 = vpop.f32.mrb[149].mxu1 }
 0x65c   : > { %v4575_v39 = vpop.f32.mrb[150].mxu1  ;;  %v5262_v20 = vsel %vm2949_vm11, %v18720_v46, -inf }
 0x65d   : > { %5260 = vmax.xlane.f32.xlu0 %v5259_v42  ;;  %v18727_v57 = vsel %vm518_vm10, -1e-09, %v4573_v56  ;;  %v4576_v52 = vadd.f32 %v4575_v39, %v18679_v62  ;;  %v13620_v36 = vpop.f32.mrb[151].mxu1 }
 0x65e   : > { %5263 = vmax.xlane.f32.xlu1 %v5262_v20  ;;  %v4625_v63 = vpop.f32.mrb[120].mxu0  ;;  %v5265_v1 = vsel %vm2949_vm11, %v18727_v57, -inf }
 0x65f   : > { %v18734_v33 = vsel %vm519_vm12, -1e-09, %v4576_v52  ;;  %v4626_v13 = vadd.f32 %v4625_v63, %v18668_v7  ;;  %v13625_v58 = vpop.f32.mrb[121].mxu0 }
 0x660   : > { %v4628_v42 = vpop.f32.mrb[122].mxu0  ;;  %v5268_v56 = vsel %vm2949_vm11, %v18734_v33, -inf }
 0x661   : > { %5266 = vmax.xlane.f32.xlu0 %v5265_v1  ;;  %v18741_v11 = vsel %vm518_vm10, -1e-09, %v4626_v13  ;;  %v4629_v39 = vadd.f32 %v4628_v42, %v18679_v62  ;;  %v13626_v20 = vpop.f32.mrb[123].mxu0 }
 0x662   : > { %5269 = vmax.xlane.f32.xlu1 %v5268_v56  ;;  %v4678_v36 = vpop.f32.mrb[152].mxu1  ;;  %v5271_v52 = vsel %vm2949_vm11, %v18741_v11, -inf }
 0x663   : > { %v18748_v63 = vsel %vm519_vm12, -1e-09, %v4629_v39  ;;  %v4679_v1 = vadd.f32 %v4678_v36, %v18668_v7  ;;  %v13631_v58 = vpop.f32.mrb[153].mxu1 }
 0x664   : > { %v4681_v44 = vpop.f32.mrb[154].mxu1  ;;  %v5274_v13 = vsel %vm2949_vm11, %v18748_v63, -inf }
 0x665   : > { %5272 = vmax.xlane.f32.xlu0 %v5271_v52  ;;  %v18755_v42 = vsel %vm518_vm10, -1e-09, %v4679_v1  ;;  %v4682_v56 = vadd.f32 %v4681_v44, %v18679_v62  ;;  %v13632_v20 = vpop.f32.mrb[155].mxu1 }
 0x666   : > { %5275 = vmax.xlane.f32.xlu1 %v5274_v13  ;;  %v4731_v59 = vpop.f32.mrb[124].mxu0  ;;  %v5277_v39 = vsel %vm2949_vm11, %v18755_v42, -inf }
 0x667   : > { %v18762_v36 = vsel %vm519_vm12, -1e-09, %v4682_v56  ;;  %v4732_v52 = vadd.f32 %v4731_v59, %v18668_v7  ;;  %v13637_v58 = vpop.f32.mrb[125].mxu0 }
 0x668   : > { %v4734_v35 = vpop.f32.mrb[126].mxu0  ;;  %v5280_v1 = vsel %vm2949_vm11, %v18762_v36, -inf }
 0x669   : > { %5278 = vmax.xlane.f32.xlu0 %v5277_v39  ;;  %v18769_v44 = vsel %vm518_vm10, -1e-09, %v4732_v52  ;;  %v4735_v13 = vadd.f32 %v4734_v35, %v18679_v62  ;;  %v13638_v20 = vpop.f32.mrb[127].mxu0 }
 0x66a   : > { %5281 = vmax.xlane.f32.xlu1 %v5280_v1  ;;  %v4784_v18 = vpop.f32.mrb[156].mxu1  ;;  %v5283_v56 = vsel %vm2949_vm11, %v18769_v44, -inf }
 0x66b   : > { %v18776_v59 = vsel %vm519_vm12, -1e-09, %v4735_v13  ;;  %v4785_v39 = vadd.f32 %v4784_v18, %v18668_v7  ;;  %v13643_v58 = vpop.f32.mrb[157].mxu1 }
 0x66c   : > { %v4787_v38 = vpop.f32.mrb[158].mxu1  ;;  %v5286_v52 = vsel %vm2949_vm11, %v18776_v59, -inf }
 0x66d   : > { %5284 = vmax.xlane.f32.xlu0 %v5283_v56  ;;  %v18783_v35 = vsel %vm518_vm10, -1e-09, %v4785_v39  ;;  %v13644_v1 = vpop.f32.mrb[159].mxu1  ;;  %v4788_v13 = vadd.f32 %v4787_v38, %v18679_v62 }
 0x66e   : > { %5287 = vmax.xlane.f32.xlu1 %v5286_v52  ;;  %v4837_v20 = vpop.f32.mrb[128].mxu0  ;;  %v5289_v43 = vsel %vm2949_vm11, %v18783_v35, -inf }
 0x66f   : > { %v4838_v18 = vadd.f32 %v4837_v20, %v18668_v7  ;;  %v13649_v58 = vpop.f32.mrb[129].mxu0  ;;  %v18798_v5 = vsel %vm519_vm12, -1e-09, %v4788_v13 }
 0x670   : > { %v4840_v56 = vpop.f32.mrb[130].mxu0  ;;  %v5292_v17 = vsel %vm2949_vm11, %v18798_v5, -inf }
 0x671   : > { %5290 = vmax.xlane.f32.xlu0 %v5289_v43  ;;  %v18791_v16 = vsel %vm518_vm10, -1e-09, %v4838_v18  ;;  %v4841_v39 = vadd.f32 %v4840_v56, %v18679_v62  ;;  %v13650_v50 = vpop.f32.mrb[131].mxu0 }
 0x672   : > { %v4890_v52 = vpop.f32.mrb[160].mxu1  ;;  %v5295_v1 = vsel %vm2949_vm11, %v18791_v16, -inf }
 0x673   : > { %v18802_v38 = vsel %vm519_vm12, -1e-09, %v4841_v39  ;;  %v4891_v43 = vadd.f32 %v4890_v52, %v18668_v7  ;;  %5296 = vmax.xlane.f32.xlu1 %v5295_v1  ;;  %v13655_v20 = vpop.f32.mrb[161].mxu1 }
 0x674   : > { %v4893_v18 = vpop.f32.mrb[162].mxu1  ;;  %v5298_v50 = vsel %vm2949_vm11, %v18802_v38, -inf }
 0x675   : > { %v18809_v58 = vsel %vm518_vm10, -1e-09, %v4891_v43  ;;  %v13656_v56 = vpop.f32.mrb[163].mxu1  ;;  %5299 = vmax.xlane.f32.xlu0 %v5298_v50  ;;  %v4894_v39 = vadd.f32 %v4893_v18, %v18679_v62 }
 0x676   : > { %v4943_v13 = vpop.f32.mrb[132].mxu0  ;;  %v5301_v14 = vsel %vm2949_vm11, %v18809_v58, -inf }
 0x677   : > { %v4944_v52 = vadd.f32 %v4943_v13, %v18668_v7  ;;  %v13661_v1 = vpop.f32.mrb[133].mxu0  ;;  %5293 = vmax.xlane.f32.xlu1 %v5292_v17  ;;  %v18826_v13 = vsel %vm519_vm12, -1e-09, %v4894_v39 }
 0x678   : > { %v4946_v20 = vpop.f32.mrb[134].mxu0  ;;  %v5304_v61 = vsel %vm2949_vm11, %v18826_v13, -inf }
 0x679   : > { %v18819_v43 = vsel %vm518_vm10, -1e-09, %v4944_v52  ;;  %v4947_v50 = vadd.f32 %v4946_v20, %v18679_v62  ;;  %v13662_v56 = vpop.f32.mrb[135].mxu0  ;;  %5302 = vmax.xlane.f32.xlu0 %v5301_v14 }
 0x67a   : > { %v4996_v54 = vpop.f32.mrb[164].mxu1  ;;  %v5307_v18 = vsel %vm2949_vm11, %v18819_v43, -inf }
 0x67b   : > { %v18830_v17 = vsel %vm519_vm12, -1e-09, %v4947_v50  ;;  %v4997_v1 = vadd.f32 %v4996_v54, %v18668_v7  ;;  %5308 = vmax.xlane.f32.xlu1 %v5307_v18  ;;  %v13667_v52 = vpop.f32.mrb[165].mxu1 }
 0x67c   : > { %v4999_v37 = vpop.f32.mrb[166].mxu1  ;;  %v5310_v14 = vsel %vm2949_vm11, %v18830_v17, -inf }
 0x67d   : > { %v18837_v20 = vsel %vm518_vm10, -1e-09, %v4997_v1  ;;  %v13668_v56 = vpop.f32.mrb[167].mxu1  ;;  %5311 = vmax.xlane.f32.xlu0 %v5310_v14  ;;  %v5000_v50 = vadd.f32 %v4999_v37, %v18679_v62 }
 0x67e   : > { %v5049_v39 = vpop.f32.mrb[136].mxu0  ;;  %v5313_v0 = vsel %vm2949_vm11, %v18837_v20, -inf }
 0x67f   : > { %v5050_v54 = vadd.f32 %v5049_v39, %v18668_v7  ;;  %v13673_v18 = vpop.f32.mrb[137].mxu0  ;;  %5305 = vmax.xlane.f32.xlu1 %v5304_v61  ;;  %v18854_v39 = vsel %vm519_vm12, -1e-09, %v5000_v50 }
 0x680   : > { %v5052_v52 = vpop.f32.mrb[138].mxu0  ;;  %v5316_v34 = vsel %vm2949_vm11, %v18854_v39, -inf }
 0x681   : > { %v18847_v1 = vsel %vm518_vm10, -1e-09, %v5050_v54  ;;  %v5053_v14 = vadd.f32 %v5052_v52, %v18679_v62  ;;  %v13674_v56 = vpop.f32.mrb[139].mxu0  ;;  %5314 = vmax.xlane.f32.xlu0 %v5313_v0 }
 0x682   : > { %v5102_v40 = vpop.f32.mrb[168].mxu1  ;;  %v5319_v37 = vsel %vm2949_vm11, %v18847_v1, -inf }
 0x683   : > { %v18858_v61 = vsel %vm519_vm12, -1e-09, %v5053_v14  ;;  %v5103_v18 = vadd.f32 %v5102_v40, %v18668_v7  ;;  %5320 = vmax.xlane.f32.xlu1 %v5319_v37  ;;  %v13679_v54 = vpop.f32.mrb[169].mxu1 }
 0x684   : > { %v5105_v55 = vpop.f32.mrb[170].mxu1  ;;  %v5322_v0 = vsel %vm2949_vm11, %v18858_v61, -inf }
 0x685   : > { %v18865_v52 = vsel %vm518_vm10, -1e-09, %v5103_v18  ;;  %v13680_v56 = vpop.f32.mrb[171].mxu1  ;;  %5323 = vmax.xlane.f32.xlu0 %v5322_v0  ;;  %v5106_v14 = vadd.f32 %v5105_v55, %v18679_v62 }
 0x686   : > { %v5155_v50 = vpop.f32.mrb[140].mxu0  ;;  %v5325_v15 = vsel %vm2949_vm11, %v18865_v52, -inf }
 0x687   : > { %v5156_v40 = vadd.f32 %v5155_v50, %v18668_v7  ;;  %v13685_v37 = vpop.f32.mrb[141].mxu0  ;;  %5317 = vmax.xlane.f32.xlu1 %v5316_v34  ;;  %v18882_v50 = vsel %vm519_vm12, -1e-09, %v5106_v14 }
 0x688   : > { %v5158_v54 = vpop.f32.mrb[142].mxu0 }
 0x689   : > { %v18875_v18 = vsel %vm518_vm10, -1e-09, %v5156_v40  ;;  %v5159_v0 = vadd.f32 %v5158_v54, %v18679_v62  ;;  %v13686_v56 = vpop.f32.mrb[143].mxu0  ;;  %5326 = vmax.xlane.f32.xlu0 %v5325_v15 }
 0x68a   : > { %v5208_v9 = vpop.f32.mrb[172].mxu1  ;;  %v5331_v55 = vsel %vm2949_vm11, %v18875_v18, -inf }
 0x68b   : > { %v18886_v34 = vsel %vm519_vm12, -1e-09, %v5159_v0  ;;  %v5209_v37 = vadd.f32 %v5208_v9, %v18668_v7  ;;  %5332 = vmax.xlane.f32.xlu1 %v5331_v55  ;;  %v13691_v40 = vpop.f32.mrb[173].mxu1  ;;  %v5328_v0 = vsel %vm2949_vm11, %v18882_v50, -inf }
 0x68c   : > { %v5211_v31 = vpop.f32.mrb[174].mxu1  ;;  %v5334_v15 = vsel %vm2949_vm11, %v18886_v34, -inf }
 0x68d   : > { %v18893_v54 = vsel %vm518_vm10, -1e-09, %v5209_v37  ;;  %v5212_v56 = vadd.f32 %v5211_v31, %v18679_v62  ;;  %v13692_v14 = vpop.f32.mrb[175].mxu1  ;;  %5335 = vmax.xlane.f32.xlu0 %v5334_v15  ;;  %v18906_v37 = vpop.permute.xlu0 %8530 }
 0x68e   : > { %v5337_v7 = vsel %vm2949_vm11, %v18893_v54, -inf  ;;  %22504 = vst [vmem:[#allocation147_spill] sm:$0xff] %v18906_v37 }
 0x68f   : > { %v18900_v9 = vsel %vm519_vm12, -1e-09, %v5212_v56  ;;  %5329 = vmax.xlane.f32.xlu1 %v5328_v0 }
 0x690   : > { %v5340_v55 = vsel %vm2949_vm11, %v18900_v9, -inf }
 0x691   : > { %5338 = vmax.xlane.f32.xlu0 %v5337_v7 }
 0x693   : > { %5341 = vmax.xlane.f32.xlu1 %v5340_v55 }
 0x6e2   : > { %v5249_v31 = vpop.xlane.xlu0 %5248 }
 0x6e3   : > { %v5343_v62 = vsub.f32 %v18685_v22, %v5249_v31  ;;  %v5252_v40 = vpop.xlane.xlu1 %5251 }
 0x6e4   : > { %v5344_v14 = vsub.f32 %v18692_v3, %v5252_v40 }
 0x6e5   : > { %v5375_v15 = vmul.f32 1.442695, %v5343_v62 }
 0x6e6   : > { %v5255_v56 = vpop.xlane.xlu0 %5254  ;;  %v5377_v0 = vmul.f32 1.442695, %v5344_v14 }
 0x6e7   : > { %14921 = vpow2.f32 %v5375_v15  ;;  %v5345_v47 = vsub.f32 %v18699_v2, %v5255_v56  ;;  %v5258_v28 = vpop.xlane.xlu1 %5257 }
 0x6e8   : > { %14923 = vpow2.f32 %v5377_v0  ;;  %v5346_v27 = vsub.f32 %v18706_v4, %v5258_v28 }
 0x6e9   : > { %v5379_v7 = vmul.f32 1.442695, %v5345_v47 }
 0x6ea   : > { %v5261_v55 = vpop.xlane.xlu0 %5260  ;;  %v5381_v37 = vmul.f32 1.442695, %v5346_v27 }
 0x6eb   : > { %14925 = vpow2.f32 %v5379_v7  ;;  %v5347_v60 = vsub.f32 %v18713_v26, %v5261_v55  ;;  %v5264_v22 = vpop.xlane.xlu1 %5263 }
 0x6ec   : > { %14927 = vpow2.f32 %v5381_v37  ;;  %v5348_v3 = vsub.f32 %v18720_v46, %v5264_v22 }
 0x6ed   : > { %v5383_v31 = vmul.f32 1.442695, %v5347_v60 }
 0x6ee   : > { %v5267_v62 = vpop.xlane.xlu0 %5266  ;;  %v5385_v40 = vmul.f32 1.442695, %v5348_v3 }
 0x6ef   : > { %14929 = vpow2.f32 %v5383_v31  ;;  %v5349_v2 = vsub.f32 %v18727_v57, %v5267_v62  ;;  %v5270_v15 = vpop.xlane.xlu1 %5269 }
 0x6f0   : > { %14931 = vpow2.f32 %v5385_v40  ;;  %v5350_v28 = vsub.f32 %v18734_v33, %v5270_v15 }
 0x6f1   : > { %v14922_v14 = vpop.eup %14921  ;;  %v5387_v47 = vmul.f32 1.442695, %v5349_v2 }
 0x6f2   : > { %v5273_v4 = vpop.xlane.xlu0 %5272  ;;  %v5439_v27 = vsel %vm2949_vm11, %v14922_v14, 0.0  ;;  %v14924_v26 = vpop.eup %14923  ;;  %v5389_v37 = vmul.f32 1.442695, %v5350_v28 }
 0x6f3   : > { %14933 = vpow2.f32 %v5387_v47  ;;  %v5351_v60 = vsub.f32 %v18741_v11, %v5273_v4  ;;  %5440 = vadd.xlane.f32.xlu0 %v5439_v27  ;;  %v5276_v46 = vpop.xlane.xlu1 %5275  ;;  %v5442_v56 = vsel %vm2949_vm11, %v14924_v26, 0.0  ;;  %v5567_v0 = vpack.c.bf16 %v14924_v26, %v14922_v14  ;;  %v22505_v11 = vld [vmem:[#allocation95_spill] sm:$0xff] }
 0x6f4   : > { %14935 = vpow2.f32 %v5389_v37  ;;  %v5352_v55 = vsub.f32 %v18748_v63, %v5276_v46  ;;  %5443 = vadd.xlane.f32.xlu1 %v5442_v56  ;;  %v22506_v26 = vld [vmem:[#allocation219_spill] sm:$0xff] }
 0x6f5   : > { %v14926_v57 = vpop.eup %14925  ;;  %v5391_v7 = vmul.f32 1.442695, %v5351_v60  ;;  %13696 = vmatmul.mubr.msk.bf16.vlgmr.msra.gmra.mrb[144].mxu0 %vm2949_vm11, %v5567_v0 }
 0x6f6   : > { %v5279_v33 = vpop.xlane.xlu0 %5278  ;;  %v5445_v22 = vsel %vm2949_vm11, %v14926_v57, 0.0  ;;  %v14928_v31 = vpop.eup %14927  ;;  %v5393_v3 = vmul.f32 1.442695, %v5352_v55  ;;  %13706 = vmatpush3.bf16.msra.mxu0 %v22505_v11  ;;  %13707 = vmatprep.mubr.msk.bf16.mxu0 %vm15602_vm0, %v22333_v48 }
 0x6f7   : > { %14937 = vpow2.f32 %v5391_v7  ;;  %v5353_v62 = vsub.f32 %v18755_v42, %v5279_v33  ;;  %5446 = vadd.xlane.f32.xlu0 %v5445_v22  ;;  %v5282_v40 = vpop.xlane.xlu1 %5281  ;;  %v5568_v2 = vpack.c.bf16 %v14928_v31, %v14926_v57  ;;  %13717 = vmatprep.subr.bf16.mxu0 %v22333_v48  ;;  %v5448_v28 = vsel %vm2949_vm11, %v14928_v31, 0.0  ;;  %v22507_v22 = vld [vmem:[#allocation223_spill] sm:$0xff] }
 0x6f8   : > { %14939 = vpow2.f32 %v5393_v3  ;;  %v5354_v14 = vsub.f32 %v18762_v36, %v5282_v40 }
 0x6f9   : > { %v14930_v63 = vpop.eup %14929  ;;  %v5395_v15 = vmul.f32 1.442695, %v5353_v62  ;;  %13702 = vmatmul.mubr.msk.bf16.vlgmr.msra.gmra.mrb[176].mxu1 %vm2949_vm11, %v5568_v2 }
 0x6fa   : > { %v5285_v47 = vpop.xlane.xlu0 %5284  ;;  %v5451_v42 = vsel %vm2949_vm11, %v14930_v63, 0.0  ;;  %v14932_v4 = vpop.eup %14931  ;;  %v5397_v27 = vmul.f32 1.442695, %v5354_v14  ;;  %13712 = vmatpush3.bf16.msra.mxu1 %v22506_v26  ;;  %13713 = vmatprep.mubr.msk.bf16.mxu1 %vm15602_vm0, %v22333_v48 }
 0x6fb   : > { %14941 = vpow2.f32 %v5395_v15  ;;  %v5355_v37 = vsub.f32 %v18769_v44, %v5285_v47  ;;  %5449 = vadd.xlane.f32.xlu0 %v5448_v28  ;;  %5452 = vadd.xlane.f32.xlu1 %v5451_v42  ;;  %v5288_v60 = vpop.xlane.xlu1 %5287  ;;  %v5569_v46 = vpack.c.bf16 %v14932_v4, %v14930_v63  ;;  %v5454_v7 = vsel %vm2949_vm11, %v14932_v4, 0.0  ;;  %v22508_v15 = vld [vmem:[#allocation225_spill] sm:$0xff] }
 0x6fc   : > { %14943 = vpow2.f32 %v5397_v27  ;;  %v5356_v0 = vsub.f32 %v18776_v59, %v5288_v60  ;;  %13723 = vmatprep.subr.bf16.mxu1 %v22333_v48 }
 0x6fd   : > { %v14934_v36 = vpop.eup %14933  ;;  %v5399_v56 = vmul.f32 1.442695, %v5355_v37  ;;  %13708 = vmatmul.mubr.msk.bf16.vlgmr.msra.gmra.mrb[148].mxu0 %vm2949_vm11, %v5569_v46 }
 0x6fe   : > { %v5291_v57 = vpop.xlane.xlu0 %5290  ;;  %v5457_v44 = vsel %vm2949_vm11, %v14934_v36, 0.0  ;;  %v14936_v55 = vpop.eup %14935  ;;  %v5401_v33 = vmul.f32 1.442695, %v5356_v0  ;;  %13718 = vmatpush3.bf16.msra.mxu0 %v22507_v22  ;;  %13719 = vmatprep.mubr.msk.bf16.mxu0 %vm15602_vm0, %v22333_v48 }
 0x6ff   : > { %14945 = vpow2.f32 %v5399_v56  ;;  %v5357_v31 = vsub.f32 %v18783_v35, %v5291_v57  ;;  %5455 = vadd.xlane.f32.xlu0 %v5454_v7  ;;  %5458 = vadd.xlane.f32.xlu1 %v5457_v44  ;;  %v5570_v3 = vpack.c.bf16 %v14936_v55, %v14934_v36  ;;  %v5460_v40 = vsel %vm2949_vm11, %v14936_v55, 0.0  ;;  %v22509_v36 = vld [vmem:[#allocation184_spill] sm:$0xff] }
 0x700   : > { %14947 = vpow2.f32 %v5401_v33  ;;  %13729 = vmatprep.subr.bf16.mxu0 %v22333_v48  ;;  %v5297_v62 = vpop.xlane.xlu1 %5296 }
 0x701   : > { %v14938_v59 = vpop.eup %14937  ;;  %v5403_v11 = vmul.f32 1.442695, %v5357_v31  ;;  %13714 = vmatmul.mubr.msk.bf16.vlgmr.msra.gmra.mrb[180].mxu1 %vm2949_vm11, %v5570_v3  ;;  %v5359_v35 = vsub.f32 %v18791_v16, %v5297_v62  ;;  %v22510_v31 = vld [vmem:[#allocation186_spill] sm:$0xff] }
 0x702   : > { %v5463_v2 = vsel %vm2949_vm11, %v14938_v59, 0.0  ;;  %v14940_v63 = vpop.eup %14939  ;;  %13724 = vmatpush3.bf16.msra.mxu1 %v22508_v15  ;;  %v5300_v14 = vpop.xlane.xlu0 %5299  ;;  %13725 = vmatprep.mubr.msk.bf16.mxu1 %vm15602_vm0, %v22333_v48 }
 0x703   : > { %14949 = vpow2.f32 %v5403_v11  ;;  %5461 = vadd.xlane.f32.xlu0 %v5460_v40  ;;  %5464 = vadd.xlane.f32.xlu1 %v5463_v2  ;;  %v5571_v47 = vpack.c.bf16 %v14940_v63, %v14938_v59  ;;  %v5407_v42 = vmul.f32 1.442695, %v5359_v35  ;;  %v5360_v4 = vsub.f32 %v18802_v38, %v5300_v14  ;;  %v22511_v14 = vld [vmem:[#allocation204_spill] sm:$0xff] }
 0x704   : > { %13735 = vmatprep.subr.bf16.mxu1 %v22333_v48  ;;  %v5294_v27 = vpop.xlane.xlu1 %5293  ;;  %v5466_v16 = vsel %vm2949_vm11, %v14940_v63, 0.0 }
 0x705   : > { %v14942_v28 = vpop.eup %14941  ;;  %13720 = vmatmul.mubr.msk.bf16.vlgmr.msra.gmra.mrb[152].mxu0 %vm2949_vm11, %v5571_v47  ;;  %14951 = vpow2.f32 %v5407_v42  ;;  %v5409_v60 = vmul.f32 1.442695, %v5360_v4  ;;  %v5358_v46 = vsub.f32 %v18798_v5, %v5294_v27 }
 0x706   : > { %v5469_v26 = vsel %vm2949_vm11, %v14942_v28, 0.0  ;;  %v14944_v37 = vpop.eup %14943  ;;  %13730 = vmatpush3.bf16.msra.mxu0 %v22509_v36  ;;  %v5303_v56 = vpop.xlane.xlu0 %5302  ;;  %13731 = vmatprep.mubr.msk.bf16.mxu0 %vm15602_vm0, %v22333_v48 }
 0x707   : > { %5467 = vadd.xlane.f32.xlu0 %v5466_v16  ;;  %5470 = vadd.xlane.f32.xlu1 %v5469_v26  ;;  %v5572_v38 = vpack.c.bf16 %v14944_v37, %v14942_v28  ;;  %14953 = vpow2.f32 %v5409_v60  ;;  %v5405_v57 = vmul.f32 1.442695, %v5358_v46  ;;  %v5361_v7 = vsub.f32 %v18809_v58, %v5303_v56 }
 0x708   : > { %13741 = vmatprep.subr.bf16.mxu0 %v22333_v48  ;;  %v5309_v44 = vpop.xlane.xlu1 %5308  ;;  %v5472_v5 = vsel %vm2949_vm11, %v14944_v37, 0.0 }
 0x709   : > { %v14946_v0 = vpop.eup %14945  ;;  %13726 = vmatmul.mubr.msk.bf16.vlgmr.msra.gmra.mrb[184].mxu1 %vm2949_vm11, %v5572_v38  ;;  %14955 = vpow2.f32 %v5405_v57  ;;  %v5363_v22 = vsub.f32 %v18819_v43, %v5309_v44  ;;  %v5411_v3 = vmul.f32 1.442695, %v5361_v7  ;;  %v22512_v44 = vld [vmem:[#allocation201_spill] sm:$0xff] }
 0x70a   : > { %v5475_v55 = vsel %vm2949_vm11, %v14946_v0, 0.0  ;;  %v14948_v33 = vpop.eup %14947  ;;  %13736 = vmatpush3.bf16.msra.mxu1 %v22510_v31  ;;  %v5312_v59 = vpop.xlane.xlu0 %5311  ;;  %13737 = vmatprep.mubr.msk.bf16.mxu1 %vm15602_vm0, %v22333_v48 }
 0x70b   : > { %5473 = vadd.xlane.f32.xlu0 %v5472_v5  ;;  %5476 = vadd.xlane.f32.xlu1 %v5475_v55  ;;  %v5573_v58 = vpack.c.bf16 %v14948_v33, %v14946_v0  ;;  %v5415_v62 = vmul.f32 1.442695, %v5363_v22  ;;  %v5364_v40 = vsub.f32 %v18830_v17, %v5312_v59  ;;  %v5478_v43 = vsel %vm2949_vm11, %v14948_v33, 0.0  ;;  %v22513_v55 = vld [vmem:[#allocation196_spill] sm:$0xff] }
 0x70c   : > { %13747 = vmatprep.subr.bf16.mxu1 %v22333_v48  ;;  %v5306_v2 = vpop.xlane.xlu1 %5305 }
 0x70d   : > { %v14950_v11 = vpop.eup %14949  ;;  %13732 = vmatmul.mubr.msk.bf16.vlgmr.msra.gmra.mrb[156].mxu0 %vm2949_vm11, %v5573_v58  ;;  %14957 = vpow2.f32 %v5415_v62  ;;  %v5417_v35 = vmul.f32 1.442695, %v5364_v40  ;;  %v5362_v15 = vsub.f32 %v18826_v13, %v5306_v2 }
 0x70e   : > { %v5481_v63 = vsel %vm2949_vm11, %v14950_v11, 0.0  ;;  %13742 = vmatpush3.bf16.msra.mxu0 %v22511_v14  ;;  %14959 = vpow2.f32 %v5411_v3  ;;  %v5315_v47 = vpop.xlane.xlu0 %5314  ;;  %13743 = vmatprep.mubr.msk.bf16.mxu0 %vm15602_vm0, %v22333_v48 }
 0x70f   : > { %5479 = vadd.xlane.f32.xlu0 %v5478_v43  ;;  %5482 = vadd.xlane.f32.xlu1 %v5481_v63  ;;  %v14952_v17 = vpop.eup %14951  ;;  %14961 = vpow2.f32 %v5417_v35  ;;  %v5413_v28 = vmul.f32 1.442695, %v5362_v15  ;;  %v5365_v42 = vsub.f32 %v18837_v20, %v5315_v47  ;;  %v22514_v47 = vld [vmem:[#allocation229_spill] sm:$0xff] }
 0x710   : > { %13753 = vmatprep.subr.bf16.mxu0 %v22333_v48  ;;  %v5321_v4 = vpop.xlane.xlu1 %5320  ;;  %v5487_v27 = vsel %vm2949_vm11, %v14952_v17, 0.0 }
 0x711   : > { %v14954_v13 = vpop.eup %14953  ;;  %14963 = vpow2.f32 %v5413_v28  ;;  %v5367_v16 = vsub.f32 %v18847_v1, %v5321_v4  ;;  %v5419_v56 = vmul.f32 1.442695, %v5365_v42  ;;  %v22515_v28 = vld [vmem:[#allocation228_spill] sm:$0xff] }
 0x712   : > { %v5324_v26 = vpop.xlane.xlu0 %5323  ;;  %v5575_v37 = vpack.c.bf16 %v14954_v13, %v14952_v17  ;;  %v5490_v3 = vsel %vm2949_vm11, %v14954_v13, 0.0 }
 0x713   : > { %5488 = vadd.xlane.f32.xlu0 %v5487_v27  ;;  %v14956_v60 = vpop.eup %14955  ;;  %v5423_v46 = vmul.f32 1.442695, %v5367_v16  ;;  %v5368_v36 = vsub.f32 %v18858_v61, %v5324_v26 }
 0x714   : > { %v5318_v38 = vpop.xlane.xlu1 %5317  ;;  %v5484_v20 = vsel %vm2949_vm11, %v14956_v60, 0.0  ;;  %v5574_v0 = vpack.c.bf16 %v14956_v60, %v14950_v11 }
 0x715   : > { %13744 = vmatmul.mubr.msk.bf16.vlgmr.msra.gmra.mrb[160].mxu0 %vm2949_vm11, %v5575_v37  ;;  %v5425_v57 = vmul.f32 1.442695, %v5368_v36  ;;  %v5366_v7 = vsub.f32 %v18854_v39, %v5318_v38  ;;  %14965 = vpow2.f32 %v5423_v46 }
 0x716   : > { %13754 = vmatpush3.bf16.msra.mxu0 %v22512_v44  ;;  %13738 = vmatmul.mubr.msk.bf16.vlgmr.msra.gmra.mrb[188].mxu1 %vm2949_vm11, %v5574_v0  ;;  %v5327_v1 = vpop.xlane.xlu0 %5326  ;;  %v22518_v0 = vld [vmem:[#allocation92_spill] sm:$0xff] }
 0x717   : > { %5485 = vadd.xlane.f32.xlu0 %v5484_v20  ;;  %13755 = vmatprep.mubr.msk.bf16.mxu0 %vm15602_vm0, %v22333_v48  ;;  %v14958_v61 = vpop.eup %14957  ;;  %14967 = vpow2.f32 %v5425_v57  ;;  %v5421_v5 = vmul.f32 1.442695, %v5366_v7  ;;  %v5369_v39 = vsub.f32 %v18865_v52, %v5327_v1  ;;  %v22519_v1 = vld [vmem:[#allocation242_spill] sm:$0xff] }
 0x718   : > { %13748 = vmatpush3.bf16.msra.mxu1 %v22513_v55  ;;  %13765 = vmatprep.subr.bf16.mxu0 %v22333_v48  ;;  %v14960_v33 = vpop.eup %14959  ;;  %14969 = vpow2.f32 %v5419_v56  ;;  %v5333_v22 = vpop.xlane.xlu1 %5332  ;;  %v5499_v31 = vsel %vm2949_vm11, %v14958_v61, 0.0  ;;  %v22516_v56 = vld [vmem:[#allocation237_spill] sm:$0xff] }
 0x719   : > { %13749 = vmatprep.mubr.msk.bf16.mxu1 %vm15602_vm0, %v22333_v48  ;;  %13759 = vmatprep.subr.bf16.mxu1 %v22333_v48  ;;  %v18999_v59 = vpop.eup %14961  ;;  %14971 = vpow2.f32 %v5421_v5  ;;  %v5371_v58 = vsub.f32 %v18875_v18, %v5333_v22  ;;  %v5427_v43 = vmul.f32 1.442695, %v5369_v39  ;;  %v5493_v35 = vsel %vm2949_vm11, %v14960_v33, 0.0  ;;  %v22521_v22 = vld [vmem:[#allocation190_spill] sm:$0xff] }
 0x71a   : > { %5500 = vadd.xlane.f32.xlu1 %v5499_v31  ;;  %v5336_v11 = vpop.xlane.xlu0 %5335  ;;  %v5577_v52 = vpack.c.bf16 %v18999_v59, %v14958_v61  ;;  %v7405_v31 = vsel %vm2160_vm1, %v22521_v22, 0 }
 0x71b   : > { %5491 = vadd.xlane.f32.xlu0 %v5490_v3  ;;  %v19003_v62 = vpop.eup %14963  ;;  %v5431_v40 = vmul.f32 1.442695, %v5371_v58  ;;  %v5372_v2 = vsub.f32 %v18886_v34, %v5336_v11  ;;  %v22522_v3 = vld [vmem:[#allocation173_spill] sm:$0xff]  ;;  %v22523_v58 = vld [vmem:[#allocation202_spill] sm:$0xff] }
 0x71c   : > { %v5330_v63 = vpop.xlane.xlu1 %5329  ;;  %v5576_v15 = vpack.c.bf16 %v19003_v62, %v14960_v33  ;;  %v22520_v33 = vld [vmem:[#allocation174_spill] sm:$0xff]  ;;  %v7456_v11 = vsel %vm2160_vm1, %v22523_v58, 0 }
 0x71d   : > { %13756 = vmatmul.mubr.msk.bf16.vlgmr.msra.gmra.mrb[164].mxu0 %vm2949_vm11, %v5577_v52  ;;  %v5433_v14 = vmul.f32 1.442695, %v5372_v2  ;;  %v5370_v18 = vsub.f32 %v18882_v50, %v5330_v63  ;;  %14973 = vpow2.f32 %v5431_v40  ;;  %v7354_v39 = vsel %vm2160_vm1, %v22520_v33, 0  ;;  %v22524_v52 = vld [vmem:[#allocation180_spill] sm:$0xff]  ;;  %v22525_v40 = vld [vmem:[#allocation211_spill] sm:$0xff] }
 0x71e   : > { %13766 = vmatpush3.bf16.msra.mxu0 %v22514_v47  ;;  %13750 = vmatmul.mubr.msk.bf16.vlgmr.msra.gmra.mrb[192].mxu1 %vm2949_vm11, %v5576_v15  ;;  %v5339_v17 = vpop.xlane.xlu0 %5338  ;;  %v7507_v2 = vsel %vm2160_vm1, %v22525_v40, 0  ;;  %v22527_v15 = vld [vmem:[#allocation213_spill] sm:$0xff]  ;;  %v5502_v47 = vsel %vm2949_vm11, %v18999_v59, 0.0  ;;  %v22541_v33 = vld [vmem:[#allocation192_spill] sm:$0xff] }
 0x71f   : > { %5494 = vadd.xlane.f32.xlu0 %v5493_v35  ;;  %13767 = vmatprep.mubr.msk.bf16.mxu0 %vm15602_vm0, %v22333_v48  ;;  %14975 = vpow2.f32 %v5433_v14  ;;  %v5429_v34 = vmul.f32 1.442695, %v5370_v18  ;;  %v19016_v42 = vpop.eup %14965  ;;  %v5373_v27 = vsub.f32 %v18893_v54, %v5339_v17  ;;  %v22517_v54 = vld [vmem:[#allocation234_spill] sm:$0xff]  ;;  %v5496_v35 = vsel %vm2949_vm11, %v19003_v62, 0.0  ;;  %v22528_v18 = vld [vmem:[#allocation203_spill] sm:$0xff]  ;;  %v22529_v17 = vld [vmem:[#allocation217_spill] sm:$0xff] }
 0x720   : > { %13760 = vmatpush3.bf16.msra.mxu1 %v22515_v28  ;;  %13777 = vmatprep.subr.bf16.mxu0 %v22333_v48  ;;  %14977 = vpow2.f32 %v5427_v43  ;;  %v5342_v50 = vpop.xlane.xlu1 %5341  ;;  %v22526_v43 = vld [vmem:[#allocation189_spill] sm:$0xff]  ;;  %v7558_v14 = vsel %vm2160_vm1, %v22527_v15, 0  ;;  %v22530_v28 = vld [vmem:[#allocation215_spill] sm:$0xff]  ;;  %v5511_v59 = vsel %vm2949_vm11, %v19016_v42, 0.0 }
 0x721   : > { %13761 = vmatprep.mubr.msk.bf16.mxu1 %vm15602_vm0, %v22333_v48  ;;  %13771 = vmatprep.subr.bf16.mxu1 %v22333_v48  ;;  %v19021_v4 = vpop.eup %14967  ;;  %14979 = vpow2.f32 %v5429_v34  ;;  %v5374_v13 = vsub.f32 %v18900_v9, %v5342_v50  ;;  %v5435_v36 = vmul.f32 1.442695, %v5373_v27  ;;  %v7609_v34 = vsel %vm2160_vm1, %v22529_v17, 0  ;;  %v22531_v27 = vld [vmem:[#allocation94_spill] sm:$0xff] }
 0x722   : > { %v19025_v16 = vpop.eup %14969  ;;  %v5579_v26 = vpack.c.bf16 %v19021_v4, %v19016_v42  ;;  %v5514_v42 = vsel %vm2949_vm11, %v19021_v4, 0.0 }
 0x723   : > { %v19029_v37 = vpop.eup %14971  ;;  %v5437_v60 = vmul.f32 1.442695, %v5374_v13  ;;  %v5505_v62 = vsel %vm2949_vm11, %v19025_v16, 0.0  ;;  %v7660_v13 = vsel %vm2160_vm1, %v22531_v27, 0  ;;  %v22549_v27 = vld [vmem:[#allocation212_spill] sm:$0xff] }
 0x724   : > { %v5578_v46 = vpack.c.bf16 %v19029_v37, %v19025_v16  ;;  %v5508_v50 = vsel %vm2949_vm11, %v19029_v37, 0.0  ;;  %v22532_v16 = vld [vmem:[#allocation218_spill] sm:$0xff]  ;;  %v22533_v37 = vld [vmem:[#allocation220_spill] sm:$0xff] }
 0x725   : > { %13768 = vmatmul.mubr.msk.bf16.vlgmr.msra.gmra.mrb[168].mxu0 %vm2949_vm11, %v5579_v26  ;;  %14981 = vpow2.f32 %v5437_v60  ;;  %v7711_v60 = vsel %vm2160_vm1, %v22533_v37, 0 }
 0x726   : > { %13778 = vmatpush3.bf16.msra.mxu0 %v22516_v56  ;;  %13779 = vmatprep.mubr.msk.bf16.mxu0 %vm15602_vm0, %v22333_v48  ;;  %14983 = vpow2.f32 %v5435_v36  ;;  %v22535_v56 = vld [vmem:[#allocation222_spill] sm:$0xff] }
 0x727   : > { %13762 = vmatmul.mubr.msk.bf16.vlgmr.msra.gmra.mrb[196].mxu1 %vm2949_vm11, %v5578_v46  ;;  %v19041_v9 = vpop.eup %14973  ;;  %v22534_v46 = vld [vmem:[#allocation71_spill] sm:$0xff] }
 0x728   : > { %13772 = vmatpush3.bf16.msra.mxu1 %v22517_v54  ;;  %13773 = vmatprep.mubr.msk.bf16.mxu1 %vm15602_vm0, %v22333_v48  ;;  %v5523_v4 = vsel %vm2949_vm11, %v19041_v9, 0.0  ;;  %v7762_v54 = vsel %vm2160_vm1, %v22535_v56, 0 }
 0x729   : > { %13783 = vmatprep.subr.bf16.mxu1 %v22333_v48  ;;  %v19044_v38 = vpop.eup %14975 }
 0x72a   : > { %v19046_v20 = vpop.eup %14977  ;;  %v5581_v57 = vpack.c.bf16 %v19044_v38, %v19041_v9  ;;  %v5526_v9 = vsel %vm2949_vm11, %v19044_v38, 0.0  ;;  %v22539_v38 = vld [vmem:[#allocation177_spill] sm:$0xff] }
 0x72b   : > { %8577 = vrot.lane.b32.xlu1 %v22518_v0, %s15604_s24  ;;  %v19052_v7 = vpop.eup %14979  ;;  %v5517_v26 = vsel %vm2949_vm11, %v19046_v20, 0.0 }
 0x72c   : > { %v5580_v44 = vpack.c.bf16 %v19052_v7, %v19046_v20  ;;  %v5520_v36 = vsel %vm2949_vm11, %v19052_v7, 0.0  ;;  %v22536_v20 = vld [vmem:[#allocation221_spill] sm:$0xff]  ;;  %v22537_v7 = vld [vmem:[#allocation226_spill] sm:$0xff] }
 0x72d   : > { %13780 = vmatmul.mubr.msk.bf16.vlgmr.msra.gmra.mrb[172].mxu0 %vm2949_vm11, %v5581_v57 }
 0x72f   : > { %8671 = vrot.lane.b32.xlu1 %v22334_v6, %s15604_s24  ;;  %13774 = vmatmul.mubr.msk.bf16.vlgmr.msra.gmra.mrb[200].mxu1 %vm2949_vm11, %v5580_v44  ;;  %v19064_v61 = vpop.eup %14981  ;;  %v7813_v44 = vsel %vm2160_vm1, %v22537_v7, 0 }
 0x730   : > { %13784 = vmatpush3.bf16.msra.mxu1 %v22519_v1  ;;  %13785 = vmatprep.mubr.msk.bf16.mxu1 %vm15602_vm0, %v22333_v48  ;;  %v14984_v5 = vpop.eup %14983  ;;  %v5532_v57 = vsel %vm2949_vm11, %v19064_v61, 0.0  ;;  %v22538_v1 = vld [vmem:[#allocation224_spill] sm:$0xff] }
 0x731   : > { %13861 = vmatprep.subr.bf16.mxu1 %v22333_v48  ;;  %v5582_v55 = vpack.c.bf16 %v19064_v61, %v14984_v5  ;;  %v5529_v63 = vsel %vm2949_vm11, %v14984_v5, 0.0  ;;  %v7864_v5 = vsel %vm2160_vm1, %v22539_v38, 0 }
 0x735   : > { %8624 = vrot.lane.b32.xlu0 %v22332_v41, %s15604_s24 }
 0x737   : > { %13786 = vmatmul.mubr.msk.bf16.vlgmr.msra.gmra.mrb[204].mxu1 %vm2949_vm11, %v5582_v55  ;;  %v22540_v55 = vld [vmem:[#allocation227_spill] sm:$0xff] }
 0x738   : > { %13863 = vmatprep.mubr.msk.bf16.mxu1 %vm15602_vm0, %v22333_v48 }
 0x739   : > { %8718 = vrot.lane.b32.xlu0 %v22335_v12, %s15604_s24  ;;  %13862 = vmatpush3.bf16.xpose.msra.mxu1 %v7354_v39  ;;  %v7915_v39 = vsel %vm2160_vm1, %v22541_v33, 0 }
 0x73a   : > { %13867 = vmatprep.subr.bf16.mxu1 %v22333_v48 }
 0x740   : > { %13864 = vmatmul.mubr.msk.bf16.vlgmr.msra.gmra.mrb[208].mxu1 %vm2160_vm1, %v22522_v3 }
 0x741   : > { %13868 = vmatpush3.bf16.xpose.msra.mxu1 %v7405_v31  ;;  %13869 = vmatprep.mubr.msk.bf16.mxu1 %vm15602_vm0, %v22333_v48  ;;  %v22542_v31 = vld [vmem:[#allocation181_spill] sm:$0xff] }
 0x742   : > { %13873 = vmatprep.subr.bf16.mxu1 %v22333_v48 }
 0x748   : > { %13870 = vmatmul.mubr.msk.bf16.vlgmr.msra.gmra.mrb[212].mxu1 %vm2160_vm1, %v22524_v52 }
 0x749   : > { %13874 = vmatpush3.bf16.xpose.msra.mxu1 %v7456_v11  ;;  %13875 = vmatprep.mubr.msk.bf16.mxu1 %vm15602_vm0, %v22333_v48  ;;  %v22543_v11 = vld [vmem:[#allocation176_spill] sm:$0xff] }
 0x74a   : > { %13879 = vmatprep.subr.bf16.mxu1 %v22333_v48  ;;  %v7966_v52 = vsel %vm2160_vm1, %v22543_v11, 0 }
 0x750   : > { %13876 = vmatmul.mubr.msk.bf16.vlgmr.msra.gmra.mrb[216].mxu1 %vm2160_vm1, %v22526_v43 }
 0x751   : > { %13880 = vmatpush3.bf16.xpose.msra.mxu1 %v7507_v2  ;;  %13881 = vmatprep.mubr.msk.bf16.mxu1 %vm15602_vm0, %v22333_v48  ;;  %v22544_v2 = vld [vmem:[#allocation199_spill] sm:$0xff] }
 0x752   : > { %13885 = vmatprep.subr.bf16.mxu1 %v22333_v48 }
 0x753   : > { %5530 = vadd.xlane.f32.xlu1 %v5529_v63 }
 0x758   : > { %5497 = vadd.xlane.f32.xlu0 %v5496_v35  ;;  %13882 = vmatmul.mubr.msk.bf16.vlgmr.msra.gmra.mrb[220].mxu1 %vm2160_vm1, %v22528_v18  ;;  %v22545_v35 = vld [vmem:[#allocation187_spill] sm:$0xff] }
 0x759   : > { %13886 = vmatpush3.bf16.xpose.msra.mxu1 %v7558_v14  ;;  %13887 = vmatprep.mubr.msk.bf16.mxu1 %vm15602_vm0, %v22333_v48  ;;  %v8017_v15 = vsel %vm2160_vm1, %v22545_v35, 0  ;;  %v22546_v14 = vld [vmem:[#allocation171_spill] sm:$0xff] }
 0x75a   : > { %13891 = vmatprep.subr.bf16.mxu1 %v22333_v48 }
 0x75c   : > { %5503 = vadd.xlane.f32.xlu0 %v5502_v47 }
 0x760   : > { %5506 = vadd.xlane.f32.xlu0 %v5505_v62  ;;  %13888 = vmatmul.mubr.msk.bf16.vlgmr.msra.gmra.mrb[224].mxu1 %vm2160_vm1, %v22530_v28  ;;  %v22547_v62 = vld [vmem:[#allocation197_spill] sm:$0xff] }
 0x761   : > { %13892 = vmatpush3.bf16.xpose.msra.mxu1 %v7609_v34  ;;  %13893 = vmatprep.mubr.msk.bf16.mxu1 %vm15602_vm0, %v22333_v48  ;;  %v8068_v17 = vsel %vm2160_vm1, %v22547_v62, 0  ;;  %v22548_v28 = vld [vmem:[#allocation185_spill] sm:$0xff] }
 0x762   : > { %13897 = vmatprep.subr.bf16.mxu1 %v22333_v48 }
 0x764   : > { %5512 = vadd.xlane.f32.xlu0 %v5511_v59  ;;  %8765 = vrot.lane.b32.xlu1 %v22336_v24, %s15604_s24 }
 0x768   : > { %5509 = vadd.xlane.f32.xlu0 %v5508_v50  ;;  %13894 = vmatmul.mubr.msk.bf16.vlgmr.msra.gmra.mrb[228].mxu1 %vm2160_vm1, %v22532_v16 }
 0x769   : > { %13898 = vmatpush3.bf16.xpose.msra.mxu1 %v7660_v13  ;;  %13899 = vmatprep.mubr.msk.bf16.mxu1 %vm15602_vm0, %v22333_v48  ;;  %v8119_v13 = vsel %vm2160_vm1, %v22549_v27, 0 }
 0x76a   : > { %13903 = vmatprep.subr.bf16.mxu1 %v22333_v48 }
 0x76c   : > { %5515 = vadd.xlane.f32.xlu0 %v5514_v42  ;;  %v22550_v42 = vld [vmem:[#allocation198_spill] sm:$0xff] }
 0x770   : > { %5518 = vadd.xlane.f32.xlu0 %v5517_v26  ;;  %13900 = vmatmul.mubr.msk.bf16.vlgmr.msra.gmra.mrb[232].mxu1 %vm2160_vm1, %v22534_v46  ;;  %v22551_v46 = vld [vmem:[#allocation208_spill] sm:$0xff] }
 0x771   : > { %13904 = vmatpush3.bf16.xpose.msra.mxu1 %v7711_v60  ;;  %13905 = vmatprep.mubr.msk.bf16.mxu1 %vm15602_vm0, %v22333_v48 }
 0x772   : > { %13909 = vmatprep.subr.bf16.mxu1 %v22333_v48 }
 0x774   : > { %5524 = vadd.xlane.f32.xlu0 %v5523_v4 }
 0x778   : > { %5521 = vadd.xlane.f32.xlu0 %v5520_v36  ;;  %13906 = vmatmul.mubr.msk.bf16.vlgmr.msra.gmra.mrb[236].mxu1 %vm2160_vm1, %v22536_v20 }
 0x779   : > { %13910 = vmatpush3.bf16.xpose.msra.mxu1 %v7762_v54  ;;  %13911 = vmatprep.mubr.msk.bf16.mxu1 %vm15602_vm0, %v22333_v48 }
 0x77a   : > { %13915 = vmatprep.subr.bf16.mxu1 %v22333_v48 }
 0x77c   : > { %5527 = vadd.xlane.f32.xlu0 %v5526_v9 }
 0x780   : > { %5533 = vadd.xlane.f32.xlu0 %v5532_v57  ;;  %13912 = vmatmul.mubr.msk.bf16.vlgmr.msra.gmra.mrb[240].mxu1 %vm2160_vm1, %v22538_v1  ;;  %v5441_v3 = vpop.xlane.xlu0 %5440 }
 0x781   : > { %13916 = vmatpush3.bf16.xpose.msra.mxu1 %v7813_v44  ;;  %13917 = vmatprep.mubr.msk.bf16.mxu1 %vm15602_vm0, %v22333_v48  ;;  %v5444_v61 = vpop.xlane.xlu1 %5443  ;;  %14985 = vrcp.f32 %v5441_v3 }
 0x782   : > { %13921 = vmatprep.subr.bf16.mxu1 %v22333_v48  ;;  %14987 = vrcp.f32 %v5444_v61 }
 0x784   : > { %v5447_v40 = vpop.xlane.xlu0 %5446 }
 0x785   : > { %14989 = vrcp.f32 %v5447_v40 }
 0x788   : > { %13918 = vmatmul.mubr.msk.bf16.vlgmr.msra.gmra.mrb[244].mxu1 %vm2160_vm1, %v22540_v55  ;;  %v5453_v22 = vpop.xlane.xlu1 %5452  ;;  %v5450_v63 = vpop.xlane.xlu0 %5449 }
 0x789   : > { %13922 = vmatpush3.bf16.xpose.msra.mxu1 %v7864_v5  ;;  %13923 = vmatprep.mubr.msk.bf16.mxu1 %vm15602_vm0, %v22333_v48  ;;  %14991 = vrcp.f32 %v5450_v63 }
 0x78a   : > { %13927 = vmatprep.subr.bf16.mxu1 %v22333_v48  ;;  %14993 = vrcp.f32 %v5453_v22 }
 0x78b   : > { %v14986_v56 = vpop.eup %14985 }
 0x78c   : > { %v5459_v58 = vpop.xlane.xlu1 %5458  ;;  %v5456_v47 = vpop.xlane.xlu0 %5455 }
 0x78d   : > { %14995 = vrcp.f32 %v5456_v47  ;;  %v14988_v7 = vpop.eup %14987 }
 0x78e   : > { %14997 = vrcp.f32 %v5459_v58 }
 0x78f   : > { %v14990_v5 = vpop.eup %14989 }
 0x790   : > { %13924 = vmatmul.mubr.msk.bf16.vlgmr.msra.gmra.mrb[248].mxu1 %vm2160_vm1, %v22542_v31  ;;  %v5465_v43 = vpop.xlane.xlu1 %5464  ;;  %v5462_v59 = vpop.xlane.xlu0 %5461 }
 0x791   : > { %13928 = vmatpush3.bf16.xpose.msra.mxu1 %v7915_v39  ;;  %13929 = vmatprep.mubr.msk.bf16.mxu1 %vm15602_vm0, %v22333_v48  ;;  %14999 = vrcp.f32 %v5462_v59 }
 0x792   : > { %13933 = vmatprep.subr.bf16.mxu1 %v22333_v48  ;;  %15001 = vrcp.f32 %v5465_v43 }
 0x793   : > { %v14992_v31 = vpop.eup %14991 }
 0x794   : > { %v5471_v18 = vpop.xlane.xlu1 %5470  ;;  %v5468_v16 = vpop.xlane.xlu0 %5467 }
 0x795   : > { %v14994_v58 = vpop.eup %14993  ;;  %15003 = vrcp.f32 %v5468_v16 }
 0x796   : > { %15005 = vrcp.f32 %v5471_v18 }
 0x797   : > { %v14996_v35 = vpop.eup %14995 }
 0x798   : > { %13930 = vmatmul.mubr.msk.bf16.vlgmr.msra.gmra.mrb[252].mxu1 %vm2160_vm1, %v22544_v2  ;;  %v19195_v34 = vpop.xlane.xlu1 %5476  ;;  %v5474_v37 = vpop.xlane.xlu0 %5473 }
 0x799   : > { %13934 = vmatpush3.bf16.xpose.msra.mxu1 %v7966_v52  ;;  %13935 = vmatprep.mubr.msk.bf16.mxu1 %vm15602_vm0, %v22333_v48  ;;  %v14998_v43 = vpop.eup %14997  ;;  %15007 = vrcp.f32 %v5474_v37 }
 0x79a   : > { %13939 = vmatprep.subr.bf16.mxu1 %v22333_v48  ;;  %15009 = vrcp.f32 %v19195_v34 }
 0x79b   : > { %v15000_v27 = vpop.eup %14999 }
 0x79c   : > { %v19202_v50 = vpop.xlane.xlu1 %5482  ;;  %v5480_v4 = vpop.xlane.xlu0 %5479 }
 0x79d   : > { %v15002_v18 = vpop.eup %15001  ;;  %15011 = vrcp.f32 %v5480_v4 }
 0x79e   : > { %15013 = vrcp.f32 %v19202_v50 }
 0x7a0   : > { %13936 = vmatmul.mubr.msk.bf16.vlgmr.msra.gmra.mrb[0].mxu1 %vm2160_vm1, %v22546_v14  ;;  %v19218_v36 = vpop.xlane.xlu0 %5488 }
 0x7a1   : > { %13940 = vmatpush3.bf16.xpose.msra.mxu1 %v8017_v15  ;;  %13941 = vmatprep.mubr.msk.bf16.mxu1 %vm15602_vm0, %v22333_v48 }
 0x7a2   : > { %13945 = vmatprep.subr.bf16.mxu1 %v22333_v48 }
 0x7a4   : > { %v19220_v54 = vpop.xlane.xlu0 %5485 }
 0x7a5   : > { %15015 = vrcp.f32 %v19220_v54 }
 0x7a6   : > { %15017 = vrcp.f32 %v19218_v36 }
 0x7a7   : > { %v19210_v26 = vpop.xlane.xlu1 %5500 }
 0x7a8   : > { %13942 = vmatmul.mubr.msk.bf16.vlgmr.msra.gmra.mrb[4].mxu1 %vm2160_vm1, %v22548_v28  ;;  %v19224_v39 = vpop.xlane.xlu0 %5491 }
 0x7a9   : > { %13946 = vmatpush3.bf16.xpose.msra.mxu1 %v8068_v17  ;;  %13947 = vmatprep.mubr.msk.bf16.mxu1 %vm15602_vm0, %v22333_v48  ;;  %15019 = vrcp.f32 %v19224_v39 }
 0x7aa   : > { %13951 = vmatprep.subr.bf16.mxu1 %v22333_v48 }
 0x7ab   : > { %v8578_v60 = vpop.permute.xlu1 %8577 }
 0x7ac   : > { %v5495_v14 = vpop.xlane.xlu0 %5494 }
 0x7ad   : > { %15021 = vrcp.f32 %v5495_v14 }
 0x7b0   : > { %13948 = vmatmul.mubr.msk.bf16.vlgmr.msra.gmra.mrb[8].mxu1 %vm2160_vm1, %v22550_v42 }
 0x7b1   : > { %13952 = vmatpush3.bf16.xpose.msra.mxu1 %v8119_v13  ;;  %13953 = vmatprep.mubr.msk.bf16.mxu1 %vm15602_vm0, %v22333_v48 }
 0x7b2   : > { %13963 = vmatprep.subr.bf16.mxu1 %v22333_v48 }
 0x7b8   : > { %13954 = vmatmul.mubr.msk.bf16.vlgmr.msra.gmra.mrb[12].mxu1 %vm2160_vm1, %v22551_v46 }
 0x7b9   : > { %13964 = vmatpush3.bf16.msra.mxu1 %v8578_v60  ;;  %13965 = vmatprep.mubr.msk.bf16.mxu1 %vm15602_vm0, %v22333_v48 }
 0x7ba   : > { %13975 = vmatprep.subr.bf16.mxu1 %v22333_v48 }
 0x7c8   : > { %v5624_v20 = vpop.f32.mrb[144].mxu0 }
 0x7c9   : > { %v6351_v9 = vmul.f32 %v14986_v56, %v5624_v20  ;;  %v13697_v57 = vpop.f32.mrb[145].mxu0  ;;  %v19232_v56 = vpop.permute.xlu0 %8624 }
 0x7ca   : > { %v5627_v44 = vpop.f32.mrb[146].mxu0  ;;  %22552 = vst [vmem:[#allocation150_spill] sm:$0xff] %v19232_v56  ;;  %v15004_v20 = vpop.eup %15003 }
 0x7cb   : > { %v6352_v1 = vmul.f32 %v14988_v7, %v5627_v44  ;;  %v13698_v38 = vpop.f32.mrb[147].mxu0  ;;  %6415 = vrot.lane.b32.xlu1 %v6351_v9, %s15605_s18  ;;  %v15006_v34 = vpop.eup %15005 }
 0x7cc   : > { %v5672_v55 = vpop.f32.mrb[176].mxu1 }
 0x7cd   : > { %v6353_v61 = vmul.f32 %v14990_v5, %v5672_v55  ;;  %v13703_v33 = vpop.f32.mrb[177].mxu1  ;;  %6417 = vrot.lane.b32.xlu0 %v6352_v1, %s15605_s18  ;;  %v15008_v5 = vpop.eup %15007 }
 0x7ce   : > { %v5675_v22 = vpop.f32.mrb[178].mxu1  ;;  %v15010_v4 = vpop.eup %15009 }
 0x7cf   : > { %v13704_v3 = vpop.f32.mrb[179].mxu1  ;;  %6419 = vrot.lane.b32.xlu1 %v6353_v61, %s15605_s18  ;;  %v6354_v52 = vmul.f32 %v14992_v31, %v5675_v22  ;;  %v19239_v61 = vpop.permute.xlu0 %8718 }
 0x7d0   : > { %v5720_v11 = vpop.f32.mrb[148].mxu0  ;;  %22553 = vst [vmem:[#allocation124_spill] sm:$0xff] %v19239_v61  ;;  %v22594_v61 = vld [vmem:[#allocation178_spill] sm:$0xff] }
 0x7d1   : > { %v6355_v40 = vmul.f32 %v14994_v58, %v5720_v11  ;;  %v13709_v2 = vpop.f32.mrb[149].mxu0 }
 0x7d2   : > { %v5723_v63 = vpop.f32.mrb[150].mxu0 }
 0x7d3   : > { %v13710_v15 = vpop.f32.mrb[151].mxu0  ;;  %6423 = vrot.lane.b32.xlu0 %v6355_v40, %s15605_s18  ;;  %6421 = vrot.lane.b32.xlu1 %v6354_v52, %s15605_s18  ;;  %v6356_v62 = vmul.f32 %v14996_v35, %v5723_v63  ;;  %v15012_v52 = vpop.eup %15011 }
 0x7d4   : > { %v5768_v47 = vpop.f32.mrb[180].mxu1  ;;  %v15014_v54 = vpop.eup %15013 }
 0x7d5   : > { %v6357_v17 = vmul.f32 %v14998_v43, %v5768_v47  ;;  %v13715_v28 = vpop.f32.mrb[181].mxu1  ;;  %v15016_v36 = vpop.eup %15015 }
 0x7d6   : > { %v5771_v59 = vpop.f32.mrb[182].mxu1  ;;  %v15018_v14 = vpop.eup %15017 }
 0x7d7   : > { %v13716_v13 = vpop.f32.mrb[183].mxu1  ;;  %6427 = vrot.lane.b32.xlu0 %v6357_v17, %s15605_s18  ;;  %6425 = vrot.lane.b32.xlu1 %v6356_v62, %s15605_s18  ;;  %v6358_v42 = vmul.f32 %v15000_v27, %v5771_v59 }
 0x7d8   : > { %v5816_v16 = vpop.f32.mrb[152].mxu0 }
 0x7d9   : > { %v6359_v60 = vmul.f32 %v15002_v18, %v5816_v16  ;;  %v13721_v46 = vpop.f32.mrb[153].mxu0  ;;  %v15020_v18 = vpop.eup %15019 }
 0x7da   : > { %v5819_v37 = vpop.f32.mrb[154].mxu0  ;;  %v15022_v46 = vpop.eup %15021 }
 0x7db   : > { %v13722_v9 = vpop.f32.mrb[155].mxu0  ;;  %6431 = vrot.lane.b32.xlu0 %v6359_v60, %s15605_s18  ;;  %6429 = vrot.lane.b32.xlu1 %v6358_v42, %s15605_s18  ;;  %v6360_v7 = vmul.f32 %v15004_v20, %v5819_v37 }
 0x7dc   : > { %v5864_v57 = vpop.f32.mrb[184].mxu1 }
 0x7dd   : > { %v6361_v44 = vmul.f32 %v15006_v34, %v5864_v57  ;;  %v13727_v1 = vpop.f32.mrb[185].mxu1 }
 0x7de   : > { %v5867_v38 = vpop.f32.mrb[186].mxu1 }
 0x7df   : > { %v13728_v55 = vpop.f32.mrb[187].mxu1  ;;  %6435 = vrot.lane.b32.xlu0 %v6361_v44, %s15605_s18  ;;  %6433 = vrot.lane.b32.xlu1 %v6360_v7, %s15605_s18  ;;  %v6362_v22 = vmul.f32 %v15008_v5, %v5867_v38 }
 0x7e0   : > { %v5912_v33 = vpop.f32.mrb[156].mxu0 }
 0x7e1   : > { %v6363_v31 = vmul.f32 %v15010_v4, %v5912_v33  ;;  %v13733_v3 = vpop.f32.mrb[157].mxu0 }
 0x7e2   : > { %v5915_v58 = vpop.f32.mrb[158].mxu0 }
 0x7e3   : > { %v13734_v11 = vpop.f32.mrb[159].mxu0  ;;  %6439 = vrot.lane.b32.xlu0 %v6363_v31, %s15605_s18  ;;  %6437 = vrot.lane.b32.xlu1 %v6362_v22, %s15605_s18  ;;  %v6364_v2 = vmul.f32 %v15012_v52, %v5915_v58 }
 0x7e5   : > { %v5498_v40 = vpop.xlane.xlu0 %5497 }
 0x7e6   : > { %15023 = vrcp.f32 %v5498_v40 }
 0x7e7   : > { %6441 = vrot.lane.b32.xlu1 %v6364_v2, %s15605_s18  ;;  %15025 = vrcp.f32 %v19210_v26 }
 0x7e8   : > { %v6008_v50 = vpop.f32.mrb[160].mxu0 }
 0x7e9   : > { %v5504_v63 = vpop.xlane.xlu0 %5503  ;;  %v13745_v35 = vpop.f32.mrb[161].mxu0  ;;  %v6367_v13 = vmul.f32 %v15018_v14, %v6008_v50 }
 0x7ea   : > { %v5960_v15 = vpop.f32.mrb[188].mxu1  ;;  %v6011_v43 = vpop.f32.mrb[162].mxu0  ;;  %15027 = vrcp.f32 %v5504_v63 }
 0x7eb   : > { %v6365_v47 = vmul.f32 %v15014_v54, %v5960_v15  ;;  %v13739_v62 = vpop.f32.mrb[189].mxu1  ;;  %v13746_v17 = vpop.f32.mrb[163].mxu0  ;;  %v6368_v26 = vmul.f32 %v15020_v18, %v6011_v43 }
 0x7ec   : > { %v5963_v28 = vpop.f32.mrb[190].mxu1  ;;  %v19256_v43 = vpop.permute.xlu1 %8671 }
 0x7ed   : > { %v5507_v59 = vpop.xlane.xlu0 %5506  ;;  %v6366_v39 = vmul.f32 %v15016_v36, %v5963_v28  ;;  %v13740_v27 = vpop.f32.mrb[191].mxu1  ;;  %6443 = vrot.lane.b32.xlu0 %v6365_v47, %s15605_s18 }
 0x7ee   : > { %15029 = vrcp.f32 %v5507_v59 }
 0x7ef   : > { %6445 = vrot.lane.b32.xlu1 %v6366_v39, %s15605_s18 }
 0x7f0   : > { %v6104_v16 = vpop.f32.mrb[164].mxu0  ;;  %v15024_v7 = vpop.eup %15023 }
 0x7f1   : > { %v5513_v42 = vpop.xlane.xlu0 %5512  ;;  %v13757_v60 = vpop.f32.mrb[165].mxu0  ;;  %6447 = vrot.lane.b32.xlu0 %v6367_v13, %s15605_s18 }
 0x7f2   : > { %15031 = vrcp.f32 %v5513_v42  ;;  %v6056_v37 = vpop.f32.mrb[192].mxu1  ;;  %v6107_v20 = vpop.f32.mrb[166].mxu0 }
 0x7f3   : > { %v6369_v9 = vmul.f32 %v15022_v46, %v6056_v37  ;;  %v13751_v34 = vpop.f32.mrb[193].mxu1  ;;  %v13758_v57 = vpop.f32.mrb[167].mxu0  ;;  %6449 = vrot.lane.b32.xlu1 %v6368_v26, %s15605_s18 }
 0x7f4   : > { %v6059_v44 = vpop.f32.mrb[194].mxu1  ;;  %v15026_v38 = vpop.eup %15025 }
 0x7f5   : > { %v5510_v1 = vpop.xlane.xlu0 %5509  ;;  %v6370_v5 = vmul.f32 %v15024_v7, %v6059_v44  ;;  %v13752_v55 = vpop.f32.mrb[195].mxu1  ;;  %6451 = vrot.lane.b32.xlu0 %v6369_v9, %s15605_s18  ;;  %v6371_v33 = vmul.f32 %v15026_v38, %v6104_v16 }
 0x7f6   : > { %15033 = vrcp.f32 %v5510_v1  ;;  %v15028_v4 = vpop.eup %15027  ;;  %v5531_v39 = vpop.xlane.xlu1 %5530 }
 0x7f7   : > { %6453 = vrot.lane.b32.xlu1 %v6370_v5, %s15605_s18  ;;  %v6372_v3 = vmul.f32 %v15028_v4, %v6107_v20 }
 0x7f8   : > { %v6200_v22 = vpop.f32.mrb[168].mxu0  ;;  %v15030_v11 = vpop.eup %15029 }
 0x7f9   : > { %v5516_v31 = vpop.xlane.xlu0 %5515  ;;  %v13769_v58 = vpop.f32.mrb[169].mxu0  ;;  %6455 = vrot.lane.b32.xlu0 %v6371_v33, %s15605_s18 }
 0x7fa   : > { %15035 = vrcp.f32 %v5516_v31  ;;  %v6152_v52 = vpop.f32.mrb[196].mxu1  ;;  %v6203_v40 = vpop.f32.mrb[170].mxu0 }
 0x7fb   : > { %v6373_v2 = vmul.f32 %v15030_v11, %v6152_v52  ;;  %v13763_v50 = vpop.f32.mrb[197].mxu1  ;;  %v13770_v63 = vpop.f32.mrb[171].mxu0  ;;  %6457 = vrot.lane.b32.xlu1 %v6372_v3, %s15605_s18 }
 0x7fc   : > { %v15032_v35 = vpop.eup %15031  ;;  %v6155_v54 = vpop.f32.mrb[198].mxu1 }
 0x7fd   : > { %v5519_v15 = vpop.xlane.xlu0 %5518  ;;  %v13764_v47 = vpop.f32.mrb[199].mxu1  ;;  %6459 = vrot.lane.b32.xlu0 %v6373_v2, %s15605_s18  ;;  %v6375_v17 = vmul.f32 %v15032_v35, %v6200_v22  ;;  %v22554_v35 = vld [vmem:[#allocation236_spill] sm:$0xff] }
 0x7fe   : > { %15037 = vrcp.f32 %v5519_v15  ;;  %v22555_v15 = vld [vmem:[#allocation244_spill] sm:$0xff] }
 0x7ff   : > { %v7215_v47 = vrot.slane %v22555_v15, %v22437_v8 }
 0x800   : > { %v15034_v62 = vpop.eup %15033  ;;  %v6296_v28 = vpop.f32.mrb[172].mxu0 }
 0x801   : > { %v6374_v36 = vmul.f32 %v15034_v62, %v6155_v54  ;;  %v5525_v59 = vpop.xlane.xlu0 %5524  ;;  %v13781_v27 = vpop.f32.mrb[173].mxu0  ;;  %6463 = vrot.lane.b32.xlu0 %v6375_v17, %s15605_s18  ;;  %v7206_v54 = vrot.slane %v22554_v35, %v22437_v8  ;;  %v22556_v62 = vld [vmem:[#allocation230_spill] sm:$0xff] }
 0x802   : > { %15039 = vrcp.f32 %v5525_v59  ;;  %v6248_v14 = vpop.f32.mrb[200].mxu1  ;;  %v6299_v13 = vpop.f32.mrb[174].mxu0  ;;  %v7193_v17 = vrot.slane %v22556_v62, %v22439_v25  ;;  %v22558_v59 = vld [vmem:[#allocation248_spill] sm:$0xff] }
 0x803   : > { %6461 = vrot.lane.b32.xlu1 %v6374_v36, %s15605_s18  ;;  %v13775_v16 = vpop.f32.mrb[201].mxu1  ;;  %v13782_v42 = vpop.f32.mrb[175].mxu0  ;;  %15041 = vrcp.f32 %v5531_v39  ;;  %v22557_v36 = vld [vmem:[#allocation232_spill] sm:$0xff]  ;;  %v7224_v39 = vrot.slane %v22558_v59, %v22437_v8 }
 0x804   : > { %v15036_v18 = vpop.eup %15035  ;;  %v6251_v60 = vpop.f32.mrb[202].mxu1 }
 0x805   : > { %v6376_v26 = vmul.f32 %v15036_v18, %v6203_v40  ;;  %v5522_v46 = vpop.xlane.xlu0 %5521  ;;  %v13776_v37 = vpop.f32.mrb[203].mxu1  ;;  %v22560_v18 = vld [vmem:[#allocation251_spill] sm:$0xff] }
 0x806   : > { %15043 = vrcp.f32 %v5522_v46  ;;  %v7233_v16 = vrot.slane %v22560_v18, %v22437_v8  ;;  %v22562_v37 = vld [vmem:[#allocation241_spill] sm:$0xff] }
 0x807   : > { %6465 = vrot.lane.b32.xlu1 %v6376_v26, %s15605_s18  ;;  %v22561_v26 = vld [vmem:[#allocation205_spill] sm:$0xff] }
 0x808   : > { %v15038_v20 = vpop.eup %15037 }
 0x809   : > { %v6377_v9 = vmul.f32 %v15038_v20, %v6248_v14  ;;  %v5528_v34 = vpop.xlane.xlu0 %5527  ;;  %v22559_v14 = vld [vmem:[#allocation235_spill] sm:$0xff]  ;;  %v7220_v20 = vrot.slane %v22562_v37, %v22439_v25  ;;  %v22572_v37 = vld [vmem:[#allocation238_spill] sm:$0xff] }
 0x80a   : > { %15045 = vrcp.f32 %v5528_v34  ;;  %v6344_v57 = vpop.f32.mrb[204].mxu1 }
 0x80b   : > { %6467 = vrot.lane.b32.xlu0 %v6377_v9, %s15605_s18  ;;  %v13787_v44 = vpop.f32.mrb[205].mxu1  ;;  %v22563_v9 = vld [vmem:[#allocation257_spill] sm:$0xff] }
 0x80c   : > { %v15040_v7 = vpop.eup %15039  ;;  %v6347_v1 = vpop.f32.mrb[206].mxu1  ;;  %v7242_v34 = vrot.slane %v22563_v9, %v22437_v8  ;;  %v22564_v44 = vld [vmem:[#allocation245_spill] sm:$0xff]  ;;  %v22573_v9 = vld [vmem:[#allocation250_spill] sm:$0xff] }
 0x80d   : > { %v5534_v38 = vpop.xlane.xlu0 %5533  ;;  %v6379_v5 = vmul.f32 %v15040_v7, %v6296_v28  ;;  %v13788_v55 = vpop.f32.mrb[207].mxu1  ;;  %v7202_v28 = vrot.slane %v22557_v36, %v22439_v25  ;;  %v22568_v36 = vld [vmem:[#allocation256_spill] sm:$0xff] }
 0x80e   : > { %15047 = vrcp.f32 %v5534_v38  ;;  %v15042_v4 = vpop.eup %15041  ;;  %v7251_v38 = vrot.slane %v17987_v32, %v22437_v8 }
 0x80f   : > { %6471 = vrot.lane.b32.xlu0 %v6379_v5, %s15605_s18  ;;  %v6381_v22 = vmul.f32 %v15042_v4, %v6344_v57  ;;  %v7207_v46 = vsel %vm2000_vm2, %v7206_v54, %v7202_v28  ;;  %v7225_v4 = vsel %vm2000_vm2, %v7224_v39, %v7220_v20  ;;  %v22567_v54 = vld [vmem:[#allocation258_spill] sm:$0xff]  ;;  %v7256_v28 = vrot.slane %v22568_v36, %v22439_v25 }
 0x810   : > { %v15044_v33 = vpop.eup %15043  ;;  %v7260_v15 = vrot.slane %v22567_v54, %v22437_v8  ;;  %v7269_v20 = vrot.slane %v22572_v37, %v22437_v8  ;;  %v22580_v54 = vld [vmem:[#allocation259_spill] sm:$0xff] }
 0x811   : > { %v6378_v31 = vmul.f32 %v15044_v33, %v6251_v60  ;;  %v7197_v60 = vrot.slane %v22561_v26, %v22437_v8  ;;  %v22565_v33 = vld [vmem:[#allocation255_spill] sm:$0xff] }
 0x812   : > { %v7261_v26 = vsel %vm2000_vm2, %v7260_v15, %v7256_v28  ;;  %v7310_v15 = vrot.slane %v22580_v54, %v22439_v25 }
 0x813   : > { %6475 = vrot.lane.b32.xlu0 %v6381_v22, %s15605_s18  ;;  %6469 = vrot.lane.b32.xlu1 %v6378_v31, %s15605_s18  ;;  %v7390_v58 = vpop.f32.mrb[208].mxu1  ;;  %v7198_v55 = vsel %vm2000_vm2, %v7197_v60, %v7193_v17  ;;  %v7238_v22 = vrot.slane %v22565_v33, %v22439_v25  ;;  %v22571_v60 = vld [vmem:[#allocation233_spill] sm:$0xff] }
 0x814   : > { %v15046_v3 = vpop.eup %15045  ;;  %v13865_v11 = vpop.f32.mrb[209].mxu1  ;;  %v7334_v31 = vsel %vm2137_vm3, %v7207_v46, %v7198_v55  ;;  %v7274_v46 = vrot.slane %v22571_v60, %v22439_v25  ;;  %v22582_v60 = vld [vmem:[#allocation254_spill] sm:$0xff] }
 0x815   : > { %v6380_v52 = vmul.f32 %v15046_v3, %v6299_v13  ;;  %v19266_v40 = vpop.f32.mrb[210].mxu1  ;;  %v7211_v13 = vrot.slane %v22559_v14, %v22439_v25  ;;  %v22566_v3 = vld [vmem:[#allocation249_spill] sm:$0xff]  ;;  %v22569_v14 = vld [vmem:[#allocation240_spill] sm:$0xff] }
 0x816   : > { %v13866_v2 = vpop.f32.mrb[211].mxu1  ;;  %v7247_v11 = vrot.slane %v22566_v3, %v22439_v25 }
 0x817   : > { %6473 = vrot.lane.b32.xlu1 %v6380_v52, %s15605_s18  ;;  %v7216_v7 = vsel %vm2000_vm2, %v7215_v47, %v7211_v13  ;;  %v7278_v13 = vrot.slane %v22569_v14, %v22437_v8 }
 0x818   : > { %v15048_v50 = vpop.eup %15047  ;;  %v7335_v2 = vsel %vm2139_vm4, %v7216_v7, %v7334_v31  ;;  %v22577_v31 = vld [vmem:[#allocation243_spill] sm:$0xff] }
 0x819   : > { %v6382_v63 = vmul.f32 %v15048_v50, %v6347_v1  ;;  %v7229_v1 = vrot.slane %v22564_v44, %v22439_v25  ;;  %v7243_v50 = vsel %vm2000_vm2, %v7242_v34, %v7238_v22  ;;  %v7336_v32 = vsel %vm2141_vm5, %v7225_v4, %v7335_v2  ;;  %v22574_v44 = vld [vmem:[#allocation239_spill] sm:$0xff] }
 0x81a   : > { %v7296_v34 = vrot.slane %v22573_v9, %v22437_v8  ;;  %v22576_v4 = vld [vmem:[#allocation231_spill] sm:$0xff]  ;;  %v7279_v22 = vsel %vm2000_vm2, %v7278_v13, %v7274_v46  ;;  %v7292_v3 = vrot.slane %v22577_v31, %v22439_v25  ;;  %v7323_v46 = vrot.slane %v22582_v60, %v22437_v8 }
 0x81b   : > { %6477 = vrot.lane.b32.xlu1 %v6382_v63, %s15605_s18  ;;  %v7441_v27 = vpop.f32.mrb[212].mxu1  ;;  %v7234_v52 = vsel %vm2000_vm2, %v7233_v16, %v7229_v1  ;;  %v7252_v63 = vsel %vm2000_vm2, %v7251_v38, %v7247_v11  ;;  %v22570_v16 = vld [vmem:[#allocation246_spill] sm:$0xff]  ;;  %v7283_v1 = vrot.slane %v22574_v44, %v22439_v25  ;;  %v22575_v38 = vld [vmem:[#allocation253_spill] sm:$0xff]  ;;  %v7265_v33 = vrot.slane %v22576_v4, %v22439_v25 }
 0x81c   : > { %v13871_v42 = vpop.f32.mrb[213].mxu1  ;;  %v7337_v35 = vsel %vm2143_vm6, %v7234_v52, %v7336_v32  ;;  %v22578_v11 = vld [vmem:[#allocation261_spill] sm:$0xff] }
 0x81d   : > { %v19291_v57 = vpop.f32.mrb[214].mxu1  ;;  %v7338_v62 = vsel %vm2145_vm7, %v7243_v50, %v7337_v35  ;;  %v7287_v42 = vrot.slane %v22570_v16, %v22437_v8  ;;  %v7314_v52 = vrot.slane %v22578_v11, %v22437_v8  ;;  %v22579_v50 = vld [vmem:[#allocation247_spill] sm:$0xff]  ;;  %v7270_v35 = vsel %vm2000_vm2, %v7269_v20, %v7265_v33  ;;  %v22583_v20 = vld [vmem:[#allocation260_spill] sm:$0xff] }
 0x81e   : > { %v13872_v5 = vpop.f32.mrb[215].mxu1  ;;  %v7339_v59 = vsel %vm2147_vm8, %v7252_v63, %v7338_v62  ;;  %v7301_v32 = vrot.slane %v22579_v50, %v22439_v25  ;;  %v7332_v16 = vrot.slane %v17992_v23, %v22437_v8  ;;  %v7328_v9 = vrot.slane %v22583_v20, %v22439_v25 }
 0x81f   : > { %v19331_v7 = vsel %vm2149_vm9, %v7261_v26, %v7339_v59  ;;  %v7305_v5 = vrot.slane %v22575_v38, %v22437_v8  ;;  %v7288_v2 = vsel %vm2000_vm2, %v7287_v42, %v7283_v1  ;;  %v22592_v8 = vld [vmem:[#allocation193_spill] sm:$0xff] }
 0x820   : > { %v7391_v55 = vadd.f32 %v7390_v58, %v19331_v7  ;;  %v7297_v58 = vsel %vm2000_vm2, %v7296_v34, %v7292_v3  ;;  %v7442_v59 = vadd.f32 %v7441_v27, %v19331_v7  ;;  %v22584_v34 = vld [vmem:[#allocation252_spill] sm:$0xff] }
 0x821   : > { %v7306_v36 = vsel %vm2000_vm2, %v7305_v5, %v7301_v32  ;;  %v7319_v44 = vrot.slane %v22584_v34, %v22439_v25  ;;  %v7333_v5 = vsel %vm2000_vm2, %v7332_v16, %v7328_v9 }
 0x822   : > { %v19356_v28 = vsel %vm518_vm10, -1e-09, %v7391_v55  ;;  %v19376_v23 = vsel %vm518_vm10, -1e-09, %v7442_v59 }
 0x823   : > { %v7492_v47 = vpop.f32.mrb[216].mxu1  ;;  %22581 = vst [vmem:[#allocation154_spill] sm:$0xff] %v19356_v28  ;;  %v8194_v27 = vsel %vm2949_vm11, %v19356_v28, -inf  ;;  %v7324_v55 = vsel %vm2000_vm2, %v7323_v46, %v7319_v44  ;;  %v8200_v31 = vsel %vm2949_vm11, %v19376_v23, -inf }
 0x824   : > { %v13877_v17 = vpop.f32.mrb[217].mxu1  ;;  %v7493_v38 = vadd.f32 %v7492_v47, %v19331_v7 }
 0x825   : > { %v19317_v39 = vpop.f32.mrb[218].mxu1  ;;  %v7341_v17 = vsel %vm2137_vm3, %v7279_v22, %v7270_v35 }
 0x826   : > { %v13878_v18 = vpop.f32.mrb[219].mxu1  ;;  %v7342_v13 = vsel %vm2139_vm4, %v7288_v2, %v7341_v17  ;;  %v19389_v11 = vsel %vm518_vm10, -1e-09, %v7493_v38 }
 0x827   : > { %v7315_v18 = vsel %vm2000_vm2, %v7314_v52, %v7310_v15  ;;  %v7343_v26 = vsel %vm2141_vm5, %v7297_v58, %v7342_v13  ;;  %22585 = vst [vmem:[#allocation127_spill] sm:$0xff] %v19389_v11  ;;  %v8206_v32 = vsel %vm2949_vm11, %v19389_v11, -inf }
 0x828   : > { %v7344_v37 = vsel %vm2143_vm6, %v7306_v36, %v7343_v26 }
 0x829   : > { %v7345_v1 = vsel %vm2145_vm7, %v7315_v18, %v7344_v37 }
 0x82a   : > { %v7346_v33 = vsel %vm2147_vm8, %v7324_v55, %v7345_v1 }
 0x82b   : > { %v7543_v63 = vpop.f32.mrb[220].mxu1  ;;  %v19385_v3 = vsel %vm2149_vm9, %v7333_v5, %v7346_v33 }
 0x82c   : > { %v13883_v62 = vpop.f32.mrb[221].mxu1  ;;  %v7544_v47 = vadd.f32 %v7543_v63, %v19331_v7  ;;  %v7394_v2 = vadd.f32 %v19266_v40, %v19385_v3  ;;  %v7445_v63 = vadd.f32 %v19291_v57, %v19385_v3  ;;  %v7496_v57 = vadd.f32 %v19317_v39, %v19385_v3 }
 0x82d   : > { %v7546_v14 = vpop.f32.mrb[222].mxu1 }
 0x82e   : > { %v13884_v42 = vpop.f32.mrb[223].mxu1  ;;  %v19398_v35 = vsel %vm518_vm10, -1e-09, %v7544_v47  ;;  %v19403_v54 = vsel %vm519_vm12, -1e-09, %v7394_v2  ;;  %v7547_v37 = vadd.f32 %v7546_v14, %v19385_v3  ;;  %v19457_v47 = vpop.permute.xlu1 %8765 }
 0x82f   : > { %v8212_v62 = vsel %vm2949_vm11, %v19398_v35, -inf  ;;  %v8197_v13 = vsel %vm2949_vm11, %v19403_v54, -inf  ;;  %v19418_v18 = vsel %vm519_vm12, -1e-09, %v7445_v63  ;;  %v19432_v46 = vsel %vm519_vm12, -1e-09, %v7496_v57 }
 0x830   : > { %v8203_v60 = vsel %vm2949_vm11, %v19418_v18, -inf  ;;  %22587 = vst [vmem:[#allocation131_spill] sm:$0xff] %v19432_v46  ;;  %v8209_v34 = vsel %vm2949_vm11, %v19432_v46, -inf  ;;  %v19441_v44 = vsel %vm519_vm12, -1e-09, %v7547_v37 }
 0x831   : > { %v8215_v14 = vsel %vm2949_vm11, %v19441_v44, -inf }
 0x832   : > { %8195 = vmax.xlane.f32.xlu0 %v8194_v27 }
 0x833   : > { %v7594_v4 = vpop.f32.mrb[224].mxu1 }
 0x834   : > { %v13889_v22 = vpop.f32.mrb[225].mxu1  ;;  %v7595_v58 = vadd.f32 %v7594_v4, %v19331_v7 }
 0x835   : > { %v7597_v52 = vpop.f32.mrb[226].mxu1 }
 0x836   : > { %8201 = vmax.xlane.f32.xlu0 %v8200_v31  ;;  %v13890_v50 = vpop.f32.mrb[227].mxu1  ;;  %v19411_v17 = vsel %vm518_vm10, -1e-09, %v7595_v58  ;;  %v7598_v1 = vadd.f32 %v7597_v52, %v19385_v3 }
 0x837   : > { %22586 = vst [vmem:[#allocation159_spill] sm:$0xff] %v19411_v17  ;;  %v8218_v42 = vsel %vm2949_vm11, %v19411_v17, -inf }
 0x838   : > { %v19448_v5 = vsel %vm519_vm12, -1e-09, %v7598_v1 }
 0x839   : > { %22588 = vst [vmem:[#allocation164_spill] sm:$0xff] %v19448_v5  ;;  %v8221_v31 = vsel %vm2949_vm11, %v19448_v5, -inf  ;;  %v22600_v5 = vld [vmem:[#allocation194_spill] sm:$0xff] }
 0x83a   : > { %8207 = vmax.xlane.f32.xlu0 %v8206_v32 }
 0x83b   : > { %v7645_v15 = vpop.f32.mrb[228].mxu1 }
 0x83c   : > { %v13895_v40 = vpop.f32.mrb[229].mxu1  ;;  %v7646_v36 = vadd.f32 %v7645_v15, %v19331_v7 }
 0x83d   : > { %v7648_v59 = vpop.f32.mrb[230].mxu1  ;;  %v6416_v58 = vpop.permute.xlu1 %6415 }
 0x83e   : > { %8213 = vmax.xlane.f32.xlu0 %v8212_v62  ;;  %v13896_v16 = vpop.f32.mrb[231].mxu1  ;;  %v19426_v26 = vsel %vm518_vm10, -1e-09, %v7646_v36  ;;  %v7649_v55 = vadd.f32 %v7648_v59, %v19385_v3 }
 0x83f   : > { %8198 = vmax.xlane.f32.xlu1 %v8197_v13  ;;  %v8224_v9 = vsel %vm2949_vm11, %v19426_v26, -inf  ;;  %v6418_v63 = vpop.permute.xlu0 %6417  ;;  %v6511_v16 = vmul.f32 %v18302_v45, %v6416_v58 }
 0x840   : > { %v19461_v52 = vsel %vm519_vm12, -1e-09, %v7649_v55  ;;  %v6512_v36 = vmul.f32 %v18308_v51, %v6418_v63 }
 0x841   : > { %v8227_v32 = vsel %vm2949_vm11, %v19461_v52, -inf }
 0x842   : > { %8219 = vmax.xlane.f32.xlu0 %v8218_v42  ;;  %v6420_v42 = vpop.permute.xlu1 %6419 }
 0x843   : > { %8204 = vmax.xlane.f32.xlu1 %v8203_v60  ;;  %v7696_v39 = vpop.f32.mrb[232].mxu1  ;;  %v6543_v60 = vpack.c.bf16 %v6512_v36, %v6511_v16  ;;  %v14594_v36 = vld [vmem:[%s21757_s8 + $0x18] sm:$0xff]  }
 0x844   : > { %v13901_v20 = vpop.f32.mrb[233].mxu1 }
 0x845   : > { %v7699_v27 = vpop.f32.mrb[234].mxu1 }
 0x846   : > { %8225 = vmax.xlane.f32.xlu0 %v8224_v9  ;;  %v13902_v38 = vpop.f32.mrb[235].mxu1  ;;  %v7700_v2 = vadd.f32 %v7699_v27, %v19385_v3  ;;  %v6422_v27 = vpop.permute.xlu1 %6421 }
 0x847   : > { %8210 = vmax.xlane.f32.xlu1 %v8209_v34  ;;  %v6514_v1 = vmul.f32 %v18316_v21, %v6422_v27  ;;  %v6513_v38 = vmul.f32 %v18312_v30, %v6420_v42 }
 0x848   : > { %v19468_v15 = vsel %vm519_vm12, -1e-09, %v7700_v2 }
 0x849   : > { %22589 = vst [vmem:[#allocation136_spill] sm:$0xff] %v19468_v15  ;;  %v8233_v13 = vsel %vm2949_vm11, %v19468_v15, -inf }
 0x84b   : > { %8216 = vmax.xlane.f32.xlu1 %v8215_v14  ;;  %v19451_v4 = vpop.f32.mrb[236].mxu1 }
 0x84c   : > { %v13907_v33 = vpop.f32.mrb[237].mxu1 }
 0x84d   : > { %v19453_v22 = vpop.f32.mrb[238].mxu1  ;;  %v6544_v33 = vpack.c.bf16 %v6514_v1, %v6513_v38 }
 0x84e   : > { %v13908_v50 = vpop.f32.mrb[239].mxu1 }
 0x84f   : > { %8222 = vmax.xlane.f32.xlu1 %v8221_v31 }
 0x853   : > { %8228 = vmax.xlane.f32.xlu1 %v8227_v32  ;;  %v19470_v40 = vpop.f32.mrb[240].mxu1 }
 0x854   : > { %v13913_v62 = vpop.f32.mrb[241].mxu1 }
 0x855   : > { %v19473_v59 = vpop.f32.mrb[242].mxu1  ;;  %v14593_v62 = vld [vmem:[%s21757_s8 + $0x10] sm:$0xff]  }
 0x856   : > { %v13914_v57 = vpop.f32.mrb[243].mxu1  ;;  %13789 = vmatprep.subr.bf16.mxu0 %v14593_v62 }
 0x857   : > { %8234 = vmax.xlane.f32.xlu1 %v8233_v13  ;;  %v6424_v13 = vpop.permute.xlu0 %6423  ;;  %v7697_v57 = vadd.f32 %v7696_v39, %v19331_v7  ;;  %13790 = vmatpush3.bf16.msra.mxu0 %v14593_v62  ;;  %v7751_v62 = vadd.f32 %v19453_v22, %v19385_v3 }
 0x858   : > { %13791 = vmatprep.subr.bf16.mxu0 %v14594_v36 }
 0x85b   : > { %v19478_v37 = vpop.f32.mrb[244].mxu1  ;;  %v6428_v27 = vpop.permute.xlu0 %6427  ;;  %13792 = vmatpush3.bf16.msra.mxu0 %v14594_v36 }
 0x85c   : > { %6579 = vrot.lane.b32.xlu0 %v6543_v60, %s15603_s30  ;;  %v13919_v20 = vpop.f32.mrb[245].mxu1  ;;  %v6517_v21 = vmul.f32 %v22592_v8, %v6428_v27  ;;  %v7799_v8 = vadd.f32 %v19470_v40, %v19331_v7 }
 0x85d   : > { %v19481_v9 = vpop.f32.mrb[246].mxu1  ;;  %v19507_v20 = vsel %vm518_vm10, -1e-09, %v7697_v57 }
 0x85e   : > { %v13920_v34 = vpop.f32.mrb[247].mxu1  ;;  %22590 = vst [vmem:[#allocation141_spill] sm:$0xff] %v19507_v20  ;;  %v8230_v1 = vsel %vm2949_vm11, %v19507_v20, -inf }
 0x85f   : > { %v6432_v39 = vpop.permute.xlu0 %6431 }
 0x863   : > { %v19485_v14 = vpop.f32.mrb[248].mxu1 }
 0x864   : > { %v13925_v55 = vpop.f32.mrb[249].mxu1 }
 0x865   : > { %v19487_v31 = vpop.f32.mrb[250].mxu1 }
 0x866   : > { %v13926_v2 = vpop.f32.mrb[251].mxu1 }
 0x868   : > { %6581 = vrot.lane.b32.xlu1 %v6544_v33, %s15603_s30 }
 0x86b   : > { %v19490_v50 = vpop.f32.mrb[252].mxu1 }
 0x86c   : > { %v13931_v32 = vpop.f32.mrb[253].mxu1 }
 0x86d   : > { %v19492_v58 = vpop.f32.mrb[254].mxu1  ;;  %v6426_v32 = vpop.permute.xlu1 %6425 }
 0x86e   : > { %v13932_v63 = vpop.f32.mrb[255].mxu1 }
 0x86f   : > { %v6436_v63 = vpop.permute.xlu0 %6435 }
 0x871   : > { %v6430_v36 = vpop.permute.xlu1 %6429 }
 0x873   : > { %v19501_v16 = vpop.f32.mrb[0].mxu1 }
 0x874   : > { %v13937_v42 = vpop.f32.mrb[1].mxu1 }
 0x875   : > { %v19503_v60 = vpop.f32.mrb[2].mxu1  ;;  %v6434_v41 = vpop.permute.xlu1 %6433 }
 0x876   : > { %v13938_v34 = vpop.f32.mrb[3].mxu1 }
 0x879   : > { %v6438_v51 = vpop.permute.xlu1 %6437 }
 0x87b   : > { %8231 = vmax.xlane.f32.xlu0 %v8230_v1  ;;  %v19511_v38 = vpop.f32.mrb[4].mxu1  ;;  %v19523_v1 = vsel %vm519_vm12, -1e-09, %v7751_v62 }
 0x87c   : > { %v13943_v55 = vpop.f32.mrb[5].mxu1  ;;  %22591 = vst [vmem:[#allocation148_spill] sm:$0xff] %v19523_v1  ;;  %v8239_v24 = vsel %vm2949_vm11, %v19523_v1, -inf }
 0x87d   : > { %v19513_v33 = vpop.f32.mrb[6].mxu1  ;;  %v19525_v55 = vpop.permute.xlu0 %6439 }
 0x87e   : > { %v13944_v2 = vpop.f32.mrb[7].mxu1  ;;  %v6442_v25 = vpop.permute.xlu1 %6441 }
 0x87f   : > { %v6516_v2 = vmul.f32 %v18322_v10, %v6426_v32  ;;  %v6518_v10 = vmul.f32 %v18328_v29, %v6430_v36 }
 0x881   : > { %v19533_v6 = vpop.permute.xlu0 %6443 }
 0x883   : > { %v19517_v57 = vpop.f32.mrb[8].mxu1 }
 0x884   : > { %v13949_v42 = vpop.f32.mrb[9].mxu1 }
 0x885   : > { %v19519_v34 = vpop.f32.mrb[10].mxu1  ;;  %v6515_v42 = vmul.f32 %v18320_v53, %v6424_v13  ;;  %v19538_v32 = vpop.permute.xlu0 %6447  ;;  %v6546_v13 = vpack.c.bf16 %v6518_v10, %v6517_v21  ;;  %v22593_v53 = vld [vmem:[#allocation183_spill] sm:$0xff]  ;;  %v7748_v21 = vadd.f32 %v19451_v4, %v19331_v7 }
 0x886   : > { %v13950_v12 = vpop.f32.mrb[11].mxu1  ;;  %v6520_v30 = vmul.f32 %v22593_v53, %v6434_v41 }
 0x887   : > { %v6545_v62 = vpack.c.bf16 %v6516_v2, %v6515_v42  ;;  %v6519_v2 = vmul.f32 %v22594_v61, %v6432_v39  ;;  %v19564_v27 = vsel %vm518_vm10, -1e-09, %v7748_v21 }
 0x888   : > { %22595 = vst [vmem:[#allocation168_spill] sm:$0xff] %v19564_v27 }
 0x88b   : > { %v19530_v22 = vpop.f32.mrb[12].mxu1 }
 0x88c   : > { %8240 = vmax.xlane.f32.xlu1 %v8239_v24  ;;  %v13955_v12 = vpop.f32.mrb[13].mxu1  ;;  %v19542_v24 = vpop.permute.xlu0 %6451 }
 0x88d   : > { %v19535_v0 = vpop.f32.mrb[14].mxu1  ;;  %v19545_v12 = vpop.permute.xlu1 %6445 }
 0x88e   : > { %v13956_v45 = vpop.f32.mrb[15].mxu1 }
 0x88f   : > { %v6547_v45 = vpack.c.bf16 %v6520_v30, %v6519_v2  ;;  %v7802_v30 = vadd.f32 %v19473_v59, %v19385_v3  ;;  %v8236_v2 = vsel %vm2949_vm11, %v19564_v27, -inf  ;;  %v6521_v27 = vmul.f32 %v22600_v5, %v6436_v63  ;;  %v22603_v5 = vld [vmem:[#allocation182_spill] sm:$0xff] }
 0x890   : > { %v19549_v42 = vpop.permute.xlu0 %6455 }
 0x891   : > { %6583 = vrot.lane.b32.xlu0 %v6545_v62, %s15603_s30  ;;  %v19552_v36 = vpop.permute.xlu1 %6449  ;;  %v19576_v4 = vsel %vm519_vm12, -1e-09, %v7802_v30 }
 0x892   : > { %22596 = vst [vmem:[#allocation144_spill] sm:$0xff] %v19576_v4  ;;  %v8245_v21 = vsel %vm2949_vm11, %v19576_v4, -inf  ;;  %v22599_v4 = vld [vmem:[#allocation167_spill] sm:$0xff] }
 0x893   : > { %v6522_v1 = vmul.f32 %v22599_v4, %v6438_v51  ;;  %v22602_v51 = vld [vmem:[#allocation195_spill] sm:$0xff] }
 0x894   : > { %v19554_v62 = vpop.permute.xlu0 %6459  ;;  %v6524_v4 = vmul.f32 %v22602_v51, %v6442_v25 }
 0x895   : > { %v19558_v10 = vpop.permute.xlu1 %6453  ;;  %v6548_v40 = vpack.c.bf16 %v6522_v1, %v6521_v27  ;;  %v6523_v1 = vmul.f32 %v22603_v5, %v19525_v55  ;;  %v22617_v5 = vld [vmem:[#allocation110_spill] sm:$0xff] }
 0x898   : > { %v19560_v41 = vpop.permute.xlu0 %6463 }
 0x899   : > { %v19568_v39 = vpop.permute.xlu1 %6457 }
 0x89d   : > { %6585 = vrot.lane.b32.xlu1 %v6546_v13, %s15603_s30  ;;  %v19570_v13 = vpop.permute.xlu0 %6467 }
 0x8a1   : > { %6587 = vrot.lane.b32.xlu1 %v6547_v45, %s15603_s30  ;;  %v19578_v45 = vpop.permute.xlu1 %6461  ;;  %v19582_v61 = vpop.permute.xlu0 %6471 }
 0x8a5   : > { %v19584_v59 = vpop.permute.xlu1 %6465  ;;  %v19586_v53 = vpop.permute.xlu0 %6475 }
 0x8a6   : > { %v6541_v51 = vmul.f32 %v22617_v5, %v19586_v53 }
 0x8a9   : > { %v19588_v29 = vpop.permute.xlu1 %6469 }
 0x8ad   : > { %v19598_v56 = vpop.permute.xlu1 %6473 }
 0x8b0   : > { %8237 = vmax.xlane.f32.xlu0 %v8236_v2  ;;  %v19596_v2 = vsel %vm518_vm10, -1e-09, %v7799_v8 }
 0x8b1   : > { %22598 = vst [vmem:[#allocation153_spill] sm:$0xff] %v19596_v2  ;;  %v8242_v15 = vsel %vm2949_vm11, %v19596_v2, -inf  ;;  %v19606_v46 = vpop.permute.xlu1 %6477 }
 0x8b4   : > { %8246 = vmax.xlane.f32.xlu0 %v8245_v21 }
 0x8bf   : > { %v19592_v30 = vpop.xlane.xlu0 %8195 }
 0x8c0   : > { %22597 = vst [vmem:[#allocation158_spill] sm:$0xff] %v19592_v30 }
 0x8c3   : > { %v8202_v21 = vpop.xlane.xlu0 %8201 }
 0x8c4   : > { %v8292_v17 = vsub.f32 %v19376_v23, %v8202_v21 }
 0x8c5   : > { %8243 = vmax.xlane.f32.xlu1 %v8242_v15 }
 0x8c6   : > { %v8326_v2 = vmul.f32 1.442695, %v8292_v17 }
 0x8c7   : > { %v19604_v20 = vpop.xlane.xlu0 %8207 }
 0x8c8   : > { %22601 = vst [vmem:[#allocation161_spill] sm:$0xff] %v19604_v20  ;;  %v6549_v20 = vpack.c.bf16 %v6524_v4, %v6523_v1  ;;  %15049 = vpow2.f32 %v8326_v2  ;;  %v7850_v1 = vadd.f32 %v19478_v37, %v19331_v7 }
 0x8ca   : > { %6589 = vrot.lane.b32.xlu0 %v6548_v40, %s15603_s30 }
 0x8cb   : > { %v8214_v8 = vpop.xlane.xlu0 %8213 }
 0x8cc   : > { %v19610_v28 = vpop.xlane.xlu1 %8198  ;;  %v8296_v40 = vsub.f32 %v19398_v35, %v8214_v8 }
 0x8ce   : > { %v8334_v25 = vmul.f32 1.442695, %v8296_v40 }
 0x8cf   : > { %v19612_v30 = vpop.xlane.xlu0 %8219 }
 0x8d0   : > { %v8205_v15 = vpop.xlane.xlu1 %8204 }
 0x8d1   : > { %v8293_v63 = vsub.f32 %v19418_v18, %v8205_v15 }
 0x8d2   : > { %v19627_v35 = vpop.eup %15049 }
 0x8d3   : > { %v8328_v27 = vmul.f32 1.442695, %v8293_v63  ;;  %v8226_v11 = vpop.xlane.xlu0 %8225 }
 0x8d4   : > { %v19619_v23 = vpop.xlane.xlu1 %8210  ;;  %v8300_v55 = vsub.f32 %v19426_v26, %v8226_v11 }
 0x8d5   : > { %15051 = vpow2.f32 %v8328_v27  ;;  %v19645_v27 = vsel %vm518_vm10, -1e-09, %v7850_v1 }
 0x8d6   : > { %6591 = vrot.lane.b32.xlu1 %v6549_v20, %s15603_s30  ;;  %15053 = vpow2.f32 %v8334_v25  ;;  %v8342_v8 = vmul.f32 1.442695, %v8300_v55  ;;  %v22604_v55 = vld [vmem:[#allocation87_spill] sm:$0xff] }
 0x8d7   : > { %v6580_v21 = vpop.permute.xlu0 %6579 }
 0x8d8   : > { %v8217_v17 = vpop.xlane.xlu1 %8216  ;;  %13793 = vmatprep.mubr.msk.bf16.mxu0 %vm2160_vm1, %v6580_v21  ;;  %v8248_v21 = vsel %vm2949_vm11, %v19645_v27, -inf }
 0x8d9   : > { %v8297_v18 = vsub.f32 %v19441_v44, %v8217_v17 }
 0x8db   : > { %v8336_v15 = vmul.f32 1.442695, %v8297_v18 }
 0x8dc   : > { %v19625_v4 = vpop.xlane.xlu1 %8222 }
 0x8dd   : > { %15055 = vpow2.f32 %v8336_v15  ;;  %v7853_v15 = vadd.f32 %v19481_v9, %v19385_v3 }
 0x8de   : > { %15057 = vpow2.f32 %v8342_v8 }
 0x8df   : > { %v19629_v2 = vpop.eup %15051 }
 0x8e0   : > { %v8515_v20 = vpack.c.bf16 %v19629_v2, %v19627_v35  ;;  %v8229_v63 = vpop.xlane.xlu1 %8228  ;;  %v19647_v37 = vpop.eup %15053 }
 0x8e1   : > { %v8301_v44 = vsub.f32 %v19461_v52, %v8229_v63  ;;  %v22605_v63 = vld [vmem:[#allocation214_spill] sm:$0xff] }
 0x8e2   : > { %13966 = vmatmul.mubr.msk.bf16.vlgmr.msra.gmra.mrb[16].mxu1 %vm2949_vm11, %v8515_v20  ;;  %v6526_v20 = vmul.f32 %v22604_v55, %v19545_v12  ;;  %v6525_v1 = vmul.f32 %v22605_v63, %v19533_v6  ;;  %v7904_v6 = vadd.f32 %v19487_v31, %v19385_v3 }
 0x8e3   : > { %v8344_v11 = vmul.f32 1.442695, %v8301_v44  ;;  %13976 = vmatpush3.bf16.msra.mxu1 %v19256_v43  ;;  %13977 = vmatprep.mubr.msk.bf16.mxu1 %vm15602_vm0, %v22333_v48  ;;  %v22606_v44 = vld [vmem:[#allocation96_spill] sm:$0xff] }
 0x8e4   : > { %v19640_v26 = vpop.xlane.xlu1 %8234  ;;  %13987 = vmatprep.subr.bf16.mxu1 %v22333_v48  ;;  %v6550_v9 = vpack.c.bf16 %v6526_v20, %v6525_v1  ;;  %v19697_v20 = vsel %vm519_vm12, -1e-09, %v7904_v6  ;;  %v7901_v1 = vadd.f32 %v19485_v14, %v19331_v7 }
 0x8e5   : > { %15059 = vpow2.f32 %v8344_v11  ;;  %v6528_v11 = vmul.f32 %v22606_v44, %v19552_v36 }
 0x8e6   : > { %v19707_v31 = vsel %vm518_vm10, -1e-09, %v7901_v1 }
 0x8e7   : > { %v19649_v52 = vpop.eup %15055 }
 0x8e8   : > { %v8517_v43 = vpack.c.bf16 %v19649_v52, %v19647_v37  ;;  %v6582_v40 = vpop.permute.xlu1 %6581  ;;  %v19661_v25 = vpop.eup %15057 }
 0x8e9   : > { %8249 = vmax.xlane.f32.xlu0 %v8248_v21  ;;  %13794 = vmatmul.mubr.msk.bf16.vlgmr.msra.gmra.mrb[176].mxu0 %vm2160_vm1, %v6582_v40 }
 0x8ea   : > { %13978 = vmatmul.mubr.msk.bf16.vlgmr.msra.gmra.mrb[20].mxu1 %vm2949_vm11, %v8517_v43  ;;  %v22607_v43 = vld [vmem:[#allocation90_spill] sm:$0xff] }
 0x8eb   : > { %13988 = vmatpush3.bf16.msra.mxu1 %v19457_v47  ;;  %13989 = vmatprep.mubr.msk.bf16.mxu1 %vm15602_vm0, %v22333_v48  ;;  %v19674_v47 = vsel %vm519_vm12, -1e-09, %v7853_v15  ;;  %v6527_v40 = vmul.f32 %v22607_v43, %v19538_v32  ;;  %v8257_v32 = vsel %vm2949_vm11, %v19697_v20, -inf  ;;  %v22616_v43 = vld [vmem:[#allocation142_spill] sm:$0xff] }
 0x8ec   : > { %13999 = vmatprep.subr.bf16.mxu1 %v22333_v48  ;;  %v8251_v8 = vsel %vm2949_vm11, %v19674_v47, -inf }
 0x8ef   : > { %v19663_v17 = vpop.eup %15059 }
 0x8f0   : > { %v8519_v18 = vpack.c.bf16 %v19663_v17, %v19661_v25 }
 0x8f2   : > { %13990 = vmatmul.mubr.msk.bf16.vlgmr.msra.gmra.mrb[24].mxu1 %vm2949_vm11, %v8519_v18  ;;  %v6551_v18 = vpack.c.bf16 %v6528_v11, %v6527_v40  ;;  %v8254_v40 = vsel %vm2949_vm11, %v19707_v31, -inf }
 0x8f3   : > { %14001 = vmatprep.mubr.msk.bf16.mxu1 %vm15602_vm0, %v22333_v48 }
 0x8fa   : > { %8252 = vmax.xlane.f32.xlu1 %v8251_v8 }
 0x8ff   : > { %6593 = vrot.lane.b32.xlu0 %v6550_v9, %s15603_s30  ;;  %v22608_v9 = vld [vmem:[#allocation100_spill] sm:$0xff] }
 0x900   : > { %v6530_v11 = vmul.f32 %v22608_v9, %v19558_v10 }
 0x908   : > { %v19687_v21 = vpop.xlane.xlu0 %8231 }
 0x90b   : > { %6595 = vrot.lane.b32.xlu1 %v6551_v18, %s15603_s30  ;;  %v22609_v18 = vld [vmem:[#allocation98_spill] sm:$0xff] }
 0x90c   : > { %v6584_v12 = vpop.permute.xlu0 %6583 }
 0x90d   : > { %13797 = vmatprep.mubr.msk.bf16.mxu0 %vm2160_vm1, %v6584_v12  ;;  %v6529_v12 = vmul.f32 %v22609_v18, %v19542_v24  ;;  %v7952_v24 = vadd.f32 %v19490_v50, %v19331_v7  ;;  %v22612_v50 = vld [vmem:[#allocation121_spill] sm:$0xff] }
 0x90f   : > { %v6552_v6 = vpack.c.bf16 %v6530_v11, %v6529_v12  ;;  %v19730_v11 = vsel %vm518_vm10, -1e-09, %v7952_v24 }
 0x919   : > { %v19693_v15 = vpop.xlane.xlu1 %8240 }
 0x91d   : > { %v6586_v36 = vpop.permute.xlu1 %6585 }
 0x91e   : > { %8258 = vmax.xlane.f32.xlu0 %v8257_v32  ;;  %13798 = vmatmul.mubr.msk.bf16.gmra.mrb[180].mxu0 %vm2160_vm1, %v6586_v36  ;;  %v22610_v36 = vld [vmem:[#allocation109_spill] sm:$0xff]  ;;  %v22611_v32 = vld [vmem:[#allocation106_spill] sm:$0xff] }
 0x91f   : > { %v6532_v14 = vmul.f32 %v22610_v36, %v19568_v39 }
 0x921   : > { %v6588_v8 = vpop.permute.xlu1 %6587 }
 0x922   : > { %13801 = vmatprep.mubr.msk.bf16.mxu0 %vm2160_vm1, %v6588_v8  ;;  %v6531_v8 = vmul.f32 %v22611_v32, %v19549_v42  ;;  %v8260_v42 = vsel %vm2949_vm11, %v19730_v11, -inf }
 0x924   : > { %v6553_v44 = vpack.c.bf16 %v6532_v14, %v6531_v8  ;;  %v6534_v14 = vmul.f32 %v22612_v50, %v19578_v45  ;;  %v6542_v45 = vmul.f32 %v22616_v43, %v19606_v46  ;;  %v22621_v46 = vld [vmem:[#allocation125_spill] sm:$0xff]  ;;  %v22633_v43 = vld [vmem:[#allocation127_spill] sm:$0xff] }
 0x925   : > { %v22640_v50 = vld [vmem:[#allocation91_spill] sm:$0xff] }
 0x92f   : > { %8255 = vmax.xlane.f32.xlu1 %v8254_v40 }
 0x934   : > { %6597 = vrot.lane.b32.xlu0 %v6552_v6, %s15603_s30 }
 0x93d   : > { %v19720_v1 = vpop.xlane.xlu0 %8237 }
 0x940   : > { %6599 = vrot.lane.b32.xlu1 %v6553_v44, %s15603_s30  ;;  %v7955_v44 = vadd.f32 %v19492_v58, %v19385_v3  ;;  %v22615_v58 = vld [vmem:[#allocation170_spill] sm:$0xff] }
 0x941   : > { %v19723_v10 = vpop.xlane.xlu0 %8246  ;;  %v6537_v36 = vmul.f32 %v22615_v58, %v19570_v13  ;;  %v22635_v58 = vld [vmem:[#allocation200_spill] sm:$0xff] }
 0x942   : > { %v19741_v6 = vsel %vm519_vm12, -1e-09, %v7955_v44 }
 0x943   : > { %v8263_v8 = vsel %vm2949_vm11, %v19741_v6, -inf }
 0x945   : > { %v6590_v40 = vpop.permute.xlu0 %6589 }
 0x946   : > { %13802 = vmatmul.mubr.msk.bf16.gmra.mrb[184].mxu0 %vm2160_vm1, %v6590_v40  ;;  %v22613_v40 = vld [vmem:[#allocation118_spill] sm:$0xff] }
 0x947   : > { %v6533_v24 = vmul.f32 %v22613_v40, %v19554_v62  ;;  %v22618_v62 = vld [vmem:[#allocation155_spill] sm:$0xff]  ;;  %v22638_v40 = vld [vmem:[#allocation154_spill] sm:$0xff] }
 0x952   : > { %v19732_v39 = vpop.xlane.xlu1 %8243 }
 0x953   : > { %8261 = vmax.xlane.f32.xlu0 %v8260_v42  ;;  %v6554_v42 = vpack.c.bf16 %v6534_v14, %v6533_v24  ;;  %v6536_v14 = vmul.f32 %v22618_v62, %v19584_v59 }
 0x956   : > { %v6592_v12 = vpop.permute.xlu1 %6591 }
 0x957   : > { %13805 = vmatprep.mubr.msk.bf16.mxu0 %vm2160_vm1, %v6592_v12  ;;  %v22614_v12 = vld [vmem:[#allocation116_spill] sm:$0xff] }
 0x958   : > { %v6538_v32 = vmul.f32 %v22614_v12, %v19588_v29  ;;  %v22619_v29 = vld [vmem:[#allocation140_spill] sm:$0xff] }
 0x959   : > { %v6535_v24 = vmul.f32 %v22619_v29, %v19560_v41  ;;  %v14595_v41 = vld [vmem:[%s21757_s8] sm:$0xff]  }
 0x95a   : > { %v6556_v44 = vpack.c.bf16 %v6538_v32, %v6537_v36  ;;  %v22620_v36 = vld [vmem:[#allocation130_spill] sm:$0xff]  ;;  %13825 = vmatprep.subr.bf16.mxu0 %v14595_v41 }
 0x95b   : > { %v6555_v13 = vpack.c.bf16 %v6536_v14, %v6535_v24  ;;  %v6540_v32 = vmul.f32 %v22620_v36, %v19598_v56  ;;  %v14596_v56 = vld [vmem:[%s21757_s8 + $0x8] sm:$0xff]   ;;  %13826 = vmatpush3.bf16.msra.mxu0 %v14595_v41 }
 0x95c   : > { %13827 = vmatprep.subr.bf16.mxu0 %v14596_v56 }
 0x95f   : > { %13828 = vmatpush3.bf16.msra.mxu0 %v14596_v56 }
 0x960   : > { %13957 = vmatprep.subr.bf16.mxu0 %v22333_v48 }
 0x964   : > { %8264 = vmax.xlane.f32.xlu1 %v8263_v8  ;;  %v6558_v8 = vpack.c.bf16 %v6542_v45, %v6541_v51  ;;  %v8006_v51 = vadd.f32 %v19503_v60, %v19385_v3 }
 0x966   : > { %v19786_v14 = vsel %vm519_vm12, -1e-09, %v8006_v51 }
 0x967   : > { %v8269_v24 = vsel %vm2949_vm11, %v19786_v14, -inf }
 0x969   : > { %6601 = vrot.lane.b32.xlu0 %v6554_v42, %s15603_s30  ;;  %v6539_v42 = vmul.f32 %v22621_v46, %v19582_v61 }
 0x96d   : > { %6605 = vrot.lane.b32.xlu0 %v6556_v44, %s15603_s30  ;;  %v6557_v44 = vpack.c.bf16 %v6540_v32, %v6539_v42  ;;  %v8003_v32 = vadd.f32 %v19501_v16, %v19331_v7  ;;  %v8057_v42 = vadd.f32 %v19513_v33, %v19385_v3  ;;  %v22622_v16 = vld [vmem:[#allocation117_spill] sm:$0xff]  ;;  %v22623_v33 = vld [vmem:[#allocation122_spill] sm:$0xff] }
 0x971   : > { %6609 = vrot.lane.b32.xlu0 %v6558_v8, %s15603_s30  ;;  %v8054_v8 = vadd.f32 %v19511_v38, %v19331_v7  ;;  %v19803_v38 = vsel %vm518_vm10, -1e-09, %v8003_v32 }
 0x975   : > { %6603 = vrot.lane.b32.xlu1 %v6555_v13, %s15603_s30  ;;  %v19795_v13 = vsel %vm518_vm10, -1e-09, %v8054_v8 }
 0x976   : > { %v19769_v53 = vpop.xlane.xlu0 %8249  ;;  %v8272_v60 = vsel %vm2949_vm11, %v19795_v13, -inf }
 0x979   : > { %6607 = vrot.lane.b32.xlu1 %v6557_v44, %s15603_s30  ;;  %v8266_v44 = vsel %vm2949_vm11, %v19803_v38, -inf }
 0x97a   : > { %v6594_v59 = vpop.permute.xlu0 %6593 }
 0x97b   : > { %13806 = vmatmul.mubr.msk.bf16.gmra.mrb[188].mxu0 %vm2160_vm1, %v6594_v59  ;;  %v19811_v59 = vsel %vm519_vm12, -1e-09, %v8057_v42 }
 0x97c   : > { %v8275_v41 = vsel %vm2949_vm11, %v19811_v59, -inf }
 0x987   : > { %v19779_v61 = vpop.xlane.xlu1 %8252 }
 0x98b   : > { %v6596_v45 = vpop.permute.xlu1 %6595 }
 0x98c   : > { %13809 = vmatprep.mubr.msk.bf16.mxu0 %vm2160_vm1, %v6596_v45 }
 0x990   : > { %8270 = vmax.xlane.f32.xlu0 %v8269_v24 }
 0x994   : > { %8273 = vmax.xlane.f32.xlu0 %v8272_v60 }
 0x99d   : > { %8267 = vmax.xlane.f32.xlu1 %v8266_v44 }
 0x9a1   : > { %8276 = vmax.xlane.f32.xlu1 %v8275_v41 }
 0x9aa   : > { %8812 = vrot.lane.b32.xlu0 %v22622_v16, %s15604_s24 }
 0x9ab   : > { %v19817_v56 = vpop.xlane.xlu0 %8258 }
 0x9af   : > { %v6598_v51 = vpop.permute.xlu0 %6597 }
 0x9b0   : > { %13810 = vmatmul.mubr.msk.bf16.gmra.mrb[192].mxu0 %vm2160_vm1, %v6598_v51  ;;  %v8108_v51 = vadd.f32 %v19519_v34, %v19385_v3 }
 0x9b2   : > { %8859 = vrot.lane.b32.xlu1 %v22623_v33, %s15604_s24 }
 0x9b5   : > { %v19822_v45 = vpop.f32.mrb[16].mxu1 }
 0x9b6   : > { %v13967_v8 = vpop.f32.mrb[17].mxu1 }
 0x9b7   : > { %v19824_v24 = vpop.f32.mrb[18].mxu1  ;;  %v19837_v8 = vsel %vm519_vm12, -1e-09, %v8108_v51 }
 0x9b8   : > { %v13968_v60 = vpop.f32.mrb[19].mxu1 }
 0x9b9   : > { %v8156_v60 = vadd.f32 %v19530_v22, %v19331_v7  ;;  %v8105_v22 = vadd.f32 %v19517_v57, %v19331_v7  ;;  %v22624_v57 = vld [vmem:[#allocation128_spill] sm:$0xff] }
 0x9bb   : > { %v19849_v34 = vsel %vm518_vm10, -1e-09, %v8156_v60 }
 0x9bc   : > { %v19826_v32 = vpop.xlane.xlu1 %8255 }
 0x9bd   : > { %v19828_v42 = vpop.f32.mrb[20].mxu1 }
 0x9be   : > { %v13979_v44 = vpop.f32.mrb[21].mxu1 }
 0x9bf   : > { %v19830_v41 = vpop.f32.mrb[22].mxu1 }
 0x9c0   : > { %v6600_v16 = vpop.permute.xlu1 %6599  ;;  %v13980_v36 = vpop.f32.mrb[23].mxu1 }
 0x9c1   : > { %13813 = vmatprep.mubr.msk.bf16.mxu0 %vm2160_vm1, %v6600_v16  ;;  %v8281_v36 = vsel %vm2949_vm11, %v19837_v8, -inf  ;;  %v8284_v16 = vsel %vm2949_vm11, %v19849_v34, -inf }
 0x9c5   : > { %v19841_v33 = vpop.f32.mrb[24].mxu1 }
 0x9c6   : > { %v13991_v46 = vpop.f32.mrb[25].mxu1 }
 0x9c7   : > { %v19843_v44 = vpop.f32.mrb[26].mxu1  ;;  %v19857_v46 = vsel %vm518_vm10, -1e-09, %v8105_v22  ;;  %v22627_v22 = vld [vmem:[#allocation156_spill] sm:$0xff] }
 0x9c8   : > { %v13992_v29 = vpop.f32.mrb[27].mxu1  ;;  %v8278_v51 = vsel %vm2949_vm11, %v19857_v46, -inf }
 0x9c9   : > { %8282 = vmax.xlane.f32.xlu0 %v8281_v36  ;;  %v8159_v29 = vadd.f32 %v19535_v0, %v19385_v3  ;;  %v22625_v0 = vld [vmem:[#allocation145_spill] sm:$0xff]  ;;  %v22626_v3 = vld [vmem:[#allocation134_spill] sm:$0xff] }
 0x9cb   : > { %v19865_v60 = vsel %vm519_vm12, -1e-09, %v8159_v29  ;;  %v22628_v29 = vld [vmem:[#allocation139_spill] sm:$0xff] }
 0x9cc   : > { %v8287_v36 = vsel %vm2949_vm11, %v19865_v60, -inf }
 0x9cd   : > { %8285 = vmax.xlane.f32.xlu0 %v8284_v16 }
 0x9d6   : > { %8279 = vmax.xlane.f32.xlu1 %v8278_v51  ;;  %v22629_v51 = vld [vmem:[#allocation169_spill] sm:$0xff] }
 0x9da   : > { %8288 = vmax.xlane.f32.xlu1 %v8287_v36 }
 0x9e0   : > { %v19869_v7 = vpop.xlane.xlu0 %8261 }
 0x9e3   : > { %8906 = vrot.lane.b32.xlu0 %v22624_v57, %s15604_s24  ;;  %v22630_v57 = vld [vmem:[#allocation151_spill] sm:$0xff] }
 0x9e4   : > { %v6602_v16 = vpop.permute.xlu0 %6601 }
 0x9e5   : > { %13814 = vmatmul.mubr.msk.bf16.gmra.mrb[196].mxu0 %vm2160_vm1, %v6602_v16 }
 0x9e7   : > { %9047 = vrot.lane.b32.xlu0 %v22625_v0, %s15604_s24  ;;  %v22631_v0 = vld [vmem:[#allocation162_spill] sm:$0xff] }
 0x9e8   : > { %v6606_v62 = vpop.permute.xlu0 %6605 }
 0x9eb   : > { %8953 = vrot.lane.b32.xlu1 %v22626_v3, %s15604_s24  ;;  %9141 = vrot.lane.b32.xlu0 %v22627_v22, %s15604_s24  ;;  %v8291_v22 = vsub.f32 %v19403_v54, %v19610_v28  ;;  %v22639_v54 = vld [vmem:[#allocation93_spill] sm:$0xff] }
 0x9ec   : > { %v6610_v3 = vpop.permute.xlu0 %6609 }
 0x9ef   : > { %9000 = vrot.lane.b32.xlu1 %v22628_v29, %s15604_s24  ;;  %9235 = vrot.lane.b32.xlu0 %v22629_v51, %s15604_s24  ;;  %v8324_v51 = vmul.f32 1.442695, %v8291_v22 }
 0x9f1   : > { %v19884_v36 = vpop.xlane.xlu1 %8264  ;;  %15061 = vpow2.f32 %v8324_v51  ;;  %v22645_v51 = vld [vmem:[#allocation102_spill] sm:$0xff] }
 0x9f3   : > { %9094 = vrot.lane.b32.xlu1 %v22630_v57, %s15604_s24  ;;  %v22632_v57 = vld [vmem:[#allocation161_spill] sm:$0xff] }
 0x9f4   : > { %v8294_v5 = vsub.f32 %v22633_v43, %v22632_v57  ;;  %v22643_v43 = vld [vmem:[#allocation147_spill] sm:$0xff]  ;;  %v22644_v57 = vld [vmem:[#allocation104_spill] sm:$0xff] }
 0x9f5   : > { %v6604_v16 = vpop.permute.xlu1 %6603 }
 0x9f6   : > { %13817 = vmatprep.mubr.msk.bf16.mxu0 %vm2160_vm1, %v6604_v16  ;;  %v22634_v16 = vld [vmem:[#allocation216_spill] sm:$0xff] }
 0x9f7   : > { %9188 = vrot.lane.b32.xlu1 %v22631_v0, %s15604_s24  ;;  %13818 = vmatmul.mubr.msk.bf16.gmra.mrb[200].mxu0 %vm2160_vm1, %v6606_v62  ;;  %v22636_v12 = vpack.c.bf16 %v22634_v16, %v22635_v58  ;;  %v8330_v62 = vmul.f32 1.442695, %v8294_v5  ;;  %v22637_v0 = vld [vmem:[#allocation158_spill] sm:$0xff]  ;;  %v22646_v58 = vpack.c.bf16 %v22644_v57, %v22645_v51  ;;  %v22648_v16 = vld [vmem:[#allocation115_spill] sm:$0xff] }
 0x9f8   : > { %v8290_v28 = vsub.f32 %v22638_v40, %v22637_v0 }
 0x9f9   : > { %v6608_v29 = vpop.permute.xlu1 %6607  ;;  %15063 = vpow2.f32 %v8330_v62  ;;  %v22649_v62 = vld [vmem:[#allocation112_spill] sm:$0xff] }
 0x9fa   : > { %13821 = vmatprep.mubr.msk.bf16.mxu0 %vm2160_vm1, %v6608_v29  ;;  %v22641_v29 = vpack.c.bf16 %v22639_v54, %v22640_v50  ;;  %v8322_v5 = vmul.f32 1.442695, %v8290_v28  ;;  %v22647_v50 = vld [vmem:[#allocation131_spill] sm:$0xff]  ;;  %v22650_v54 = vpack.c.bf16 %v22648_v16, %v22649_v62  ;;  %v22651_v28 = vld [vmem:[#allocation141_spill] sm:$0xff] }
 0x9fb   : > { %v19916_v40 = vpop.eup %15061  ;;  %v8295_v0 = vsub.f32 %v22647_v50, %v19619_v23  ;;  %v8392_v23 = vsel %vm2949_vm11, %v19627_v35, 0.0  ;;  %v22658_v62 = vld [vmem:[#allocation129_spill] sm:$0xff] }
 0x9fc   : > { %15065 = vpow2.f32 %v8322_v5  ;;  %v22655_v5 = vld [vmem:[#allocation168_spill] sm:$0xff] }
 0x9fd   : > { %v8332_v57 = vmul.f32 1.442695, %v8295_v0  ;;  %v8304_v50 = vsub.f32 %v22655_v5, %v19720_v1  ;;  %v22657_v0 = vld [vmem:[#allocation132_spill] sm:$0xff] }
 0x9fe   : > { %v22659_v35 = vpack.c.bf16 %v22657_v0, %v22658_v62  ;;  %v22664_v5 = vld [vmem:[#allocation136_spill] sm:$0xff]  ;;  %v22666_v0 = vld [vmem:[#allocation143_spill] sm:$0xff] }
 0x9ff   : > { %13822 = vmatmul.mubr.msk.bf16.gmra.mrb[204].mxu0 %vm2160_vm1, %v6610_v3  ;;  %v22642_v3 = vld [vmem:[#allocation159_spill] sm:$0xff] }
 0xa00   : > { %13829 = vmatprep.mubr.msk.bf16.mxu0 %vm2160_vm1, %v22636_v12  ;;  %v8298_v22 = vsub.f32 %v22642_v3, %v19612_v30  ;;  %v8389_v30 = vsel %vm2949_vm11, %v19916_v40, 0.0  ;;  %v22652_v3 = vld [vmem:[#allocation126_spill] sm:$0xff] }
 0xa02   : > { %v8338_v12 = vmul.f32 1.442695, %v8298_v22 }
 0xa03   : > { %v19934_v51 = vpop.eup %15063 }
 0xa04   : > { %15067 = vpow2.f32 %v8338_v12  ;;  %v22656_v12 = vld [vmem:[#allocation164_spill] sm:$0xff] }
 0xa05   : > { %15069 = vpow2.f32 %v8332_v57 }
 0xa06   : > { %v19942_v16 = vpop.eup %15065 }
 0xa07   : > { %13830 = vmatmul.mubr.msk.bf16.vlgmr.msra.gmra.mrb[176].mxu0 %vm2160_vm1, %v22641_v29  ;;  %v8302_v29 = vsub.f32 %v22651_v28, %v19687_v21  ;;  %v8299_v21 = vsub.f32 %v22656_v12, %v19625_v4  ;;  %v22660_v28 = vld [vmem:[#allocation153_spill] sm:$0xff] }
 0xa08   : > { %13958 = vmatpush3.bf16.msra.mxu0 %v22643_v43  ;;  %13833 = vmatprep.mubr.msk.bf16.mxu0 %vm2160_vm1, %v22646_v58  ;;  %v22653_v43 = vld [vmem:[#allocation123_spill] sm:$0xff]  ;;  %v8306_v1 = vsub.f32 %v22660_v28, %v19732_v39  ;;  %v8308_v39 = vsub.f32 %v19645_v27, %v19769_v53  ;;  %v22668_v53 = vld [vmem:[#allocation152_spill] sm:$0xff] }
 0xa09   : > { %13969 = vmatprep.subr.bf16.mxu0 %v22333_v48  ;;  %v22654_v22 = vpack.c.bf16 %v22652_v3, %v22653_v43  ;;  %v8346_v58 = vmul.f32 1.442695, %v8302_v29  ;;  %v22661_v29 = vld [vmem:[#allocation138_spill] sm:$0xff]  ;;  %v22662_v3 = vld [vmem:[#allocation135_spill] sm:$0xff]  ;;  %v8340_v4 = vmul.f32 1.442695, %v8299_v21 }
 0xa0a   : > { %v22663_v43 = vpack.c.bf16 %v22661_v29, %v22662_v3  ;;  %v8358_v27 = vmul.f32 1.442695, %v8308_v39  ;;  %v8416_v29 = vsel %vm2949_vm11, %v19661_v25, 0.0  ;;  %v8407_v39 = vsel %vm2949_vm11, %v19649_v52, 0.0 }
 0xa0b   : > { %15071 = vpow2.f32 %v8346_v58  ;;  %v8354_v58 = vmul.f32 1.442695, %v8306_v1  ;;  %v8309_v52 = vsub.f32 %v19674_v47, %v19779_v61  ;;  %v8311_v47 = vsub.f32 %v19697_v20, %v19817_v56  ;;  %v22682_v56 = vld [vmem:[#allocation103_spill] sm:$0xff] }
 0xa0e   : > { %8390 = vadd.xlane.f32.xlu0 %v8389_v30  ;;  %v8398_v30 = vsel %vm2949_vm11, %v19934_v51, 0.0  ;;  %v19956_v57 = vpop.eup %15067 }
 0xa0f   : > { %13834 = vmatmul.mubr.msk.bf16.gmra.mrb[180].mxu0 %vm2160_vm1, %v22650_v54  ;;  %v8350_v54 = vmul.f32 1.442695, %v8304_v50  ;;  %v8303_v50 = vsub.f32 %v22664_v5, %v19640_v26  ;;  %v8410_v12 = vsel %vm2949_vm11, %v19956_v57, 0.0  ;;  %v19968_v21 = vpop.eup %15069  ;;  %v8310_v26 = vsub.f32 %v19707_v31, %v19826_v32  ;;  %v22672_v31 = vld [vmem:[#allocation144_spill] sm:$0xff] }
 0xa10   : > { %13837 = vmatprep.mubr.msk.bf16.mxu0 %vm2160_vm1, %v22654_v22  ;;  %v8404_v22 = vsel %vm2949_vm11, %v19647_v37, 0.0  ;;  %v8395_v37 = vsel %vm2949_vm11, %v19629_v2, 0.0  ;;  %v22671_v2 = vld [vmem:[#allocation148_spill] sm:$0xff]  ;;  %v8307_v32 = vsub.f32 %v22672_v31, %v19723_v10  ;;  %v8419_v31 = vsel %vm2949_vm11, %v19663_v17, 0.0 }
 0xa11   : > { %15073 = vpow2.f32 %v8350_v54  ;;  %v8348_v28 = vmul.f32 1.442695, %v8303_v50  ;;  %v8305_v1 = vsub.f32 %v22671_v2, %v19693_v15  ;;  %v8312_v15 = vsub.f32 %v19730_v11, %v19869_v7  ;;  %v22673_v50 = vld [vmem:[#allocation160_spill] sm:$0xff]  ;;  %v22676_v7 = vld [vmem:[#allocation166_spill] sm:$0xff] }
 0xa12   : > { %8393 = vadd.xlane.f32.xlu0 %v8392_v23  ;;  %v8386_v23 = vsel %vm2949_vm11, %v19942_v16, 0.0  ;;  %15075 = vpow2.f32 %v8340_v4  ;;  %v8356_v10 = vmul.f32 1.442695, %v8307_v32  ;;  %v8360_v2 = vmul.f32 1.442695, %v8309_v52  ;;  %v22679_v32 = vld [vmem:[#allocation113_spill] sm:$0xff] }
 0xa13   : > { %15077 = vpow2.f32 %v8354_v58  ;;  %v8366_v11 = vmul.f32 1.442695, %v8312_v15  ;;  %v22683_v15 = vld [vmem:[#allocation120_spill] sm:$0xff]  ;;  %v8313_v17 = vsub.f32 %v19741_v6, %v19884_v36  ;;  %v22685_v52 = vld [vmem:[#allocation133_spill] sm:$0xff] }
 0xa14   : > { %15079 = vpow2.f32 %v8358_v27 }
 0xa15   : > { %v19984_v3 = vpop.eup %15071  ;;  %15081 = vpow2.f32 %v8348_v28  ;;  %v8368_v6 = vmul.f32 1.442695, %v8313_v17 }
 0xa16   : > { %8399 = vadd.xlane.f32.xlu0 %v8398_v30  ;;  %v22665_v30 = vld [vmem:[#allocation146_spill] sm:$0xff]  ;;  %v8422_v25 = vsel %vm2949_vm11, %v19984_v3, 0.0 }
 0xa17   : > { %13838 = vmatmul.mubr.msk.bf16.gmra.mrb[184].mxu0 %vm2160_vm1, %v22659_v35  ;;  %v22667_v62 = vpack.c.bf16 %v22665_v30, %v22666_v0  ;;  %v22669_v35 = vld [vmem:[#allocation149_spill] sm:$0xff]  ;;  %v22677_v30 = vld [vmem:[#allocation163_spill] sm:$0xff] }
 0xa18   : > { %13841 = vmatprep.mubr.msk.bf16.mxu0 %vm2160_vm1, %v22663_v43  ;;  %v22670_v54 = vpack.c.bf16 %v22668_v53, %v22669_v35  ;;  %v8401_v43 = vsel %vm2949_vm11, %v19968_v21, 0.0  ;;  %v22678_v0 = vpack.c.bf16 %v22676_v7, %v22677_v30 }
 0xa1a   : > { %8405 = vadd.xlane.f32.xlu0 %v8404_v22  ;;  %v8362_v22 = vmul.f32 1.442695, %v8310_v26 }
 0xa1b   : > { %8387 = vadd.xlane.f32.xlu1 %v8386_v23  ;;  %v8352_v23 = vmul.f32 1.442695, %v8305_v1  ;;  %v15074_v58 = vpop.eup %15073 }
 0xa1c   : > { %v19998_v5 = vpop.eup %15075  ;;  %15083 = vpow2.f32 %v8362_v22  ;;  %v8428_v27 = vsel %vm2949_vm11, %v15074_v58, 0.0 }
 0xa1d   : > { %v19990_v4 = vpop.xlane.xlu0 %8270  ;;  %15085 = vpow2.f32 %v8352_v23  ;;  %v20011_v26 = vpop.eup %15077  ;;  %v8413_v35 = vsel %vm2949_vm11, %v19998_v5, 0.0  ;;  %v22684_v23 = vpack.c.bf16 %v22682_v56, %v22683_v15 }
 0xa1e   : > { %8411 = vadd.xlane.f32.xlu0 %v8410_v12  ;;  %v22674_v12 = vld [vmem:[#allocation157_spill] sm:$0xff]  ;;  %15087 = vpow2.f32 %v8356_v10  ;;  %v8434_v1 = vsel %vm2949_vm11, %v20011_v26, 0.0  ;;  %v8315_v36 = vsub.f32 %v19786_v14, %v19990_v4 }
 0xa1f   : > { %8396 = vadd.xlane.f32.xlu1 %v8395_v37  ;;  %13842 = vmatmul.mubr.msk.bf16.gmra.mrb[188].mxu0 %vm2160_vm1, %v22667_v62  ;;  %v22675_v37 = vpack.c.bf16 %v22673_v50, %v22674_v12  ;;  %15089 = vpow2.f32 %v8366_v11 }
 0xa20   : > { %13845 = vmatprep.mubr.msk.bf16.mxu0 %vm2160_vm1, %v22670_v54  ;;  %v8372_v14 = vmul.f32 1.442695, %v8315_v36  ;;  %v8518_v36 = vpack.c.bf16 %v19998_v5, %v19956_v57 }
 0xa21   : > { %v8274_v62 = vpop.xlane.xlu0 %8273 }
 0xa22   : > { %8417 = vadd.xlane.f32.xlu0 %v8416_v29  ;;  %v8316_v28 = vsub.f32 %v19795_v13, %v8274_v62  ;;  %v20021_v29 = vpop.eup %15079  ;;  %v22680_v13 = vld [vmem:[#allocation108_spill] sm:$0xff]  ;;  %v22686_v62 = vld [vmem:[#allocation99_spill] sm:$0xff] }
 0xa23   : > { %8402 = vadd.xlane.f32.xlu1 %v8401_v43  ;;  %v22681_v22 = vpack.c.bf16 %v22679_v32, %v22680_v13  ;;  %v22691_v13 = vld [vmem:[#allocation119_spill] sm:$0xff] }
 0xa24   : > { %v8374_v20 = vmul.f32 1.442695, %v8316_v28 }
 0xa26   : > { %8423 = vadd.xlane.f32.xlu0 %v8422_v25  ;;  %v8364_v25 = vmul.f32 1.442695, %v8311_v47 }
 0xa27   : > { %8408 = vadd.xlane.f32.xlu1 %v8407_v39  ;;  %13846 = vmatmul.mubr.msk.bf16.gmra.mrb[192].mxu0 %vm2160_vm1, %v22675_v37  ;;  %v8440_v39 = vsel %vm2949_vm11, %v20021_v29, 0.0 }
 0xa28   : > { %13849 = vmatprep.mubr.msk.bf16.mxu0 %vm2160_vm1, %v22678_v0 }
 0xa2a   : > { %v8268_v53 = vpop.xlane.xlu1 %8267  ;;  %8429 = vadd.xlane.f32.xlu0 %v8428_v27  ;;  %v22687_v27 = vpack.c.bf16 %v22685_v52, %v22686_v62 }
 0xa2b   : > { %v8314_v54 = vsub.f32 %v19803_v38, %v8268_v53  ;;  %8414 = vadd.xlane.f32.xlu1 %v8413_v35  ;;  %v20025_v38 = vpop.eup %15081  ;;  %v22688_v53 = vld [vmem:[#allocation107_spill] sm:$0xff]  ;;  %v22689_v35 = vld [vmem:[#allocation137_spill] sm:$0xff] }
 0xa2c   : > { %v20039_v10 = vpop.eup %15083  ;;  %v8425_v12 = vsel %vm2949_vm11, %v20025_v38, 0.0  ;;  %v8520_v52 = vpack.c.bf16 %v20025_v38, %v19984_v3 }
 0xa2d   : > { %v8370_v61 = vmul.f32 1.442695, %v8314_v54  ;;  %v15086_v37 = vpop.eup %15085  ;;  %v8446_v30 = vsel %vm2949_vm11, %v20039_v10, 0.0  ;;  %v22690_v54 = vpack.c.bf16 %v22688_v53, %v22689_v35 }
 0xa2e   : > { %v8277_v43 = vpop.xlane.xlu1 %8276  ;;  %8435 = vadd.xlane.f32.xlu0 %v8434_v1  ;;  %v8521_v11 = vpack.c.bf16 %v15086_v37, %v15074_v58  ;;  %v20044_v7 = vpop.eup %15087  ;;  %v8431_v58 = vsel %vm2949_vm11, %v15086_v37, 0.0 }
 0xa2f   : > { %8420 = vadd.xlane.f32.xlu1 %v8419_v31  ;;  %13850 = vmatmul.mubr.msk.bf16.gmra.mrb[196].mxu0 %vm2160_vm1, %v22681_v22  ;;  %15091 = vpow2.f32 %v8370_v61  ;;  %v20050_v0 = vpop.eup %15089  ;;  %v8317_v4 = vsub.f32 %v19811_v59, %v8277_v43  ;;  %v8437_v47 = vsel %vm2949_vm11, %v20044_v7, 0.0  ;;  %v22692_v22 = vld [vmem:[#allocation114_spill] sm:$0xff]  ;;  %v8522_v53 = vpack.c.bf16 %v20044_v7, %v20011_v26 }
 0xa30   : > { %13853 = vmatprep.mubr.msk.bf16.mxu0 %vm2160_vm1, %v22684_v23  ;;  %15093 = vpow2.f32 %v8360_v2  ;;  %v8452_v28 = vsel %vm2949_vm11, %v20050_v0, 0.0 }
 0xa31   : > { %15095 = vpow2.f32 %v8374_v20  ;;  %v8376_v1 = vmul.f32 1.442695, %v8317_v4  ;;  %v22693_v20 = vpack.c.bf16 %v22691_v13, %v22692_v22 }
 0xa32   : > { %v8860_v50 = vpop.permute.xlu1 %8859  ;;  %8441 = vadd.xlane.f32.xlu0 %v8440_v39  ;;  %15097 = vpow2.f32 %v8364_v25  ;;  %v8514_v25 = vpack.c.bf16 %v19916_v40, %v19942_v16  ;;  %v8516_v40 = vpack.c.bf16 %v19968_v21, %v19934_v51 }
 0xa33   : > { %8426 = vadd.xlane.f32.xlu1 %v8425_v12  ;;  %14000 = vmatpush3.bf16.msra.mxu1 %v8860_v50  ;;  %15099 = vpow2.f32 %v8368_v6  ;;  %v22694_v50 = vld [vmem:[#allocation150_spill] sm:$0xff]  ;;  %v8813_v6 = vpop.permute.xlu0 %8812 }
 0xa34   : > { %14011 = vmatprep.subr.bf16.mxu1 %v22333_v48  ;;  %15101 = vpow2.f32 %v8372_v14 }
 0xa35   : > { %15103 = vpow2.f32 %v8376_v1 }
 0xa36   : > { %14002 = vmatmul.mubr.msk.bf16.vlgmr.msra.gmra.mrb[28].mxu1 %vm2949_vm11, %v8521_v11  ;;  %8447 = vadd.xlane.f32.xlu0 %v8446_v30  ;;  %v22695_v11 = vld [vmem:[#allocation124_spill] sm:$0xff] }
 0xa37   : > { %8432 = vadd.xlane.f32.xlu1 %v8431_v58  ;;  %13854 = vmatmul.mubr.msk.bf16.gmra.mrb[200].mxu0 %vm2160_vm1, %v22687_v27 }
 0xa38   : > { %13857 = vmatprep.mubr.msk.bf16.mxu0 %vm2160_vm1, %v22690_v54  ;;  %14013 = vmatprep.mubr.msk.bf16.mxu1 %vm15602_vm0, %v22333_v48 }
 0xa39   : > { %v20067_v2 = vpop.eup %15091 }
 0xa3a   : > { %8453 = vadd.xlane.f32.xlu0 %v8452_v28  ;;  %v20071_v61 = vpop.eup %15093  ;;  %v8458_v31 = vsel %vm2949_vm11, %v20067_v2, 0.0 }
 0xa3b   : > { %8438 = vadd.xlane.f32.xlu1 %v8437_v47  ;;  %v20075_v32 = vpop.eup %15095  ;;  %v8443_v59 = vsel %vm2949_vm11, %v20071_v61, 0.0  ;;  %v8523_v26 = vpack.c.bf16 %v20071_v61, %v20021_v29 }
 0xa3c   : > { %v20079_v43 = vpop.eup %15097  ;;  %v8464_v56 = vsel %vm2949_vm11, %v20075_v32, 0.0 }
 0xa3d   : > { %v8449_v15 = vsel %vm2949_vm11, %v20079_v43, 0.0  ;;  %v20091_v23 = vpop.eup %15099 }
 0xa3e   : > { %8459 = vadd.xlane.f32.xlu0 %v8458_v31  ;;  %v8455_v17 = vsel %vm2949_vm11, %v20091_v23, 0.0  ;;  %v20097_v39 = vpop.eup %15101  ;;  %v8525_v1 = vpack.c.bf16 %v20091_v23, %v20050_v0  ;;  %v22698_v23 = vld [vmem:[#allocation54_spill] sm:$0xff] }
 0xa3f   : > { %8444 = vadd.xlane.f32.xlu1 %v8443_v59  ;;  %13858 = vmatmul.mubr.msk.bf16.gmra.mrb[204].mxu0 %vm2160_vm1, %v22693_v20  ;;  %v8461_v12 = vsel %vm2949_vm11, %v20097_v39, 0.0  ;;  %v20106_v37 = vpop.eup %15103  ;;  %v8526_v13 = vpack.c.bf16 %v20097_v39, %v20067_v2  ;;  %v22701_v39 = vld [vmem:[#allocation61_spill] sm:$0xff] }
 0xa40   : > { %13959 = vmatprep.mubr.msk.bf16.mxu0 %vm15602_vm0, %v22333_v48  ;;  %v8467_v16 = vsel %vm2949_vm11, %v20106_v37, 0.0  ;;  %v8527_v22 = vpack.c.bf16 %v20106_v37, %v20075_v32  ;;  %v22696_v32 = vld [vmem:[#allocation55_spill] sm:$0xff]  ;;  %v22704_v37 = vld [vmem:[#allocation60_spill] sm:$0xff] }
 0xa42   : > { %8465 = vadd.xlane.f32.xlu0 %v8464_v56 }
 0xa43   : > { %8450 = vadd.xlane.f32.xlu1 %v8449_v15  ;;  %v22697_v15 = vld [vmem:[#allocation57_spill] sm:$0xff] }
 0xa47   : > { %8456 = vadd.xlane.f32.xlu1 %v8455_v17  ;;  %13960 = vmatmul.mubr.msk.bf16.vlgmr.msra.gmra.mrb[208].mxu0 %vm2949_vm11, %v8514_v25  ;;  %v22699_v25 = vld [vmem:[#allocation59_spill] sm:$0xff]  ;;  %v22700_v17 = vld [vmem:[#allocation56_spill] sm:$0xff] }
 0xa48   : > { %13970 = vmatpush3.bf16.msra.mxu0 %v22694_v50  ;;  %13971 = vmatprep.mubr.msk.bf16.mxu0 %vm15602_vm0, %v22333_v48  ;;  %v22702_v50 = vld [vmem:[#allocation58_spill] sm:$0xff] }
 0xa49   : > { %13981 = vmatprep.subr.bf16.mxu0 %v22333_v48 }
 0xa4b   : > { %8462 = vadd.xlane.f32.xlu1 %v8461_v12  ;;  %v22703_v12 = vld [vmem:[#allocation63_spill] sm:$0xff] }
 0xa4f   : > { %13972 = vmatmul.mubr.msk.bf16.vlgmr.msra.gmra.mrb[212].mxu0 %vm2949_vm11, %v8516_v40  ;;  %8468 = vadd.xlane.f32.xlu1 %v8467_v16  ;;  %v22705_v40 = vld [vmem:[#allocation65_spill] sm:$0xff]  ;;  %v22706_v16 = vld [vmem:[#allocation62_spill] sm:$0xff] }
 0xa50   : > { %13982 = vmatpush3.bf16.msra.mxu0 %v22695_v11  ;;  %13983 = vmatprep.mubr.msk.bf16.mxu0 %vm15602_vm0, %v22333_v48  ;;  %v22707_v11 = vld [vmem:[#allocation69_spill] sm:$0xff] }
 0xa51   : > { %13993 = vmatprep.subr.bf16.mxu0 %v22333_v48 }
 0xa56   : > { %v8283_v30 = vpop.xlane.xlu0 %8282 }
 0xa57   : > { %v8319_v51 = vsub.f32 %v19837_v8, %v8283_v30  ;;  %13984 = vmatmul.mubr.msk.bf16.vlgmr.msra.gmra.mrb[216].mxu0 %vm2949_vm11, %v8518_v36  ;;  %v22709_v36 = vld [vmem:[#allocation74_spill] sm:$0xff]  ;;  %v22710_v30 = vld [vmem:[#allocation68_spill] sm:$0xff] }
 0xa58   : > { %13994 = vmatpush3.bf16.msra.mxu0 %v8813_v6  ;;  %13995 = vmatprep.mubr.msk.bf16.mxu0 %vm15602_vm0, %v22333_v48  ;;  %v22708_v6 = vld [vmem:[#allocation64_spill] sm:$0xff] }
 0xa59   : > { %v8380_v21 = vmul.f32 1.442695, %v8319_v51  ;;  %14005 = vmatprep.subr.bf16.mxu0 %v22333_v48 }
 0xa5a   : > { %v8286_v58 = vpop.xlane.xlu0 %8285 }
 0xa5b   : > { %15105 = vpow2.f32 %v8380_v21  ;;  %v8320_v8 = vsub.f32 %v19849_v34, %v8286_v58  ;;  %v22711_v21 = vld [vmem:[#allocation73_spill] sm:$0xff]  ;;  %v22712_v58 = vld [vmem:[#allocation78_spill] sm:$0xff] }
 0xa5d   : > { %v8382_v38 = vmul.f32 1.442695, %v8320_v8 }
 0xa5e   : > { %v8907_v62 = vpop.permute.xlu0 %8906 }
 0xa5f   : > { %13996 = vmatmul.mubr.msk.bf16.vlgmr.msra.gmra.mrb[220].mxu0 %vm2949_vm11, %v8520_v52  ;;  %v22713_v52 = vld [vmem:[#allocation77_spill] sm:$0xff] }
 0xa60   : > { %14006 = vmatpush3.bf16.msra.mxu0 %v8907_v62  ;;  %14007 = vmatprep.mubr.msk.bf16.mxu0 %vm15602_vm0, %v22333_v48 }
 0xa61   : > { %14017 = vmatprep.subr.bf16.mxu0 %v22333_v48 }
 0xa62   : > { %v9048_v7 = vpop.permute.xlu0 %9047 }
 0xa63   : > { %v8280_v57 = vpop.xlane.xlu1 %8279 }
 0xa64   : > { %v8318_v5 = vsub.f32 %v19857_v46, %v8280_v57  ;;  %v22714_v57 = vld [vmem:[#allocation80_spill] sm:$0xff] }
 0xa65   : > { %v15106_v27 = vpop.eup %15105 }
 0xa66   : > { %v8378_v35 = vmul.f32 1.442695, %v8318_v5  ;;  %v8473_v3 = vsel %vm2949_vm11, %v15106_v27, 0.0  ;;  %v9142_v31 = vpop.permute.xlu0 %9141  ;;  %v22715_v5 = vld [vmem:[#allocation79_spill] sm:$0xff] }
 0xa67   : > { %v8289_v54 = vpop.xlane.xlu1 %8288  ;;  %8474 = vadd.xlane.f32.xlu1 %v8473_v3  ;;  %14008 = vmatmul.mubr.msk.bf16.vlgmr.msra.gmra.mrb[224].mxu0 %vm2949_vm11, %v8522_v53  ;;  %v22717_v3 = vld [vmem:[#allocation81_spill] sm:$0xff] }
 0xa68   : > { %15107 = vpow2.f32 %v8378_v35  ;;  %v8321_v14 = vsub.f32 %v19865_v60, %v8289_v54  ;;  %14019 = vmatprep.mubr.msk.bf16.mxu0 %vm15602_vm0, %v22333_v48  ;;  %v8524_v60 = vpack.c.bf16 %v20079_v43, %v20039_v10  ;;  %v22719_v54 = vld [vmem:[#allocation83_spill] sm:$0xff] }
 0xa69   : > { %15109 = vpow2.f32 %v8382_v38  ;;  %v22718_v38 = vld [vmem:[#allocation84_spill] sm:$0xff] }
 0xa6a   : > { %v8384_v34 = vmul.f32 1.442695, %v8321_v14  ;;  %v9236_v20 = vpop.permute.xlu0 %9235 }
 0xa6b   : > { %v8954_v46 = vpop.permute.xlu1 %8953 }
 0xa6c   : > { %15111 = vpow2.f32 %v8384_v34  ;;  %14012 = vmatpush3.bf16.msra.mxu1 %v8954_v46  ;;  %v22720_v46 = vld [vmem:[#allocation67_spill] sm:$0xff] }
 0xa6d   : > { %14023 = vmatprep.subr.bf16.mxu1 %v22333_v48 }
 0xa6f   : > { %v9001_v4 = vpop.permute.xlu1 %9000  ;;  %14014 = vmatmul.mubr.msk.bf16.vlgmr.msra.gmra.mrb[32].mxu1 %vm2949_vm11, %v8523_v26  ;;  %v22721_v26 = vld [vmem:[#allocation66_spill] sm:$0xff] }
 0xa70   : > { %14018 = vmatpush3.bf16.msra.mxu0 %v9001_v4  ;;  %14024 = vmatpush3.bf16.msra.mxu1 %v9048_v7  ;;  %v22722_v7 = vld [vmem:[#allocation72_spill] sm:$0xff] }
 0xa71   : > { %14029 = vmatprep.subr.bf16.mxu0 %v22333_v48  ;;  %14025 = vmatprep.mubr.msk.bf16.mxu1 %vm15602_vm0, %v22333_v48 }
 0xa72   : > { %v15108_v28 = vpop.eup %15107  ;;  %14035 = vmatprep.subr.bf16.mxu1 %v22333_v48 }
 0xa73   : > { %v9095_v29 = vpop.permute.xlu1 %9094  ;;  %14020 = vmatmul.mubr.msk.bf16.vlgmr.msra.gmra.mrb[228].mxu0 %vm2949_vm11, %v8524_v60  ;;  %v8470_v47 = vsel %vm2949_vm11, %v15108_v28, 0.0  ;;  %v15110_v61 = vpop.eup %15109  ;;  %v8528_v2 = vpack.c.bf16 %v15106_v27, %v15108_v28  ;;  %v22716_v27 = vld [vmem:[#allocation82_spill] sm:$0xff]  ;;  %v22724_v28 = vld [vmem:[#allocation76_spill] sm:$0xff] }
 0xa74   : > { %8471 = vadd.xlane.f32.xlu0 %v8470_v47  ;;  %14030 = vmatpush3.bf16.msra.mxu0 %v9095_v29  ;;  %v8476_v43 = vsel %vm2949_vm11, %v15110_v61, 0.0  ;;  %v22723_v60 = vld [vmem:[#allocation70_spill] sm:$0xff]  ;;  %v22725_v47 = vld [vmem:[#allocation75_spill] sm:$0xff] }
 0xa75   : > { %14031 = vmatprep.mubr.msk.bf16.mxu0 %vm15602_vm0, %v22333_v48  ;;  %14041 = vmatprep.subr.bf16.mxu0 %v22333_v48 }
 0xa76   : > { %v15112_v10 = vpop.eup %15111 }
 0xa77   : > { %14026 = vmatmul.mubr.msk.bf16.vlgmr.msra.gmra.mrb[36].mxu1 %vm2949_vm11, %v8525_v1  ;;  %v8479_v59 = vsel %vm2949_vm11, %v15112_v10, 0.0  ;;  %v9189_v0 = vpop.permute.xlu1 %9188  ;;  %v8529_v56 = vpack.c.bf16 %v15112_v10, %v15110_v61  ;;  %v22726_v10 = vld [vmem:[#allocation86_spill] sm:$0xff] }
 0xa78   : > { %14036 = vmatpush3.bf16.msra.mxu1 %v9142_v31  ;;  %8480 = vadd.xlane.f32.xlu1 %v8479_v59 }
 0xa79   : > { %8477 = vadd.xlane.f32.xlu0 %v8476_v43  ;;  %14037 = vmatprep.mubr.msk.bf16.mxu1 %vm15602_vm0, %v22333_v48 }
 0xa7a   : > { %14047 = vmatprep.subr.bf16.mxu1 %v22333_v48 }
 0xa7b   : > { %14032 = vmatmul.mubr.msk.bf16.vlgmr.msra.gmra.mrb[232].mxu0 %vm2949_vm11, %v8526_v13  ;;  %v22727_v13 = vld [vmem:[#allocation85_spill] sm:$0xff] }
 0xa7c   : > { %14042 = vmatpush3.bf16.msra.mxu0 %v9189_v0  ;;  %14043 = vmatprep.mubr.msk.bf16.mxu0 %vm15602_vm0, %v22333_v48 }
 0xa7f   : > { %14038 = vmatmul.mubr.msk.bf16.vlgmr.msra.gmra.mrb[40].mxu1 %vm2949_vm11, %v8527_v22 }
 0xa80   : > { %14048 = vmatpush3.bf16.msra.mxu1 %v9236_v20  ;;  %14049 = vmatprep.mubr.msk.bf16.mxu1 %vm15602_vm0, %v22333_v48 }
 0xa81   : > { %14089 = vmatprep.subr.bf16.mxu1 %v22333_v48 }
 0xa83   : > { %14044 = vmatmul.mubr.msk.bf16.vlgmr.msra.gmra.mrb[236].mxu0 %vm2949_vm11, %v8528_v2 }
 0xa87   : > { %14050 = vmatmul.mubr.msk.bf16.vlgmr.msra.gmra.mrb[44].mxu1 %vm2949_vm11, %v8529_v56 }
 0xa88   : > { %14091 = vmatprep.mubr.msk.bf16.mxu1 %vm15602_vm0, %v22333_v48 }
 0xa89   : > { %9898 = vrot.lane.b32.xlu1 %v22696_v32, %s15605_s18 }
 0xa8d   : > { %10141 = vrot.lane.b32.xlu1 %v22697_v15, %s15605_s18 }
 0xa8f   : > { %9896 = vrot.lane.b32.xlu0 %v22698_v23, %s15605_s18 }
 0xa91   : > { %10192 = vrot.lane.b32.xlu1 %v22699_v25, %s15605_s18 }
 0xa93   : > { %10139 = vrot.lane.b32.xlu0 %v22700_v17, %s15605_s18 }
 0xa95   : > { %10243 = vrot.lane.b32.xlu1 %v22701_v39, %s15605_s18 }
 0xa97   : > { %10190 = vrot.lane.b32.xlu0 %v22702_v50, %s15605_s18 }
 0xa99   : > { %10294 = vrot.lane.b32.xlu1 %v22703_v12, %s15605_s18  ;;  %v20281_v12 = vld [vmem:[#allocation10 + $0x3] ss:$0 sm:$0xff] }
 0xa9b   : > { %10241 = vrot.lane.b32.xlu0 %v22704_v37, %s15605_s18  ;;  %v20207_v51 = vpop.xlane.xlu0 %8390  ;;  %v22728_v37 = vld [vmem:[#allocation21_spill] sm:$0xff] }
 0xa9d   : > { %10345 = vrot.lane.b32.xlu1 %v22705_v40, %s15605_s18  ;;  %v9800_v40 = vmul.f32 %v20281_v12, %v22728_v37 }
 0xa9f   : > { %10292 = vrot.lane.b32.xlu0 %v22706_v16, %s15605_s18  ;;  %v8394_v62 = vpop.xlane.xlu0 %8393  ;;  %v22729_v16 = vld [vmem:[#allocation22_spill] sm:$0xff] }
 0xaa0   : > { %15113 = vrcp.f32 %v8394_v62  ;;  %v22733_v62 = vld [vmem:[#allocation30_spill] sm:$0xff] }
 0xaa1   : > { %10396 = vrot.lane.b32.xlu1 %v22707_v11, %s15605_s18  ;;  %v9801_v11 = vmul.f32 %v20281_v12, %v22729_v16 }
 0xaa3   : > { %10343 = vrot.lane.b32.xlu0 %v22708_v6, %s15605_s18  ;;  %v20223_v53 = vpop.xlane.xlu0 %8399 }
 0xaa5   : > { %10447 = vrot.lane.b32.xlu1 %v22709_v36, %s15605_s18 }
 0xaa7   : > { %10394 = vrot.lane.b32.xlu0 %v22710_v30, %s15605_s18  ;;  %v8406_v14 = vpop.xlane.xlu0 %8405  ;;  %v22730_v30 = vld [vmem:[#allocation23_spill] sm:$0xff] }
 0xaa8   : > { %v20215_v8 = vpop.xlane.xlu1 %8387  ;;  %15115 = vrcp.f32 %v8406_v14 }
 0xaa9   : > { %10445 = vrot.lane.b32.xlu1 %v22711_v21, %s15605_s18  ;;  %v9802_v21 = vmul.f32 %v20281_v12, %v22730_v30 }
 0xaaa   : > { %v15114_v29 = vpop.eup %15113 }
 0xaab   : > { %10498 = vrot.lane.b32.xlu0 %v22712_v58, %s15605_s18  ;;  %v20245_v61 = vpop.xlane.xlu0 %8411  ;;  %v9284_v31 = vmul.f32 %v15114_v29, %v19822_v45 }
 0xaac   : > { %v8397_v35 = vpop.xlane.xlu1 %8396 }
 0xaad   : > { %10496 = vrot.lane.b32.xlu1 %v22713_v52, %s15605_s18  ;;  %15117 = vrcp.f32 %v8397_v35 }
 0xaaf   : > { %10549 = vrot.lane.b32.xlu0 %v22714_v57, %s15605_s18  ;;  %v8418_v22 = vpop.xlane.xlu0 %8417  ;;  %v9816_v57 = vmul.f32 %v20281_v12, %v22733_v62  ;;  %v22736_v62 = vld [vmem:[#allocation24_spill] sm:$0xff] }
 0xab0   : > { %v20231_v34 = vpop.xlane.xlu1 %8402 }
 0xab1   : > { %10547 = vrot.lane.b32.xlu1 %v22715_v5, %s15605_s18 }
 0xab2   : > { %v15116_v59 = vpop.eup %15115 }
 0xab3   : > { %10600 = vrot.lane.b32.xlu0 %v22716_v27, %s15605_s18  ;;  %v9288_v0 = vmul.f32 %v15116_v59, %v19828_v42  ;;  %v20260_v32 = vpop.xlane.xlu0 %8423 }
 0xab4   : > { %v8409_v4 = vpop.xlane.xlu1 %8408 }
 0xab5   : > { %10598 = vrot.lane.b32.xlu1 %v22717_v3, %s15605_s18  ;;  %15119 = vrcp.f32 %v8409_v4 }
 0xab6   : > { %15121 = vrcp.f32 %v8418_v22 }
 0xab7   : > { %10651 = vrot.lane.b32.xlu0 %v22718_v38, %s15605_s18  ;;  %v15118_v43 = vpop.eup %15117  ;;  %v20265_v23 = vpop.xlane.xlu0 %8429 }
 0xab8   : > { %v20247_v1 = vpop.xlane.xlu1 %8414  ;;  %v9285_v2 = vmul.f32 %v15118_v43, %v19824_v24 }
 0xab9   : > { %10649 = vrot.lane.b32.xlu1 %v22719_v54, %s15605_s18 }
 0xabb   : > { %10702 = vrot.lane.b32.xlu0 %v22720_v46, %s15605_s18  ;;  %v20269_v25 = vpop.xlane.xlu0 %8435 }
 0xabc   : > { %v8421_v20 = vpop.xlane.xlu1 %8420 }
 0xabd   : > { %10700 = vrot.lane.b32.xlu1 %v22721_v26, %s15605_s18  ;;  %15123 = vrcp.f32 %v8421_v20 }
 0xabe   : > { %15125 = vrcp.f32 %v20265_v23  ;;  %v22742_v23 = vld [vmem:[#allocation36_spill] sm:$0xff] }
 0xabf   : > { %10753 = vrot.lane.b32.xlu0 %v22722_v7, %s15605_s18  ;;  %v15120_v56 = vpop.eup %15119  ;;  %v20273_v24 = vpop.xlane.xlu0 %8441 }
 0xac0   : > { %v9289_v45 = vmul.f32 %v15120_v56, %v19830_v41  ;;  %v20262_v15 = vpop.xlane.xlu1 %8426  ;;  %v15122_v5 = vpop.eup %15121 }
 0xac1   : > { %10751 = vrot.lane.b32.xlu1 %v22723_v60, %s15605_s18  ;;  %v9292_v3 = vmul.f32 %v15122_v5, %v19841_v33 }
 0xac3   : > { %10804 = vrot.lane.b32.xlu0 %v22724_v28, %s15605_s18  ;;  %v20277_v50 = vpop.xlane.xlu0 %8447 }
 0xac4   : > { %v20267_v42 = vpop.xlane.xlu1 %8432 }
 0xac5   : > { %10802 = vrot.lane.b32.xlu1 %v22725_v47, %s15605_s18  ;;  %15127 = vrcp.f32 %v20267_v42 }
 0xac6   : > { %15129 = vrcp.f32 %v20273_v24 }
 0xac7   : > { %10855 = vrot.lane.b32.xlu0 %v22726_v10, %s15605_s18  ;;  %v20287_v6 = vpop.xlane.xlu0 %8453  ;;  %v15124_v28 = vpop.eup %15123 }
 0xac8   : > { %v20271_v17 = vpop.xlane.xlu1 %8438  ;;  %v9293_v10 = vmul.f32 %v15124_v28, %v19843_v44 }
 0xac9   : > { %9350 = vrot.lane.b32.xlu1 %v9284_v31, %s15604_s24 }
 0xacb   : > { %10853 = vrot.lane.b32.xlu0 %v22727_v13, %s15605_s18  ;;  %v20293_v58 = vpop.xlane.xlu0 %8459 }
 0xacc   : > { %v20275_v39 = vpop.xlane.xlu1 %8444  ;;  %22731 = vst [vmem:[#allocation172_spill] sm:$0xff] %v20293_v58 }
 0xacd   : > { %9358 = vrot.lane.b32.xlu1 %v9288_v0, %s15604_s24  ;;  %15131 = vrcp.f32 %v20275_v39  ;;  %v22764_v39 = vld [vmem:[#allocation37_spill] sm:$0xff] }
 0xace   : > { %15133 = vrcp.f32 %v20287_v6 }
 0xacf   : > { %9352 = vrot.lane.b32.xlu0 %v9285_v2, %s15604_s24  ;;  %v20299_v27 = vpop.xlane.xlu0 %8465 }
 0xad0   : > { %v20279_v41 = vpop.xlane.xlu1 %8450 }
 0xad3   : > { %9360 = vrot.lane.b32.xlu0 %v9289_v45, %s15604_s24 }
 0xad4   : > { %v20289_v36 = vpop.xlane.xlu1 %8456 }
 0xad5   : > { %15135 = vrcp.f32 %v20289_v36 }
 0xad6   : > { %15137 = vrcp.f32 %v20299_v27 }
 0xad8   : > { %v20295_v52 = vpop.xlane.xlu1 %8462 }
 0xad9   : > { %22732 = vst [vmem:[#allocation88_spill] sm:$0xff] %v20295_v52 }
 0xadc   : > { %v20301_v35 = vpop.xlane.xlu1 %8468 }
 0xadd   : > { %15139 = vrcp.f32 %v20301_v35 }
 0xaf1   : > { %9832 = vadd.xlane.f32.xlu1 %v9800_v40 }
 0xaf2   : > { %9834 = vadd.xlane.f32.xlu0 %v9801_v11 }
 0xaf4   : > { %v20304_v38 = vpop.xlane.xlu1 %8474 }
 0xaf5   : > { %22734 = vst [vmem:[#allocation52_spill] sm:$0xff] %v20304_v38 }
 0xaf6   : > { %9836 = vadd.xlane.f32.xlu0 %v9802_v21 }
 0xafa   : > { %9864 = vadd.xlane.f32.xlu0 %v9816_v57  ;;  %v9803_v57 = vmul.f32 %v20281_v12, %v22736_v62 }
 0xb01   : > { %v20306_v54 = vpop.xlane.xlu0 %8471 }
 0xb02   : > { %22735 = vst [vmem:[#allocation95_spill] sm:$0xff] %v20306_v54  ;;  %9366 = vrot.lane.b32.xlu1 %v9292_v3, %s15604_s24 }
 0xb05   : > { %v20309_v14 = vpop.xlane.xlu1 %8480 }
 0xb06   : > { %v20311_v46 = vpop.xlane.xlu0 %8477  ;;  %15141 = vrcp.f32 %v20309_v14 }
 0xb07   : > { %15143 = vrcp.f32 %v20207_v51 }
 0xb08   : > { %15145 = vrcp.f32 %v20311_v46 }
 0xb09   : > { %v20313_v26 = vpop.f32.mrb[28].mxu1  ;;  %v9899_v7 = vpop.permute.xlu1 %9898  ;;  %15147 = vrcp.f32 %v20223_v53 }
 0xb0a   : > { %v10096_v4 = vsel %vm2160_vm1, %v9899_v7, 0  ;;  %v14003_v60 = vpop.f32.mrb[29].mxu1  ;;  %v9897_v29 = vpop.permute.xlu0 %9896  ;;  %v22737_v7 = vld [vmem:[#allocation32_spill] sm:$0xff]  ;;  %15149 = vrcp.f32 %v20215_v8 }
 0xb0b   : > { %v20316_v33 = vpop.f32.mrb[30].mxu1  ;;  %14090 = vmatpush3.bf16.xpose.msra.mxu1 %v10096_v4  ;;  %v9817_v4 = vmul.f32 %v20281_v12, %v22737_v7  ;;  %v9820_v7 = vmul.f32 %v20281_v12, %v22742_v23  ;;  %15151 = vrcp.f32 %v20245_v61 }
 0xb0c   : > { %v14004_v47 = vpop.f32.mrb[31].mxu1  ;;  %14095 = vmatprep.subr.bf16.mxu1 %v22333_v48  ;;  %15153 = vrcp.f32 %v20260_v32  ;;  %v22802_v32 = vld [vmem:[#allocation194_spill] sm:$0xff] }
 0xb0d   : > { %v10142_v31 = vpop.permute.xlu1 %10141  ;;  %15155 = vrcp.f32 %v20231_v34 }
 0xb0e   : > { %v10140_v59 = vpop.permute.xlu0 %10139  ;;  %v10147_v43 = vsel %vm2160_vm1, %v10142_v31, 0 }
 0xb10   : > { %9368 = vrot.lane.b32.xlu0 %v9293_v10, %s15604_s24 }
 0xb11   : > { %v10193_v13 = vpop.permute.xlu1 %10192 }
 0xb12   : > { %14092 = vmatmul.mubr.msk.bf16.vlgmr.msra.gmra.mrb[48].mxu1 %vm2160_vm1, %v9897_v29  ;;  %v10191_v0 = vpop.permute.xlu0 %10190  ;;  %v10198_v22 = vsel %vm2160_vm1, %v10193_v13, 0 }
 0xb13   : > { %14096 = vmatpush3.bf16.xpose.msra.mxu1 %v10147_v43  ;;  %14097 = vmatprep.mubr.msk.bf16.mxu1 %vm15602_vm0, %v22333_v48 }
 0xb14   : > { %14101 = vmatprep.subr.bf16.mxu1 %v22333_v48 }
 0xb15   : > { %v10244_v37 = vpop.permute.xlu1 %10243 }
 0xb16   : > { %v10242_v56 = vpop.permute.xlu0 %10241  ;;  %v10249_v40 = vsel %vm2160_vm1, %v10244_v37, 0 }
 0xb19   : > { %v10295_v5 = vpop.permute.xlu1 %10294 }
 0xb1a   : > { %v20327_v20 = vpop.f32.mrb[208].mxu0  ;;  %14098 = vmatmul.mubr.msk.bf16.vlgmr.msra.gmra.mrb[52].mxu1 %vm2160_vm1, %v10140_v59  ;;  %v10293_v11 = vpop.permute.xlu0 %10292  ;;  %v10300_v28 = vsel %vm2160_vm1, %v10295_v5, 0  ;;  %v22738_v59 = vld [vmem:[#allocation34_spill] sm:$0xff] }
 0xb1b   : > { %v13961_v44 = vpop.f32.mrb[209].mxu0  ;;  %14102 = vmatpush3.bf16.xpose.msra.mxu1 %v10198_v22  ;;  %14103 = vmatprep.mubr.msk.bf16.mxu1 %vm15602_vm0, %v22333_v48  ;;  %v9819_v43 = vmul.f32 %v20281_v12, %v22738_v59  ;;  %v15126_v59 = vpop.eup %15125  ;;  %15157 = vrcp.f32 %v20247_v1 }
 0xb1c   : > { %v20332_v2 = vpop.f32.mrb[210].mxu0  ;;  %14107 = vmatprep.subr.bf16.mxu1 %v22333_v48 }
 0xb1d   : > { %v13962_v45 = vpop.f32.mrb[211].mxu0  ;;  %v10346_v47 = vpop.permute.xlu1 %10345 }
 0xb1e   : > { %v10344_v60 = vpop.permute.xlu0 %10343  ;;  %v22740_v45 = vld [vmem:[#allocation26_spill] sm:$0xff] }
 0xb1f   : > { %v9804_v37 = vmul.f32 %v20281_v12, %v22740_v45 }
 0xb22   : > { %v20336_v16 = vpop.f32.mrb[212].mxu0  ;;  %14104 = vmatmul.mubr.msk.bf16.vlgmr.msra.gmra.mrb[56].mxu1 %vm2160_vm1, %v10191_v0  ;;  %v22739_v0 = vld [vmem:[#allocation33_spill] sm:$0xff]  ;;  %v10395_v44 = vpop.permute.xlu0 %10394 }
 0xb23   : > { %v13973_v30 = vpop.f32.mrb[213].mxu0  ;;  %14108 = vmatpush3.bf16.xpose.msra.mxu1 %v10249_v40  ;;  %14109 = vmatprep.mubr.msk.bf16.mxu1 %vm15602_vm0, %v22333_v48  ;;  %v9818_v22 = vmul.f32 %v20281_v12, %v22739_v0  ;;  %v10351_v40 = vsel %vm2160_vm1, %v10346_v47, 0 }
 0xb24   : > { %v20341_v21 = vpop.f32.mrb[214].mxu0  ;;  %14113 = vmatprep.subr.bf16.mxu1 %v22333_v48 }
 0xb25   : > { %v13974_v3 = vpop.f32.mrb[215].mxu0 }
 0xb26   : > { %9838 = vadd.xlane.f32.xlu1 %v9803_v57  ;;  %v20373_v5 = vpop.permute.xlu0 %10498 }
 0xb27   : > { %22741 = vst [vmem:[#allocation219_spill] sm:$0xff] %v20373_v5 }
 0xb2a   : > { %v20349_v29 = vpop.f32.mrb[216].mxu0  ;;  %9866 = vadd.xlane.f32.xlu1 %v9817_v4  ;;  %14110 = vmatmul.mubr.msk.bf16.vlgmr.msra.gmra.mrb[60].mxu1 %vm2160_vm1, %v10242_v56  ;;  %v10397_v56 = vpop.permute.xlu1 %10396 }
 0xb2b   : > { %v13985_v10 = vpop.f32.mrb[217].mxu0  ;;  %14114 = vmatpush3.bf16.xpose.msra.mxu1 %v10300_v28  ;;  %14115 = vmatprep.mubr.msk.bf16.mxu1 %vm15602_vm0, %v22333_v48  ;;  %v10550_v47 = vpop.permute.xlu0 %10549 }
 0xb2c   : > { %v20354_v31 = vpop.f32.mrb[218].mxu0  ;;  %14119 = vmatprep.subr.bf16.mxu1 %v22333_v48 }
 0xb2d   : > { %v13986_v13 = vpop.f32.mrb[219].mxu0 }
 0xb2e   : > { %9870 = vadd.xlane.f32.xlu1 %v9819_v43  ;;  %v10448_v4 = vpop.permute.xlu1 %10447  ;;  %v9296_v13 = vmul.f32 %v15126_v59, %v20313_v26 }
 0xb2f   : > { %9868 = vadd.xlane.f32.xlu0 %v9818_v22 }
 0xb32   : > { %v20365_v30 = vpop.f32.mrb[220].mxu0  ;;  %14116 = vmatmul.mubr.msk.bf16.vlgmr.msra.gmra.mrb[64].mxu1 %vm2160_vm1, %v10293_v11  ;;  %v10402_v11 = vsel %vm2160_vm1, %v10397_v56, 0  ;;  %v10446_v0 = vpop.permute.xlu1 %10445  ;;  %v10453_v56 = vsel %vm2160_vm1, %v10448_v4, 0 }
 0xb33   : > { %9840 = vadd.xlane.f32.xlu0 %v9804_v37  ;;  %v13997_v62 = vpop.f32.mrb[221].mxu0  ;;  %14120 = vmatpush3.bf16.xpose.msra.mxu1 %v10351_v40 }
 0xb34   : > { %v20368_v57 = vpop.f32.mrb[222].mxu0  ;;  %14121 = vmatprep.mubr.msk.bf16.mxu1 %vm15602_vm0, %v22333_v48  ;;  %14125 = vmatprep.subr.bf16.mxu1 %v22333_v48 }
 0xb35   : > { %v13998_v3 = vpop.f32.mrb[223].mxu0 }
 0xb36   : > { %v20395_v37 = vpop.permute.xlu1 %10496 }
 0xb37   : > { %9872 = vadd.xlane.f32.xlu0 %v9820_v7  ;;  %22744 = vst [vmem:[#allocation225_spill] sm:$0xff] %v20395_v37 }
 0xb3a   : > { %v20378_v28 = vpop.f32.mrb[224].mxu0  ;;  %14122 = vmatmul.mubr.msk.bf16.vlgmr.msra.gmra.mrb[68].mxu1 %vm2160_vm1, %v10344_v60  ;;  %v20389_v60 = vpop.permute.xlu0 %10600 }
 0xb3b   : > { %v14009_v10 = vpop.f32.mrb[225].mxu0  ;;  %14126 = vmatpush3.bf16.xpose.msra.mxu1 %v10402_v11  ;;  %14127 = vmatprep.mubr.msk.bf16.mxu1 %vm15602_vm0, %v22333_v48  ;;  %22743 = vst [vmem:[#allocation223_spill] sm:$0xff] %v20389_v60  ;;  %v10548_v4 = vpop.permute.xlu1 %10547 }
 0xb3c   : > { %v20383_v43 = vpop.f32.mrb[226].mxu0  ;;  %14131 = vmatprep.subr.bf16.mxu1 %v22333_v48  ;;  %v15128_v11 = vpop.eup %15127  ;;  %v10555_v10 = vsel %vm2160_vm1, %v10550_v47, 0  ;;  %15159 = vrcp.f32 %v20262_v15 }
 0xb3d   : > { %v14010_v22 = vpop.f32.mrb[227].mxu0 }
 0xb3e   : > { %v10652_v3 = vpop.permute.xlu0 %10651 }
 0xb3f   : > { %9374 = vrot.lane.b32.xlu1 %v9296_v13, %s15604_s24  ;;  %v9297_v13 = vmul.f32 %v15128_v11, %v20316_v33  ;;  %v10657_v11 = vsel %vm2160_vm1, %v10652_v3, 0 }
 0xb42   : > { %v20392_v45 = vpop.f32.mrb[32].mxu1  ;;  %14128 = vmatmul.mubr.msk.bf16.vlgmr.msra.gmra.mrb[72].mxu1 %vm2160_vm1, %v10395_v44 }
 0xb43   : > { %v14015_v40 = vpop.f32.mrb[33].mxu1  ;;  %14132 = vmatpush3.bf16.xpose.msra.mxu1 %v10453_v56  ;;  %14133 = vmatprep.mubr.msk.bf16.mxu1 %vm15602_vm0, %v22333_v48 }
 0xb44   : > { %v20399_v26 = vpop.f32.mrb[34].mxu1  ;;  %14143 = vmatprep.subr.bf16.mxu1 %v22333_v48  ;;  %v20416_v40 = vpop.permute.xlu0 %10702 }
 0xb45   : > { %v14016_v42 = vpop.f32.mrb[35].mxu1  ;;  %22746 = vst [vmem:[#allocation186_spill] sm:$0xff] %v20416_v40 }
 0xb46   : > { %v20402_v62 = vpop.f32.mrb[228].mxu0 }
 0xb47   : > { %v14021_v23 = vpop.f32.mrb[229].mxu0 }
 0xb48   : > { %v20404_v7 = vpop.f32.mrb[230].mxu0  ;;  %v20421_v23 = vpop.permute.xlu1 %10598 }
 0xb49   : > { %22745 = vst [vmem:[#allocation184_spill] sm:$0xff] %v20404_v7  ;;  %v14022_v44 = vpop.f32.mrb[231].mxu0  ;;  %22748 = vst [vmem:[#allocation201_spill] sm:$0xff] %v20421_v23 }
 0xb4a   : > { %v20407_v59 = vpop.f32.mrb[36].mxu1  ;;  %14134 = vmatmul.mubr.msk.bf16.vlgmr.msra.gmra.mrb[76].mxu1 %vm2160_vm1, %v10446_v0 }
 0xb4b   : > { %v14027_v22 = vpop.f32.mrb[37].mxu1  ;;  %14144 = vmatpush3.bf16.xpose.msra.mxu1 %v10555_v10  ;;  %14145 = vmatprep.mubr.msk.bf16.mxu1 %vm15602_vm0, %v22333_v48 }
 0xb4c   : > { %v20413_v56 = vpop.f32.mrb[38].mxu1  ;;  %14155 = vmatprep.subr.bf16.mxu1 %v22333_v48  ;;  %v10754_v22 = vpop.permute.xlu0 %10753 }
 0xb4d   : > { %9376 = vrot.lane.b32.xlu0 %v9297_v13, %s15604_s24  ;;  %v14028_v47 = vpop.f32.mrb[39].mxu1 }
 0xb4e   : > { %v20419_v42 = vpop.f32.mrb[232].mxu0  ;;  %v10650_v47 = vpop.permute.xlu1 %10649 }
 0xb4f   : > { %22747 = vst [vmem:[#allocation204_spill] sm:$0xff] %v20419_v42  ;;  %v14033_v0 = vpop.f32.mrb[233].mxu0 }
 0xb50   : > { %v20423_v33 = vpop.f32.mrb[234].mxu0  ;;  %v20438_v40 = vpop.permute.xlu0 %10804 }
 0xb51   : > { %22749 = vst [vmem:[#allocation196_spill] sm:$0xff] %v20423_v33  ;;  %v14034_v44 = vpop.f32.mrb[235].mxu0  ;;  %22752 = vst [vmem:[#allocation237_spill] sm:$0xff] %v20438_v40 }
 0xb52   : > { %v20426_v10 = vpop.f32.mrb[40].mxu1  ;;  %14146 = vmatmul.mubr.msk.bf16.vlgmr.msra.gmra.mrb[80].mxu1 %vm2160_vm1, %v10548_v4  ;;  %v20444_v60 = vpop.permute.xlu1 %10700 }
 0xb53   : > { %v14039_v37 = vpop.f32.mrb[41].mxu1  ;;  %14156 = vmatpush3.bf16.xpose.msra.mxu1 %v10657_v11  ;;  %14157 = vmatprep.mubr.msk.bf16.mxu1 %vm15602_vm0, %v22333_v48  ;;  %22753 = vst [vmem:[#allocation234_spill] sm:$0xff] %v20444_v60 }
 0xb54   : > { %v20431_v13 = vpop.f32.mrb[42].mxu1  ;;  %14167 = vmatprep.subr.bf16.mxu1 %v22333_v48  ;;  %v10759_v37 = vsel %vm2160_vm1, %v10754_v22, 0  ;;  %v10856_v40 = vpop.permute.xlu0 %10855 }
 0xb55   : > { %v14040_v0 = vpop.f32.mrb[43].mxu1  ;;  %v10861_v38 = vsel %vm2160_vm1, %v10856_v40, 0  ;;  %v22757_v40 = vld [vmem:[#allocation28_spill] sm:$0xff] }
 0xb56   : > { %v20434_v23 = vpop.f32.mrb[236].mxu0 }
 0xb57   : > { %22750 = vst [vmem:[#allocation229_spill] sm:$0xff] %v20434_v23  ;;  %v14045_v44 = vpop.f32.mrb[237].mxu0 }
 0xb58   : > { %v20436_v3 = vpop.f32.mrb[238].mxu0 }
 0xb59   : > { %22751 = vst [vmem:[#allocation228_spill] sm:$0xff] %v20436_v3  ;;  %v14046_v4 = vpop.f32.mrb[239].mxu0  ;;  %v22754_v3 = vld [vmem:[#allocation25_spill] sm:$0xff] }
 0xb5a   : > { %v20441_v11 = vpop.f32.mrb[44].mxu1  ;;  %14158 = vmatmul.mubr.msk.bf16.vlgmr.msra.gmra.mrb[84].mxu1 %vm2160_vm1, %v10650_v47  ;;  %v10752_v4 = vpop.permute.xlu1 %10751  ;;  %v9805_v22 = vmul.f32 %v20281_v12, %v22754_v3  ;;  %v9806_v3 = vmul.f32 %v20281_v12, %v22757_v40  ;;  %v22760_v40 = vld [vmem:[#allocation44_spill] sm:$0xff] }
 0xb5b   : > { %v14051_v5 = vpop.f32.mrb[45].mxu1  ;;  %14168 = vmatpush3.bf16.xpose.msra.mxu1 %v10759_v37  ;;  %14169 = vmatprep.mubr.msk.bf16.mxu1 %vm15602_vm0, %v22333_v48  ;;  %v10854_v37 = vpop.permute.xlu0 %10853  ;;  %v9823_v24 = vmul.f32 %v20281_v12, %v22760_v40 }
 0xb5c   : > { %v20448_v0 = vpop.f32.mrb[46].mxu1  ;;  %14179 = vmatprep.subr.bf16.mxu1 %v22333_v48  ;;  %v22755_v5 = vld [vmem:[#allocation38_spill] sm:$0xff] }
 0xb5d   : > { %v14052_v44 = vpop.f32.mrb[47].mxu1  ;;  %v9821_v47 = vmul.f32 %v20281_v12, %v22755_v5 }
 0xb5e   : > { %v22756_v44 = vld [vmem:[#allocation27_spill] sm:$0xff] }
 0xb5f   : > { %v9807_v60 = vmul.f32 %v20281_v12, %v22756_v44 }
 0xb62   : > { %14170 = vmatmul.mubr.msk.bf16.vlgmr.msra.gmra.mrb[88].mxu1 %vm2160_vm1, %v10752_v4 }
 0xb63   : > { %9842 = vadd.xlane.f32.xlu1 %v9805_v22  ;;  %14180 = vmatpush3.bf16.xpose.msra.mxu1 %v10861_v38  ;;  %v22758_v38 = vld [vmem:[#allocation42_spill] sm:$0xff]  ;;  %v22759_v22 = vld [vmem:[#allocation31_spill] sm:$0xff] }
 0xb64   : > { %14181 = vmatprep.mubr.msk.bf16.mxu1 %vm15602_vm0, %v22333_v48  ;;  %14191 = vmatprep.subr.bf16.mxu1 %v22333_v48  ;;  %v9822_v4 = vmul.f32 %v20281_v12, %v22758_v38  ;;  %v9808_v5 = vmul.f32 %v20281_v12, %v22759_v22  ;;  %v22763_v22 = vld [vmem:[#allocation39_spill] sm:$0xff] }
 0xb67   : > { %9874 = vadd.xlane.f32.xlu1 %v9821_v47  ;;  %v15130_v47 = vpop.eup %15129  ;;  %15161 = vrcp.f32 %v20271_v17 }
 0xb6a   : > { %14182 = vmatmul.mubr.msk.bf16.vlgmr.msra.gmra.mrb[92].mxu1 %vm2160_vm1, %v10854_v37  ;;  %v9300_v37 = vmul.f32 %v15130_v47, %v20392_v45  ;;  %v22765_v47 = vld [vmem:[#allocation45_spill] sm:$0xff] }
 0xb6b   : > { %9846 = vadd.xlane.f32.xlu1 %v9807_v60  ;;  %14193 = vmatprep.mubr.msk.bf16.mxu1 %vm15602_vm0, %v22333_v48  ;;  %v15132_v60 = vpop.eup %15131  ;;  %15163 = vrcp.f32 %v20269_v25 }
 0xb6c   : > { %9844 = vadd.xlane.f32.xlu0 %v9806_v3  ;;  %v9301_v44 = vmul.f32 %v15132_v60, %v20399_v26  ;;  %v22761_v3 = vld [vmem:[#allocation29_spill] sm:$0xff]  ;;  %v9810_v26 = vmul.f32 %v20281_v12, %v22764_v39  ;;  %v15134_v60 = vpop.eup %15133  ;;  %15165 = vrcp.f32 %v20277_v50 }
 0xb6d   : > { %v9809_v38 = vmul.f32 %v20281_v12, %v22761_v3  ;;  %v15136_v40 = vpop.eup %15135  ;;  %v22766_v3 = vld [vmem:[#allocation35_spill] sm:$0xff]  ;;  %15167 = vrcp.f32 %v20279_v41  ;;  %v22813_v41 = vld [vmem:[#allocation196_spill] sm:$0xff] }
 0xb6e   : > { %v9811_v6 = vmul.f32 %v20281_v12, %v22766_v3 }
 0xb70   : > { %9876 = vadd.xlane.f32.xlu0 %v9822_v4  ;;  %v22762_v4 = vld [vmem:[#allocation40_spill] sm:$0xff] }
 0xb71   : > { %v9825_v45 = vmul.f32 %v20281_v12, %v22762_v4 }
 0xb74   : > { %9848 = vadd.xlane.f32.xlu0 %v9808_v5  ;;  %v9824_v5 = vmul.f32 %v20281_v12, %v22763_v22  ;;  %v22769_v22 = vld [vmem:[#allocation43_spill] sm:$0xff] }
 0xb7c   : > { %9382 = vrot.lane.b32.xlu1 %v9300_v37, %s15604_s24  ;;  %v9826_v37 = vmul.f32 %v20281_v12, %v22765_v47  ;;  %v22770_v47 = vld [vmem:[#allocation50_spill] sm:$0xff] }
 0xb8a   : > { %9384 = vrot.lane.b32.xlu0 %v9301_v44, %s15604_s24  ;;  %v9304_v44 = vmul.f32 %v15134_v60, %v20407_v59  ;;  %v22771_v60 = vld [vmem:[#allocation48_spill] sm:$0xff] }
 0xba0   : > { %9878 = vadd.xlane.f32.xlu1 %v9823_v24  ;;  %v9305_v24 = vmul.f32 %v15136_v40, %v20413_v56 }
 0xba4   : > { %9850 = vadd.xlane.f32.xlu1 %v9809_v38  ;;  %v22767_v38 = vld [vmem:[#allocation46_spill] sm:$0xff] }
 0xba5   : > { %v9827_v4 = vmul.f32 %v20281_v12, %v22767_v38  ;;  %v15138_v38 = vpop.eup %15137 }
 0xba8   : > { %9882 = vadd.xlane.f32.xlu1 %v9825_v45  ;;  %v22768_v45 = vld [vmem:[#allocation41_spill] sm:$0xff] }
 0xba9   : > { %9880 = vadd.xlane.f32.xlu0 %v9824_v5  ;;  %v9813_v59 = vmul.f32 %v20281_v12, %v22768_v45  ;;  %v9812_v5 = vmul.f32 %v20281_v12, %v22769_v22 }
 0xbad   : > { %9852 = vadd.xlane.f32.xlu0 %v9810_v26 }
 0xbb1   : > { %9884 = vadd.xlane.f32.xlu0 %v9826_v37  ;;  %v9828_v37 = vmul.f32 %v20281_v12, %v22770_v47 }
 0xbb9   : > { %9390 = vrot.lane.b32.xlu1 %v9304_v44, %s15604_s24  ;;  %v9814_v44 = vmul.f32 %v20281_v12, %v22771_v60 }
 0xbc7   : > { %9392 = vrot.lane.b32.xlu0 %v9305_v24, %s15604_s24 }
 0xbdd   : > { %9854 = vadd.xlane.f32.xlu1 %v9811_v6 }
 0xbe1   : > { %9886 = vadd.xlane.f32.xlu1 %v9827_v4  ;;  %v9308_v4 = vmul.f32 %v15138_v38, %v20426_v10 }
 0xbe5   : > { %9858 = vadd.xlane.f32.xlu1 %v9813_v59  ;;  %v20503_v36 = vpop.f32.mrb[48].mxu1 }
 0xbe6   : > { %9856 = vadd.xlane.f32.xlu0 %v9812_v5  ;;  %v14093_v56 = vpop.f32.mrb[49].mxu1 }
 0xbe7   : > { %v20505_v39 = vpop.f32.mrb[50].mxu1 }
 0xbe8   : > { %v14094_v26 = vpop.f32.mrb[51].mxu1 }
 0xbea   : > { %9888 = vadd.xlane.f32.xlu0 %v9828_v37  ;;  %v15140_v37 = vpop.eup %15139 }
 0xbeb   : > { %v9309_v60 = vmul.f32 %v15140_v37, %v20431_v13  ;;  %v22781_v37 = vld [vmem:[#allocation49_spill] sm:$0xff] }
 0xbed   : > { %v20512_v40 = vpop.f32.mrb[52].mxu1 }
 0xbee   : > { %9860 = vadd.xlane.f32.xlu0 %v9814_v44  ;;  %v14099_v24 = vpop.f32.mrb[53].mxu1 }
 0xbef   : > { %v20514_v3 = vpop.f32.mrb[54].mxu1 }
 0xbf0   : > { %v14100_v6 = vpop.f32.mrb[55].mxu1 }
 0xbf5   : > { %v20517_v45 = vpop.f32.mrb[56].mxu1 }
 0xbf6   : > { %9398 = vrot.lane.b32.xlu1 %v9308_v4, %s15604_s24  ;;  %v14105_v59 = vpop.f32.mrb[57].mxu1 }
 0xbf7   : > { %v20521_v27 = vpop.f32.mrb[58].mxu1 }
 0xbf8   : > { %22772 = vst [vmem:[#allocation242_spill] sm:$0xff] %v20521_v27  ;;  %v14106_v22 = vpop.f32.mrb[59].mxu1 }
 0xbfd   : > { %v20523_v5 = vpop.f32.mrb[60].mxu1 }
 0xbfe   : > { %22773 = vst [vmem:[#allocation174_spill] sm:$0xff] %v20523_v5  ;;  %v14111_v56 = vpop.f32.mrb[61].mxu1 }
 0xbff   : > { %v20525_v26 = vpop.f32.mrb[62].mxu1 }
 0xc00   : > { %22774 = vst [vmem:[#allocation190_spill] sm:$0xff] %v20525_v26  ;;  %v14112_v47 = vpop.f32.mrb[63].mxu1 }
 0xc04   : > { %9400 = vrot.lane.b32.xlu0 %v9309_v60, %s15604_s24  ;;  %v9829_v60 = vmul.f32 %v20281_v12, %v22781_v37 }
 0xc05   : > { %v20529_v10 = vpop.f32.mrb[64].mxu1 }
 0xc06   : > { %22775 = vst [vmem:[#allocation173_spill] sm:$0xff] %v20529_v10  ;;  %v14117_v44 = vpop.f32.mrb[65].mxu1 }
 0xc07   : > { %v20531_v24 = vpop.f32.mrb[66].mxu1  ;;  %v22782_v44 = vld [vmem:[#allocation47_spill] sm:$0xff] }
 0xc08   : > { %22776 = vst [vmem:[#allocation202_spill] sm:$0xff] %v20531_v24  ;;  %v14118_v35 = vpop.f32.mrb[67].mxu1  ;;  %v9815_v48 = vmul.f32 %v20281_v12, %v22782_v44 }
 0xc0d   : > { %v20533_v6 = vpop.f32.mrb[68].mxu1 }
 0xc0e   : > { %22777 = vst [vmem:[#allocation180_spill] sm:$0xff] %v20533_v6  ;;  %v14123_v38 = vpop.f32.mrb[69].mxu1 }
 0xc0f   : > { %v20535_v4 = vpop.f32.mrb[70].mxu1 }
 0xc10   : > { %22778 = vst [vmem:[#allocation211_spill] sm:$0xff] %v20535_v4  ;;  %v14124_v59 = vpop.f32.mrb[71].mxu1  ;;  %v22785_v4 = vld [vmem:[#allocation51_spill] sm:$0xff] }
 0xc15   : > { %v20537_v22 = vpop.f32.mrb[72].mxu1 }
 0xc16   : > { %22779 = vst [vmem:[#allocation189_spill] sm:$0xff] %v20537_v22  ;;  %v14129_v56 = vpop.f32.mrb[73].mxu1 }
 0xc17   : > { %v20539_v47 = vpop.f32.mrb[74].mxu1  ;;  %v9830_v56 = vmul.f32 %v20281_v12, %v22785_v4 }
 0xc18   : > { %22780 = vst [vmem:[#allocation213_spill] sm:$0xff] %v20539_v47  ;;  %v14130_v13 = vpop.f32.mrb[75].mxu1 }
 0xc19   : > { %v20552_v13 = vpop.permute.xlu1 %10802 }
 0xc1a   : > { %9890 = vadd.xlane.f32.xlu1 %v9829_v60  ;;  %22786 = vst [vmem:[#allocation215_spill] sm:$0xff] %v20552_v13 }
 0xc1d   : > { %v20545_v35 = vpop.f32.mrb[76].mxu1 }
 0xc1e   : > { %22783 = vst [vmem:[#allocation203_spill] sm:$0xff] %v20545_v35  ;;  %9862 = vadd.xlane.f32.xlu1 %v9815_v48  ;;  %v14135_v38 = vpop.f32.mrb[77].mxu1  ;;  %v9351_v48 = vpop.permute.xlu1 %9350 }
 0xc1f   : > { %v20547_v24 = vpop.f32.mrb[78].mxu1  ;;  %v9353_v38 = vpop.permute.xlu0 %9352 }
 0xc20   : > { %22784 = vst [vmem:[#allocation217_spill] sm:$0xff] %v20547_v24  ;;  %v14136_v59 = vpop.f32.mrb[79].mxu1  ;;  %v15142_v35 = vpop.eup %15141  ;;  %v22790_v24 = vld [vmem:[#allocation165_spill] sm:$0xff] }
 0xc21   : > { %v22789_v59 = vld [vmem:[#allocation191_spill] sm:$0xff]  ;;  %v9445_v14 = vmul.f32 %v22790_v24, %v9353_v38  ;;  %v15144_v46 = vpop.eup %15143 }
 0xc22   : > { %v9444_v4 = vmul.f32 %v22789_v59, %v9351_v48  ;;  %v9283_v48 = vmul.f32 %v15144_v46, %v20332_v2  ;;  %v9359_v38 = vpop.permute.xlu1 %9358  ;;  %v22796_v59 = vld [vmem:[#allocation206_spill] sm:$0xff] }
 0xc23   : > { %9892 = vadd.xlane.f32.xlu0 %v9830_v56  ;;  %v9313_v56 = vmul.f32 %v15142_v35, %v20448_v0  ;;  %v15146_v35 = vpop.eup %15145  ;;  %v9361_v24 = vpop.permute.xlu0 %9360 }
 0xc24   : > { %v15148_v8 = vpop.eup %15147  ;;  %v9449_v2 = vmul.f32 %v22796_v59, %v9361_v24 }
 0xc25   : > { %v20554_v37 = vpop.f32.mrb[80].mxu1  ;;  %v15150_v46 = vpop.eup %15149 }
 0xc26   : > { %22787 = vst [vmem:[#allocation94_spill] sm:$0xff] %v20554_v37  ;;  %v14147_v60 = vpop.f32.mrb[81].mxu1  ;;  %v9475_v37 = vpack.c.bf16 %v9445_v14, %v9444_v4  ;;  %v9286_v4 = vmul.f32 %v15148_v8, %v20336_v16 }
 0xc27   : > { %v20556_v47 = vpop.f32.mrb[82].mxu1  ;;  %v20592_v24 = vpop.xlane.xlu0 %9834 }
 0xc28   : > { %22788 = vst [vmem:[#allocation218_spill] sm:$0xff] %v20556_v47  ;;  %v14148_v44 = vpop.f32.mrb[83].mxu1 }
 0xc2b   : > { %v9837_v8 = vpop.xlane.xlu0 %9836 }
 0xc2d   : > { %v20563_v13 = vpop.f32.mrb[84].mxu1 }
 0xc2e   : > { %22791 = vst [vmem:[#allocation220_spill] sm:$0xff] %v20563_v13  ;;  %v14159_v60 = vpop.f32.mrb[85].mxu1 }
 0xc2f   : > { %9408 = vrot.lane.b32.xlu1 %v9313_v56, %s15604_s24  ;;  %v20567_v44 = vpop.f32.mrb[86].mxu1  ;;  %v9312_v60 = vmul.f32 %v15146_v35, %v20441_v11 }
 0xc30   : > { %22792 = vst [vmem:[#allocation71_spill] sm:$0xff] %v20567_v44  ;;  %v14160_v51 = vpop.f32.mrb[87].mxu1 }
 0xc33   : > { %9512 = vrot.lane.b32.xlu1 %v9475_v37, %s15604_s24  ;;  %v22795_v37 = vld [vmem:[#allocation193_spill] sm:$0xff] }
 0xc34   : > { %v9448_v14 = vmul.f32 %v22795_v37, %v9359_v38  ;;  %v20590_v38 = vpop.xlane.xlu1 %9832 }
 0xc35   : > { %v20572_v0 = vpop.f32.mrb[88].mxu1 }
 0xc36   : > { %22793 = vst [vmem:[#allocation222_spill] sm:$0xff] %v20572_v0  ;;  %v14171_v53 = vpop.f32.mrb[89].mxu1  ;;  %v9282_v0 = vmul.f32 %v15150_v46, %v20327_v20  ;;  %v9477_v11 = vpack.c.bf16 %v9449_v2, %v9448_v14 }
 0xc37   : > { %v20575_v56 = vpop.f32.mrb[90].mxu1  ;;  %9348 = vrot.lane.b32.xlu1 %v9283_v48, %s15604_s24 }
 0xc38   : > { %22794 = vst [vmem:[#allocation221_spill] sm:$0xff] %v20575_v56  ;;  %v14172_v51 = vpop.f32.mrb[91].mxu1  ;;  %v15152_v56 = vpop.eup %15151 }
 0xc39   : > { %9406 = vrot.lane.b32.xlu0 %v9312_v60, %s15604_s24  ;;  %v9367_v60 = vpop.permute.xlu1 %9366  ;;  %v20594_v51 = vpop.xlane.xlu0 %9864  ;;  %v9290_v47 = vmul.f32 %v15152_v56, %v20349_v29 }
 0xc3a   : > { %v9452_v27 = vmul.f32 %v22802_v32, %v9367_v60  ;;  %v22806_v32 = vld [vmem:[#allocation207_spill] sm:$0xff] }
 0xc3b   : > { %9354 = vrot.lane.b32.xlu1 %v9286_v4, %s15604_s24  ;;  %v9939_v42 = vrot.slane %v20592_v24, %v22806_v32 }
 0xc3d   : > { %9346 = vrot.lane.b32.xlu0 %v9282_v0, %s15604_s24  ;;  %v20585_v35 = vpop.f32.mrb[92].mxu1  ;;  %v9839_v20 = vpop.xlane.xlu1 %9838 }
 0xc3e   : > { %22797 = vst [vmem:[#allocation226_spill] sm:$0xff] %v20585_v35  ;;  %v14183_v48 = vpop.f32.mrb[93].mxu1  ;;  %v9369_v0 = vpop.permute.xlu0 %9368  ;;  %v9948_v18 = vrot.slane %v9839_v20, %v22806_v32 }
 0xc3f   : > { %v20587_v53 = vpop.f32.mrb[94].mxu1  ;;  %9516 = vrot.lane.b32.xlu1 %v9477_v11, %s15604_s24  ;;  %v22799_v48 = vld [vmem:[#allocation53_spill] sm:$0xff] }
 0xc40   : > { %22798 = vst [vmem:[#allocation224_spill] sm:$0xff] %v20587_v53  ;;  %v14184_v16 = vpop.f32.mrb[95].mxu1 }
 0xc41   : > { %v20596_v4 = vpop.xlane.xlu1 %9866  ;;  %v9831_v16 = vmul.f32 %v20281_v12, %v22799_v48  ;;  %v15154_v12 = vpop.eup %15153 }
 0xc42   : > { %v20600_v2 = vpop.xlane.xlu0 %9868  ;;  %v9294_v48 = vmul.f32 %v15154_v12, %v20365_v30 }
 0xc45   : > { %v20598_v14 = vpop.xlane.xlu1 %9870 }
 0xc46   : > { %v9841_v11 = vpop.xlane.xlu0 %9840 }
 0xc49   : > { %v20602_v46 = vpop.permute.xlu1 %9374 }
 0xc4a   : > { %v20607_v37 = vpop.xlane.xlu0 %9872 }
 0xc4d   : > { %v9843_v59 = vpop.xlane.xlu1 %9842 }
 0xc4e   : > { %v20612_v53 = vpop.permute.xlu0 %9376 }
 0xc4f   : > { %v9457_v50 = vmul.f32 %v22604_v55, %v20612_v53 }
 0xc51   : > { %v20610_v35 = vpop.xlane.xlu1 %9874 }
 0xc52   : > { %v9845_v44 = vpop.xlane.xlu0 %9844 }
 0xc55   : > { %v9847_v13 = vpop.xlane.xlu1 %9846 }
 0xc56   : > { %v20620_v26 = vpop.xlane.xlu0 %9876 }
 0xc59   : > { %v20618_v22 = vpop.permute.xlu1 %9382 }
 0xc5a   : > { %22801 = vst [vmem:[#allocation177_spill] sm:$0xff] %v20618_v22  ;;  %v9849_v29 = vpop.xlane.xlu0 %9848  ;;  %v22807_v22 = vld [vmem:[#allocation210_spill] sm:$0xff] }
 0xc5b   : > { %v9935_v9 = vrot.slane %v20590_v38, %v22807_v22  ;;  %v9944_v33 = vrot.slane %v9837_v8, %v22807_v22  ;;  %v9962_v54 = vrot.slane %v9845_v44, %v22807_v22  ;;  %v9953_v20 = vrot.slane %v9841_v11, %v22807_v22 }
 0xc5c   : > { %v9971_v58 = vrot.slane %v9849_v29, %v22807_v22 }
 0xc5d   : > { %v20624_v10 = vpop.xlane.xlu1 %9878  ;;  %v9949_v38 = vsel %vm2000_vm2, %v9948_v18, %v9944_v33 }
 0xc5e   : > { %v20627_v56 = vpop.permute.xlu0 %9384 }
 0xc5f   : > { %22803 = vst [vmem:[#allocation227_spill] sm:$0xff] %v20627_v56  ;;  %v9957_v56 = vrot.slane %v9843_v59, %v22806_v32 }
 0xc63   : > { %9894 = vadd.xlane.f32.xlu1 %v9831_v16  ;;  %v22800_v16 = vld [vmem:[#allocation167_spill] sm:$0xff] }
 0xc64   : > { %v9453_v61 = vmul.f32 %v22800_v16, %v9369_v0  ;;  %v20631_v0 = vpop.xlane.xlu0 %9880 }
 0xc66   : > { %v9479_v6 = vpack.c.bf16 %v9453_v61, %v9452_v27 }
 0xc68   : > { %v9853_v16 = vpop.xlane.xlu0 %9852 }
 0xc69   : > { %v9980_v11 = vrot.slane %v9853_v16, %v22807_v22 }
 0xc6c   : > { %v20635_v60 = vpop.xlane.xlu0 %9884 }
 0xc70   : > { %v20639_v27 = vpop.permute.xlu0 %9392 }
 0xc71   : > { %22805 = vst [vmem:[#allocation181_spill] sm:$0xff] %v20639_v27  ;;  %v9966_v27 = vrot.slane %v9847_v13, %v22806_v32  ;;  %v9940_v13 = vsel %vm2000_vm2, %v9939_v42, %v9935_v9 }
 0xc72   : > { %v10076_v18 = vsel %vm2137_vm3, %v9949_v38, %v9940_v13 }
 0xc73   : > { %v9967_v44 = vsel %vm2000_vm2, %v9966_v27, %v9962_v54 }
 0xc74   : > { %9362 = vrot.lane.b32.xlu1 %v9290_v47, %s15604_s24  ;;  %v9851_v47 = vpop.xlane.xlu1 %9850 }
 0xc75   : > { %v9975_v7 = vrot.slane %v9851_v47, %v22806_v32 }
 0xc77   : > { %v9976_v33 = vsel %vm2000_vm2, %v9975_v7, %v9971_v58 }
 0xc78   : > { %9370 = vrot.lane.b32.xlu1 %v9294_v48, %s15604_s24  ;;  %v20629_v30 = vpop.xlane.xlu1 %9882 }
 0xc7c   : > { %9520 = vrot.lane.b32.xlu1 %v9479_v6, %s15604_s24  ;;  %v20633_v12 = vpop.permute.xlu1 %9390  ;;  %v9857_v6 = vpop.xlane.xlu0 %9856 }
 0xc7d   : > { %22804 = vst [vmem:[#allocation192_spill] sm:$0xff] %v20633_v12  ;;  %v9989_v8 = vrot.slane %v9857_v6, %v22807_v22 }
 0xc80   : > { %v9855_v5 = vpop.xlane.xlu1 %9854  ;;  %v20647_v12 = vpop.xlane.xlu0 %9888 }
 0xc81   : > { %v9984_v59 = vrot.slane %v9855_v5, %v22806_v32 }
 0xc83   : > { %v9985_v29 = vsel %vm2000_vm2, %v9984_v59, %v9980_v11  ;;  %v15156_v59 = vpop.eup %15155 }
 0xc84   : > { %v20637_v48 = vpop.xlane.xlu1 %9886  ;;  %v9861_v5 = vpop.xlane.xlu0 %9860 }
 0xc85   : > { %v9998_v54 = vrot.slane %v9861_v5, %v22807_v22  ;;  %v10038_v5 = vrot.slane %v20624_v10, %v22806_v32 }
 0xc88   : > { %v9859_v61 = vpop.xlane.xlu1 %9858 }
 0xc89   : > { %v9993_v24 = vrot.slane %v9859_v61, %v22806_v32 }
 0xc8b   : > { %v9994_v61 = vsel %vm2000_vm2, %v9993_v24, %v9989_v8  ;;  %v9287_v24 = vmul.f32 %v15156_v59, %v20341_v21  ;;  %v15158_v8 = vpop.eup %15157  ;;  %v10020_v21 = vrot.slane %v20598_v14, %v22806_v32  ;;  %v10047_v14 = vrot.slane %v20629_v30, %v22806_v32 }
 0xc8c   : > { %v20645_v23 = vpop.permute.xlu1 %9398 }
 0xc8d   : > { %22808 = vst [vmem:[#allocation176_spill] sm:$0xff] %v20645_v23  ;;  %v9958_v23 = vsel %vm2000_vm2, %v9957_v56, %v9953_v20 }
 0xc8e   : > { %v10077_v47 = vsel %vm2139_vm4, %v9958_v23, %v10076_v18  ;;  %v10016_v18 = vrot.slane %v20600_v2, %v22807_v22  ;;  %v10043_v2 = vrot.slane %v20631_v0, %v22807_v22 }
 0xc8f   : > { %v10078_v56 = vsel %vm2141_vm5, %v9967_v44, %v10077_v47  ;;  %v10025_v47 = vrot.slane %v20607_v37, %v22807_v22 }
 0xc90   : > { %v10079_v9 = vsel %vm2143_vm6, %v9976_v33, %v10078_v56  ;;  %v10011_v33 = vrot.slane %v20596_v4, %v22806_v32  ;;  %v10007_v4 = vrot.slane %v20594_v51, %v22807_v22  ;;  %v10021_v10 = vsel %vm2000_vm2, %v10020_v21, %v10016_v18 }
 0xc91   : > { %v10080_v16 = vsel %vm2145_vm7, %v9985_v29, %v10079_v9  ;;  %v10034_v29 = vrot.slane %v20620_v26, %v22807_v22  ;;  %v10056_v56 = vrot.slane %v20637_v48, %v22806_v32  ;;  %v10052_v26 = vrot.slane %v20635_v60, %v22807_v22 }
 0xc92   : > { %v10081_v58 = vsel %vm2147_vm8, %v9994_v61, %v10080_v16  ;;  %v10012_v51 = vsel %vm2000_vm2, %v10011_v33, %v10007_v4  ;;  %v10048_v9 = vsel %vm2000_vm2, %v10047_v14, %v10043_v2  ;;  %v22810_v2 = vld [vmem:[#allocation172_spill] sm:$0xff] }
 0xc93   : > { %v10083_v48 = vsel %vm2137_vm3, %v10021_v10, %v10012_v51  ;;  %v10057_v16 = vsel %vm2000_vm2, %v10056_v56, %v10052_v26  ;;  %v22811_v4 = vld [vmem:[#allocation184_spill] sm:$0xff] }
 0xca7   : > { %v20662_v52 = vpop.xlane.xlu1 %9890 }
 0xca8   : > { %v10065_v30 = vrot.slane %v20662_v52, %v22806_v32  ;;  %v10061_v52 = vrot.slane %v20647_v12, %v22807_v22 }
 0xcab   : > { %v9863_v6 = vpop.xlane.xlu1 %9862 }
 0xcac   : > { %v10002_v42 = vrot.slane %v9863_v6, %v22806_v32  ;;  %v10039_v6 = vsel %vm2000_vm2, %v10038_v5, %v10034_v29  ;;  %v22812_v29 = vld [vmem:[#allocation95_spill] sm:$0xff] }
 0xcae   : > { %v10003_v7 = vsel %vm2000_vm2, %v10002_v42, %v9998_v54 }
 0xcaf   : > { %v20680_v23 = vsel %vm2149_vm9, %v10003_v7, %v10081_v58  ;;  %v20696_v13 = vpop.permute.xlu1 %9408  ;;  %v10066_v7 = vsel %vm2000_vm2, %v10065_v30, %v10061_v52  ;;  %v22814_v30 = vld [vmem:[#allocation204_spill] sm:$0xff] }
 0xcb0   : > { %v10133_v27 = vadd.f32 %v20503_v36, %v20680_v23  ;;  %v9291_v36 = vmul.f32 %v15158_v8, %v20354_v31  ;;  %v10184_v34 = vadd.f32 %v20512_v40, %v20680_v23  ;;  %v10029_v31 = vrot.slane %v20610_v35, %v22806_v32  ;;  %v20726_v35 = vpop.permute.xlu0 %9400 }
 0xcb2   : > { %v20686_v20 = vsel %vm518_vm10, -1e-09, %v10133_v27  ;;  %v20718_v40 = vsel %vm518_vm10, -1e-09, %v10184_v34  ;;  %v10030_v37 = vsel %vm2000_vm2, %v10029_v31, %v10025_v47  ;;  %v22809_v47 = vld [vmem:[#allocation88_spill] sm:$0xff] }
 0xcb3   : > { %v10936_v38 = vsel %vm2949_vm11, %v20686_v20, -inf  ;;  %v20698_v44 = vpop.permute.xlu1 %9512  ;;  %v10942_v0 = vsel %vm2949_vm11, %v20718_v40, -inf  ;;  %v10084_v42 = vsel %vm2139_vm4, %v10030_v37, %v10083_v48  ;;  %15169 = vrcp.f32 %v22809_v47  ;;  %v22816_v48 = vld [vmem:[#allocation227_spill] sm:$0xff] }
 0xcb4   : > { %10937 = vmax.xlane.f32.xlu0 %v10936_v38  ;;  %v9893_v54 = vpop.xlane.xlu0 %9892  ;;  %v10085_v58 = vsel %vm2141_vm5, %v10039_v6, %v10084_v42  ;;  %15171 = vrcp.f32 %v22810_v2  ;;  %v22815_v6 = vld [vmem:[#allocation229_spill] sm:$0xff]  ;;  %v22819_v42 = vld [vmem:[#allocation98_spill] sm:$0xff] }
 0xcb5   : > { %v10086_v60 = vsel %vm2143_vm6, %v10048_v9, %v10085_v58  ;;  %v10070_v38 = vrot.slane %v9893_v54, %v22807_v22  ;;  %15173 = vrcp.f32 %v22812_v29  ;;  %v22817_v9 = vld [vmem:[#allocation100_spill] sm:$0xff]  ;;  %v22818_v54 = vld [vmem:[#allocation177_spill] sm:$0xff] }
 0xcb6   : > { %v9461_v52 = vmul.f32 %v22817_v9, %v22816_v48  ;;  %v22830_v29 = vld [vmem:[#allocation192_spill] sm:$0xff] }
 0xcb7   : > { %v20700_v11 = vpop.permute.xlu1 %9348 }
 0xcbb   : > { %v20704_v1 = vpop.permute.xlu1 %9354 }
 0xcbf   : > { %v20738_v61 = vpop.permute.xlu1 %9516 }
 0xcca   : > { %9356 = vrot.lane.b32.xlu0 %v9287_v24, %s15604_s24  ;;  %v10087_v24 = vsel %vm2145_vm7, %v10057_v16, %v10086_v60  ;;  %v9460_v16 = vmul.f32 %v22819_v42, %v22818_v54  ;;  %v14597_v54 = vld [vmem:[%s21757_s8 + $0x20] sm:$0xff]  }
 0xccb   : > { %v10088_v12 = vsel %vm2147_vm8, %v10066_v7, %v10087_v24  ;;  %v22820_v7 = vld [vmem:[#allocation174_spill] sm:$0xff]  ;;  %14053 = vmatprep.subr.bf16.mxu0 %v14597_v54 }
 0xccc   : > { %v9483_v58 = vpack.c.bf16 %v9461_v52, %v9460_v16  ;;  %14054 = vmatpush3.bf16.msra.mxu0 %v14597_v54 }
 0xcce   : > { %9364 = vrot.lane.b32.xlu0 %v9291_v36, %s15604_s24 }
 0xced   : > { %10943 = vmax.xlane.f32.xlu0 %v10942_v0 }
 0xcf0   : > { %v9895_v27 = vpop.xlane.xlu1 %9894 }
 0xcf1   : > { %v10074_v59 = vrot.slane %v9895_v27, %v22806_v32  ;;  %v15160_v32 = vpop.eup %15159  ;;  %v10286_v27 = vadd.f32 %v22820_v7, %v20680_v23  ;;  %v14598_v7 = vld [vmem:[%s21757_s8 + $0x28] sm:$0xff]  }
 0xcf2   : > { %v9295_v18 = vmul.f32 %v15160_v32, %v20368_v57  ;;  %v15162_v15 = vpop.eup %15161  ;;  %v9456_v57 = vmul.f32 %v22605_v63, %v20602_v46  ;;  %14055 = vmatprep.subr.bf16.mxu0 %v14598_v7 }
 0xcf3   : > { %v10075_v8 = vsel %vm2000_vm2, %v10074_v59, %v10070_v38  ;;  %v15164_v31 = vpop.eup %15163  ;;  %v20825_v60 = vsel %vm518_vm10, -1e-09, %v10286_v27  ;;  %v22821_v38 = vld [vmem:[#allocation173_spill] sm:$0xff]  ;;  %14056 = vmatpush3.bf16.msra.mxu0 %v14598_v7  ;;  %v22842_v7 = vld [vmem:[#allocation195_spill] sm:$0xff] }
 0xcf4   : > { %v20761_v36 = vsel %vm2149_vm9, %v10075_v8, %v10088_v12  ;;  %v9298_v33 = vmul.f32 %v15164_v31, %v20378_v28  ;;  %v15166_v17 = vpop.eup %15165  ;;  %v9481_v5 = vpack.c.bf16 %v9457_v50, %v9456_v57  ;;  %v10337_v59 = vadd.f32 %v22821_v38, %v20680_v23  ;;  %v22822_v8 = vld [vmem:[#allocation180_spill] sm:$0xff]  ;;  %v9363_v16 = vpop.permute.xlu1 %9362 }
 0xcf5   : > { %v10136_v34 = vadd.f32 %v20505_v39, %v20761_v36  ;;  %v9299_v39 = vmul.f32 %v15162_v15, %v20383_v43  ;;  %v9302_v25 = vmul.f32 %v15166_v17, %v20402_v62  ;;  %v10235_v43 = vadd.f32 %v20517_v45, %v20680_v23  ;;  %v15168_v14 = vpop.eup %15167  ;;  %v22823_v15 = vld [vmem:[#allocation242_spill] sm:$0xff] }
 0xcf6   : > { %v10187_v53 = vadd.f32 %v20514_v3, %v20761_v36  ;;  %v9303_v10 = vmul.f32 %v15168_v14, %v22811_v4  ;;  %v15170_v3 = vpop.eup %15169  ;;  %v10954_v24 = vsel %vm2949_vm11, %v20825_v60, -inf  ;;  %v20833_v12 = vsel %vm518_vm10, -1e-09, %v10337_v59  ;;  %v22827_v14 = vld [vmem:[#allocation228_spill] sm:$0xff]  ;;  %v22828_v4 = vld [vmem:[#allocation181_spill] sm:$0xff] }
 0xcf7   : > { %v20768_v21 = vsel %vm519_vm12, -1e-09, %v10136_v34  ;;  %v20792_v28 = vsel %vm518_vm10, -1e-09, %v10235_v43  ;;  %v9307_v56 = vmul.f32 %v15170_v3, %v22813_v41  ;;  %v15172_v37 = vpop.eup %15171  ;;  %v10388_v34 = vadd.f32 %v22822_v8, %v20680_v23  ;;  %v22831_v41 = vld [vmem:[#allocation118_spill] sm:$0xff]  ;;  %v22834_v8 = vld [vmem:[#allocation211_spill] sm:$0xff] }
 0xcf8   : > { %v10939_v22 = vsel %vm2949_vm11, %v20768_v21, -inf  ;;  %v10948_v62 = vsel %vm2949_vm11, %v20792_v28, -inf  ;;  %v20801_v46 = vsel %vm519_vm12, -1e-09, %v10187_v53  ;;  %v9306_v0 = vmul.f32 %v15172_v37, %v22814_v30  ;;  %v15174_v51 = vpop.eup %15173  ;;  %v9407_v30 = vpop.permute.xlu0 %9406 }
 0xcf9   : > { %10940 = vmax.xlane.f32.xlu1 %v10939_v22  ;;  %v10945_v45 = vsel %vm2949_vm11, %v20801_v46, -inf  ;;  %v9310_v26 = vmul.f32 %v15174_v51, %v22815_v6  ;;  %v10960_v22 = vsel %vm2949_vm11, %v20833_v12, -inf  ;;  %v20841_v32 = vsel %vm518_vm10, -1e-09, %v10388_v34  ;;  %v22832_v51 = vld [vmem:[#allocation189_spill] sm:$0xff]  ;;  %v9371_v27 = vpop.permute.xlu1 %9370 }
 0xcfa   : > { %v10439_v6 = vadd.f32 %v22832_v51, %v20680_v23  ;;  %v22833_v59 = vmov 0.0   ;;  %v10391_v34 = vadd.f32 %v22834_v8, %v20761_v36 }
 0xcfb   : > { %14137 = vmatprep.subr.bf16.mxu0 %v22833_v59 }
 0xcfc   : > { %v20883_v48 = vsel %vm518_vm10, -1e-09, %v10439_v6  ;;  %v22841_v6 = vld [vmem:[#allocation178_spill] sm:$0xff] }
 0xcfd   : > { %v10972_v52 = vsel %vm2949_vm11, %v20883_v48, -inf }
 0xd03   : > { %9372 = vrot.lane.b32.xlu0 %v9295_v18, %s15604_s24  ;;  %v10966_v18 = vsel %vm2949_vm11, %v20841_v32, -inf }
 0xd07   : > { %9380 = vrot.lane.b32.xlu0 %v9299_v39, %s15604_s24  ;;  %v10238_v39 = vadd.f32 %v22823_v15, %v20761_v36 }
 0xd09   : > { %v20849_v31 = vsel %vm519_vm12, -1e-09, %v10238_v39  ;;  %v22836_v39 = vld [vmem:[#allocation175_spill] sm:$0xff] }
 0xd0a   : > { %9378 = vrot.lane.b32.xlu1 %v9298_v33, %s15604_s24  ;;  %v22824_v33 = vld [vmem:[#allocation190_spill] sm:$0xff]  ;;  %v10951_v50 = vsel %vm2949_vm11, %v20849_v31, -inf }
 0xd0b   : > { %v10289_v17 = vadd.f32 %v22824_v33, %v20761_v36 }
 0xd0d   : > { %v20858_v57 = vsel %vm519_vm12, -1e-09, %v10289_v17  ;;  %v20905_v17 = vsel %vm519_vm12, -1e-09, %v10391_v34  ;;  %v22843_v34 = vld [vmem:[#allocation182_spill] sm:$0xff] }
 0xd0e   : > { %9386 = vrot.lane.b32.xlu1 %v9302_v25, %s15604_s24  ;;  %v22825_v25 = vld [vmem:[#allocation52_spill] sm:$0xff] }
 0xd0f   : > { %15175 = vrcp.f32 %v22825_v25  ;;  %v22837_v25 = vld [vmem:[#allocation213_spill] sm:$0xff] }
 0xd12   : > { %9524 = vrot.lane.b32.xlu1 %v9481_v5, %s15604_s24  ;;  %v22826_v5 = vld [vmem:[#allocation202_spill] sm:$0xff] }
 0xd13   : > { %v10340_v43 = vadd.f32 %v22826_v5, %v20761_v36 }
 0xd15   : > { %v20866_v53 = vsel %vm519_vm12, -1e-09, %v10340_v43 }
 0xd19   : > { %v15176_v47 = vpop.eup %15175 }
 0xd1a   : > { %v9311_v2 = vmul.f32 %v15176_v47, %v22827_v14 }
 0xd26   : > { %10949 = vmax.xlane.f32.xlu0 %v10948_v62  ;;  %v10957_v62 = vsel %vm2949_vm11, %v20858_v57, -inf }
 0xd36   : > { %10946 = vmax.xlane.f32.xlu1 %v10945_v45  ;;  %v10963_v45 = vsel %vm2949_vm11, %v20866_v53, -inf }
 0xd3c   : > { %9388 = vrot.lane.b32.xlu0 %v9303_v10, %s15604_s24  ;;  %v22829_v10 = vld [vmem:[#allocation121_spill] sm:$0xff] }
 0xd3d   : > { %v9465_v3 = vmul.f32 %v22829_v10, %v22828_v4 }
 0xd40   : > { %9396 = vrot.lane.b32.xlu0 %v9307_v56, %s15604_s24  ;;  %v9464_v56 = vmul.f32 %v22831_v41, %v22830_v29 }
 0xd42   : > { %v9485_v37 = vpack.c.bf16 %v9465_v3, %v9464_v56 }
 0xd47   : > { %9394 = vrot.lane.b32.xlu1 %v9306_v0, %s15604_s24  ;;  %v9347_v0 = vpop.permute.xlu0 %9346 }
 0xd48   : > { %v9442_v33 = vmul.f32 %v22836_v39, %v9347_v0  ;;  %v22840_v0 = vld [vmem:[#allocation183_spill] sm:$0xff] }
 0xd4b   : > { %9402 = vrot.lane.b32.xlu1 %v9310_v26, %s15604_s24  ;;  %v20879_v26 = vpop.xlane.xlu0 %10937 }
 0xd4f   : > { %9528 = vrot.lane.b32.xlu1 %v9483_v58, %s15604_s24  ;;  %v9357_v58 = vpop.permute.xlu0 %9356 }
 0xd53   : > { %v9365_v38 = vpop.permute.xlu0 %9364 }
 0xd54   : > { %v9451_v51 = vmul.f32 %v22840_v0, %v9365_v38  ;;  %v22845_v38 = vld [vmem:[#allocation96_spill] sm:$0xff] }
 0xd5f   : > { %10955 = vmax.xlane.f32.xlu0 %v10954_v24 }
 0xd63   : > { %10961 = vmax.xlane.f32.xlu0 %v10960_v22  ;;  %v20898_v22 = vpop.permute.xlu1 %9520 }
 0xd67   : > { %10967 = vmax.xlane.f32.xlu0 %v10966_v18  ;;  %v22835_v18 = vld [vmem:[#allocation188_spill] sm:$0xff] }
 0xd68   : > { %v9443_v15 = vmul.f32 %v22835_v18, %v20700_v11 }
 0xd6a   : > { %v9474_v47 = vpack.c.bf16 %v9443_v15, %v9442_v33  ;;  %v9454_v15 = vmul.f32 %v22843_v34, %v9371_v27  ;;  %v22849_v27 = vld [vmem:[#allocation170_spill] sm:$0xff] }
 0xd73   : > { %10952 = vmax.xlane.f32.xlu1 %v10951_v50  ;;  %v10442_v50 = vadd.f32 %v22837_v25, %v20761_v36  ;;  %v22844_v25 = vld [vmem:[#allocation90_spill] sm:$0xff] }
 0xd75   : > { %v20916_v11 = vsel %vm519_vm12, -1e-09, %v10442_v50 }
 0xd76   : > { %v10975_v56 = vsel %vm2949_vm11, %v20916_v11, -inf }
 0xd77   : > { %10958 = vmax.xlane.f32.xlu1 %v10957_v62  ;;  %v10969_v62 = vsel %vm2949_vm11, %v20905_v17, -inf }
 0xd7a   : > { %v20894_v24 = vpop.xlane.xlu0 %10943 }
 0xd7b   : > { %10964 = vmax.xlane.f32.xlu1 %v10963_v45  ;;  %v22838_v45 = vld [vmem:[#allocation179_spill] sm:$0xff] }
 0xd7c   : > { %v9447_v14 = vmul.f32 %v22838_v45, %v9357_v58 }
 0xd7d   : > { %9404 = vrot.lane.b32.xlu0 %v9311_v2, %s15604_s24  ;;  %v22839_v2 = vld [vmem:[#allocation209_spill] sm:$0xff] }
 0xd7e   : > { %v9373_v5 = vpop.permute.xlu0 %9372  ;;  %v9446_v4 = vmul.f32 %v22839_v2, %v20704_v1 }
 0xd7f   : > { %v9455_v1 = vmul.f32 %v22842_v7, %v9373_v5  ;;  %v22847_v5 = vld [vmem:[#allocation109_spill] sm:$0xff] }
 0xd81   : > { %v9480_v33 = vpack.c.bf16 %v9455_v1, %v9454_v15  ;;  %v22851_v15 = vld [vmem:[#allocation110_spill] sm:$0xff] }
 0xd82   : > { %v9381_v3 = vpop.permute.xlu0 %9380 }
 0xd86   : > { %v20909_v43 = vpop.xlane.xlu1 %10940 }
 0xd8a   : > { %v9379_v29 = vpop.permute.xlu1 %9378 }
 0xd8b   : > { %v9458_v50 = vmul.f32 %v22844_v25, %v9379_v29 }
 0xd8c   : > { %9532 = vrot.lane.b32.xlu1 %v9485_v37, %s15604_s24  ;;  %v9476_v37 = vpack.c.bf16 %v9447_v14, %v9446_v4 }
 0xd8e   : > { %v9387_v8 = vpop.permute.xlu1 %9386 }
 0xd92   : > { %v20936_v4 = vpop.permute.xlu1 %9524 }
 0xd9c   : > { %10973 = vmax.xlane.f32.xlu0 %v10972_v52  ;;  %v9450_v52 = vmul.f32 %v22841_v6, %v9363_v16  ;;  %v22846_v16 = vld [vmem:[#allocation116_spill] sm:$0xff] }
 0xd9d   : > { %v9469_v14 = vmul.f32 %v22846_v16, %v20726_v35  ;;  %v22852_v35 = vld [vmem:[#allocation142_spill] sm:$0xff] }
 0xd9e   : > { %v9478_v58 = vpack.c.bf16 %v9451_v51, %v9450_v52  ;;  %v22848_v51 = vld [vmem:[#allocation176_spill] sm:$0xff]  ;;  %v9473_v16 = vmul.f32 %v22852_v35, %v20696_v13  ;;  %v22860_v35 = vld [vmem:[#allocation218_spill] sm:$0xff] }
 0xd9f   : > { %v9468_v52 = vmul.f32 %v22849_v27, %v22848_v51  ;;  %v22854_v51 = vld [vmem:[#allocation140_spill] sm:$0xff] }
 0xda1   : > { %v9487_v29 = vpack.c.bf16 %v9469_v14, %v9468_v52  ;;  %v22855_v14 = vld [vmem:[#allocation217_spill] sm:$0xff] }
 0xdb0   : > { %10970 = vmax.xlane.f32.xlu1 %v10969_v62 }
 0xdb2   : > { %9510 = vrot.lane.b32.xlu0 %v9474_v47, %s15604_s24  ;;  %v9459_v47 = vmul.f32 %v22845_v38, %v9381_v3  ;;  %v9472_v3 = vmul.f32 %v22851_v15, %v9407_v30  ;;  %v10595_v15 = vadd.f32 %v22860_v35, %v20761_v36 }
 0xdb3   : > { %v20926_v54 = vpop.xlane.xlu0 %10949 }
 0xdb4   : > { %10976 = vmax.xlane.f32.xlu1 %v10975_v56  ;;  %v9482_v56 = vpack.c.bf16 %v9459_v47, %v9458_v50  ;;  %v9489_v50 = vpack.c.bf16 %v9473_v16, %v9472_v3  ;;  %v22853_v47 = vld [vmem:[#allocation155_spill] sm:$0xff] }
 0xdb6   : > { %9514 = vrot.lane.b32.xlu0 %v9476_v37, %s15604_s24 }
 0xdb7   : > { %v9389_v62 = vpop.permute.xlu0 %9388 }
 0xdb8   : > { %v9463_v37 = vmul.f32 %v22847_v5, %v9389_v62  ;;  %v22887_v5 = vld [vmem:[#allocation151_spill] sm:$0xff] }
 0xdba   : > { %9518 = vrot.lane.b32.xlu0 %v9478_v58, %s15604_s24  ;;  %v22850_v58 = vld [vmem:[#allocation106_spill] sm:$0xff] }
 0xdbb   : > { %v9462_v1 = vmul.f32 %v22850_v58, %v9387_v8  ;;  %v9397_v10 = vpop.permute.xlu0 %9396 }
 0xdbc   : > { %v9467_v8 = vmul.f32 %v22853_v47, %v9397_v10 }
 0xdbe   : > { %9522 = vrot.lane.b32.xlu0 %v9480_v33, %s15604_s24  ;;  %v9484_v33 = vpack.c.bf16 %v9463_v37, %v9462_v1  ;;  %v10493_v37 = vadd.f32 %v22855_v14, %v20761_v36  ;;  %v22859_v14 = vld [vmem:[#allocation203_spill] sm:$0xff] }
 0xdc0   : > { %v20958_v13 = vsel %vm519_vm12, -1e-09, %v10493_v37  ;;  %v10490_v37 = vadd.f32 %v22859_v14, %v20680_v23 }
 0xdc1   : > { %v10981_v16 = vsel %vm2949_vm11, %v20958_v13, -inf }
 0xdc2   : > { %9526 = vrot.lane.b32.xlu0 %v9482_v56, %s15604_s24 }
 0xdc3   : > { %v20944_v41 = vpop.xlane.xlu1 %10946 }
 0xdc5   : > { %9536 = vrot.lane.b32.xlu1 %v9487_v29, %s15604_s24 }
 0xdc6   : > { %9530 = vrot.lane.b32.xlu0 %v9484_v33, %s15604_s24  ;;  %v22856_v33 = vld [vmem:[#allocation125_spill] sm:$0xff] }
 0xdc7   : > { %v9395_v62 = vpop.permute.xlu1 %9394 }
 0xdc8   : > { %v9466_v56 = vmul.f32 %v22854_v51, %v9395_v62  ;;  %v22857_v62 = vld [vmem:[#allocation130_spill] sm:$0xff]  ;;  %v22883_v51 = vld [vmem:[#allocation139_spill] sm:$0xff] }
 0xdc9   : > { %9540 = vrot.lane.b32.xlu1 %v9489_v50, %s15604_s24 }
 0xdca   : > { %v9486_v30 = vpack.c.bf16 %v9467_v8, %v9466_v56 }
 0xdcb   : > { %v9403_v29 = vpop.permute.xlu1 %9402 }
 0xdcc   : > { %9534 = vrot.lane.b32.xlu0 %v9486_v30, %s15604_s24  ;;  %v9470_v50 = vmul.f32 %v22856_v33, %v9403_v29  ;;  %v22858_v30 = vld [vmem:[#allocation92_spill] sm:$0xff] }
 0xdec   : > { %v20960_v52 = vpop.xlane.xlu0 %10955 }
 0xded   : > { %10982 = vmax.xlane.f32.xlu1 %v10981_v16  ;;  %v20977_v16 = vsel %vm518_vm10, -1e-09, %v10490_v37  ;;  %v22863_v37 = vld [vmem:[#allocation101_spill] sm:$0xff] }
 0xdee   : > { %v10978_v29 = vsel %vm2949_vm11, %v20977_v16, -inf }
 0xdf0   : > { %v20964_v10 = vpop.xlane.xlu0 %10961 }
 0xdf4   : > { %v20966_v1 = vpop.xlane.xlu0 %10967 }
 0xdf8   : > { %v9405_v3 = vpop.permute.xlu0 %9404 }
 0xdf9   : > { %v9471_v8 = vmul.f32 %v22857_v62, %v9405_v3  ;;  %v20985_v3 = vsel %vm519_vm12, -1e-09, %v10595_v15  ;;  %v22862_v15 = vld [vmem:[#allocation89_spill] sm:$0xff] }
 0xdfb   : > { %v9488_v56 = vpack.c.bf16 %v9471_v8, %v9470_v50  ;;  %v10993_v50 = vsel %vm2949_vm11, %v20985_v3, -inf }
 0xdfd   : > { %9538 = vrot.lane.b32.xlu0 %v9488_v56, %s15604_s24  ;;  %s15509_s24 = sshll.u32 %s15606_s22, 4  ;;  %s15510_s24 = int_to_ptr.vmem [resolvable:$false] %s15509_s24 }
 0xdfe   : > { %11319 = vrot.lane.b32.xlu1 %v22858_v30, %s15605_s18  ;;  %v22861_v30 = vld [vmem:[#allocation219_spill] sm:$0xff]  ;;  %s15511_s5 = scalar_lea.vmem %s15510_s24, 8192  ;;  %p15512_p9 = scmp.lt.s32.totalorder %s21701_s12, %s15510_s24 }
 0xdff   : > { %v10504_v35 = vsel %vm2160_vm1, %v22861_v30, 0  ;;  %p15513_p10 = scmp.lt.s32.totalorder %s15511_s5, %s15505_s11 }
 0xe01   : > { %p15514_p8 = por %p15513_p10, %p15512_p9 }
 0xe03   : > { %p15515_p12 = pnand %p15514_p8, %p15508_p5 }
 0xe1c   : > { %10979 = vmax.xlane.f32.xlu0 %v10978_v29 }
 0xe22   : > { %10994 = vmax.xlane.f32.xlu1 %v10993_v50  ;;  %v9529_v50 = vpop.permute.xlu1 %9528 }
 0xe29   : > { %v20989_v8 = vpop.xlane.xlu0 %10973 }
 0xe2d   : > { %v9511_v56 = vpop.permute.xlu0 %9510 }
 0xe2e   : > { %14057 = vmatprep.mubr.msk.bf16.mxu0 %vm2160_vm1, %v9511_v56 }
 0xe2f   : > { %14058 = vmatmul.mubr.msk.bf16.vlgmr.msra.gmra.mrb[176].mxu0 %vm2160_vm1, %v20698_v44  ;;  %v21005_v44 = vpop.xlane.xlu1 %10952 }
 0xe30   : > { %14138 = vmatpush3.bf16.xpose.msra.mxu0 %v10504_v35 }
 0xe31   : > { %v9515_v14 = vpop.permute.xlu0 %9514  ;;  %14149 = vmatprep.subr.bf16.mxu0 %v22833_v59 }
 0xe32   : > { %11272 = vrot.lane.b32.xlu0 %v22862_v15, %s15605_s18  ;;  %14061 = vmatprep.mubr.msk.bf16.mxu0 %vm2160_vm1, %v9515_v14 }
 0xe33   : > { %11413 = vrot.lane.b32.xlu1 %v22863_v37, %s15605_s18  ;;  %v21010_v30 = vpop.xlane.xlu1 %10958 }
 0xe35   : > { %v9519_v29 = vpop.permute.xlu0 %9518 }
 0xe37   : > { %14062 = vmatmul.mubr.msk.bf16.gmra.mrb[180].mxu0 %vm2160_vm1, %v20738_v61  ;;  %v21014_v14 = vpop.xlane.xlu1 %10964  ;;  %v22864_v61 = vld [vmem:[#allocation94_spill] sm:$0xff] }
 0xe38   : > { %14065 = vmatprep.mubr.msk.bf16.mxu0 %vm2160_vm1, %v9519_v29  ;;  %v10592_v15 = vadd.f32 %v22864_v61, %v20680_v23 }
 0xe39   : > { %v9523_v56 = vpop.permute.xlu0 %9522 }
 0xe3a   : > { %v21021_v37 = vsel %vm518_vm10, -1e-09, %v10592_v15 }
 0xe3d   : > { %v9527_v35 = vpop.permute.xlu0 %9526 }
 0xe3f   : > { %14066 = vmatmul.mubr.msk.bf16.gmra.mrb[184].mxu0 %vm2160_vm1, %v20898_v22  ;;  %v9533_v22 = vpop.permute.xlu1 %9532 }
 0xe40   : > { %14069 = vmatprep.mubr.msk.bf16.mxu0 %vm2160_vm1, %v9523_v56  ;;  %v22865_v56 = vld [vmem:[#allocation71_spill] sm:$0xff] }
 0xe41   : > { %v9531_v29 = vpop.permute.xlu0 %9530  ;;  %v10697_v62 = vadd.f32 %v22865_v56, %v20761_v36  ;;  %v22866_v56 = vld [vmem:[#allocation97_spill] sm:$0xff] }
 0xe43   : > { %v21033_v61 = vsel %vm519_vm12, -1e-09, %v10697_v62  ;;  %v22867_v62 = vld [vmem:[#allocation111_spill] sm:$0xff] }
 0xe44   : > { %v11005_v15 = vsel %vm2949_vm11, %v21033_v61, -inf }
 0xe45   : > { %v9535_v33 = vpop.permute.xlu0 %9534 }
 0xe47   : > { %14070 = vmatmul.mubr.msk.bf16.gmra.mrb[188].mxu0 %vm2160_vm1, %v20936_v4  ;;  %v10990_v4 = vsel %vm2949_vm11, %v21021_v37, -inf }
 0xe48   : > { %14073 = vmatprep.mubr.msk.bf16.mxu0 %vm2160_vm1, %v9527_v35  ;;  %v21029_v35 = vpop.xlane.xlu1 %10970 }
 0xe4f   : > { %14074 = vmatmul.mubr.msk.bf16.gmra.mrb[192].mxu0 %vm2160_vm1, %v9529_v50  ;;  %v21038_v50 = vpop.xlane.xlu1 %10976 }
 0xe50   : > { %14077 = vmatprep.mubr.msk.bf16.mxu0 %vm2160_vm1, %v9531_v29 }
 0xe51   : > { %10991 = vmax.xlane.f32.xlu0 %v10990_v4  ;;  %v11035_v4 = vsub.f32 %v20801_v46, %v20944_v41  ;;  %v22869_v46 = vld [vmem:[#allocation225_spill] sm:$0xff] }
 0xe53   : > { %v9537_v29 = vpop.permute.xlu1 %9536 }
 0xe57   : > { %11006 = vmax.xlane.f32.xlu1 %v11005_v15  ;;  %14078 = vmatmul.mubr.msk.bf16.gmra.mrb[196].mxu0 %vm2160_vm1, %v9533_v22  ;;  %v11034_v15 = vsub.f32 %v20718_v40, %v20894_v24  ;;  %v11070_v22 = vmul.f32 1.442695, %v11035_v4  ;;  %v9541_v47 = vpop.permute.xlu1 %9540 }
 0xe58   : > { %14081 = vmatprep.mubr.msk.bf16.mxu0 %vm2160_vm1, %v9535_v33 }
 0xe59   : > { %v11068_v33 = vmul.f32 1.442695, %v11034_v15  ;;  %15177 = vpow2.f32 %v11070_v22  ;;  %v22871_v15 = vld [vmem:[#allocation186_spill] sm:$0xff] }
 0xe5a   : > { %v10708_v22 = vsel %vm2160_vm1, %v22871_v15, 0  ;;  %v22875_v15 = vld [vmem:[#allocation234_spill] sm:$0xff] }
 0xe5b   : > { %15179 = vpow2.f32 %v11068_v33  ;;  %v22872_v33 = vld [vmem:[#allocation201_spill] sm:$0xff] }
 0xe5f   : > { %14082 = vmatmul.mubr.msk.bf16.gmra.mrb[200].mxu0 %vm2160_vm1, %v9537_v29  ;;  %v22868_v29 = vld [vmem:[#allocation223_spill] sm:$0xff] }
 0xe63   : > { %v21063_v41 = vpop.eup %15177 }
 0xe67   : > { %11366 = vrot.lane.b32.xlu0 %v22866_v56, %s15605_s18  ;;  %v10606_v56 = vsel %vm2160_vm1, %v22868_v29, 0 }
 0xe68   : > { %11507 = vrot.lane.b32.xlu1 %v22867_v62, %s15605_s18  ;;  %v21067_v62 = vpop.eup %15179 }
 0xe69   : > { %v11257_v4 = vpack.c.bf16 %v21063_v41, %v21067_v62 }
 0xe6f   : > { %v9539_v27 = vpop.permute.xlu0 %9538 }
 0xe70   : > { %14085 = vmatprep.mubr.msk.bf16.mxu0 %vm2160_vm1, %v9539_v27  ;;  %v22870_v27 = vld [vmem:[#allocation220_spill] sm:$0xff] }
 0xe71   : > { %14086 = vmatmul.mubr.msk.bf16.gmra.mrb[204].mxu0 %vm2160_vm1, %v9541_v47  ;;  %v10694_v47 = vadd.f32 %v22870_v27, %v20680_v23 }
 0xe72   : > { %14139 = vmatprep.mubr.msk.bf16.mxu0 %vm15602_vm0, %v22833_v59 }
 0xe73   : > { %v21079_v29 = vsel %vm518_vm10, -1e-09, %v10694_v47  ;;  %v22874_v47 = vld [vmem:[#allocation237_spill] sm:$0xff] }
 0xe79   : > { %14140 = vmatmul.mubr.msk.bf16.vlgmr.msra.gmra.mrb[240].mxu0 %vm2160_vm1, %v22869_v46 }
 0xe7a   : > { %14150 = vmatpush3.bf16.xpose.msra.mxu0 %v10606_v56  ;;  %v21058_v40 = vpop.xlane.xlu1 %10982  ;;  %14151 = vmatprep.mubr.msk.bf16.mxu0 %vm15602_vm0, %v22833_v59  ;;  %v22873_v56 = vld [vmem:[#allocation221_spill] sm:$0xff] }
 0xe7b   : > { %14161 = vmatprep.subr.bf16.mxu0 %v22833_v59  ;;  %v10799_v46 = vadd.f32 %v22873_v56, %v20761_v36  ;;  %v11033_v56 = vsub.f32 %v20768_v21, %v20909_v43 }
 0xe7d   : > { %v21092_v27 = vsel %vm519_vm12, -1e-09, %v10799_v46  ;;  %v11032_v46 = vsub.f32 %v20686_v20, %v20879_v26 }
 0xe7e   : > { %v11320_v24 = vpop.permute.xlu1 %11319 }
 0xe7f   : > { %14192 = vmatpush3.bf16.msra.mxu1 %v11320_v24  ;;  %v11002_v24 = vsel %vm2949_vm11, %v21079_v29, -inf }
 0xe80   : > { %14203 = vmatprep.subr.bf16.mxu1 %v22833_v59 }
 0xe81   : > { %14152 = vmatmul.mubr.msk.bf16.vlgmr.msra.gmra.mrb[244].mxu0 %vm2160_vm1, %v22872_v33  ;;  %v22876_v33 = vld [vmem:[#allocation215_spill] sm:$0xff] }
 0xe82   : > { %14162 = vmatpush3.bf16.xpose.msra.mxu0 %v10708_v22  ;;  %14194 = vmatmul.mubr.msk.bf16.vlgmr.msra.gmra.mrb[96].mxu1 %vm2949_vm11, %v11257_v4  ;;  %v10810_v4 = vsel %vm2160_vm1, %v22874_v47, 0  ;;  %v11017_v22 = vsel %vm2949_vm11, %v21092_v27, -inf  ;;  %v22878_v47 = vld [vmem:[#allocation122_spill] sm:$0xff] }
 0xe83   : > { %14163 = vmatprep.mubr.msk.bf16.mxu0 %vm15602_vm0, %v22833_v59  ;;  %14173 = vmatprep.subr.bf16.mxu0 %v22833_v59 }
 0xe84   : > { %14205 = vmatprep.mubr.msk.bf16.mxu1 %vm15602_vm0, %v22833_v59 }
 0xe86   : > { %11003 = vmax.xlane.f32.xlu0 %v11002_v24  ;;  %v22877_v24 = vld [vmem:[#allocation105_spill] sm:$0xff] }
 0xe89   : > { %14164 = vmatmul.mubr.msk.bf16.vlgmr.msra.gmra.mrb[248].mxu0 %vm2160_vm1, %v22875_v15  ;;  %v11064_v15 = vmul.f32 1.442695, %v11032_v46 }
 0xe8a   : > { %14174 = vmatpush3.bf16.xpose.msra.mxu0 %v10810_v4  ;;  %14175 = vmatprep.mubr.msk.bf16.mxu0 %vm15602_vm0, %v22833_v59  ;;  %v11066_v4 = vmul.f32 1.442695, %v11033_v56  ;;  %v22879_v56 = vld [vmem:[#allocation222_spill] sm:$0xff] }
 0xe8b   : > { %14185 = vmatprep.subr.bf16.mxu0 %v22833_v59  ;;  %v10796_v46 = vadd.f32 %v22879_v56, %v20680_v23  ;;  %v11036_v56 = vsub.f32 %v20792_v28, %v20926_v54 }
 0xe8c   : > { %11018 = vmax.xlane.f32.xlu1 %v11017_v22  ;;  %v11039_v22 = vsub.f32 %v20858_v57, %v21010_v30  ;;  %15181 = vpow2.f32 %v11066_v4 }
 0xe8d   : > { %15183 = vpow2.f32 %v11064_v15 }
 0xe8e   : > { %v11078_v21 = vmul.f32 1.442695, %v11039_v22  ;;  %v21145_v22 = vsel %vm518_vm10, -1e-09, %v10796_v46  ;;  %v22881_v46 = vld [vmem:[#allocation117_spill] sm:$0xff] }
 0xe90   : > { %15185 = vpow2.f32 %v11078_v21 }
 0xe91   : > { %14176 = vmatmul.mubr.msk.bf16.vlgmr.msra.gmra.mrb[252].mxu0 %vm2160_vm1, %v22876_v33  ;;  %v11038_v33 = vsub.f32 %v20825_v60, %v20960_v52 }
 0xe92   : > { %14187 = vmatprep.mubr.msk.bf16.mxu0 %vm15602_vm0, %v22833_v59 }
 0xe93   : > { %v11076_v43 = vmul.f32 1.442695, %v11038_v33  ;;  %v22880_v33 = vld [vmem:[#allocation224_spill] sm:$0xff] }
 0xe94   : > { %v10901_v21 = vadd.f32 %v22880_v33, %v20761_v36 }
 0xe95   : > { %15187 = vpow2.f32 %v11076_v43  ;;  %v11014_v43 = vsel %vm2949_vm11, %v21145_v22, -inf }
 0xe96   : > { %v21121_v26 = vpop.eup %15181 }
 0xe9c   : > { %11460 = vrot.lane.b32.xlu0 %v22877_v24, %s15605_s18 }
 0xe9d   : > { %11601 = vrot.lane.b32.xlu1 %v22878_v47, %s15605_s18  ;;  %v21123_v47 = vpop.eup %15183 }
 0xe9e   : > { %v11256_v57 = vpack.c.bf16 %v21121_v26, %v21123_v47  ;;  %v21131_v60 = vpop.eup %15185 }
 0xe9f   : > { %v21137_v4 = vpop.eup %15187 }
 0xea0   : > { %v11259_v15 = vpack.c.bf16 %v21131_v60, %v21137_v4 }
 0xea9   : > { %v21119_v20 = vpop.xlane.xlu0 %10979 }
 0xead   : > { %v11273_v24 = vpop.permute.xlu0 %11272 }
 0xeae   : > { %14186 = vmatpush3.bf16.msra.mxu0 %v11273_v24  ;;  %v21155_v24 = vsel %vm519_vm12, -1e-09, %v10901_v21  ;;  %v11043_v21 = vsub.f32 %v20905_v17, %v21029_v35  ;;  %v22884_v35 = vld [vmem:[#allocation226_spill] sm:$0xff] }
 0xeaf   : > { %v21127_v30 = vpop.xlane.xlu1 %10994  ;;  %14197 = vmatprep.subr.bf16.mxu0 %v22833_v59 }
 0xeb0   : > { %v11086_v28 = vmul.f32 1.442695, %v11043_v21 }
 0xeb1   : > { %14188 = vmatmul.mubr.msk.bf16.vlgmr.msra.gmra.mrb[0].mxu0 %vm2949_vm11, %v11256_v57  ;;  %v11029_v57 = vsel %vm2949_vm11, %v21155_v24, -inf }
 0xeb2   : > { %14199 = vmatprep.mubr.msk.bf16.mxu0 %vm15602_vm0, %v22833_v59 }
 0xeb3   : > { %v11414_v52 = vpop.permute.xlu1 %11413 }
 0xeb4   : > { %14204 = vmatpush3.bf16.msra.mxu1 %v11414_v52  ;;  %v11037_v52 = vsub.f32 %v20849_v31, %v21005_v44  ;;  %v11042_v31 = vsub.f32 %v20841_v32, %v20966_v1 }
 0xeb5   : > { %14215 = vmatprep.subr.bf16.mxu1 %v22833_v59 }
 0xeb6   : > { %v11074_v33 = vmul.f32 1.442695, %v11037_v52  ;;  %v11084_v54 = vmul.f32 1.442695, %v11042_v31  ;;  %v11041_v31 = vsub.f32 %v20866_v53, %v21014_v14 }
 0xeb7   : > { %14206 = vmatmul.mubr.msk.bf16.vlgmr.msra.gmra.mrb[100].mxu1 %vm2949_vm11, %v11259_v15  ;;  %v22882_v15 = vld [vmem:[#allocation134_spill] sm:$0xff] }
 0xeb8   : > { %14217 = vmatprep.mubr.msk.bf16.mxu1 %vm15602_vm0, %v22833_v59  ;;  %15189 = vpow2.f32 %v11074_v33 }
 0xebb   : > { %11015 = vmax.xlane.f32.xlu0 %v11014_v43  ;;  %v11072_v43 = vmul.f32 1.442695, %v11036_v56 }
 0xebd   : > { %15191 = vpow2.f32 %v11072_v43 }
 0xebe   : > { %15193 = vpow2.f32 %v11086_v28  ;;  %v11040_v28 = vsub.f32 %v20833_v12, %v20964_v10 }
 0xebf   : > { %15195 = vpow2.f32 %v11084_v54  ;;  %v22885_v54 = vld [vmem:[#allocation128_spill] sm:$0xff] }
 0xec1   : > { %11030 = vmax.xlane.f32.xlu1 %v11029_v57 }
 0xec2   : > { %v21175_v57 = vpop.eup %15189 }
 0xec7   : > { %v21177_v56 = vpop.eup %15191 }
 0xec8   : > { %v11258_v17 = vpack.c.bf16 %v21175_v57, %v21177_v56  ;;  %v21185_v32 = vpop.eup %15193 }
 0xed1   : > { %11554 = vrot.lane.b32.xlu0 %v22881_v46, %s15605_s18  ;;  %v10898_v46 = vadd.f32 %v22884_v35, %v20680_v23  ;;  %v22886_v35 = vld [vmem:[#allocation145_spill] sm:$0xff] }
 0xed2   : > { %11695 = vrot.lane.b32.xlu1 %v22882_v15, %s15605_s18  ;;  %v21191_v15 = vpop.eup %15195 }
 0xed3   : > { %v11261_v33 = vpack.c.bf16 %v21185_v32, %v21191_v15  ;;  %v21199_v43 = vsel %vm518_vm10, -1e-09, %v10898_v46  ;;  %v11047_v46 = vsub.f32 %v20958_v13, %v21058_v40 }
 0xed4   : > { %v11026_v21 = vsel %vm2949_vm11, %v21199_v43, -inf }
 0xed5   : > { %v11094_v14 = vmul.f32 1.442695, %v11047_v46  ;;  %v11051_v46 = vsub.f32 %v20985_v3, %v21127_v30 }
 0xed6   : > { %11742 = vrot.lane.b32.xlu1 %v22883_v51, %s15605_s18 }
 0xede   : > { %v21173_v44 = vpop.xlane.xlu0 %10991 }
 0xee2   : > { %v11367_v52 = vpop.permute.xlu0 %11366 }
 0xee3   : > { %14198 = vmatpush3.bf16.msra.mxu0 %v11367_v52  ;;  %v11082_v52 = vmul.f32 1.442695, %v11041_v31 }
 0xee4   : > { %v21181_v51 = vpop.xlane.xlu1 %11006  ;;  %14209 = vmatprep.subr.bf16.mxu0 %v22833_v59 }
 0xee5   : > { %15197 = vpow2.f32 %v11082_v52  ;;  %v11044_v52 = vsub.f32 %v20883_v48, %v20989_v8 }
 0xee6   : > { %14200 = vmatmul.mubr.msk.bf16.vlgmr.msra.gmra.mrb[4].mxu0 %vm2949_vm11, %v11258_v17  ;;  %v11080_v17 = vmul.f32 1.442695, %v11040_v28 }
 0xee7   : > { %14211 = vmatprep.mubr.msk.bf16.mxu0 %vm15602_vm0, %v22833_v59 }
 0xee8   : > { %v11508_v1 = vpop.permute.xlu1 %11507  ;;  %15199 = vpow2.f32 %v11080_v17 }
 0xee9   : > { %14216 = vmatpush3.bf16.msra.mxu1 %v11508_v1  ;;  %v11046_v1 = vsub.f32 %v20977_v16, %v21119_v20 }
 0xeea   : > { %14227 = vmatprep.subr.bf16.mxu1 %v22833_v59 }
 0xeeb   : > { %v11092_v53 = vmul.f32 1.442695, %v11046_v1  ;;  %v11088_v1 = vmul.f32 1.442695, %v11044_v52 }
 0xeec   : > { %14218 = vmatmul.mubr.msk.bf16.vlgmr.msra.gmra.mrb[104].mxu1 %vm2949_vm11, %v11261_v33 }
 0xeed   : > { %14229 = vmatprep.mubr.msk.bf16.mxu1 %vm15602_vm0, %v22833_v59  ;;  %15201 = vpow2.f32 %v11092_v53 }
 0xeee   : > { %15203 = vpow2.f32 %v11094_v14  ;;  %v11102_v14 = vmul.f32 1.442695, %v11051_v46 }
 0xeef   : > { %v21219_v10 = vpop.eup %15197 }
 0xef0   : > { %11027 = vmax.xlane.f32.xlu0 %v11026_v21 }
 0xef2   : > { %v21221_v21 = vpop.eup %15199 }
 0xef3   : > { %v11260_v16 = vpack.c.bf16 %v21219_v10, %v21221_v21 }
 0xef7   : > { %v21229_v13 = vpop.eup %15201 }
 0xef8   : > { %v21233_v31 = vpop.eup %15203 }
 0xef9   : > { %v11263_v28 = vpack.c.bf16 %v21233_v31, %v21229_v13 }
 0xf06   : > { %11648 = vrot.lane.b32.xlu0 %v22885_v54, %s15605_s18  ;;  %v11045_v54 = vsub.f32 %v20916_v11, %v21038_v50 }
 0xf08   : > { %v11090_v17 = vmul.f32 1.442695, %v11045_v54 }
 0xf0a   : > { %11789 = vrot.lane.b32.xlu0 %v22886_v35, %s15605_s18  ;;  %v11050_v35 = vsub.f32 %v21021_v37, %v21173_v44  ;;  %15205 = vpow2.f32 %v11090_v17 }
 0xf0b   : > { %15207 = vpow2.f32 %v11088_v1 }
 0xf0c   : > { %v11100_v53 = vmul.f32 1.442695, %v11050_v35 }
 0xf0e   : > { %15209 = vpow2.f32 %v11100_v53 }
 0xf0f   : > { %15211 = vpow2.f32 %v11102_v14 }
 0xf13   : > { %v21217_v12 = vpop.xlane.xlu0 %11003 }
 0xf14   : > { %v21251_v11 = vpop.eup %15205 }
 0xf15   : > { %v21253_v8 = vpop.eup %15207 }
 0xf16   : > { %v11262_v3 = vpack.c.bf16 %v21251_v11, %v21253_v8 }
 0xf17   : > { %v11461_v33 = vpop.permute.xlu0 %11460 }
 0xf18   : > { %14210 = vmatpush3.bf16.msra.mxu0 %v11461_v33  ;;  %v21267_v17 = vpop.eup %15209 }
 0xf19   : > { %v21225_v20 = vpop.xlane.xlu1 %11018  ;;  %14221 = vmatprep.subr.bf16.mxu0 %v22833_v59  ;;  %v21277_v53 = vpop.eup %15211 }
 0xf1a   : > { %v11265_v14 = vpack.c.bf16 %v21277_v53, %v21267_v17 }
 0xf1b   : > { %14212 = vmatmul.mubr.msk.bf16.vlgmr.msra.gmra.mrb[8].mxu0 %vm2949_vm11, %v11260_v16 }
 0xf1c   : > { %14223 = vmatprep.mubr.msk.bf16.mxu0 %vm15602_vm0, %v22833_v59 }
 0xf1d   : > { %v11602_v40 = vpop.permute.xlu1 %11601 }
 0xf1e   : > { %14228 = vmatpush3.bf16.msra.mxu1 %v11602_v40 }
 0xf1f   : > { %14239 = vmatprep.subr.bf16.mxu1 %v22833_v59 }
 0xf21   : > { %14230 = vmatmul.mubr.msk.bf16.vlgmr.msra.gmra.mrb[108].mxu1 %vm2949_vm11, %v11263_v28 }
 0xf22   : > { %14241 = vmatprep.mubr.msk.bf16.mxu1 %vm15602_vm0, %v22833_v59 }
 0xf48   : > { %v21249_v33 = vpop.xlane.xlu0 %11015 }
 0xf4c   : > { %v10540_v50 = vpop.f32.mrb[240].mxu0  ;;  %v11555_v48 = vpop.permute.xlu0 %11554 }
 0xf4d   : > { %v10541_v16 = vadd.f32 %v10540_v50, %v20680_v23  ;;  %v14141_v37 = vpop.f32.mrb[241].mxu0  ;;  %14222 = vmatpush3.bf16.msra.mxu0 %v11555_v48 }
 0xf4e   : > { %v11031_v30 = vpop.xlane.xlu1 %11030  ;;  %v10543_v44 = vpop.f32.mrb[242].mxu0  ;;  %14233 = vmatprep.subr.bf16.mxu0 %v22833_v59 }
 0xf4f   : > { %v21261_v40 = vsel %vm518_vm10, -1e-09, %v10541_v16  ;;  %v10544_v28 = vadd.f32 %v10543_v44, %v20761_v36  ;;  %v14142_v54 = vpop.f32.mrb[243].mxu0  ;;  %v11063_v55 = vsub.f32 %v21155_v24, %v11031_v30 }
 0xf50   : > { %14224 = vmatmul.mubr.msk.bf16.vlgmr.msra.gmra.mrb[12].mxu0 %vm2949_vm11, %v11262_v3  ;;  %v10984_v52 = vsel %vm2949_vm11, %v21261_v40, -inf }
 0xf51   : > { %v21271_v1 = vsel %vm519_vm12, -1e-09, %v10544_v28  ;;  %10985 = vmax.xlane.f32.xlu1 %v10984_v52  ;;  %14235 = vmatprep.mubr.msk.bf16.mxu0 %vm15602_vm0, %v22833_v59 }
 0xf52   : > { %v11696_v35 = vpop.permute.xlu1 %11695  ;;  %v10987_v46 = vsel %vm2949_vm11, %v21271_v1, -inf }
 0xf53   : > { %10988 = vmax.xlane.f32.xlu0 %v10987_v46  ;;  %14240 = vmatpush3.bf16.msra.mxu1 %v11696_v35 }
 0xf54   : > { %v10642_v50 = vpop.f32.mrb[244].mxu0  ;;  %14251 = vmatprep.subr.bf16.mxu1 %v22833_v59 }
 0xf55   : > { %v14153_v48 = vpop.f32.mrb[245].mxu0  ;;  %v21282_v16 = vpop.f32.mrb[96].mxu1 }
 0xf56   : > { %v10645_v37 = vpop.f32.mrb[246].mxu0  ;;  %14242 = vmatmul.mubr.msk.bf16.vlgmr.msra.gmra.mrb[112].mxu1 %vm2949_vm11, %v11265_v14  ;;  %v14195_v44 = vpop.f32.mrb[97].mxu1 }
 0xf57   : > { %v10646_v3 = vadd.f32 %v10645_v37, %v20761_v36  ;;  %v14154_v28 = vpop.f32.mrb[247].mxu0  ;;  %14253 = vmatprep.mubr.msk.bf16.mxu1 %vm15602_vm0, %v22833_v59  ;;  %v21288_v54 = vpop.f32.mrb[98].mxu1 }
 0xf58   : > { %v14196_v35 = vpop.f32.mrb[99].mxu1 }
 0xf59   : > { %v21292_v52 = vsel %vm519_vm12, -1e-09, %v10646_v3 }
 0xf5a   : > { %v10999_v46 = vsel %vm2949_vm11, %v21292_v52, -inf }
 0xf5b   : > { %11000 = vmax.xlane.f32.xlu0 %v10999_v46 }
 0xf5c   : > { %v10744_v48 = vpop.f32.mrb[248].mxu0 }
 0xf5d   : > { %v14165_v14 = vpop.f32.mrb[249].mxu0  ;;  %v10745_v24 = vadd.f32 %v10744_v48, %v20680_v23 }
 0xf5e   : > { %v10747_v58 = vpop.f32.mrb[250].mxu0  ;;  %v11054_v14 = vsub.f32 %v21079_v29, %v21217_v12 }
 0xf5f   : > { %v10748_v37 = vadd.f32 %v10747_v58, %v20761_v36  ;;  %v14166_v44 = vpop.f32.mrb[251].mxu0  ;;  %v11055_v58 = vsub.f32 %v21033_v61, %v21181_v51 }
 0xf60   : > { %v11108_v44 = vmul.f32 1.442695, %v11054_v14 }
 0xf61   : > { %v21299_v28 = vsel %vm519_vm12, -1e-09, %v10748_v37  ;;  %v11110_v37 = vmul.f32 1.442695, %v11055_v58 }
 0xf62   : > { %11836 = vrot.lane.b32.xlu1 %v22887_v5, %s15605_s18  ;;  %v11011_v3 = vsel %vm2949_vm11, %v21299_v28, -inf  ;;  %v22888_v5 = vld [vmem:[#allocation156_spill] sm:$0xff]  ;;  %15213 = vpow2.f32 %v11108_v44 }
 0xf63   : > { %11012 = vmax.xlane.f32.xlu0 %v11011_v3  ;;  %15215 = vpow2.f32 %v11110_v37  ;;  %v11126_v3 = vmul.f32 1.442695, %v11063_v55 }
 0xf64   : > { %v10846_v35 = vpop.f32.mrb[252].mxu0 }
 0xf65   : > { %v14177_v42 = vpop.f32.mrb[253].mxu0  ;;  %15217 = vpow2.f32 %v11126_v3 }
 0xf66   : > { %v10849_v46 = vpop.f32.mrb[254].mxu0  ;;  %v10643_v42 = vadd.f32 %v10642_v50, %v20680_v23  ;;  %v21330_v50 = vsel %vm518_vm10, -1e-09, %v10745_v24 }
 0xf67   : > { %v14178_v9 = vpop.f32.mrb[255].mxu0  ;;  %v11008_v44 = vsel %vm2949_vm11, %v21330_v50, -inf  ;;  %v10850_v24 = vadd.f32 %v10849_v46, %v20761_v36 }
 0xf68   : > { %v21316_v61 = vsel %vm518_vm10, -1e-09, %v10643_v42 }
 0xf6c   : > { %v21320_v51 = vpop.eup %15213 }
 0xf79   : > { %11883 = vrot.lane.b32.xlu0 %v22888_v5, %s15605_s18 }
 0xf7d   : > { %v11028_v25 = vpop.xlane.xlu0 %11027 }
 0xf7e   : > { %v11062_v9 = vsub.f32 %v21199_v43, %v11028_v25  ;;  %v10996_v25 = vsel %vm2949_vm11, %v21316_v61, -inf  ;;  %v21326_v43 = vpop.eup %15215 }
 0xf7f   : > { %v11267_v14 = vpack.c.bf16 %v21326_v43, %v21320_v51 }
 0xf80   : > { %v11124_v38 = vmul.f32 1.442695, %v11062_v9 }
 0xf81   : > { %v11649_v29 = vpop.permute.xlu0 %11648 }
 0xf82   : > { %15219 = vpow2.f32 %v11124_v38  ;;  %14234 = vmatpush3.bf16.msra.mxu0 %v11649_v29  ;;  %v10847_v38 = vadd.f32 %v10846_v35, %v20680_v23  ;;  %v21349_v35 = vpop.eup %15217 }
 0xf83   : > { %14245 = vmatprep.subr.bf16.mxu0 %v22833_v59 }
 0xf84   : > { %v21322_v55 = vpop.f32.mrb[0].mxu0  ;;  %v21343_v37 = vsel %vm518_vm10, -1e-09, %v10847_v38  ;;  %v22890_v38 = vld [vmem:[#allocation169_spill] sm:$0xff] }
 0xf85   : > { %v14189_v12 = vpop.f32.mrb[1].mxu0  ;;  %v11790_v30 = vpop.permute.xlu0 %11789  ;;  %v11020_v49 = vsel %vm2949_vm11, %v21343_v37, -inf }
 0xf86   : > { %10997 = vmax.xlane.f32.xlu1 %v10996_v25  ;;  %v21333_v48 = vpop.f32.mrb[2].mxu0  ;;  %14252 = vmatpush3.bf16.msra.mxu1 %v11790_v30  ;;  %v21362_v12 = vsel %vm519_vm12, -1e-09, %v10850_v24  ;;  %v22889_v25 = vld [vmem:[#allocation162_spill] sm:$0xff]  ;;  %v11137_v24 = vsel %vm2949_vm11, %v21063_v41, 0.0  ;;  %v11155_v41 = vsel %vm2949_vm11, %v21219_v10, 0.0 }
 0xf87   : > { %v14190_v58 = vpop.f32.mrb[3].mxu0  ;;  %14263 = vmatprep.subr.bf16.mxu1 %v22833_v59  ;;  %v11023_v30 = vsel %vm2949_vm11, %v21362_v12, -inf  ;;  %v11167_v10 = vsel %vm2949_vm11, %v21251_v11, 0.0  ;;  %v11158_v11 = vsel %vm2949_vm11, %v21191_v15, 0.0 }
 0xf89   : > { %14254 = vmatmul.mubr.msk.bf16.vlgmr.msra.gmra.mrb[116].mxu1 %vm2949_vm11, %v11267_v14 }
 0xf8a   : > { %v21345_v23 = vpop.f32.mrb[100].mxu1  ;;  %11009 = vmax.xlane.f32.xlu1 %v11008_v44  ;;  %14265 = vmatprep.mubr.msk.bf16.mxu1 %vm15602_vm0, %v22833_v59 }
 0xf8b   : > { %v14207_v5 = vpop.f32.mrb[101].mxu1 }
 0xf8c   : > { %v21351_v3 = vpop.eup %15219  ;;  %v21353_v42 = vpop.f32.mrb[102].mxu1 }
 0xf8d   : > { %v11271_v9 = vpack.c.bf16 %v21349_v35, %v21351_v3  ;;  %v14208_v29 = vpop.f32.mrb[103].mxu1 }
 0xf8e   : > { %11021 = vmax.xlane.f32.xlu1 %v11020_v49  ;;  %v11128_v49 = vsel %vm2949_vm11, %v21123_v47, 0.0  ;;  %v11134_v47 = vsel %vm2949_vm11, %v21067_v62, 0.0 }
 0xf98   : > { %11024 = vmax.xlane.f32.xlu0 %v11023_v30  ;;  %v11143_v30 = vsel %vm2949_vm11, %v21175_v57, 0.0  ;;  %v11140_v57 = vsel %vm2949_vm11, %v21177_v56, 0.0  ;;  %v11152_v56 = vsel %vm2949_vm11, %v21221_v21, 0.0  ;;  %v11185_v21 = vsel %vm2949_vm11, %v21277_v53, 0.0 }
 0xf9f   : > { %11930 = vrot.lane.b32.xlu1 %v22889_v25, %s15605_s18  ;;  %v11131_v25 = vsel %vm2949_vm11, %v21121_v26, 0.0  ;;  %v11161_v26 = vsel %vm2949_vm11, %v21185_v32, 0.0  ;;  %v11173_v32 = vsel %vm2949_vm11, %v21233_v31, 0.0  ;;  %v11197_v31 = vsel %vm2949_vm11, %v21326_v43, 0.0 }
 0xfae   : > { %11977 = vrot.lane.b32.xlu0 %v22890_v38, %s15605_s18  ;;  %v11149_v38 = vsel %vm2949_vm11, %v21131_v60, 0.0  ;;  %v11146_v60 = vsel %vm2949_vm11, %v21137_v4, 0.0 }
 0xfb9   : > { %v21370_v14 = vpop.f32.mrb[4].mxu0 }
 0xfba   : > { %v14201_v58 = vpop.f32.mrb[5].mxu0 }
 0xfbb   : > { %v21372_v44 = vpop.f32.mrb[6].mxu0  ;;  %v11059_v58 = vsub.f32 %v21092_v27, %v21225_v20  ;;  %v11058_v20 = vsub.f32 %v21145_v22, %v21249_v33  ;;  %v11164_v22 = vsel %vm2949_vm11, %v21253_v8, 0.0  ;;  %v11182_v8 = vsel %vm2949_vm11, %v21267_v17, 0.0 }
 0xfbc   : > { %v14202_v36 = vpop.f32.mrb[7].mxu0 }
 0xfbd   : > { %v11118_v62 = vmul.f32 1.442695, %v11059_v58  ;;  %v11743_v36 = vpop.permute.xlu1 %11742 }
 0xfbf   : > { %v21374_v46 = vpop.f32.mrb[104].mxu1  ;;  %15221 = vpow2.f32 %v11118_v62 }
 0xfc0   : > { %v14219_v19 = vpop.f32.mrb[105].mxu1 }
 0xfc1   : > { %v21376_v5 = vpop.f32.mrb[106].mxu1 }
 0xfc2   : > { %v14220_v29 = vpop.f32.mrb[107].mxu1 }
 0xfc3   : > { %11129 = vadd.xlane.f32.xlu1 %v11128_v49 }
 0xfc7   : > { %11138 = vadd.xlane.f32.xlu1 %v11137_v24  ;;  %v11116_v24 = vmul.f32 1.442695, %v11058_v20 }
 0xfc9   : > { %v15222_v15 = vpop.eup %15221 }
 0xfca   : > { %v11209_v53 = vsel %vm2949_vm11, %v15222_v15, 0.0 }
 0xfcb   : > { %11144 = vadd.xlane.f32.xlu1 %v11143_v30 }
 0xfcd   : > { %11132 = vadd.xlane.f32.xlu0 %v11131_v25 }
 0xfcf   : > { %11150 = vadd.xlane.f32.xlu1 %v11149_v38 }
 0xfd1   : > { %11135 = vadd.xlane.f32.xlu0 %v11134_v47  ;;  %v11221_v47 = vsel %vm2949_vm11, %v21349_v35, 0.0 }
 0xfd3   : > { %11156 = vadd.xlane.f32.xlu1 %v11155_v41 }
 0xfd5   : > { %11141 = vadd.xlane.f32.xlu0 %v11140_v57 }
 0xfd7   : > { %11162 = vadd.xlane.f32.xlu1 %v11161_v26  ;;  %v11194_v26 = vsel %vm2949_vm11, %v21320_v51, 0.0 }
 0xfd9   : > { %11147 = vadd.xlane.f32.xlu0 %v11146_v60 }
 0xfdb   : > { %11168 = vadd.xlane.f32.xlu1 %v11167_v10 }
 0xfdd   : > { %11153 = vadd.xlane.f32.xlu0 %v11152_v56 }
 0xfde   : > { %v10986_v27 = vpop.xlane.xlu1 %10985 }
 0xfdf   : > { %v11048_v4 = vsub.f32 %v21261_v40, %v10986_v27  ;;  %11174 = vadd.xlane.f32.xlu1 %v11173_v32  ;;  %v11170_v40 = vsel %vm2949_vm11, %v21229_v13, 0.0 }
 0xfe0   : > { %v10989_v19 = vpop.xlane.xlu0 %10988 }
 0xfe1   : > { %v11096_v29 = vmul.f32 1.442695, %v11048_v4  ;;  %v11049_v49 = vsub.f32 %v21271_v1, %v10989_v19  ;;  %11159 = vadd.xlane.f32.xlu0 %v11158_v11  ;;  %v11218_v19 = vsel %vm2949_vm11, %v21351_v3, 0.0 }
 0xfe3   : > { %v11098_v30 = vmul.f32 1.442695, %v11049_v49  ;;  %11186 = vadd.xlane.f32.xlu1 %v11185_v21  ;;  %15223 = vpow2.f32 %v11096_v29  ;;  %v11837_v49 = vpop.permute.xlu1 %11836 }
 0xfe5   : > { %15225 = vpow2.f32 %v11098_v30  ;;  %11165 = vadd.xlane.f32.xlu0 %v11164_v22 }
 0xfe6   : > { %15227 = vpow2.f32 %v11116_v24 }
 0xfe7   : > { %11198 = vadd.xlane.f32.xlu1 %v11197_v31 }
 0xfe8   : > { %v11001_v33 = vpop.xlane.xlu0 %11000 }
 0xfe9   : > { %v11053_v1 = vsub.f32 %v21292_v52, %v11001_v33  ;;  %11171 = vadd.xlane.f32.xlu0 %v11170_v40 }
 0xfeb   : > { %v11106_v25 = vmul.f32 1.442695, %v11053_v1  ;;  %11210 = vadd.xlane.f32.xlu1 %v11209_v53 }
 0xfed   : > { %15229 = vpow2.f32 %v11106_v25  ;;  %11183 = vadd.xlane.f32.xlu0 %v11182_v8  ;;  %v15224_v43 = vpop.eup %15223 }
 0xfee   : > { %v21424_v38 = vpop.f32.mrb[8].mxu0  ;;  %v11176_v29 = vsel %vm2949_vm11, %v15224_v43, 0.0 }
 0xfef   : > { %v15226_v41 = vpop.eup %15225  ;;  %11222 = vadd.xlane.f32.xlu1 %v11221_v47  ;;  %v14213_v13 = vpop.f32.mrb[9].mxu0 }
 0xff0   : > { %v11264_v52 = vpack.c.bf16 %v15226_v41, %v15224_v43  ;;  %v21428_v57 = vpop.f32.mrb[10].mxu0  ;;  %v11013_v58 = vpop.xlane.xlu0 %11012  ;;  %v11179_v62 = vsel %vm2949_vm11, %v15226_v41, 0.0 }
 0xff1   : > { %v15228_v60 = vpop.eup %15227  ;;  %11195 = vadd.xlane.f32.xlu0 %v11194_v26  ;;  %v14214_v17 = vpop.f32.mrb[11].mxu0  ;;  %v11057_v31 = vsub.f32 %v21299_v28, %v11013_v58 }
 0xff2   : > { %14236 = vmatmul.mubr.msk.bf16.vlgmr.msra.gmra.mrb[16].mxu0 %vm2949_vm11, %v11264_v52  ;;  %v11206_v27 = vsel %vm2949_vm11, %v15228_v60, 0.0  ;;  %v11269_v32 = vpack.c.bf16 %v15222_v15, %v15228_v60 }
 0xff3   : > { %14246 = vmatpush3.bf16.msra.mxu0 %v11743_v36  ;;  %11180 = vadd.xlane.f32.xlu1 %v11179_v62  ;;  %v11114_v40 = vmul.f32 1.442695, %v11057_v31 }
 0xff4   : > { %v21434_v10 = vpop.f32.mrb[108].mxu1  ;;  %v11884_v56 = vpop.permute.xlu0 %11883  ;;  %14247 = vmatprep.mubr.msk.bf16.mxu0 %vm15602_vm0, %v22833_v59  ;;  %14257 = vmatprep.subr.bf16.mxu0 %v22833_v59 }
 0xff5   : > { %v14231_v51 = vpop.f32.mrb[109].mxu1  ;;  %11207 = vadd.xlane.f32.xlu0 %v11206_v27  ;;  %14264 = vmatpush3.bf16.msra.mxu1 %v11884_v56 }
 0xff6   : > { %v21440_v20 = vpop.f32.mrb[110].mxu1  ;;  %14275 = vmatprep.subr.bf16.mxu1 %v22833_v59 }
 0xff7   : > { %v15230_v36 = vpop.eup %15229  ;;  %v14232_v4 = vpop.f32.mrb[111].mxu1 }
 0xff8   : > { %14266 = vmatmul.mubr.msk.bf16.vlgmr.msra.gmra.mrb[120].mxu1 %vm2949_vm11, %v11269_v32  ;;  %v11191_v11 = vsel %vm2949_vm11, %v15230_v36, 0.0 }
 0xff9   : > { %11219 = vadd.xlane.f32.xlu0 %v11218_v19  ;;  %11192 = vadd.xlane.f32.xlu1 %v11191_v11 }
 0xffa   : > { %14277 = vmatprep.mubr.msk.bf16.mxu1 %vm15602_vm0, %v22833_v59 }
 0xffd   : > { %11177 = vadd.xlane.f32.xlu0 %v11176_v29 }
0x1013   : > { %v10998_v21 = vpop.xlane.xlu1 %10997 }
0x1014   : > { %v11052_v24 = vsub.f32 %v21316_v61, %v10998_v21 }
0x1016   : > { %v11104_v30 = vmul.f32 1.442695, %v11052_v24 }
0x1017   : > { %v11010_v22 = vpop.xlane.xlu1 %11009 }
0x1018   : > { %15231 = vpow2.f32 %v11104_v30  ;;  %v11056_v15 = vsub.f32 %v21330_v50, %v11010_v22 }
0x101a   : > { %v11112_v33 = vmul.f32 1.442695, %v11056_v15 }
0x101b   : > { %v11022_v1 = vpop.xlane.xlu1 %11021 }
0x101c   : > { %15233 = vpow2.f32 %v11112_v33  ;;  %v11060_v53 = vsub.f32 %v21343_v37, %v11022_v1 }
0x101d   : > { %15235 = vpow2.f32 %v11114_v40 }
0x101e   : > { %v11120_v41 = vmul.f32 1.442695, %v11060_v53 }
0x101f   : > { %v11931_v32 = vpop.permute.xlu1 %11930 }
0x1020   : > { %15237 = vpow2.f32 %v11120_v41 }
0x1022   : > { %v15232_v25 = vpop.eup %15231 }
0x1023   : > { %v11266_v8 = vpack.c.bf16 %v15230_v36, %v15232_v25  ;;  %v21454_v43 = vpop.f32.mrb[12].mxu0  ;;  %v11188_v61 = vsel %vm2949_vm11, %v15232_v25, 0.0 }
0x1024   : > { %v14225_v47 = vpop.f32.mrb[13].mxu0  ;;  %11189 = vadd.xlane.f32.xlu0 %v11188_v61 }
0x1025   : > { %v21457_v28 = vpop.f32.mrb[14].mxu0  ;;  %14248 = vmatmul.mubr.msk.bf16.vlgmr.msra.gmra.mrb[20].mxu0 %vm2949_vm11, %v11266_v8  ;;  %v11025_v50 = vpop.xlane.xlu0 %11024 }
0x1026   : > { %v15234_v13 = vpop.eup %15233  ;;  %14258 = vmatpush3.bf16.msra.mxu0 %v11837_v49  ;;  %v11061_v52 = vsub.f32 %v21362_v12, %v11025_v50  ;;  %v14226_v58 = vpop.f32.mrb[15].mxu0  ;;  %14259 = vmatprep.mubr.msk.bf16.mxu0 %vm15602_vm0, %v22833_v59 }
0x1027   : > { %v11200_v37 = vsel %vm2949_vm11, %v15234_v13, 0.0  ;;  %14269 = vmatprep.subr.bf16.mxu0 %v22833_v59  ;;  %v15236_v62 = vpop.eup %15235 }
0x1028   : > { %v11122_v26 = vmul.f32 1.442695, %v11061_v52  ;;  %11201 = vadd.xlane.f32.xlu0 %v11200_v37  ;;  %v11268_v27 = vpack.c.bf16 %v15236_v62, %v15234_v13  ;;  %v11203_v50 = vsel %vm2949_vm11, %v15236_v62, 0.0 }
0x1029   : > { %v21465_v60 = vpop.f32.mrb[112].mxu1  ;;  %v11978_v17 = vpop.permute.xlu0 %11977 }
0x102a   : > { %15239 = vpow2.f32 %v11122_v26  ;;  %v14243_v56 = vpop.f32.mrb[113].mxu1  ;;  %14276 = vmatpush3.bf16.msra.mxu1 %v11978_v17  ;;  %v15238_v36 = vpop.eup %15237 }
0x102b   : > { %v21467_v12 = vpop.f32.mrb[114].mxu1  ;;  %v11212_v61 = vsel %vm2949_vm11, %v15238_v36, 0.0 }
0x102c   : > { %v14244_v51 = vpop.f32.mrb[115].mxu1 }
0x102d   : > { %14260 = vmatmul.mubr.msk.bf16.vlgmr.msra.gmra.mrb[24].mxu0 %vm2949_vm11, %v11268_v27  ;;  %14278 = vmatmul.mubr.msk.bf16.vlgmr.msra.gmra.mrb[124].mxu1 %vm2949_vm11, %v11271_v9 }
0x102e   : > { %14270 = vmatpush3.bf16.msra.mxu0 %v11931_v32  ;;  %14271 = vmatprep.mubr.msk.bf16.mxu0 %vm15602_vm0, %v22833_v59 }
0x1034   : > { %v21476_v4 = vpop.eup %15239 }
0x1035   : > { %v11270_v19 = vpack.c.bf16 %v21476_v4, %v15238_v36 }
0x1037   : > { %14272 = vmatmul.mubr.msk.bf16.vlgmr.msra.gmra.mrb[28].mxu0 %vm2949_vm11, %v11270_v19 }
0x1050   : > { %v11130_v11 = vpop.xlane.xlu1 %11129 }
0x1051   : > { %15241 = vrcp.f32 %v11130_v11 }
0x1054   : > { %v11139_v29 = vpop.xlane.xlu1 %11138 }
0x1058   : > { %v11145_v49 = vpop.xlane.xlu1 %11144 }
0x105a   : > { %v11133_v21 = vpop.xlane.xlu0 %11132 }
0x105b   : > { %v15242_v24 = vpop.eup %15241  ;;  %15243 = vrcp.f32 %v11133_v21 }
0x105c   : > { %v11151_v35 = vpop.xlane.xlu1 %11150  ;;  %v21480_v3 = vpop.f32.mrb[116].mxu1  ;;  %v12024_v9 = vmul.f32 %v15242_v24, %v21322_v55 }
0x105d   : > { %v14255_v59 = vpop.f32.mrb[117].mxu1 }
0x105e   : > { %12088 = vrot.lane.b32.xlu0 %v12024_v9, %s15603_s30  ;;  %v11832_v30 = vpop.f32.mrb[118].mxu1  ;;  %v11136_v41 = vpop.xlane.xlu0 %11135 }
0x105f   : > { %v14256_v22 = vpop.f32.mrb[119].mxu1 }
0x1060   : > { %v11157_v31 = vpop.xlane.xlu1 %11156 }
0x1062   : > { %v11142_v51 = vpop.xlane.xlu0 %11141 }
0x1064   : > { %v11163_v15 = vpop.xlane.xlu1 %11162 }
0x1065   : > { %v15244_v33 = vpop.eup %15243 }
0x1066   : > { %v12025_v40 = vmul.f32 %v15244_v33, %v21333_v48 }
0x1068   : > { %v11169_v1 = vpop.xlane.xlu1 %11168  ;;  %12090 = vrot.lane.b32.xlu1 %v12025_v40, %s15603_s30 }
0x106c   : > { %v11175_v53 = vpop.xlane.xlu1 %11174 }
0x1070   : > { %v11187_v25 = vpop.xlane.xlu1 %11186 }
0x1074   : > { %v11199_v8 = vpop.xlane.xlu1 %11198 }
0x1075   : > { %15245 = vrcp.f32 %v11199_v8 }
0x1076   : > { %15247 = vrcp.f32 %v11139_v29 }
0x1077   : > { %15249 = vrcp.f32 %v11145_v49 }
0x1078   : > { %15251 = vrcp.f32 %v11151_v35 }
0x1079   : > { %15253 = vrcp.f32 %v11136_v41 }
0x107a   : > { %15255 = vrcp.f32 %v11157_v31 }
0x107b   : > { %15257 = vrcp.f32 %v11163_v15 }
0x107c   : > { %15259 = vrcp.f32 %v11169_v1 }
0x107d   : > { %11213 = vadd.xlane.f32.xlu0 %v11212_v61  ;;  %15261 = vrcp.f32 %v11175_v53 }
0x107f   : > { %v15246_v55 = vpop.eup %15245 }
0x1080   : > { %v21487_v47 = vmul.f32 %v15246_v55, %v11832_v30  ;;  %v15248_v48 = vpop.eup %15247 }
0x1081   : > { %v12027_v13 = vmul.f32 %v15248_v48, %v21288_v54  ;;  %v15250_v52 = vpop.eup %15249 }
0x1082   : > { %v12029_v58 = vmul.f32 %v15250_v52, %v21372_v44  ;;  %v15252_v37 = vpop.eup %15251 }
0x1083   : > { %v15254_v26 = vpop.eup %15253  ;;  %v12031_v17 = vmul.f32 %v15252_v37, %v21353_v42  ;;  %v11148_v42 = vpop.xlane.xlu0 %11147 }
0x1084   : > { %v15256_v62 = vpop.eup %15255  ;;  %v12026_v56 = vmul.f32 %v15254_v26, %v21282_v16 }
0x1085   : > { %v12033_v54 = vmul.f32 %v15256_v62, %v21428_v57  ;;  %v15258_v27 = vpop.eup %15257  ;;  %v11211_v57 = vpop.xlane.xlu1 %11210 }
0x1086   : > { %v12035_v44 = vmul.f32 %v15258_v27, %v21376_v5  ;;  %v15260_v32 = vpop.eup %15259 }
0x1087   : > { %v12037_v36 = vmul.f32 %v15260_v32, %v21457_v28  ;;  %v15262_v19 = vpop.eup %15261  ;;  %v11154_v11 = vpop.xlane.xlu0 %11153  ;;  %v11215_v28 = vsel %vm2949_vm11, %v21476_v4, 0.0 }
0x1088   : > { %v12039_v16 = vmul.f32 %v15262_v19, %v21440_v20 }
0x1089   : > { %v21506_v49 = vpop.xlane.xlu1 %11222 }
0x108b   : > { %v11160_v29 = vpop.xlane.xlu0 %11159 }
0x108c   : > { %11204 = vadd.xlane.f32.xlu1 %v11203_v50 }
0x108d   : > { %v11181_v5 = vpop.xlane.xlu1 %11180 }
0x108e   : > { %15263 = vrcp.f32 %v11181_v5 }
0x108f   : > { %v11166_v21 = vpop.xlane.xlu0 %11165  ;;  %15265 = vrcp.f32 %v11187_v25 }
0x1090   : > { %15267 = vrcp.f32 %v11142_v51 }
0x1091   : > { %15269 = vrcp.f32 %v11211_v57 }
0x1092   : > { %15271 = vrcp.f32 %v11148_v42 }
0x1093   : > { %12094 = vrot.lane.b32.xlu0 %v12027_v13, %s15603_s30  ;;  %v11172_v24 = vpop.xlane.xlu0 %11171  ;;  %15273 = vrcp.f32 %v11154_v11 }
0x1094   : > { %15275 = vrcp.f32 %v11160_v29 }
0x1095   : > { %15277 = vrcp.f32 %v11166_v21 }
0x1096   : > { %15279 = vrcp.f32 %v11172_v24 }
0x1097   : > { %12098 = vrot.lane.b32.xlu0 %v12029_v58, %s15603_s30  ;;  %v11184_v35 = vpop.xlane.xlu0 %11183 }
0x1098   : > { %v15264_v59 = vpop.eup %15263 }
0x1099   : > { %v15266_v33 = vpop.eup %15265 }
0x109a   : > { %v15268_v1 = vpop.eup %15267  ;;  %v12043_v53 = vmul.f32 %v15266_v33, %v21467_v12 }
0x109b   : > { %12102 = vrot.lane.b32.xlu0 %v12031_v17, %s15603_s30  ;;  %v11196_v22 = vpop.xlane.xlu0 %11195  ;;  %v15270_v25 = vpop.eup %15269  ;;  %v12028_v50 = vmul.f32 %v15268_v1, %v21370_v14 }
0x109c   : > { %v15272_v48 = vpop.eup %15271 }
0x109d   : > { %12092 = vrot.lane.b32.xlu1 %v12026_v56, %s15603_s30  ;;  %v12030_v52 = vmul.f32 %v15272_v48, %v21345_v23  ;;  %v15274_v12 = vpop.eup %15273 }
0x109e   : > { %v12032_v58 = vmul.f32 %v15274_v12, %v21424_v38  ;;  %v15276_v37 = vpop.eup %15275 }
0x109f   : > { %12106 = vrot.lane.b32.xlu0 %v12033_v54, %s15603_s30  ;;  %v11208_v61 = vpop.xlane.xlu0 %11207  ;;  %v12034_v14 = vmul.f32 %v15276_v37, %v21374_v46  ;;  %v15278_v17 = vpop.eup %15277 }
0x10a0   : > { %v12036_v62 = vmul.f32 %v15278_v17, %v21454_v43  ;;  %v15280_v23 = vpop.eup %15279 }
0x10a1   : > { %v12038_v56 = vmul.f32 %v15280_v23, %v21434_v10 }
0x10a3   : > { %12110 = vrot.lane.b32.xlu0 %v12035_v44, %s15603_s30  ;;  %v21519_v13 = vpop.xlane.xlu0 %11219  ;;  %v11193_v44 = vpop.xlane.xlu1 %11192 }
0x10a7   : > { %12114 = vrot.lane.b32.xlu0 %v12037_v36, %s15603_s30  ;;  %v11178_v26 = vpop.xlane.xlu0 %11177 }
0x10a8   : > { %15281 = vrcp.f32 %v11178_v26 }
0x10a9   : > { %15283 = vrcp.f32 %v11184_v35 }
0x10ab   : > { %12118 = vrot.lane.b32.xlu0 %v12039_v16, %s15603_s30 }
0x10b1   : > { %v11190_v46 = vpop.xlane.xlu0 %11189 }
0x10b2   : > { %v15282_v38 = vpop.eup %15281  ;;  %15285 = vrcp.f32 %v11190_v46  ;;  %v14600_v46 = vld [vmem:[%s21757_s8 + $0x38] sm:$0xff]  }
0x10b3   : > { %v15284_v27 = vpop.eup %15283  ;;  %15287 = vrcp.f32 %v11196_v22 }
0x10b4   : > { %v12042_v51 = vmul.f32 %v15284_v27, %v21465_v60  ;;  %15289 = vrcp.f32 %v11193_v44 }
0x10b5   : > { %v11202_v43 = vpop.xlane.xlu0 %11201 }
0x10b6   : > { %15291 = vrcp.f32 %v11202_v43 }
0x10b7   : > { %15293 = vrcp.f32 %v21506_v49 }
0x10b8   : > { %15295 = vrcp.f32 %v11208_v61 }
0x10bc   : > { %v15286_v32 = vpop.eup %15285 }
0x10bd   : > { %v15288_v42 = vpop.eup %15287 }
0x10be   : > { %v15290_v16 = vpop.eup %15289  ;;  %v12046_v29 = vmul.f32 %v15288_v42, %v21480_v3 }
0x10c0   : > { %v15292_v21 = vpop.eup %15291 }
0x10c1   : > { %11216 = vadd.xlane.f32.xlu1 %v11215_v28 }
0x10c5   : > { %v11688_v20 = vpop.f32.mrb[16].mxu0 }
0x10c6   : > { %v14237_v9 = vpop.f32.mrb[17].mxu0  ;;  %v12040_v54 = vmul.f32 %v15282_v38, %v11688_v20  ;;  %v15294_v20 = vpop.eup %15293 }
0x10c7   : > { %v11691_v30 = vpop.f32.mrb[18].mxu0  ;;  %v15296_v3 = vpop.eup %15295 }
0x10c8   : > { %v12041_v31 = vmul.f32 %v15264_v59, %v11691_v30  ;;  %v14238_v15 = vpop.f32.mrb[19].mxu0 }
0x10ca   : > { %12122 = vrot.lane.b32.xlu0 %v12041_v31, %s15603_s30 }
0x10cb   : > { %v21511_v40 = vpop.f32.mrb[120].mxu1 }
0x10cc   : > { %v14267_v4 = vpop.f32.mrb[121].mxu1  ;;  %v12050_v15 = vmul.f32 %v15296_v3, %v21511_v40 }
0x10cd   : > { %v11926_v8 = vpop.f32.mrb[122].mxu1 }
0x10ce   : > { %v21514_v55 = vmul.f32 %v15270_v25, %v11926_v8  ;;  %12126 = vrot.lane.b32.xlu0 %v12043_v53, %s15603_s30  ;;  %v14268_v41 = vpop.f32.mrb[123].mxu1 }
0x10d0   : > { %v12089_v33 = vpop.permute.xlu0 %12088 }
0x10d1   : > { %v12184_v12 = vmul.f32 %v22836_v39, %v12089_v33  ;;  %v14599_v39 = vld [vmem:[%s21757_s8 + $0x30] sm:$0xff]   ;;  %v22897_v33 = vld [vmem:[#allocation96_spill] sm:$0xff] }
0x10d2   : > { %12096 = vrot.lane.b32.xlu1 %v12028_v50, %s15603_s30  ;;  %14281 = vmatprep.subr.bf16.mxu0 %v14599_v39 }
0x10d3   : > { %14282 = vmatpush3.bf16.msra.mxu0 %v14599_v39  ;;  %v22904_v39 = vld [vmem:[#allocation121_spill] sm:$0xff] }
0x10d4   : > { %14283 = vmatprep.subr.bf16.mxu0 %v14600_v46 }
0x10d6   : > { %12100 = vrot.lane.b32.xlu1 %v12030_v52, %s15603_s30 }
0x10d7   : > { %14284 = vmatpush3.bf16.msra.mxu0 %v14600_v46 }
0x10da   : > { %12104 = vrot.lane.b32.xlu1 %v12032_v58, %s15603_s30  ;;  %v12091_v61 = vpop.permute.xlu1 %12090 }
0x10db   : > { %v12185_v40 = vmul.f32 %v22835_v18, %v12091_v61 }
0x10dd   : > { %v12216_v58 = vpack.c.bf16 %v12185_v40, %v12184_v12 }
0x10de   : > { %12108 = vrot.lane.b32.xlu1 %v12034_v14, %s15603_s30 }
0x10e2   : > { %12112 = vrot.lane.b32.xlu1 %v12036_v62, %s15603_s30 }
0x10e6   : > { %12116 = vrot.lane.b32.xlu1 %v12038_v56, %s15603_s30 }
0x10ea   : > { %12120 = vrot.lane.b32.xlu1 %v12040_v54, %s15603_s30 }
0x10ee   : > { %12124 = vrot.lane.b32.xlu1 %v12042_v51, %s15603_s30 }
0x10f8   : > { %v11782_v10 = vpop.f32.mrb[20].mxu0 }
0x10f9   : > { %v12044_v36 = vmul.f32 %v15286_v32, %v11782_v10  ;;  %v14249_v19 = vpop.f32.mrb[21].mxu0 }
0x10fa   : > { %v11785_v11 = vpop.f32.mrb[22].mxu0 }
0x10fb   : > { %v12045_v57 = vmul.f32 %v15290_v16, %v11785_v11  ;;  %v14250_v60 = vpop.f32.mrb[23].mxu0  ;;  %12128 = vrot.lane.b32.xlu1 %v12044_v36, %s15603_s30  ;;  %v22891_v36 = vld [vmem:[#allocation191_spill] sm:$0xff]  ;;  %v22892_v11 = vld [vmem:[#allocation165_spill] sm:$0xff] }
0x10fd   : > { %12130 = vrot.lane.b32.xlu0 %v12045_v57, %s15603_s30 }
0x10ff   : > { %12132 = vrot.lane.b32.xlu1 %v12046_v29, %s15603_s30 }
0x1100   : > { %v11876_v5 = vpop.f32.mrb[24].mxu0  ;;  %v12017_v49 = vpop.f32.mrb[124].mxu1 }
0x1101   : > { %v12048_v24 = vmul.f32 %v15292_v21, %v11876_v5  ;;  %12134 = vrot.lane.b32.xlu0 %v21487_v47, %s15603_s30  ;;  %v14261_v28 = vpop.f32.mrb[25].mxu0  ;;  %v14279_v35 = vpop.f32.mrb[125].mxu1  ;;  %v22893_v21 = vld [vmem:[#allocation193_spill] sm:$0xff] }
0x1102   : > { %v11879_v9 = vpop.f32.mrb[26].mxu0  ;;  %v12020_v59 = vpop.f32.mrb[126].mxu1 }
0x1103   : > { %v21541_v30 = vmul.f32 %v15294_v20, %v12020_v59  ;;  %v14262_v22 = vpop.f32.mrb[27].mxu0  ;;  %v14280_v31 = vpop.f32.mrb[127].mxu1  ;;  %12136 = vrot.lane.b32.xlu1 %v12048_v24, %s15603_s30  ;;  %v22894_v24 = vld [vmem:[#allocation206_spill] sm:$0xff] }
0x1104   : > { %v22895_v59 = vld [vmem:[#allocation194_spill] sm:$0xff] }
0x1107   : > { %12140 = vrot.lane.b32.xlu1 %v12050_v15, %s15603_s30 }
0x110a   : > { %v11970_v1 = vpop.f32.mrb[28].mxu0  ;;  %v11214_v4 = vpop.xlane.xlu0 %11213 }
0x110b   : > { %15297 = vrcp.f32 %v11214_v4  ;;  %v14273_v47 = vpop.f32.mrb[29].mxu0 }
0x110c   : > { %v11973_v53 = vpop.f32.mrb[30].mxu0  ;;  %15299 = vrcp.f32 %v21519_v13  ;;  %v22898_v47 = vld [vmem:[#allocation90_spill] sm:$0xff] }
0x110d   : > { %v14274_v25 = vpop.f32.mrb[31].mxu0 }
0x110e   : > { %v12095_v26 = vpop.permute.xlu0 %12094  ;;  %v22899_v25 = vld [vmem:[#allocation87_spill] sm:$0xff] }
0x110f   : > { %v12187_v57 = vmul.f32 %v22892_v11, %v12095_v26 }
0x1112   : > { %v12099_v14 = vpop.permute.xlu0 %12098 }
0x1113   : > { %v12189_v38 = vmul.f32 %v22838_v45, %v12099_v14  ;;  %v22903_v14 = vld [vmem:[#allocation106_spill] sm:$0xff] }
0x1115   : > { %v15298_v8 = vpop.eup %15297 }
0x1116   : > { %v12052_v41 = vmul.f32 %v15298_v8, %v11970_v1  ;;  %v15300_v50 = vpop.eup %15299  ;;  %v12103_v17 = vpop.permute.xlu0 %12102 }
0x1117   : > { %v12054_v52 = vmul.f32 %v15300_v50, %v12017_v49  ;;  %v12191_v28 = vmul.f32 %v22894_v24, %v12103_v17 }
0x1118   : > { %12144 = vrot.lane.b32.xlu1 %v12052_v41, %s15603_s30 }
0x1119   : > { %v11205_v48 = vpop.xlane.xlu1 %11204 }
0x111a   : > { %15301 = vrcp.f32 %v11205_v48  ;;  %v12107_v23 = vpop.permute.xlu0 %12106  ;;  %v22900_v48 = vld [vmem:[#allocation100_spill] sm:$0xff] }
0x111b   : > { %v12193_v45 = vmul.f32 %v22840_v0, %v12107_v23 }
0x111c   : > { %12148 = vrot.lane.b32.xlu1 %v12054_v52, %s15603_s30  ;;  %v22901_v52 = vld [vmem:[#allocation98_spill] sm:$0xff] }
0x111d   : > { %v12093_v18 = vpop.permute.xlu1 %12092 }
0x111e   : > { %v12111_v27 = vpop.permute.xlu0 %12110  ;;  %v12186_v19 = vmul.f32 %v22891_v36, %v12093_v18 }
0x1120   : > { %12252 = vrot.lane.b32.xlu1 %v12216_v58, %s15605_s18  ;;  %v12217_v29 = vpack.c.bf16 %v12187_v57, %v12186_v19  ;;  %v22909_v57 = vld [vmem:[#allocation116_spill] sm:$0xff] }
0x1122   : > { %v12115_v10 = vpop.permute.xlu0 %12114 }
0x1124   : > { %v15302_v37 = vpop.eup %15301 }
0x1125   : > { %v12049_v13 = vmul.f32 %v15302_v37, %v11879_v9 }
0x1126   : > { %v12119_v60 = vpop.permute.xlu0 %12118 }
0x1127   : > { %12138 = vrot.lane.b32.xlu0 %v12049_v13, %s15603_s30  ;;  %v12199_v8 = vmul.f32 %v22899_v25, %v12119_v60  ;;  %v22902_v13 = vld [vmem:[#allocation109_spill] sm:$0xff] }
0x112b   : > { %12142 = vrot.lane.b32.xlu0 %v21514_v55, %s15603_s30 }
0x113c   : > { %v12123_v35 = vpop.permute.xlu0 %12122 }
0x113d   : > { %v12201_v1 = vmul.f32 %v22897_v33, %v12123_v35  ;;  %v22912_v35 = vld [vmem:[#allocation110_spill] sm:$0xff] }
0x1140   : > { %v12127_v4 = vpop.permute.xlu0 %12126 }
0x1141   : > { %v12203_v40 = vmul.f32 %v22900_v48, %v12127_v4 }
0x114e   : > { %v11217_v62 = vpop.xlane.xlu1 %11216 }
0x114f   : > { %15303 = vrcp.f32 %v11217_v62 }
0x1152   : > { %v12097_v56 = vpop.permute.xlu1 %12096 }
0x1153   : > { %v12188_v54 = vmul.f32 %v22839_v2, %v12097_v56 }
0x1155   : > { %v12218_v55 = vpack.c.bf16 %v12189_v38, %v12188_v54  ;;  %v22905_v38 = vld [vmem:[#allocation118_spill] sm:$0xff] }
0x1156   : > { %v12101_v51 = vpop.permute.xlu1 %12100 }
0x1157   : > { %12256 = vrot.lane.b32.xlu1 %v12218_v55, %s15605_s18  ;;  %v12190_v0 = vmul.f32 %v22893_v21, %v12101_v51 }
0x1159   : > { %v15304_v44 = vpop.eup %15303  ;;  %v12219_v9 = vpack.c.bf16 %v12191_v28, %v12190_v0  ;;  %v22910_v0 = vld [vmem:[#allocation125_spill] sm:$0xff] }
0x115a   : > { %v12105_v43 = vpop.permute.xlu1 %12104  ;;  %v12053_v32 = vmul.f32 %v15304_v44, %v11973_v53 }
0x115b   : > { %v12192_v2 = vmul.f32 %v22841_v6, %v12105_v43  ;;  %v12197_v6 = vmul.f32 %v22842_v7, %v12115_v10 }
0x115c   : > { %12146 = vrot.lane.b32.xlu0 %v12053_v32, %s15603_s30 }
0x115d   : > { %v12220_v42 = vpack.c.bf16 %v12193_v45, %v12192_v2  ;;  %v22906_v45 = vld [vmem:[#allocation140_spill] sm:$0xff]  ;;  %v22907_v2 = vld [vmem:[#allocation155_spill] sm:$0xff] }
0x115e   : > { %v12109_v16 = vpop.permute.xlu1 %12108 }
0x115f   : > { %12260 = vrot.lane.b32.xlu1 %v12220_v42, %s15605_s18  ;;  %v12194_v22 = vmul.f32 %v22895_v59, %v12109_v16  ;;  %v22908_v16 = vld [vmem:[#allocation170_spill] sm:$0xff] }
0x1160   : > { %12150 = vrot.lane.b32.xlu0 %v21541_v30, %s15603_s30  ;;  %v22896_v30 = vld [vmem:[#allocation167_spill] sm:$0xff] }
0x1161   : > { %v12195_v3 = vmul.f32 %v22896_v30, %v12111_v27 }
0x1162   : > { %v12113_v5 = vpop.permute.xlu1 %12112 }
0x1163   : > { %v12196_v49 = vmul.f32 %v22843_v34, %v12113_v5  ;;  %v12221_v15 = vpack.c.bf16 %v12195_v3, %v12194_v22 }
0x1164   : > { %12254 = vrot.lane.b32.xlu0 %v12217_v29, %s15605_s18 }
0x1165   : > { %v12222_v20 = vpack.c.bf16 %v12197_v6, %v12196_v49  ;;  %v22911_v6 = vld [vmem:[#allocation130_spill] sm:$0xff] }
0x1166   : > { %v12117_v31 = vpop.permute.xlu1 %12116 }
0x1167   : > { %12264 = vrot.lane.b32.xlu1 %v12222_v20, %s15605_s18  ;;  %v12198_v7 = vmul.f32 %v22605_v63, %v12117_v31 }
0x1168   : > { %12258 = vrot.lane.b32.xlu0 %v12219_v9, %s15605_s18  ;;  %v22913_v9 = vld [vmem:[#allocation142_spill] sm:$0xff] }
0x1169   : > { %v12223_v41 = vpack.c.bf16 %v12199_v8, %v12198_v7 }
0x116a   : > { %v12121_v34 = vpop.permute.xlu1 %12120 }
0x116b   : > { %v12200_v53 = vmul.f32 %v22898_v47, %v12121_v34 }
0x116c   : > { %12262 = vrot.lane.b32.xlu0 %v12221_v15, %s15605_s18 }
0x116d   : > { %v12224_v61 = vpack.c.bf16 %v12201_v1, %v12200_v53 }
0x116e   : > { %v12125_v50 = vpop.permute.xlu1 %12124 }
0x116f   : > { %v12202_v12 = vmul.f32 %v22901_v52, %v12125_v50  ;;  %12268 = vrot.lane.b32.xlu1 %v12224_v61, %s15605_s18  ;;  %v12131_v63 = vpop.permute.xlu0 %12130  ;;  %v21628_v50 = vld [vmem:[%s22914_s17] ss:$0 sm:$0xff] }
0x1170   : > { %12266 = vrot.lane.b32.xlu0 %v12223_v41, %s15605_s18  ;;  %v12205_v26 = vmul.f32 %v22902_v13, %v12131_v63 }
0x1171   : > { %v12225_v58 = vpack.c.bf16 %v12203_v40, %v12202_v12 }
0x1172   : > { %v12129_v37 = vpop.permute.xlu1 %12128 }
0x1173   : > { %v12204_v17 = vmul.f32 %v22903_v14, %v12129_v37  ;;  %v12135_v18 = vpop.permute.xlu0 %12134 }
0x1174   : > { %12270 = vrot.lane.b32.xlu0 %v12225_v58, %s15605_s18  ;;  %v12207_v56 = vmul.f32 %v22904_v39, %v12135_v18 }
0x1175   : > { %v12226_v62 = vpack.c.bf16 %v12205_v26, %v12204_v17 }
0x1176   : > { %v12133_v23 = vpop.permute.xlu1 %12132 }
0x1177   : > { %v12206_v54 = vmul.f32 %v22905_v38, %v12133_v23  ;;  %12272 = vrot.lane.b32.xlu1 %v12226_v62, %s15605_s18 }
0x1179   : > { %v12227_v27 = vpack.c.bf16 %v12207_v56, %v12206_v54 }
0x117a   : > { %v12137_v55 = vpop.permute.xlu1 %12136 }
0x117b   : > { %12274 = vrot.lane.b32.xlu0 %v12227_v27, %s15605_s18  ;;  %v12208_v10 = vmul.f32 %v22906_v45, %v12137_v55 }
0x117e   : > { %v12141_v46 = vpop.permute.xlu1 %12140 }
0x117f   : > { %v12210_v11 = vmul.f32 %v22908_v16, %v12141_v46 }
0x118a   : > { %v12145_v51 = vpop.permute.xlu1 %12144 }
0x118b   : > { %v12212_v5 = vmul.f32 %v22910_v0, %v12145_v51 }
0x118e   : > { %v12149_v44 = vpop.permute.xlu1 %12148 }
0x118f   : > { %v12214_v20 = vmul.f32 %v22912_v35, %v12149_v44 }
0x1192   : > { %v12253_v43 = vpop.permute.xlu1 %12252 }
0x1193   : > { %14285 = vmatprep.mubr.msk.bf16.mxu0 %vm2160_vm1, %v12253_v43 }
0x1199   : > { %v12139_v32 = vpop.permute.xlu0 %12138 }
0x119a   : > { %v12209_v42 = vmul.f32 %v22907_v2, %v12139_v32 }
0x119c   : > { %v12228_v36 = vpack.c.bf16 %v12209_v42, %v12208_v10 }
0x119d   : > { %v12143_v19 = vpop.permute.xlu0 %12142 }
0x119e   : > { %v12211_v60 = vmul.f32 %v22909_v57, %v12143_v19  ;;  %12276 = vrot.lane.b32.xlu1 %v12228_v36, %s15605_s18 }
0x11a0   : > { %v12229_v29 = vpack.c.bf16 %v12211_v60, %v12210_v11 }
0x11a2   : > { %12278 = vrot.lane.b32.xlu0 %v12229_v29, %s15605_s18 }
0x11c9   : > { %v12257_v30 = vpop.permute.xlu1 %12256 }
0x11ce   : > { %v12147_v21 = vpop.permute.xlu0 %12146 }
0x11cf   : > { %v12213_v49 = vmul.f32 %v22911_v6, %v12147_v21 }
0x11d1   : > { %v12230_v24 = vpack.c.bf16 %v12213_v49, %v12212_v5  ;;  %v12261_v15 = vpop.permute.xlu1 %12260 }
0x11d2   : > { %v12151_v28 = vpop.permute.xlu0 %12150 }
0x11d3   : > { %v12215_v59 = vmul.f32 %v22913_v9, %v12151_v28  ;;  %12280 = vrot.lane.b32.xlu1 %v12230_v24, %s15605_s18 }
0x11d5   : > { %v12231_v22 = vpack.c.bf16 %v12215_v59, %v12214_v20 }
0x11d6   : > { %v12255_v31 = vpop.permute.xlu0 %12254 }
0x11d7   : > { %12282 = vrot.lane.b32.xlu0 %v12231_v22, %s15605_s18  ;;  %14286 = vmatmul.mubr.msk.bf16.vlgmr.msra.gmra.mrb[176].mxu0 %vm2160_vm1, %v12255_v31 }
0x11d8   : > { %14289 = vmatprep.mubr.msk.bf16.mxu0 %vm2160_vm1, %v12257_v30 }
0x11d9   : > { %v12265_v34 = vpop.permute.xlu1 %12264 }
0x11da   : > { %v12259_v3 = vpop.permute.xlu0 %12258 }
0x11de   : > { %v12263_v7 = vpop.permute.xlu0 %12262 }
0x11df   : > { %14290 = vmatmul.mubr.msk.bf16.gmra.mrb[180].mxu0 %vm2160_vm1, %v12259_v3 }
0x11e0   : > { %14293 = vmatprep.mubr.msk.bf16.mxu0 %vm2160_vm1, %v12261_v15 }
0x11e1   : > { %v12269_v1 = vpop.permute.xlu1 %12268 }
0x11e2   : > { %v12267_v33 = vpop.permute.xlu0 %12266 }
0x11e6   : > { %v12271_v4 = vpop.permute.xlu0 %12270 }
0x11e7   : > { %14294 = vmatmul.mubr.msk.bf16.gmra.mrb[184].mxu0 %vm2160_vm1, %v12263_v7 }
0x11e8   : > { %14297 = vmatprep.mubr.msk.bf16.mxu0 %vm2160_vm1, %v12265_v34 }
0x11e9   : > { %v12273_v47 = vpop.permute.xlu1 %12272 }
0x11ed   : > { %v12275_v53 = vpop.permute.xlu0 %12274 }
0x11ef   : > { %14298 = vmatmul.mubr.msk.bf16.gmra.mrb[188].mxu0 %vm2160_vm1, %v12267_v33 }
0x11f0   : > { %14301 = vmatprep.mubr.msk.bf16.mxu0 %vm2160_vm1, %v12269_v1 }
0x11f7   : > { %14302 = vmatmul.mubr.msk.bf16.gmra.mrb[192].mxu0 %vm2160_vm1, %v12271_v4 }
0x11f8   : > { %14305 = vmatprep.mubr.msk.bf16.mxu0 %vm2160_vm1, %v12273_v47 }
0x11ff   : > { %14306 = vmatmul.mubr.msk.bf16.gmra.mrb[196].mxu0 %vm2160_vm1, %v12275_v53 }
0x1210   : > { %v12277_v25 = vpop.permute.xlu1 %12276 }
0x1211   : > { %14309 = vmatprep.mubr.msk.bf16.mxu0 %vm2160_vm1, %v12277_v25 }
0x1214   : > { %v12279_v8 = vpop.permute.xlu0 %12278 }
0x1215   : > { %14310 = vmatmul.mubr.msk.bf16.gmra.mrb[200].mxu0 %vm2160_vm1, %v12279_v8 }
0x1245   : > { %v12281_v61 = vpop.permute.xlu1 %12280 }
0x1246   : > { %14313 = vmatprep.mubr.msk.bf16.mxu0 %vm2160_vm1, %v12281_v61 }
0x1249   : > { %v12283_v41 = vpop.permute.xlu0 %12282 }
0x124a   : > { %14314 = vmatmul.mubr.msk.bf16.gmra.mrb[204].mxu0 %vm2160_vm1, %v12283_v41 }
0x12aa   : > { %v14287_v48 = vpop.f32.mrb[176].mxu0 }
0x12ab   : > { %v12546_v40 = vadd.f32 %v14287_v48, %v21628_v50  ;;  %v12378_v52 = vpop.f32.mrb[177].mxu0 }
0x12ac   : > { %v12544_v12 = vadd.f32 %v21628_v50, %v12378_v52  ;;  %v14288_v63 = vpop.f32.mrb[178].mxu0 }
0x12ad   : > { %12578 = vst [vmem:[%s21634_s0 + $0x10] sm:$0xff] %v12546_v40  ;;  %v12547_v58 = vadd.f32 %v14288_v63, %v21628_v50  ;;  %v12381_v37 = vpop.f32.mrb[179].mxu0 }
0x12ae   : > { %12576 = vst [vmem:[%s21634_s0] sm:$0xff] %v12544_v12  ;;  %v12545_v13 = vadd.f32 %v21628_v50, %v12381_v37 }
0x12af   : > { %12579 = vst [vmem:[%s21634_s0 + $0x18] sm:$0xff] %v12547_v58 }
0x12b0   : > { %12577 = vst [vmem:[%s21634_s0 + $0x8] sm:$0xff] %v12545_v13 }
0x12b2   : > { %v14291_v26 = vpop.f32.mrb[180].mxu0 }
0x12b3   : > { %v12550_v14 = vadd.f32 %v14291_v26, %v21628_v50  ;;  %v12394_v17 = vpop.f32.mrb[181].mxu0 }
0x12b4   : > { %v12548_v18 = vadd.f32 %v21628_v50, %v12394_v17  ;;  %v14292_v62 = vpop.f32.mrb[182].mxu0 }
0x12b5   : > { %12582 = vst [vmem:[%s21634_s0 + $0x30] sm:$0xff] %v12550_v14  ;;  %v12551_v23 = vadd.f32 %v14292_v62, %v21628_v50  ;;  %v12397_v39 = vpop.f32.mrb[183].mxu0 }
0x12b6   : > { %12580 = vst [vmem:[%s21634_s0 + $0x20] sm:$0xff] %v12548_v18  ;;  %v12549_v56 = vadd.f32 %v21628_v50, %v12397_v39 }
0x12b7   : > { %12583 = vst [vmem:[%s21634_s0 + $0x38] sm:$0xff] %v12551_v23 }
0x12b8   : > { %12581 = vst [vmem:[%s21634_s0 + $0x28] sm:$0xff] %v12549_v56 }
0x12ba   : > { %v14295_v38 = vpop.f32.mrb[184].mxu0 }
0x12bb   : > { %v12554_v54 = vadd.f32 %v14295_v38, %v21628_v50  ;;  %v12410_v27 = vpop.f32.mrb[185].mxu0 }
0x12bc   : > { %v12552_v55 = vadd.f32 %v21628_v50, %v12410_v27  ;;  %v14296_v46 = vpop.f32.mrb[186].mxu0 }
0x12bd   : > { %12586 = vst [vmem:[%s21634_s0 + $0x50] sm:$0xff] %v12554_v54  ;;  %v12555_v51 = vadd.f32 %v14296_v46, %v21628_v50  ;;  %v12413_v44 = vpop.f32.mrb[187].mxu0 }
0x12be   : > { %12584 = vst [vmem:[%s21634_s0 + $0x40] sm:$0xff] %v12552_v55  ;;  %v12553_v43 = vadd.f32 %v21628_v50, %v12413_v44 }
0x12bf   : > { %12587 = vst [vmem:[%s21634_s0 + $0x58] sm:$0xff] %v12555_v51 }
0x12c0   : > { %12585 = vst [vmem:[%s21634_s0 + $0x48] sm:$0xff] %v12553_v43 }
0x12c2   : > { %v14299_v32 = vpop.f32.mrb[188].mxu0 }
0x12c3   : > { %v12558_v45 = vadd.f32 %v14299_v32, %v21628_v50  ;;  %v12426_v10 = vpop.f32.mrb[189].mxu0 }
0x12c4   : > { %v12556_v2 = vadd.f32 %v21628_v50, %v12426_v10  ;;  %v14300_v42 = vpop.f32.mrb[190].mxu0 }
0x12c5   : > { %12590 = vst [vmem:[%s21634_s0 + $0x70] sm:$0xff] %v12558_v45  ;;  %v12559_v36 = vadd.f32 %v14300_v42, %v21628_v50  ;;  %v12429_v19 = vpop.f32.mrb[191].mxu0 }
0x12c6   : > { %12588 = vst [vmem:[%s21634_s0 + $0x60] sm:$0xff] %v12556_v2  ;;  %v12557_v16 = vadd.f32 %v21628_v50, %v12429_v19 }
0x12c7   : > { %12591 = vst [vmem:[%s21634_s0 + $0x78] sm:$0xff] %v12559_v36 }
0x12c8   : > { %12589 = vst [vmem:[%s21634_s0 + $0x68] sm:$0xff] %v12557_v16 }
0x12ca   : > { %v14303_v11 = vpop.f32.mrb[192].mxu0 }
0x12cb   : > { %v12562_v57 = vadd.f32 %v14303_v11, %v21628_v50  ;;  %v12442_v60 = vpop.f32.mrb[193].mxu0 }
0x12cc   : > { %v12560_v29 = vadd.f32 %v21628_v50, %v12442_v60  ;;  %v14304_v21 = vpop.f32.mrb[194].mxu0 }
0x12cd   : > { %12594 = vst [vmem:[%s21634_s0 + $0x90] sm:$0xff] %v12562_v57  ;;  %v12563_v0 = vadd.f32 %v14304_v21, %v21628_v50  ;;  %v12445_v5 = vpop.f32.mrb[195].mxu0 }
0x12ce   : > { %12592 = vst [vmem:[%s21634_s0 + $0x80] sm:$0xff] %v12560_v29  ;;  %v12561_v6 = vadd.f32 %v21628_v50, %v12445_v5 }
0x12cf   : > { %12595 = vst [vmem:[%s21634_s0 + $0x98] sm:$0xff] %v12563_v0 }
0x12d0   : > { %12593 = vst [vmem:[%s21634_s0 + $0x88] sm:$0xff] %v12561_v6 }
0x12d2   : > { %v14307_v49 = vpop.f32.mrb[196].mxu0 }
0x12d3   : > { %v12566_v24 = vadd.f32 %v14307_v49, %v21628_v50  ;;  %v12458_v28 = vpop.f32.mrb[197].mxu0 }
0x12d4   : > { %v12564_v35 = vadd.f32 %v21628_v50, %v12458_v28  ;;  %v14308_v20 = vpop.f32.mrb[198].mxu0 }
0x12d5   : > { %12598 = vst [vmem:[%s21634_s0 + $0xb0] sm:$0xff] %v12566_v24  ;;  %v12567_v9 = vadd.f32 %v14308_v20, %v21628_v50  ;;  %v12461_v59 = vpop.f32.mrb[199].mxu0 }
0x12d6   : > { %12596 = vst [vmem:[%s21634_s0 + $0xa0] sm:$0xff] %v12564_v35  ;;  %v12565_v22 = vadd.f32 %v21628_v50, %v12461_v59 }
0x12d7   : > { %12599 = vst [vmem:[%s21634_s0 + $0xb8] sm:$0xff] %v12567_v9 }
0x12d8   : > { %12597 = vst [vmem:[%s21634_s0 + $0xa8] sm:$0xff] %v12565_v22 }
0x12e8   : > { %v14311_v31 = vpop.f32.mrb[200].mxu0 }
0x12e9   : > { %v12570_v30 = vadd.f32 %v14311_v31, %v21628_v50  ;;  %v12474_v3 = vpop.f32.mrb[201].mxu0 }
0x12ea   : > { %v12568_v15 = vadd.f32 %v21628_v50, %v12474_v3  ;;  %v14312_v7 = vpop.f32.mrb[202].mxu0 }
0x12eb   : > { %12602 = vst [vmem:[%s21634_s0 + $0xd0] sm:$0xff] %v12570_v30  ;;  %v12571_v34 = vadd.f32 %v14312_v7, %v21628_v50  ;;  %v12477_v33 = vpop.f32.mrb[203].mxu0 }
0x12ec   : > { %12600 = vst [vmem:[%s21634_s0 + $0xc0] sm:$0xff] %v12568_v15  ;;  %v12569_v1 = vadd.f32 %v21628_v50, %v12477_v33 }
0x12ed   : > { %12603 = vst [vmem:[%s21634_s0 + $0xd8] sm:$0xff] %v12571_v34 }
0x12ee   : > { %12601 = vst [vmem:[%s21634_s0 + $0xc8] sm:$0xff] %v12569_v1 }
0x131d   : > { %v14315_v4 = vpop.f32.mrb[204].mxu0 }
0x131e   : > { %v12574_v47 = vadd.f32 %v14315_v4, %v21628_v50  ;;  %v12490_v53 = vpop.f32.mrb[205].mxu0 }
0x131f   : > { %v12572_v25 = vadd.f32 %v21628_v50, %v12490_v53  ;;  %v14316_v8 = vpop.f32.mrb[206].mxu0 }
0x1320   : > { %12606 = vst [vmem:[%s21634_s0 + $0xf0] sm:$0xff] %v12574_v47  ;;  %v12575_v61 = vadd.f32 %v14316_v8, %v21628_v50  ;;  %v12493_v41 = vpop.f32.mrb[207].mxu0 }
0x1321   : > { %12604 = vst [vmem:[%s21634_s0 + $0xe0] sm:$0xff] %v12572_v25  ;;  %v12573_v48 = vadd.f32 %v21628_v50, %v12493_v41 }
0x1322   : > { %12607 = vst [vmem:[%s21634_s0 + $0xf8] sm:$0xff] %v12575_v61 }
0x1323   : > { %12605 = vst [vmem:[%s21634_s0 + $0xe8] sm:$0xff] %v12573_v48 }
0x1324   : > { %15518 = shalt.err (!%p15515_p12)
}
0x1325   : > { %s15519_s28 = scalar_lea.hbm %s21699_s23, 4096  ;;  %s15523_s18 = scalar_lea.hbm %s22915_s26, 8192 }
0x1326   : > { %p15520_p0 = scmp.ne.s32.totalorder %s21699_s23, %s15519_s28  ;;  %p15524_p1 = scmp.lt.u32.totalorder %s21699_s23, %s22915_s26 }
0x1327   : > { %p15525_p3 = scmp.lt.u32.totalorder %s15523_s18, %s15519_s28  ;;  %p15527_p2 = scmp.lt.u32.totalorder %s15519_s28, %s21699_s23 }
0x1328   : > { %p15521_p4 = pnand %p15520_p0, %p22916_p6 }
0x1329   : > { %p15526_p7 = por %p15525_p3, %p15524_p1 }
0x132a   : > { %p15522_p13 = pneg %p15521_p4 }
0x132b   : > { %p15528_p11 = por %p15527_p2, %p15526_p7 }
0x132d   : > { %p15529_p5 = pnand %p15528_p11, %p15522_p13 }
0x132f   : > { %15532 = shalt.err (!%p15529_p5)
}
0x1330   : > { %s15607_s20 = smov 128   ;;  %s15608_s27 = smov 8  }
0x1331   : > { %14453 = dma.vmem_to_hbm [thread:$0]  (%p22916_p6), %s21701_s12, 4096, %s21699_s23, %s12609_s19, %s15607_s20, %s15607_s20, %s15608_s27  }
0x1332 PF: > { %s12637_s21 = sand.u32 1, %s15575_s13   ;;  %p22917_p9 = scmp.ne.s32.totalorder %s22029_s10, 0 }
0x1333   : > { %p22918_p10 = scmp.ge.s32.totalorder %s15587_s16, 2  ;;  %s12638_s11 = scalar_lea.sflag [#allocation4], %s12637_s21 }
0x1335   : > { %p14479_p8 = pnand %p22918_p10, %p22917_p9 }
0x1337   : > { %15570 = dma.done.wait (!%p14479_p8), %s12638_s11, 4096  }
0x1338   : > { %15572 = vsyncadd (!%p14479_p8), %s12638_s11, 4294963200  ;;  %p28_p12 = scmp.ge.s32.totalorder %s15824_s25, 4   ;;  %s22919_s13 = smov %s15579_s14 }
0x1339   : > { %s22920_s14 = smov %s15583_s15  ;;  %s22921_s15 = smov %s15836_s3 }
0x133a   : > { %s22922_s16 = smov %s15824_s25  ;;  %30 = sbr.rel (!%p28_p12) target bundleno = 16 (0x10), region = 141 }
0x1341   :  { %12643 = vsyncpa [#allocation3], 1 }
0x1342   :  { %12645 = vsyncpa [#allocation3 + $0x1], 1 }
0x1343   :  { %12646 = vsyncpa [#allocation6], 1 }
0x1344   :  { %12648 = vsyncpa [#allocation6 + $0x1], 1 }
0x1345   :  { %12649 = vsyncpa [#allocation9], 1 }
0x1346   :  { %12650 = vsyncpa [#allocation12], 1 }
0x1347   :  { %12651 = vsyncpa [#allocation4], 1 }
0x1348   :  { %12653 = vsyncpa [#allocation4 + $0x1], 1 }

</bundles_post_ra>
